<compile_context>
chip_gen: v7x
topology: tpu7x:2x2x1
jax: 0.10.0
libtpu: 0.0.40
codegen_flags: <defaults>
</compile_context>

<pallas_src>
import jax
import jax.numpy as jnp
from jax.experimental import pallas as pl
from jax.experimental.pallas import tpu as pltpu


def upsample3_kernel(x_ref, w_ref, b_ref, o_ref):
    # x_ref: (1, Cin, H+4, W+4)   input image with a 2-pixel zero halo (VMEM)
    # w_ref: (Cout*Cin*9,)        flattened conv weights (SMEM scalars)
    # b_ref: (Cout,)              bias (SMEM scalars)
    # o_ref: (1, Cout, Hout, Wout) full conv output for this image (VMEM)
    _, Cin, Hp, Wp = x_ref.shape
    _, Cout, Hout, Wout = o_ref.shape
    Hwin, Wwin = Hp - 2, Wp - 2          # (H+2, W+2): only these pixels see data
    off = (Hout - Hwin) // 2             # = padding - 2 = 31

    # Window convolution: 9*Cin shifted windows, each loaded once and reused
    # across all Cout outputs as scalar-broadcast FMAs on the VPU.
    accs = [jnp.full((Hwin, Wwin), b_ref[co], jnp.float32) for co in range(Cout)]
    for ci in range(Cin):
        for kh in range(3):
            for kw in range(3):
                xwin = x_ref[0, ci, kh:kh + Hwin, kw:kw + Wwin].astype(jnp.float32)
                for co in range(Cout):
                    w = w_ref[((co * Cin + ci) * 3 + kh) * 3 + kw]
                    accs[co] = accs[co] + w * xwin

    # Every output pixel outside the window is exactly bias (its 3x3 receptive
    # field is all zero padding): write bias planes, then the interior window.
    for co in range(Cout):
        o_ref[0, co, :, :] = jnp.full((Hout, Wout), b_ref[co],
                                      jnp.float32).astype(o_ref.dtype)
        o_ref[0, co, off:off + Hwin, off:off + Wwin] = accs[co].astype(o_ref.dtype)


def upsample3_forward(x_nchw, weight, bias, *, pad=33):
    """x_nchw: (N, Cin, H, W); weight: (Cout, Cin, 3, 3); bias: (Cout,)."""
    N, Cin, H, W = x_nchw.shape
    Cout = weight.shape[0]
    Hout, Wout = H + 2 * pad - 2, W + 2 * pad - 2

    # Tiny 2-pixel halo (NOT the 33-pixel zero sea): conv(x, padding=2) is exactly
    # the non-trivial (H+2)x(W+2) window of the padding=33 convolution.
    x_halo = jnp.pad(x_nchw, ((0, 0), (0, 0), (2, 2), (2, 2)))
    Hp, Wp = H + 4, W + 4

    w_flat = weight.astype(jnp.float32).reshape(Cout * Cin * 9)
    b_flat = bias.astype(jnp.float32)

    return pl.pallas_call(
        upsample3_kernel,
        out_shape=jax.ShapeDtypeStruct((N, Cout, Hout, Wout), x_nchw.dtype),
        grid=(N,),
        in_specs=[
            pl.BlockSpec((1, Cin, Hp, Wp), lambda n: (n, 0, 0, 0)),
            pl.BlockSpec(memory_space=pltpu.MemorySpace.SMEM),
            pl.BlockSpec(memory_space=pltpu.MemorySpace.SMEM),
        ],
        out_specs=pl.BlockSpec((1, Cout, Hout, Wout), lambda n: (n, 0, 0, 0)),
        compiler_params=pltpu.CompilerParams(
            dimension_semantics=("parallel",)),
    )(x_halo, w_flat, b_flat)


def reference_conv(x_nchw, weight, bias, *, pad=33):
    out = jax.lax.conv_general_dilated(
        x_nchw, weight, window_strides=(1, 1),
        padding=((pad, pad), (pad, pad)),
        dimension_numbers=("NCHW", "OIHW", "NCHW"))
    return out + bias.reshape(1, -1, 1, 1)


if __name__ == "__main__":
    key = jax.random.PRNGKey(0)
    k_x, k_w, k_b = jax.random.split(key, 3)

    N, Cin, H, W = 2, 4, 16, 16
    Cout = 8

    x = jax.random.normal(k_x, (N, Cin, H, W), jnp.float32)
    weight = jax.random.normal(k_w, (Cout, Cin, 3, 3), jnp.float32) * 0.1
    bias = jax.random.normal(k_b, (Cout,), jnp.float32) * 0.1

    out = jax.block_until_ready(upsample3_forward(x, weight, bias))

    expected_shape = (N, Cout, H + 2 * 33 - 2, W + 2 * 33 - 2)  # (2, 8, 80, 80)
    assert out.shape == expected_shape, (out.shape, expected_shape)

    ref = jax.block_until_ready(reference_conv(x, weight, bias))
    assert jnp.allclose(out, ref, rtol=1e-4, atol=1e-4), \
        float(jnp.max(jnp.abs(out - ref)))

    print("KERNEL_OK")
</pallas_src>

<mosaic_0001>
module attributes {stable_mosaic.version = 11 : i64} {
  func.func @upsample3_kernel(%arg0: i32, %arg1: memref<1x4x20x20xf32, #tpu.memory_space<vmem>>, %arg2: memref<288xf32, #tpu.memory_space<smem>>, %arg3: memref<8xf32, #tpu.memory_space<smem>>, %arg4: memref<1x8x80x80xf32, #tpu.memory_space<vmem>>) attributes {dimension_semantics = [#tpu.dimension_semantics<parallel>], iteration_bounds = array<i64: 2>, scalar_prefetch = 0 : i64, scratch_operands = 0 : i64, tpu.core_type = #tpu.core_type<tc>, window_params = [{transform_indices = @transform_0, window_bounds = array<i64: 1, 4, 20, 20>}, {transform_indices = @transform_1, window_bounds = array<i64: 288>}, {transform_indices = @transform_2, window_bounds = array<i64: 8>}, {transform_indices = @transform_3, window_bounds = array<i64: 1, 8, 80, 80>}]} {
    %c0 = arith.constant 0 : index
    %0 = memref.load %arg3[%c0] : memref<8xf32, #tpu.memory_space<smem>>
    %1 = vector.broadcast %0 : f32 to vector<18x18xf32>
    %c1 = arith.constant 1 : index
    %2 = memref.load %arg3[%c1] : memref<8xf32, #tpu.memory_space<smem>>
    %3 = vector.broadcast %2 : f32 to vector<18x18xf32>
    %c2 = arith.constant 2 : index
    %4 = memref.load %arg3[%c2] : memref<8xf32, #tpu.memory_space<smem>>
    %5 = vector.broadcast %4 : f32 to vector<18x18xf32>
    %c3 = arith.constant 3 : index
    %6 = memref.load %arg3[%c3] : memref<8xf32, #tpu.memory_space<smem>>
    %7 = vector.broadcast %6 : f32 to vector<18x18xf32>
    %c4 = arith.constant 4 : index
    %8 = memref.load %arg3[%c4] : memref<8xf32, #tpu.memory_space<smem>>
    %9 = vector.broadcast %8 : f32 to vector<18x18xf32>
    %c5 = arith.constant 5 : index
    %10 = memref.load %arg3[%c5] : memref<8xf32, #tpu.memory_space<smem>>
    %11 = vector.broadcast %10 : f32 to vector<18x18xf32>
    %c6 = arith.constant 6 : index
    %12 = memref.load %arg3[%c6] : memref<8xf32, #tpu.memory_space<smem>>
    %13 = vector.broadcast %12 : f32 to vector<18x18xf32>
    %c7 = arith.constant 7 : index
    %14 = memref.load %arg3[%c7] : memref<8xf32, #tpu.memory_space<smem>>
    %15 = vector.broadcast %14 : f32 to vector<18x18xf32>
    %c0_0 = arith.constant 0 : index
    %c0_1 = arith.constant 0 : index
    %c0_2 = arith.constant 0 : index
    %c0_3 = arith.constant 0 : index
    %16 = vector.load %arg1[%c0_0, %c0_1, %c0_2, %c0_3] : memref<1x4x20x20xf32, #tpu.memory_space<vmem>>, vector<1x1x18x18xf32>
    %17 = vector.shape_cast %16 : vector<1x1x18x18xf32> to vector<18x18xf32>
    %c0_4 = arith.constant 0 : index
    %18 = memref.load %arg2[%c0_4] : memref<288xf32, #tpu.memory_space<smem>>
    %19 = vector.broadcast %18 : f32 to vector<18x18xf32>
    %20 = arith.mulf %19, %17 : vector<18x18xf32>
    %21 = arith.addf %1, %20 : vector<18x18xf32>
    %c36 = arith.constant 36 : index
    %22 = memref.load %arg2[%c36] : memref<288xf32, #tpu.memory_space<smem>>
    %23 = vector.broadcast %22 : f32 to vector<18x18xf32>
    %24 = arith.mulf %23, %17 : vector<18x18xf32>
    %25 = arith.addf %3, %24 : vector<18x18xf32>
    %c72 = arith.constant 72 : index
    %26 = memref.load %arg2[%c72] : memref<288xf32, #tpu.memory_space<smem>>
    %27 = vector.broadcast %26 : f32 to vector<18x18xf32>
    %28 = arith.mulf %27, %17 : vector<18x18xf32>
    %29 = arith.addf %5, %28 : vector<18x18xf32>
    %c108 = arith.constant 108 : index
    %30 = memref.load %arg2[%c108] : memref<288xf32, #tpu.memory_space<smem>>
    %31 = vector.broadcast %30 : f32 to vector<18x18xf32>
    %32 = arith.mulf %31, %17 : vector<18x18xf32>
    %33 = arith.addf %7, %32 : vector<18x18xf32>
    %c144 = arith.constant 144 : index
    %34 = memref.load %arg2[%c144] : memref<288xf32, #tpu.memory_space<smem>>
    %35 = vector.broadcast %34 : f32 to vector<18x18xf32>
    %36 = arith.mulf %35, %17 : vector<18x18xf32>
    %37 = arith.addf %9, %36 : vector<18x18xf32>
    %c180 = arith.constant 180 : index
    %38 = memref.load %arg2[%c180] : memref<288xf32, #tpu.memory_space<smem>>
    %39 = vector.broadcast %38 : f32 to vector<18x18xf32>
    %40 = arith.mulf %39, %17 : vector<18x18xf32>
    %41 = arith.addf %11, %40 : vector<18x18xf32>
    %c216 = arith.constant 216 : index
    %42 = memref.load %arg2[%c216] : memref<288xf32, #tpu.memory_space<smem>>
    %43 = vector.broadcast %42 : f32 to vector<18x18xf32>
    %44 = arith.mulf %43, %17 : vector<18x18xf32>
    %45 = arith.addf %13, %44 : vector<18x18xf32>
    %c252 = arith.constant 252 : index
    %46 = memref.load %arg2[%c252] : memref<288xf32, #tpu.memory_space<smem>>
    %47 = vector.broadcast %46 : f32 to vector<18x18xf32>
    %48 = arith.mulf %47, %17 : vector<18x18xf32>
    %49 = arith.addf %15, %48 : vector<18x18xf32>
    %c0_5 = arith.constant 0 : index
    %c0_6 = arith.constant 0 : index
    %c0_7 = arith.constant 0 : index
    %c1_8 = arith.constant 1 : index
    %50 = vector.load %arg1[%c0_5, %c0_6, %c0_7, %c1_8] : memref<1x4x20x20xf32, #tpu.memory_space<vmem>>, vector<1x1x18x18xf32>
    %51 = vector.shape_cast %50 : vector<1x1x18x18xf32> to vector<18x18xf32>
    %c1_9 = arith.constant 1 : index
    %52 = memref.load %arg2[%c1_9] : memref<288xf32, #tpu.memory_space<smem>>
    %53 = vector.broadcast %52 : f32 to vector<18x18xf32>
    %54 = arith.mulf %53, %51 : vector<18x18xf32>
    %55 = arith.addf %21, %54 : vector<18x18xf32>
    %c37 = arith.constant 37 : index
    %56 = memref.load %arg2[%c37] : memref<288xf32, #tpu.memory_space<smem>>
    %57 = vector.broadcast %56 : f32 to vector<18x18xf32>
    %58 = arith.mulf %57, %51 : vector<18x18xf32>
    %59 = arith.addf %25, %58 : vector<18x18xf32>
    %c73 = arith.constant 73 : index
    %60 = memref.load %arg2[%c73] : memref<288xf32, #tpu.memory_space<smem>>
    %61 = vector.broadcast %60 : f32 to vector<18x18xf32>
    %62 = arith.mulf %61, %51 : vector<18x18xf32>
    %63 = arith.addf %29, %62 : vector<18x18xf32>
    %c109 = arith.constant 109 : index
    %64 = memref.load %arg2[%c109] : memref<288xf32, #tpu.memory_space<smem>>
    %65 = vector.broadcast %64 : f32 to vector<18x18xf32>
    %66 = arith.mulf %65, %51 : vector<18x18xf32>
    %67 = arith.addf %33, %66 : vector<18x18xf32>
    %c145 = arith.constant 145 : index
    %68 = memref.load %arg2[%c145] : memref<288xf32, #tpu.memory_space<smem>>
    %69 = vector.broadcast %68 : f32 to vector<18x18xf32>
    %70 = arith.mulf %69, %51 : vector<18x18xf32>
    %71 = arith.addf %37, %70 : vector<18x18xf32>
    %c181 = arith.constant 181 : index
    %72 = memref.load %arg2[%c181] : memref<288xf32, #tpu.memory_space<smem>>
    %73 = vector.broadcast %72 : f32 to vector<18x18xf32>
    %74 = arith.mulf %73, %51 : vector<18x18xf32>
    %75 = arith.addf %41, %74 : vector<18x18xf32>
    %c217 = arith.constant 217 : index
    %76 = memref.load %arg2[%c217] : memref<288xf32, #tpu.memory_space<smem>>
    %77 = vector.broadcast %76 : f32 to vector<18x18xf32>
    %78 = arith.mulf %77, %51 : vector<18x18xf32>
    %79 = arith.addf %45, %78 : vector<18x18xf32>
    %c253 = arith.constant 253 : index
    %80 = memref.load %arg2[%c253] : memref<288xf32, #tpu.memory_space<smem>>
    %81 = vector.broadcast %80 : f32 to vector<18x18xf32>
    %82 = arith.mulf %81, %51 : vector<18x18xf32>
    %83 = arith.addf %49, %82 : vector<18x18xf32>
    %c0_10 = arith.constant 0 : index
    %c0_11 = arith.constant 0 : index
    %c0_12 = arith.constant 0 : index
    %c2_13 = arith.constant 2 : index
    %84 = vector.load %arg1[%c0_10, %c0_11, %c0_12, %c2_13] : memref<1x4x20x20xf32, #tpu.memory_space<vmem>>, vector<1x1x18x18xf32>
    %85 = vector.shape_cast %84 : vector<1x1x18x18xf32> to vector<18x18xf32>
    %c2_14 = arith.constant 2 : index
    %86 = memref.load %arg2[%c2_14] : memref<288xf32, #tpu.memory_space<smem>>
    %87 = vector.broadcast %86 : f32 to vector<18x18xf32>
    %88 = arith.mulf %87, %85 : vector<18x18xf32>
    %89 = arith.addf %55, %88 : vector<18x18xf32>
    %c38 = arith.constant 38 : index
    %90 = memref.load %arg2[%c38] : memref<288xf32, #tpu.memory_space<smem>>
    %91 = vector.broadcast %90 : f32 to vector<18x18xf32>
    %92 = arith.mulf %91, %85 : vector<18x18xf32>
    %93 = arith.addf %59, %92 : vector<18x18xf32>
    %c74 = arith.constant 74 : index
    %94 = memref.load %arg2[%c74] : memref<288xf32, #tpu.memory_space<smem>>
    %95 = vector.broadcast %94 : f32 to vector<18x18xf32>
    %96 = arith.mulf %95, %85 : vector<18x18xf32>
    %97 = arith.addf %63, %96 : vector<18x18xf32>
    %c110 = arith.constant 110 : index
    %98 = memref.load %arg2[%c110] : memref<288xf32, #tpu.memory_space<smem>>
    %99 = vector.broadcast %98 : f32 to vector<18x18xf32>
    %100 = arith.mulf %99, %85 : vector<18x18xf32>
    %101 = arith.addf %67, %100 : vector<18x18xf32>
    %c146 = arith.constant 146 : index
    %102 = memref.load %arg2[%c146] : memref<288xf32, #tpu.memory_space<smem>>
    %103 = vector.broadcast %102 : f32 to vector<18x18xf32>
    %104 = arith.mulf %103, %85 : vector<18x18xf32>
    %105 = arith.addf %71, %104 : vector<18x18xf32>
    %c182 = arith.constant 182 : index
    %106 = memref.load %arg2[%c182] : memref<288xf32, #tpu.memory_space<smem>>
    %107 = vector.broadcast %106 : f32 to vector<18x18xf32>
    %108 = arith.mulf %107, %85 : vector<18x18xf32>
    %109 = arith.addf %75, %108 : vector<18x18xf32>
    %c218 = arith.constant 218 : index
    %110 = memref.load %arg2[%c218] : memref<288xf32, #tpu.memory_space<smem>>
    %111 = vector.broadcast %110 : f32 to vector<18x18xf32>
    %112 = arith.mulf %111, %85 : vector<18x18xf32>
    %113 = arith.addf %79, %112 : vector<18x18xf32>
    %c254 = arith.constant 254 : index
    %114 = memref.load %arg2[%c254] : memref<288xf32, #tpu.memory_space<smem>>
    %115 = vector.broadcast %114 : f32 to vector<18x18xf32>
    %116 = arith.mulf %115, %85 : vector<18x18xf32>
    %117 = arith.addf %83, %116 : vector<18x18xf32>
    %c0_15 = arith.constant 0 : index
    %c0_16 = arith.constant 0 : index
    %c1_17 = arith.constant 1 : index
    %c0_18 = arith.constant 0 : index
    %118 = vector.load %arg1[%c0_15, %c0_16, %c1_17, %c0_18] : memref<1x4x20x20xf32, #tpu.memory_space<vmem>>, vector<1x1x18x18xf32>
    %119 = vector.shape_cast %118 : vector<1x1x18x18xf32> to vector<18x18xf32>
    %c3_19 = arith.constant 3 : index
    %120 = memref.load %arg2[%c3_19] : memref<288xf32, #tpu.memory_space<smem>>
    %121 = vector.broadcast %120 : f32 to vector<18x18xf32>
    %122 = arith.mulf %121, %119 : vector<18x18xf32>
    %123 = arith.addf %89, %122 : vector<18x18xf32>
    %c39 = arith.constant 39 : index
    %124 = memref.load %arg2[%c39] : memref<288xf32, #tpu.memory_space<smem>>
    %125 = vector.broadcast %124 : f32 to vector<18x18xf32>
    %126 = arith.mulf %125, %119 : vector<18x18xf32>
    %127 = arith.addf %93, %126 : vector<18x18xf32>
    %c75 = arith.constant 75 : index
    %128 = memref.load %arg2[%c75] : memref<288xf32, #tpu.memory_space<smem>>
    %129 = vector.broadcast %128 : f32 to vector<18x18xf32>
    %130 = arith.mulf %129, %119 : vector<18x18xf32>
    %131 = arith.addf %97, %130 : vector<18x18xf32>
    %c111 = arith.constant 111 : index
    %132 = memref.load %arg2[%c111] : memref<288xf32, #tpu.memory_space<smem>>
    %133 = vector.broadcast %132 : f32 to vector<18x18xf32>
    %134 = arith.mulf %133, %119 : vector<18x18xf32>
    %135 = arith.addf %101, %134 : vector<18x18xf32>
    %c147 = arith.constant 147 : index
    %136 = memref.load %arg2[%c147] : memref<288xf32, #tpu.memory_space<smem>>
    %137 = vector.broadcast %136 : f32 to vector<18x18xf32>
    %138 = arith.mulf %137, %119 : vector<18x18xf32>
    %139 = arith.addf %105, %138 : vector<18x18xf32>
    %c183 = arith.constant 183 : index
    %140 = memref.load %arg2[%c183] : memref<288xf32, #tpu.memory_space<smem>>
    %141 = vector.broadcast %140 : f32 to vector<18x18xf32>
    %142 = arith.mulf %141, %119 : vector<18x18xf32>
    %143 = arith.addf %109, %142 : vector<18x18xf32>
    %c219 = arith.constant 219 : index
    %144 = memref.load %arg2[%c219] : memref<288xf32, #tpu.memory_space<smem>>
    %145 = vector.broadcast %144 : f32 to vector<18x18xf32>
    %146 = arith.mulf %145, %119 : vector<18x18xf32>
    %147 = arith.addf %113, %146 : vector<18x18xf32>
    %c255 = arith.constant 255 : index
    %148 = memref.load %arg2[%c255] : memref<288xf32, #tpu.memory_space<smem>>
    %149 = vector.broadcast %148 : f32 to vector<18x18xf32>
    %150 = arith.mulf %149, %119 : vector<18x18xf32>
    %151 = arith.addf %117, %150 : vector<18x18xf32>
    %c0_20 = arith.constant 0 : index
    %c0_21 = arith.constant 0 : index
    %c1_22 = arith.constant 1 : index
    %c1_23 = arith.constant 1 : index
    %152 = vector.load %arg1[%c0_20, %c0_21, %c1_22, %c1_23] : memref<1x4x20x20xf32, #tpu.memory_space<vmem>>, vector<1x1x18x18xf32>
    %153 = vector.shape_cast %152 : vector<1x1x18x18xf32> to vector<18x18xf32>
    %c4_24 = arith.constant 4 : index
    %154 = memref.load %arg2[%c4_24] : memref<288xf32, #tpu.memory_space<smem>>
    %155 = vector.broadcast %154 : f32 to vector<18x18xf32>
    %156 = arith.mulf %155, %153 : vector<18x18xf32>
    %157 = arith.addf %123, %156 : vector<18x18xf32>
    %c40 = arith.constant 40 : index
    %158 = memref.load %arg2[%c40] : memref<288xf32, #tpu.memory_space<smem>>
    %159 = vector.broadcast %158 : f32 to vector<18x18xf32>
    %160 = arith.mulf %159, %153 : vector<18x18xf32>
    %161 = arith.addf %127, %160 : vector<18x18xf32>
    %c76 = arith.constant 76 : index
    %162 = memref.load %arg2[%c76] : memref<288xf32, #tpu.memory_space<smem>>
    %163 = vector.broadcast %162 : f32 to vector<18x18xf32>
    %164 = arith.mulf %163, %153 : vector<18x18xf32>
    %165 = arith.addf %131, %164 : vector<18x18xf32>
    %c112 = arith.constant 112 : index
    %166 = memref.load %arg2[%c112] : memref<288xf32, #tpu.memory_space<smem>>
    %167 = vector.broadcast %166 : f32 to vector<18x18xf32>
    %168 = arith.mulf %167, %153 : vector<18x18xf32>
    %169 = arith.addf %135, %168 : vector<18x18xf32>
    %c148 = arith.constant 148 : index
    %170 = memref.load %arg2[%c148] : memref<288xf32, #tpu.memory_space<smem>>
    %171 = vector.broadcast %170 : f32 to vector<18x18xf32>
    %172 = arith.mulf %171, %153 : vector<18x18xf32>
    %173 = arith.addf %139, %172 : vector<18x18xf32>
    %c184 = arith.constant 184 : index
    %174 = memref.load %arg2[%c184] : memref<288xf32, #tpu.memory_space<smem>>
    %175 = vector.broadcast %174 : f32 to vector<18x18xf32>
    %176 = arith.mulf %175, %153 : vector<18x18xf32>
    %177 = arith.addf %143, %176 : vector<18x18xf32>
    %c220 = arith.constant 220 : index
    %178 = memref.load %arg2[%c220] : memref<288xf32, #tpu.memory_space<smem>>
    %179 = vector.broadcast %178 : f32 to vector<18x18xf32>
    %180 = arith.mulf %179, %153 : vector<18x18xf32>
    %181 = arith.addf %147, %180 : vector<18x18xf32>
    %c256 = arith.constant 256 : index
    %182 = memref.load %arg2[%c256] : memref<288xf32, #tpu.memory_space<smem>>
    %183 = vector.broadcast %182 : f32 to vector<18x18xf32>
    %184 = arith.mulf %183, %153 : vector<18x18xf32>
    %185 = arith.addf %151, %184 : vector<18x18xf32>
    %c0_25 = arith.constant 0 : index
    %c0_26 = arith.constant 0 : index
    %c1_27 = arith.constant 1 : index
    %c2_28 = arith.constant 2 : index
    %186 = vector.load %arg1[%c0_25, %c0_26, %c1_27, %c2_28] : memref<1x4x20x20xf32, #tpu.memory_space<vmem>>, vector<1x1x18x18xf32>
    %187 = vector.shape_cast %186 : vector<1x1x18x18xf32> to vector<18x18xf32>
    %c5_29 = arith.constant 5 : index
    %188 = memref.load %arg2[%c5_29] : memref<288xf32, #tpu.memory_space<smem>>
    %189 = vector.broadcast %188 : f32 to vector<18x18xf32>
    %190 = arith.mulf %189, %187 : vector<18x18xf32>
    %191 = arith.addf %157, %190 : vector<18x18xf32>
    %c41 = arith.constant 41 : index
    %192 = memref.load %arg2[%c41] : memref<288xf32, #tpu.memory_space<smem>>
    %193 = vector.broadcast %192 : f32 to vector<18x18xf32>
    %194 = arith.mulf %193, %187 : vector<18x18xf32>
    %195 = arith.addf %161, %194 : vector<18x18xf32>
    %c77 = arith.constant 77 : index
    %196 = memref.load %arg2[%c77] : memref<288xf32, #tpu.memory_space<smem>>
    %197 = vector.broadcast %196 : f32 to vector<18x18xf32>
    %198 = arith.mulf %197, %187 : vector<18x18xf32>
    %199 = arith.addf %165, %198 : vector<18x18xf32>
    %c113 = arith.constant 113 : index
    %200 = memref.load %arg2[%c113] : memref<288xf32, #tpu.memory_space<smem>>
    %201 = vector.broadcast %200 : f32 to vector<18x18xf32>
    %202 = arith.mulf %201, %187 : vector<18x18xf32>
    %203 = arith.addf %169, %202 : vector<18x18xf32>
    %c149 = arith.constant 149 : index
    %204 = memref.load %arg2[%c149] : memref<288xf32, #tpu.memory_space<smem>>
    %205 = vector.broadcast %204 : f32 to vector<18x18xf32>
    %206 = arith.mulf %205, %187 : vector<18x18xf32>
    %207 = arith.addf %173, %206 : vector<18x18xf32>
    %c185 = arith.constant 185 : index
    %208 = memref.load %arg2[%c185] : memref<288xf32, #tpu.memory_space<smem>>
    %209 = vector.broadcast %208 : f32 to vector<18x18xf32>
    %210 = arith.mulf %209, %187 : vector<18x18xf32>
    %211 = arith.addf %177, %210 : vector<18x18xf32>
    %c221 = arith.constant 221 : index
    %212 = memref.load %arg2[%c221] : memref<288xf32, #tpu.memory_space<smem>>
    %213 = vector.broadcast %212 : f32 to vector<18x18xf32>
    %214 = arith.mulf %213, %187 : vector<18x18xf32>
    %215 = arith.addf %181, %214 : vector<18x18xf32>
    %c257 = arith.constant 257 : index
    %216 = memref.load %arg2[%c257] : memref<288xf32, #tpu.memory_space<smem>>
    %217 = vector.broadcast %216 : f32 to vector<18x18xf32>
    %218 = arith.mulf %217, %187 : vector<18x18xf32>
    %219 = arith.addf %185, %218 : vector<18x18xf32>
    %c0_30 = arith.constant 0 : index
    %c0_31 = arith.constant 0 : index
    %c2_32 = arith.constant 2 : index
    %c0_33 = arith.constant 0 : index
    %220 = vector.load %arg1[%c0_30, %c0_31, %c2_32, %c0_33] : memref<1x4x20x20xf32, #tpu.memory_space<vmem>>, vector<1x1x18x18xf32>
    %221 = vector.shape_cast %220 : vector<1x1x18x18xf32> to vector<18x18xf32>
    %c6_34 = arith.constant 6 : index
    %222 = memref.load %arg2[%c6_34] : memref<288xf32, #tpu.memory_space<smem>>
    %223 = vector.broadcast %222 : f32 to vector<18x18xf32>
    %224 = arith.mulf %223, %221 : vector<18x18xf32>
    %225 = arith.addf %191, %224 : vector<18x18xf32>
    %c42 = arith.constant 42 : index
    %226 = memref.load %arg2[%c42] : memref<288xf32, #tpu.memory_space<smem>>
    %227 = vector.broadcast %226 : f32 to vector<18x18xf32>
    %228 = arith.mulf %227, %221 : vector<18x18xf32>
    %229 = arith.addf %195, %228 : vector<18x18xf32>
    %c78 = arith.constant 78 : index
    %230 = memref.load %arg2[%c78] : memref<288xf32, #tpu.memory_space<smem>>
    %231 = vector.broadcast %230 : f32 to vector<18x18xf32>
    %232 = arith.mulf %231, %221 : vector<18x18xf32>
    %233 = arith.addf %199, %232 : vector<18x18xf32>
    %c114 = arith.constant 114 : index
    %234 = memref.load %arg2[%c114] : memref<288xf32, #tpu.memory_space<smem>>
    %235 = vector.broadcast %234 : f32 to vector<18x18xf32>
    %236 = arith.mulf %235, %221 : vector<18x18xf32>
    %237 = arith.addf %203, %236 : vector<18x18xf32>
    %c150 = arith.constant 150 : index
    %238 = memref.load %arg2[%c150] : memref<288xf32, #tpu.memory_space<smem>>
    %239 = vector.broadcast %238 : f32 to vector<18x18xf32>
    %240 = arith.mulf %239, %221 : vector<18x18xf32>
    %241 = arith.addf %207, %240 : vector<18x18xf32>
    %c186 = arith.constant 186 : index
    %242 = memref.load %arg2[%c186] : memref<288xf32, #tpu.memory_space<smem>>
    %243 = vector.broadcast %242 : f32 to vector<18x18xf32>
    %244 = arith.mulf %243, %221 : vector<18x18xf32>
    %245 = arith.addf %211, %244 : vector<18x18xf32>
    %c222 = arith.constant 222 : index
    %246 = memref.load %arg2[%c222] : memref<288xf32, #tpu.memory_space<smem>>
    %247 = vector.broadcast %246 : f32 to vector<18x18xf32>
    %248 = arith.mulf %247, %221 : vector<18x18xf32>
    %249 = arith.addf %215, %248 : vector<18x18xf32>
    %c258 = arith.constant 258 : index
    %250 = memref.load %arg2[%c258] : memref<288xf32, #tpu.memory_space<smem>>
    %251 = vector.broadcast %250 : f32 to vector<18x18xf32>
    %252 = arith.mulf %251, %221 : vector<18x18xf32>
    %253 = arith.addf %219, %252 : vector<18x18xf32>
    %c0_35 = arith.constant 0 : index
    %c0_36 = arith.constant 0 : index
    %c2_37 = arith.constant 2 : index
    %c1_38 = arith.constant 1 : index
    %254 = vector.load %arg1[%c0_35, %c0_36, %c2_37, %c1_38] : memref<1x4x20x20xf32, #tpu.memory_space<vmem>>, vector<1x1x18x18xf32>
    %255 = vector.shape_cast %254 : vector<1x1x18x18xf32> to vector<18x18xf32>
    %c7_39 = arith.constant 7 : index
    %256 = memref.load %arg2[%c7_39] : memref<288xf32, #tpu.memory_space<smem>>
    %257 = vector.broadcast %256 : f32 to vector<18x18xf32>
    %258 = arith.mulf %257, %255 : vector<18x18xf32>
    %259 = arith.addf %225, %258 : vector<18x18xf32>
    %c43 = arith.constant 43 : index
    %260 = memref.load %arg2[%c43] : memref<288xf32, #tpu.memory_space<smem>>
    %261 = vector.broadcast %260 : f32 to vector<18x18xf32>
    %262 = arith.mulf %261, %255 : vector<18x18xf32>
    %263 = arith.addf %229, %262 : vector<18x18xf32>
    %c79 = arith.constant 79 : index
    %264 = memref.load %arg2[%c79] : memref<288xf32, #tpu.memory_space<smem>>
    %265 = vector.broadcast %264 : f32 to vector<18x18xf32>
    %266 = arith.mulf %265, %255 : vector<18x18xf32>
    %267 = arith.addf %233, %266 : vector<18x18xf32>
    %c115 = arith.constant 115 : index
    %268 = memref.load %arg2[%c115] : memref<288xf32, #tpu.memory_space<smem>>
    %269 = vector.broadcast %268 : f32 to vector<18x18xf32>
    %270 = arith.mulf %269, %255 : vector<18x18xf32>
    %271 = arith.addf %237, %270 : vector<18x18xf32>
    %c151 = arith.constant 151 : index
    %272 = memref.load %arg2[%c151] : memref<288xf32, #tpu.memory_space<smem>>
    %273 = vector.broadcast %272 : f32 to vector<18x18xf32>
    %274 = arith.mulf %273, %255 : vector<18x18xf32>
    %275 = arith.addf %241, %274 : vector<18x18xf32>
    %c187 = arith.constant 187 : index
    %276 = memref.load %arg2[%c187] : memref<288xf32, #tpu.memory_space<smem>>
    %277 = vector.broadcast %276 : f32 to vector<18x18xf32>
    %278 = arith.mulf %277, %255 : vector<18x18xf32>
    %279 = arith.addf %245, %278 : vector<18x18xf32>
    %c223 = arith.constant 223 : index
    %280 = memref.load %arg2[%c223] : memref<288xf32, #tpu.memory_space<smem>>
    %281 = vector.broadcast %280 : f32 to vector<18x18xf32>
    %282 = arith.mulf %281, %255 : vector<18x18xf32>
    %283 = arith.addf %249, %282 : vector<18x18xf32>
    %c259 = arith.constant 259 : index
    %284 = memref.load %arg2[%c259] : memref<288xf32, #tpu.memory_space<smem>>
    %285 = vector.broadcast %284 : f32 to vector<18x18xf32>
    %286 = arith.mulf %285, %255 : vector<18x18xf32>
    %287 = arith.addf %253, %286 : vector<18x18xf32>
    %c0_40 = arith.constant 0 : index
    %c0_41 = arith.constant 0 : index
    %c2_42 = arith.constant 2 : index
    %c2_43 = arith.constant 2 : index
    %288 = vector.load %arg1[%c0_40, %c0_41, %c2_42, %c2_43] : memref<1x4x20x20xf32, #tpu.memory_space<vmem>>, vector<1x1x18x18xf32>
    %289 = vector.shape_cast %288 : vector<1x1x18x18xf32> to vector<18x18xf32>
    %c8 = arith.constant 8 : index
    %290 = memref.load %arg2[%c8] : memref<288xf32, #tpu.memory_space<smem>>
    %291 = vector.broadcast %290 : f32 to vector<18x18xf32>
    %292 = arith.mulf %291, %289 : vector<18x18xf32>
    %293 = arith.addf %259, %292 : vector<18x18xf32>
    %c44 = arith.constant 44 : index
    %294 = memref.load %arg2[%c44] : memref<288xf32, #tpu.memory_space<smem>>
    %295 = vector.broadcast %294 : f32 to vector<18x18xf32>
    %296 = arith.mulf %295, %289 : vector<18x18xf32>
    %297 = arith.addf %263, %296 : vector<18x18xf32>
    %c80 = arith.constant 80 : index
    %298 = memref.load %arg2[%c80] : memref<288xf32, #tpu.memory_space<smem>>
    %299 = vector.broadcast %298 : f32 to vector<18x18xf32>
    %300 = arith.mulf %299, %289 : vector<18x18xf32>
    %301 = arith.addf %267, %300 : vector<18x18xf32>
    %c116 = arith.constant 116 : index
    %302 = memref.load %arg2[%c116] : memref<288xf32, #tpu.memory_space<smem>>
    %303 = vector.broadcast %302 : f32 to vector<18x18xf32>
    %304 = arith.mulf %303, %289 : vector<18x18xf32>
    %305 = arith.addf %271, %304 : vector<18x18xf32>
    %c152 = arith.constant 152 : index
    %306 = memref.load %arg2[%c152] : memref<288xf32, #tpu.memory_space<smem>>
    %307 = vector.broadcast %306 : f32 to vector<18x18xf32>
    %308 = arith.mulf %307, %289 : vector<18x18xf32>
    %309 = arith.addf %275, %308 : vector<18x18xf32>
    %c188 = arith.constant 188 : index
    %310 = memref.load %arg2[%c188] : memref<288xf32, #tpu.memory_space<smem>>
    %311 = vector.broadcast %310 : f32 to vector<18x18xf32>
    %312 = arith.mulf %311, %289 : vector<18x18xf32>
    %313 = arith.addf %279, %312 : vector<18x18xf32>
    %c224 = arith.constant 224 : index
    %314 = memref.load %arg2[%c224] : memref<288xf32, #tpu.memory_space<smem>>
    %315 = vector.broadcast %314 : f32 to vector<18x18xf32>
    %316 = arith.mulf %315, %289 : vector<18x18xf32>
    %317 = arith.addf %283, %316 : vector<18x18xf32>
    %c260 = arith.constant 260 : index
    %318 = memref.load %arg2[%c260] : memref<288xf32, #tpu.memory_space<smem>>
    %319 = vector.broadcast %318 : f32 to vector<18x18xf32>
    %320 = arith.mulf %319, %289 : vector<18x18xf32>
    %321 = arith.addf %287, %320 : vector<18x18xf32>
    %c0_44 = arith.constant 0 : index
    %c1_45 = arith.constant 1 : index
    %c0_46 = arith.constant 0 : index
    %c0_47 = arith.constant 0 : index
    %322 = vector.load %arg1[%c0_44, %c1_45, %c0_46, %c0_47] : memref<1x4x20x20xf32, #tpu.memory_space<vmem>>, vector<1x1x18x18xf32>
    %323 = vector.shape_cast %322 : vector<1x1x18x18xf32> to vector<18x18xf32>
    %c9 = arith.constant 9 : index
    %324 = memref.load %arg2[%c9] : memref<288xf32, #tpu.memory_space<smem>>
    %325 = vector.broadcast %324 : f32 to vector<18x18xf32>
    %326 = arith.mulf %325, %323 : vector<18x18xf32>
    %327 = arith.addf %293, %326 : vector<18x18xf32>
    %c45 = arith.constant 45 : index
    %328 = memref.load %arg2[%c45] : memref<288xf32, #tpu.memory_space<smem>>
    %329 = vector.broadcast %328 : f32 to vector<18x18xf32>
    %330 = arith.mulf %329, %323 : vector<18x18xf32>
    %331 = arith.addf %297, %330 : vector<18x18xf32>
    %c81 = arith.constant 81 : index
    %332 = memref.load %arg2[%c81] : memref<288xf32, #tpu.memory_space<smem>>
    %333 = vector.broadcast %332 : f32 to vector<18x18xf32>
    %334 = arith.mulf %333, %323 : vector<18x18xf32>
    %335 = arith.addf %301, %334 : vector<18x18xf32>
    %c117 = arith.constant 117 : index
    %336 = memref.load %arg2[%c117] : memref<288xf32, #tpu.memory_space<smem>>
    %337 = vector.broadcast %336 : f32 to vector<18x18xf32>
    %338 = arith.mulf %337, %323 : vector<18x18xf32>
    %339 = arith.addf %305, %338 : vector<18x18xf32>
    %c153 = arith.constant 153 : index
    %340 = memref.load %arg2[%c153] : memref<288xf32, #tpu.memory_space<smem>>
    %341 = vector.broadcast %340 : f32 to vector<18x18xf32>
    %342 = arith.mulf %341, %323 : vector<18x18xf32>
    %343 = arith.addf %309, %342 : vector<18x18xf32>
    %c189 = arith.constant 189 : index
    %344 = memref.load %arg2[%c189] : memref<288xf32, #tpu.memory_space<smem>>
    %345 = vector.broadcast %344 : f32 to vector<18x18xf32>
    %346 = arith.mulf %345, %323 : vector<18x18xf32>
    %347 = arith.addf %313, %346 : vector<18x18xf32>
    %c225 = arith.constant 225 : index
    %348 = memref.load %arg2[%c225] : memref<288xf32, #tpu.memory_space<smem>>
    %349 = vector.broadcast %348 : f32 to vector<18x18xf32>
    %350 = arith.mulf %349, %323 : vector<18x18xf32>
    %351 = arith.addf %317, %350 : vector<18x18xf32>
    %c261 = arith.constant 261 : index
    %352 = memref.load %arg2[%c261] : memref<288xf32, #tpu.memory_space<smem>>
    %353 = vector.broadcast %352 : f32 to vector<18x18xf32>
    %354 = arith.mulf %353, %323 : vector<18x18xf32>
    %355 = arith.addf %321, %354 : vector<18x18xf32>
    %c0_48 = arith.constant 0 : index
    %c1_49 = arith.constant 1 : index
    %c0_50 = arith.constant 0 : index
    %c1_51 = arith.constant 1 : index
    %356 = vector.load %arg1[%c0_48, %c1_49, %c0_50, %c1_51] : memref<1x4x20x20xf32, #tpu.memory_space<vmem>>, vector<1x1x18x18xf32>
    %357 = vector.shape_cast %356 : vector<1x1x18x18xf32> to vector<18x18xf32>
    %c10 = arith.constant 10 : index
    %358 = memref.load %arg2[%c10] : memref<288xf32, #tpu.memory_space<smem>>
    %359 = vector.broadcast %358 : f32 to vector<18x18xf32>
    %360 = arith.mulf %359, %357 : vector<18x18xf32>
    %361 = arith.addf %327, %360 : vector<18x18xf32>
    %c46 = arith.constant 46 : index
    %362 = memref.load %arg2[%c46] : memref<288xf32, #tpu.memory_space<smem>>
    %363 = vector.broadcast %362 : f32 to vector<18x18xf32>
    %364 = arith.mulf %363, %357 : vector<18x18xf32>
    %365 = arith.addf %331, %364 : vector<18x18xf32>
    %c82 = arith.constant 82 : index
    %366 = memref.load %arg2[%c82] : memref<288xf32, #tpu.memory_space<smem>>
    %367 = vector.broadcast %366 : f32 to vector<18x18xf32>
    %368 = arith.mulf %367, %357 : vector<18x18xf32>
    %369 = arith.addf %335, %368 : vector<18x18xf32>
    %c118 = arith.constant 118 : index
    %370 = memref.load %arg2[%c118] : memref<288xf32, #tpu.memory_space<smem>>
    %371 = vector.broadcast %370 : f32 to vector<18x18xf32>
    %372 = arith.mulf %371, %357 : vector<18x18xf32>
    %373 = arith.addf %339, %372 : vector<18x18xf32>
    %c154 = arith.constant 154 : index
    %374 = memref.load %arg2[%c154] : memref<288xf32, #tpu.memory_space<smem>>
    %375 = vector.broadcast %374 : f32 to vector<18x18xf32>
    %376 = arith.mulf %375, %357 : vector<18x18xf32>
    %377 = arith.addf %343, %376 : vector<18x18xf32>
    %c190 = arith.constant 190 : index
    %378 = memref.load %arg2[%c190] : memref<288xf32, #tpu.memory_space<smem>>
    %379 = vector.broadcast %378 : f32 to vector<18x18xf32>
    %380 = arith.mulf %379, %357 : vector<18x18xf32>
    %381 = arith.addf %347, %380 : vector<18x18xf32>
    %c226 = arith.constant 226 : index
    %382 = memref.load %arg2[%c226] : memref<288xf32, #tpu.memory_space<smem>>
    %383 = vector.broadcast %382 : f32 to vector<18x18xf32>
    %384 = arith.mulf %383, %357 : vector<18x18xf32>
    %385 = arith.addf %351, %384 : vector<18x18xf32>
    %c262 = arith.constant 262 : index
    %386 = memref.load %arg2[%c262] : memref<288xf32, #tpu.memory_space<smem>>
    %387 = vector.broadcast %386 : f32 to vector<18x18xf32>
    %388 = arith.mulf %387, %357 : vector<18x18xf32>
    %389 = arith.addf %355, %388 : vector<18x18xf32>
    %c0_52 = arith.constant 0 : index
    %c1_53 = arith.constant 1 : index
    %c0_54 = arith.constant 0 : index
    %c2_55 = arith.constant 2 : index
    %390 = vector.load %arg1[%c0_52, %c1_53, %c0_54, %c2_55] : memref<1x4x20x20xf32, #tpu.memory_space<vmem>>, vector<1x1x18x18xf32>
    %391 = vector.shape_cast %390 : vector<1x1x18x18xf32> to vector<18x18xf32>
    %c11 = arith.constant 11 : index
    %392 = memref.load %arg2[%c11] : memref<288xf32, #tpu.memory_space<smem>>
    %393 = vector.broadcast %392 : f32 to vector<18x18xf32>
    %394 = arith.mulf %393, %391 : vector<18x18xf32>
    %395 = arith.addf %361, %394 : vector<18x18xf32>
    %c47 = arith.constant 47 : index
    %396 = memref.load %arg2[%c47] : memref<288xf32, #tpu.memory_space<smem>>
    %397 = vector.broadcast %396 : f32 to vector<18x18xf32>
    %398 = arith.mulf %397, %391 : vector<18x18xf32>
    %399 = arith.addf %365, %398 : vector<18x18xf32>
    %c83 = arith.constant 83 : index
    %400 = memref.load %arg2[%c83] : memref<288xf32, #tpu.memory_space<smem>>
    %401 = vector.broadcast %400 : f32 to vector<18x18xf32>
    %402 = arith.mulf %401, %391 : vector<18x18xf32>
    %403 = arith.addf %369, %402 : vector<18x18xf32>
    %c119 = arith.constant 119 : index
    %404 = memref.load %arg2[%c119] : memref<288xf32, #tpu.memory_space<smem>>
    %405 = vector.broadcast %404 : f32 to vector<18x18xf32>
    %406 = arith.mulf %405, %391 : vector<18x18xf32>
    %407 = arith.addf %373, %406 : vector<18x18xf32>
    %c155 = arith.constant 155 : index
    %408 = memref.load %arg2[%c155] : memref<288xf32, #tpu.memory_space<smem>>
    %409 = vector.broadcast %408 : f32 to vector<18x18xf32>
    %410 = arith.mulf %409, %391 : vector<18x18xf32>
    %411 = arith.addf %377, %410 : vector<18x18xf32>
    %c191 = arith.constant 191 : index
    %412 = memref.load %arg2[%c191] : memref<288xf32, #tpu.memory_space<smem>>
    %413 = vector.broadcast %412 : f32 to vector<18x18xf32>
    %414 = arith.mulf %413, %391 : vector<18x18xf32>
    %415 = arith.addf %381, %414 : vector<18x18xf32>
    %c227 = arith.constant 227 : index
    %416 = memref.load %arg2[%c227] : memref<288xf32, #tpu.memory_space<smem>>
    %417 = vector.broadcast %416 : f32 to vector<18x18xf32>
    %418 = arith.mulf %417, %391 : vector<18x18xf32>
    %419 = arith.addf %385, %418 : vector<18x18xf32>
    %c263 = arith.constant 263 : index
    %420 = memref.load %arg2[%c263] : memref<288xf32, #tpu.memory_space<smem>>
    %421 = vector.broadcast %420 : f32 to vector<18x18xf32>
    %422 = arith.mulf %421, %391 : vector<18x18xf32>
    %423 = arith.addf %389, %422 : vector<18x18xf32>
    %c0_56 = arith.constant 0 : index
    %c1_57 = arith.constant 1 : index
    %c1_58 = arith.constant 1 : index
    %c0_59 = arith.constant 0 : index
    %424 = vector.load %arg1[%c0_56, %c1_57, %c1_58, %c0_59] : memref<1x4x20x20xf32, #tpu.memory_space<vmem>>, vector<1x1x18x18xf32>
    %425 = vector.shape_cast %424 : vector<1x1x18x18xf32> to vector<18x18xf32>
    %c12 = arith.constant 12 : index
    %426 = memref.load %arg2[%c12] : memref<288xf32, #tpu.memory_space<smem>>
    %427 = vector.broadcast %426 : f32 to vector<18x18xf32>
    %428 = arith.mulf %427, %425 : vector<18x18xf32>
    %429 = arith.addf %395, %428 : vector<18x18xf32>
    %c48 = arith.constant 48 : index
    %430 = memref.load %arg2[%c48] : memref<288xf32, #tpu.memory_space<smem>>
    %431 = vector.broadcast %430 : f32 to vector<18x18xf32>
    %432 = arith.mulf %431, %425 : vector<18x18xf32>
    %433 = arith.addf %399, %432 : vector<18x18xf32>
    %c84 = arith.constant 84 : index
    %434 = memref.load %arg2[%c84] : memref<288xf32, #tpu.memory_space<smem>>
    %435 = vector.broadcast %434 : f32 to vector<18x18xf32>
    %436 = arith.mulf %435, %425 : vector<18x18xf32>
    %437 = arith.addf %403, %436 : vector<18x18xf32>
    %c120 = arith.constant 120 : index
    %438 = memref.load %arg2[%c120] : memref<288xf32, #tpu.memory_space<smem>>
    %439 = vector.broadcast %438 : f32 to vector<18x18xf32>
    %440 = arith.mulf %439, %425 : vector<18x18xf32>
    %441 = arith.addf %407, %440 : vector<18x18xf32>
    %c156 = arith.constant 156 : index
    %442 = memref.load %arg2[%c156] : memref<288xf32, #tpu.memory_space<smem>>
    %443 = vector.broadcast %442 : f32 to vector<18x18xf32>
    %444 = arith.mulf %443, %425 : vector<18x18xf32>
    %445 = arith.addf %411, %444 : vector<18x18xf32>
    %c192 = arith.constant 192 : index
    %446 = memref.load %arg2[%c192] : memref<288xf32, #tpu.memory_space<smem>>
    %447 = vector.broadcast %446 : f32 to vector<18x18xf32>
    %448 = arith.mulf %447, %425 : vector<18x18xf32>
    %449 = arith.addf %415, %448 : vector<18x18xf32>
    %c228 = arith.constant 228 : index
    %450 = memref.load %arg2[%c228] : memref<288xf32, #tpu.memory_space<smem>>
    %451 = vector.broadcast %450 : f32 to vector<18x18xf32>
    %452 = arith.mulf %451, %425 : vector<18x18xf32>
    %453 = arith.addf %419, %452 : vector<18x18xf32>
    %c264 = arith.constant 264 : index
    %454 = memref.load %arg2[%c264] : memref<288xf32, #tpu.memory_space<smem>>
    %455 = vector.broadcast %454 : f32 to vector<18x18xf32>
    %456 = arith.mulf %455, %425 : vector<18x18xf32>
    %457 = arith.addf %423, %456 : vector<18x18xf32>
    %c0_60 = arith.constant 0 : index
    %c1_61 = arith.constant 1 : index
    %c1_62 = arith.constant 1 : index
    %c1_63 = arith.constant 1 : index
    %458 = vector.load %arg1[%c0_60, %c1_61, %c1_62, %c1_63] : memref<1x4x20x20xf32, #tpu.memory_space<vmem>>, vector<1x1x18x18xf32>
    %459 = vector.shape_cast %458 : vector<1x1x18x18xf32> to vector<18x18xf32>
    %c13 = arith.constant 13 : index
    %460 = memref.load %arg2[%c13] : memref<288xf32, #tpu.memory_space<smem>>
    %461 = vector.broadcast %460 : f32 to vector<18x18xf32>
    %462 = arith.mulf %461, %459 : vector<18x18xf32>
    %463 = arith.addf %429, %462 : vector<18x18xf32>
    %c49 = arith.constant 49 : index
    %464 = memref.load %arg2[%c49] : memref<288xf32, #tpu.memory_space<smem>>
    %465 = vector.broadcast %464 : f32 to vector<18x18xf32>
    %466 = arith.mulf %465, %459 : vector<18x18xf32>
    %467 = arith.addf %433, %466 : vector<18x18xf32>
    %c85 = arith.constant 85 : index
    %468 = memref.load %arg2[%c85] : memref<288xf32, #tpu.memory_space<smem>>
    %469 = vector.broadcast %468 : f32 to vector<18x18xf32>
    %470 = arith.mulf %469, %459 : vector<18x18xf32>
    %471 = arith.addf %437, %470 : vector<18x18xf32>
    %c121 = arith.constant 121 : index
    %472 = memref.load %arg2[%c121] : memref<288xf32, #tpu.memory_space<smem>>
    %473 = vector.broadcast %472 : f32 to vector<18x18xf32>
    %474 = arith.mulf %473, %459 : vector<18x18xf32>
    %475 = arith.addf %441, %474 : vector<18x18xf32>
    %c157 = arith.constant 157 : index
    %476 = memref.load %arg2[%c157] : memref<288xf32, #tpu.memory_space<smem>>
    %477 = vector.broadcast %476 : f32 to vector<18x18xf32>
    %478 = arith.mulf %477, %459 : vector<18x18xf32>
    %479 = arith.addf %445, %478 : vector<18x18xf32>
    %c193 = arith.constant 193 : index
    %480 = memref.load %arg2[%c193] : memref<288xf32, #tpu.memory_space<smem>>
    %481 = vector.broadcast %480 : f32 to vector<18x18xf32>
    %482 = arith.mulf %481, %459 : vector<18x18xf32>
    %483 = arith.addf %449, %482 : vector<18x18xf32>
    %c229 = arith.constant 229 : index
    %484 = memref.load %arg2[%c229] : memref<288xf32, #tpu.memory_space<smem>>
    %485 = vector.broadcast %484 : f32 to vector<18x18xf32>
    %486 = arith.mulf %485, %459 : vector<18x18xf32>
    %487 = arith.addf %453, %486 : vector<18x18xf32>
    %c265 = arith.constant 265 : index
    %488 = memref.load %arg2[%c265] : memref<288xf32, #tpu.memory_space<smem>>
    %489 = vector.broadcast %488 : f32 to vector<18x18xf32>
    %490 = arith.mulf %489, %459 : vector<18x18xf32>
    %491 = arith.addf %457, %490 : vector<18x18xf32>
    %c0_64 = arith.constant 0 : index
    %c1_65 = arith.constant 1 : index
    %c1_66 = arith.constant 1 : index
    %c2_67 = arith.constant 2 : index
    %492 = vector.load %arg1[%c0_64, %c1_65, %c1_66, %c2_67] : memref<1x4x20x20xf32, #tpu.memory_space<vmem>>, vector<1x1x18x18xf32>
    %493 = vector.shape_cast %492 : vector<1x1x18x18xf32> to vector<18x18xf32>
    %c14 = arith.constant 14 : index
    %494 = memref.load %arg2[%c14] : memref<288xf32, #tpu.memory_space<smem>>
    %495 = vector.broadcast %494 : f32 to vector<18x18xf32>
    %496 = arith.mulf %495, %493 : vector<18x18xf32>
    %497 = arith.addf %463, %496 : vector<18x18xf32>
    %c50 = arith.constant 50 : index
    %498 = memref.load %arg2[%c50] : memref<288xf32, #tpu.memory_space<smem>>
    %499 = vector.broadcast %498 : f32 to vector<18x18xf32>
    %500 = arith.mulf %499, %493 : vector<18x18xf32>
    %501 = arith.addf %467, %500 : vector<18x18xf32>
    %c86 = arith.constant 86 : index
    %502 = memref.load %arg2[%c86] : memref<288xf32, #tpu.memory_space<smem>>
    %503 = vector.broadcast %502 : f32 to vector<18x18xf32>
    %504 = arith.mulf %503, %493 : vector<18x18xf32>
    %505 = arith.addf %471, %504 : vector<18x18xf32>
    %c122 = arith.constant 122 : index
    %506 = memref.load %arg2[%c122] : memref<288xf32, #tpu.memory_space<smem>>
    %507 = vector.broadcast %506 : f32 to vector<18x18xf32>
    %508 = arith.mulf %507, %493 : vector<18x18xf32>
    %509 = arith.addf %475, %508 : vector<18x18xf32>
    %c158 = arith.constant 158 : index
    %510 = memref.load %arg2[%c158] : memref<288xf32, #tpu.memory_space<smem>>
    %511 = vector.broadcast %510 : f32 to vector<18x18xf32>
    %512 = arith.mulf %511, %493 : vector<18x18xf32>
    %513 = arith.addf %479, %512 : vector<18x18xf32>
    %c194 = arith.constant 194 : index
    %514 = memref.load %arg2[%c194] : memref<288xf32, #tpu.memory_space<smem>>
    %515 = vector.broadcast %514 : f32 to vector<18x18xf32>
    %516 = arith.mulf %515, %493 : vector<18x18xf32>
    %517 = arith.addf %483, %516 : vector<18x18xf32>
    %c230 = arith.constant 230 : index
    %518 = memref.load %arg2[%c230] : memref<288xf32, #tpu.memory_space<smem>>
    %519 = vector.broadcast %518 : f32 to vector<18x18xf32>
    %520 = arith.mulf %519, %493 : vector<18x18xf32>
    %521 = arith.addf %487, %520 : vector<18x18xf32>
    %c266 = arith.constant 266 : index
    %522 = memref.load %arg2[%c266] : memref<288xf32, #tpu.memory_space<smem>>
    %523 = vector.broadcast %522 : f32 to vector<18x18xf32>
    %524 = arith.mulf %523, %493 : vector<18x18xf32>
    %525 = arith.addf %491, %524 : vector<18x18xf32>
    %c0_68 = arith.constant 0 : index
    %c1_69 = arith.constant 1 : index
    %c2_70 = arith.constant 2 : index
    %c0_71 = arith.constant 0 : index
    %526 = vector.load %arg1[%c0_68, %c1_69, %c2_70, %c0_71] : memref<1x4x20x20xf32, #tpu.memory_space<vmem>>, vector<1x1x18x18xf32>
    %527 = vector.shape_cast %526 : vector<1x1x18x18xf32> to vector<18x18xf32>
    %c15 = arith.constant 15 : index
    %528 = memref.load %arg2[%c15] : memref<288xf32, #tpu.memory_space<smem>>
    %529 = vector.broadcast %528 : f32 to vector<18x18xf32>
    %530 = arith.mulf %529, %527 : vector<18x18xf32>
    %531 = arith.addf %497, %530 : vector<18x18xf32>
    %c51 = arith.constant 51 : index
    %532 = memref.load %arg2[%c51] : memref<288xf32, #tpu.memory_space<smem>>
    %533 = vector.broadcast %532 : f32 to vector<18x18xf32>
    %534 = arith.mulf %533, %527 : vector<18x18xf32>
    %535 = arith.addf %501, %534 : vector<18x18xf32>
    %c87 = arith.constant 87 : index
    %536 = memref.load %arg2[%c87] : memref<288xf32, #tpu.memory_space<smem>>
    %537 = vector.broadcast %536 : f32 to vector<18x18xf32>
    %538 = arith.mulf %537, %527 : vector<18x18xf32>
    %539 = arith.addf %505, %538 : vector<18x18xf32>
    %c123 = arith.constant 123 : index
    %540 = memref.load %arg2[%c123] : memref<288xf32, #tpu.memory_space<smem>>
    %541 = vector.broadcast %540 : f32 to vector<18x18xf32>
    %542 = arith.mulf %541, %527 : vector<18x18xf32>
    %543 = arith.addf %509, %542 : vector<18x18xf32>
    %c159 = arith.constant 159 : index
    %544 = memref.load %arg2[%c159] : memref<288xf32, #tpu.memory_space<smem>>
    %545 = vector.broadcast %544 : f32 to vector<18x18xf32>
    %546 = arith.mulf %545, %527 : vector<18x18xf32>
    %547 = arith.addf %513, %546 : vector<18x18xf32>
    %c195 = arith.constant 195 : index
    %548 = memref.load %arg2[%c195] : memref<288xf32, #tpu.memory_space<smem>>
    %549 = vector.broadcast %548 : f32 to vector<18x18xf32>
    %550 = arith.mulf %549, %527 : vector<18x18xf32>
    %551 = arith.addf %517, %550 : vector<18x18xf32>
    %c231 = arith.constant 231 : index
    %552 = memref.load %arg2[%c231] : memref<288xf32, #tpu.memory_space<smem>>
    %553 = vector.broadcast %552 : f32 to vector<18x18xf32>
    %554 = arith.mulf %553, %527 : vector<18x18xf32>
    %555 = arith.addf %521, %554 : vector<18x18xf32>
    %c267 = arith.constant 267 : index
    %556 = memref.load %arg2[%c267] : memref<288xf32, #tpu.memory_space<smem>>
    %557 = vector.broadcast %556 : f32 to vector<18x18xf32>
    %558 = arith.mulf %557, %527 : vector<18x18xf32>
    %559 = arith.addf %525, %558 : vector<18x18xf32>
    %c0_72 = arith.constant 0 : index
    %c1_73 = arith.constant 1 : index
    %c2_74 = arith.constant 2 : index
    %c1_75 = arith.constant 1 : index
    %560 = vector.load %arg1[%c0_72, %c1_73, %c2_74, %c1_75] : memref<1x4x20x20xf32, #tpu.memory_space<vmem>>, vector<1x1x18x18xf32>
    %561 = vector.shape_cast %560 : vector<1x1x18x18xf32> to vector<18x18xf32>
    %c16 = arith.constant 16 : index
    %562 = memref.load %arg2[%c16] : memref<288xf32, #tpu.memory_space<smem>>
    %563 = vector.broadcast %562 : f32 to vector<18x18xf32>
    %564 = arith.mulf %563, %561 : vector<18x18xf32>
    %565 = arith.addf %531, %564 : vector<18x18xf32>
    %c52 = arith.constant 52 : index
    %566 = memref.load %arg2[%c52] : memref<288xf32, #tpu.memory_space<smem>>
    %567 = vector.broadcast %566 : f32 to vector<18x18xf32>
    %568 = arith.mulf %567, %561 : vector<18x18xf32>
    %569 = arith.addf %535, %568 : vector<18x18xf32>
    %c88 = arith.constant 88 : index
    %570 = memref.load %arg2[%c88] : memref<288xf32, #tpu.memory_space<smem>>
    %571 = vector.broadcast %570 : f32 to vector<18x18xf32>
    %572 = arith.mulf %571, %561 : vector<18x18xf32>
    %573 = arith.addf %539, %572 : vector<18x18xf32>
    %c124 = arith.constant 124 : index
    %574 = memref.load %arg2[%c124] : memref<288xf32, #tpu.memory_space<smem>>
    %575 = vector.broadcast %574 : f32 to vector<18x18xf32>
    %576 = arith.mulf %575, %561 : vector<18x18xf32>
    %577 = arith.addf %543, %576 : vector<18x18xf32>
    %c160 = arith.constant 160 : index
    %578 = memref.load %arg2[%c160] : memref<288xf32, #tpu.memory_space<smem>>
    %579 = vector.broadcast %578 : f32 to vector<18x18xf32>
    %580 = arith.mulf %579, %561 : vector<18x18xf32>
    %581 = arith.addf %547, %580 : vector<18x18xf32>
    %c196 = arith.constant 196 : index
    %582 = memref.load %arg2[%c196] : memref<288xf32, #tpu.memory_space<smem>>
    %583 = vector.broadcast %582 : f32 to vector<18x18xf32>
    %584 = arith.mulf %583, %561 : vector<18x18xf32>
    %585 = arith.addf %551, %584 : vector<18x18xf32>
    %c232 = arith.constant 232 : index
    %586 = memref.load %arg2[%c232] : memref<288xf32, #tpu.memory_space<smem>>
    %587 = vector.broadcast %586 : f32 to vector<18x18xf32>
    %588 = arith.mulf %587, %561 : vector<18x18xf32>
    %589 = arith.addf %555, %588 : vector<18x18xf32>
    %c268 = arith.constant 268 : index
    %590 = memref.load %arg2[%c268] : memref<288xf32, #tpu.memory_space<smem>>
    %591 = vector.broadcast %590 : f32 to vector<18x18xf32>
    %592 = arith.mulf %591, %561 : vector<18x18xf32>
    %593 = arith.addf %559, %592 : vector<18x18xf32>
    %c0_76 = arith.constant 0 : index
    %c1_77 = arith.constant 1 : index
    %c2_78 = arith.constant 2 : index
    %c2_79 = arith.constant 2 : index
    %594 = vector.load %arg1[%c0_76, %c1_77, %c2_78, %c2_79] : memref<1x4x20x20xf32, #tpu.memory_space<vmem>>, vector<1x1x18x18xf32>
    %595 = vector.shape_cast %594 : vector<1x1x18x18xf32> to vector<18x18xf32>
    %c17 = arith.constant 17 : index
    %596 = memref.load %arg2[%c17] : memref<288xf32, #tpu.memory_space<smem>>
    %597 = vector.broadcast %596 : f32 to vector<18x18xf32>
    %598 = arith.mulf %597, %595 : vector<18x18xf32>
    %599 = arith.addf %565, %598 : vector<18x18xf32>
    %c53 = arith.constant 53 : index
    %600 = memref.load %arg2[%c53] : memref<288xf32, #tpu.memory_space<smem>>
    %601 = vector.broadcast %600 : f32 to vector<18x18xf32>
    %602 = arith.mulf %601, %595 : vector<18x18xf32>
    %603 = arith.addf %569, %602 : vector<18x18xf32>
    %c89 = arith.constant 89 : index
    %604 = memref.load %arg2[%c89] : memref<288xf32, #tpu.memory_space<smem>>
    %605 = vector.broadcast %604 : f32 to vector<18x18xf32>
    %606 = arith.mulf %605, %595 : vector<18x18xf32>
    %607 = arith.addf %573, %606 : vector<18x18xf32>
    %c125 = arith.constant 125 : index
    %608 = memref.load %arg2[%c125] : memref<288xf32, #tpu.memory_space<smem>>
    %609 = vector.broadcast %608 : f32 to vector<18x18xf32>
    %610 = arith.mulf %609, %595 : vector<18x18xf32>
    %611 = arith.addf %577, %610 : vector<18x18xf32>
    %c161 = arith.constant 161 : index
    %612 = memref.load %arg2[%c161] : memref<288xf32, #tpu.memory_space<smem>>
    %613 = vector.broadcast %612 : f32 to vector<18x18xf32>
    %614 = arith.mulf %613, %595 : vector<18x18xf32>
    %615 = arith.addf %581, %614 : vector<18x18xf32>
    %c197 = arith.constant 197 : index
    %616 = memref.load %arg2[%c197] : memref<288xf32, #tpu.memory_space<smem>>
    %617 = vector.broadcast %616 : f32 to vector<18x18xf32>
    %618 = arith.mulf %617, %595 : vector<18x18xf32>
    %619 = arith.addf %585, %618 : vector<18x18xf32>
    %c233 = arith.constant 233 : index
    %620 = memref.load %arg2[%c233] : memref<288xf32, #tpu.memory_space<smem>>
    %621 = vector.broadcast %620 : f32 to vector<18x18xf32>
    %622 = arith.mulf %621, %595 : vector<18x18xf32>
    %623 = arith.addf %589, %622 : vector<18x18xf32>
    %c269 = arith.constant 269 : index
    %624 = memref.load %arg2[%c269] : memref<288xf32, #tpu.memory_space<smem>>
    %625 = vector.broadcast %624 : f32 to vector<18x18xf32>
    %626 = arith.mulf %625, %595 : vector<18x18xf32>
    %627 = arith.addf %593, %626 : vector<18x18xf32>
    %c0_80 = arith.constant 0 : index
    %c2_81 = arith.constant 2 : index
    %c0_82 = arith.constant 0 : index
    %c0_83 = arith.constant 0 : index
    %628 = vector.load %arg1[%c0_80, %c2_81, %c0_82, %c0_83] : memref<1x4x20x20xf32, #tpu.memory_space<vmem>>, vector<1x1x18x18xf32>
    %629 = vector.shape_cast %628 : vector<1x1x18x18xf32> to vector<18x18xf32>
    %c18 = arith.constant 18 : index
    %630 = memref.load %arg2[%c18] : memref<288xf32, #tpu.memory_space<smem>>
    %631 = vector.broadcast %630 : f32 to vector<18x18xf32>
    %632 = arith.mulf %631, %629 : vector<18x18xf32>
    %633 = arith.addf %599, %632 : vector<18x18xf32>
    %c54 = arith.constant 54 : index
    %634 = memref.load %arg2[%c54] : memref<288xf32, #tpu.memory_space<smem>>
    %635 = vector.broadcast %634 : f32 to vector<18x18xf32>
    %636 = arith.mulf %635, %629 : vector<18x18xf32>
    %637 = arith.addf %603, %636 : vector<18x18xf32>
    %c90 = arith.constant 90 : index
    %638 = memref.load %arg2[%c90] : memref<288xf32, #tpu.memory_space<smem>>
    %639 = vector.broadcast %638 : f32 to vector<18x18xf32>
    %640 = arith.mulf %639, %629 : vector<18x18xf32>
    %641 = arith.addf %607, %640 : vector<18x18xf32>
    %c126 = arith.constant 126 : index
    %642 = memref.load %arg2[%c126] : memref<288xf32, #tpu.memory_space<smem>>
    %643 = vector.broadcast %642 : f32 to vector<18x18xf32>
    %644 = arith.mulf %643, %629 : vector<18x18xf32>
    %645 = arith.addf %611, %644 : vector<18x18xf32>
    %c162 = arith.constant 162 : index
    %646 = memref.load %arg2[%c162] : memref<288xf32, #tpu.memory_space<smem>>
    %647 = vector.broadcast %646 : f32 to vector<18x18xf32>
    %648 = arith.mulf %647, %629 : vector<18x18xf32>
    %649 = arith.addf %615, %648 : vector<18x18xf32>
    %c198 = arith.constant 198 : index
    %650 = memref.load %arg2[%c198] : memref<288xf32, #tpu.memory_space<smem>>
    %651 = vector.broadcast %650 : f32 to vector<18x18xf32>
    %652 = arith.mulf %651, %629 : vector<18x18xf32>
    %653 = arith.addf %619, %652 : vector<18x18xf32>
    %c234 = arith.constant 234 : index
    %654 = memref.load %arg2[%c234] : memref<288xf32, #tpu.memory_space<smem>>
    %655 = vector.broadcast %654 : f32 to vector<18x18xf32>
    %656 = arith.mulf %655, %629 : vector<18x18xf32>
    %657 = arith.addf %623, %656 : vector<18x18xf32>
    %c270 = arith.constant 270 : index
    %658 = memref.load %arg2[%c270] : memref<288xf32, #tpu.memory_space<smem>>
    %659 = vector.broadcast %658 : f32 to vector<18x18xf32>
    %660 = arith.mulf %659, %629 : vector<18x18xf32>
    %661 = arith.addf %627, %660 : vector<18x18xf32>
    %c0_84 = arith.constant 0 : index
    %c2_85 = arith.constant 2 : index
    %c0_86 = arith.constant 0 : index
    %c1_87 = arith.constant 1 : index
    %662 = vector.load %arg1[%c0_84, %c2_85, %c0_86, %c1_87] : memref<1x4x20x20xf32, #tpu.memory_space<vmem>>, vector<1x1x18x18xf32>
    %663 = vector.shape_cast %662 : vector<1x1x18x18xf32> to vector<18x18xf32>
    %c19 = arith.constant 19 : index
    %664 = memref.load %arg2[%c19] : memref<288xf32, #tpu.memory_space<smem>>
    %665 = vector.broadcast %664 : f32 to vector<18x18xf32>
    %666 = arith.mulf %665, %663 : vector<18x18xf32>
    %667 = arith.addf %633, %666 : vector<18x18xf32>
    %c55 = arith.constant 55 : index
    %668 = memref.load %arg2[%c55] : memref<288xf32, #tpu.memory_space<smem>>
    %669 = vector.broadcast %668 : f32 to vector<18x18xf32>
    %670 = arith.mulf %669, %663 : vector<18x18xf32>
    %671 = arith.addf %637, %670 : vector<18x18xf32>
    %c91 = arith.constant 91 : index
    %672 = memref.load %arg2[%c91] : memref<288xf32, #tpu.memory_space<smem>>
    %673 = vector.broadcast %672 : f32 to vector<18x18xf32>
    %674 = arith.mulf %673, %663 : vector<18x18xf32>
    %675 = arith.addf %641, %674 : vector<18x18xf32>
    %c127 = arith.constant 127 : index
    %676 = memref.load %arg2[%c127] : memref<288xf32, #tpu.memory_space<smem>>
    %677 = vector.broadcast %676 : f32 to vector<18x18xf32>
    %678 = arith.mulf %677, %663 : vector<18x18xf32>
    %679 = arith.addf %645, %678 : vector<18x18xf32>
    %c163 = arith.constant 163 : index
    %680 = memref.load %arg2[%c163] : memref<288xf32, #tpu.memory_space<smem>>
    %681 = vector.broadcast %680 : f32 to vector<18x18xf32>
    %682 = arith.mulf %681, %663 : vector<18x18xf32>
    %683 = arith.addf %649, %682 : vector<18x18xf32>
    %c199 = arith.constant 199 : index
    %684 = memref.load %arg2[%c199] : memref<288xf32, #tpu.memory_space<smem>>
    %685 = vector.broadcast %684 : f32 to vector<18x18xf32>
    %686 = arith.mulf %685, %663 : vector<18x18xf32>
    %687 = arith.addf %653, %686 : vector<18x18xf32>
    %c235 = arith.constant 235 : index
    %688 = memref.load %arg2[%c235] : memref<288xf32, #tpu.memory_space<smem>>
    %689 = vector.broadcast %688 : f32 to vector<18x18xf32>
    %690 = arith.mulf %689, %663 : vector<18x18xf32>
    %691 = arith.addf %657, %690 : vector<18x18xf32>
    %c271 = arith.constant 271 : index
    %692 = memref.load %arg2[%c271] : memref<288xf32, #tpu.memory_space<smem>>
    %693 = vector.broadcast %692 : f32 to vector<18x18xf32>
    %694 = arith.mulf %693, %663 : vector<18x18xf32>
    %695 = arith.addf %661, %694 : vector<18x18xf32>
    %c0_88 = arith.constant 0 : index
    %c2_89 = arith.constant 2 : index
    %c0_90 = arith.constant 0 : index
    %c2_91 = arith.constant 2 : index
    %696 = vector.load %arg1[%c0_88, %c2_89, %c0_90, %c2_91] : memref<1x4x20x20xf32, #tpu.memory_space<vmem>>, vector<1x1x18x18xf32>
    %697 = vector.shape_cast %696 : vector<1x1x18x18xf32> to vector<18x18xf32>
    %c20 = arith.constant 20 : index
    %698 = memref.load %arg2[%c20] : memref<288xf32, #tpu.memory_space<smem>>
    %699 = vector.broadcast %698 : f32 to vector<18x18xf32>
    %700 = arith.mulf %699, %697 : vector<18x18xf32>
    %701 = arith.addf %667, %700 : vector<18x18xf32>
    %c56 = arith.constant 56 : index
    %702 = memref.load %arg2[%c56] : memref<288xf32, #tpu.memory_space<smem>>
    %703 = vector.broadcast %702 : f32 to vector<18x18xf32>
    %704 = arith.mulf %703, %697 : vector<18x18xf32>
    %705 = arith.addf %671, %704 : vector<18x18xf32>
    %c92 = arith.constant 92 : index
    %706 = memref.load %arg2[%c92] : memref<288xf32, #tpu.memory_space<smem>>
    %707 = vector.broadcast %706 : f32 to vector<18x18xf32>
    %708 = arith.mulf %707, %697 : vector<18x18xf32>
    %709 = arith.addf %675, %708 : vector<18x18xf32>
    %c128 = arith.constant 128 : index
    %710 = memref.load %arg2[%c128] : memref<288xf32, #tpu.memory_space<smem>>
    %711 = vector.broadcast %710 : f32 to vector<18x18xf32>
    %712 = arith.mulf %711, %697 : vector<18x18xf32>
    %713 = arith.addf %679, %712 : vector<18x18xf32>
    %c164 = arith.constant 164 : index
    %714 = memref.load %arg2[%c164] : memref<288xf32, #tpu.memory_space<smem>>
    %715 = vector.broadcast %714 : f32 to vector<18x18xf32>
    %716 = arith.mulf %715, %697 : vector<18x18xf32>
    %717 = arith.addf %683, %716 : vector<18x18xf32>
    %c200 = arith.constant 200 : index
    %718 = memref.load %arg2[%c200] : memref<288xf32, #tpu.memory_space<smem>>
    %719 = vector.broadcast %718 : f32 to vector<18x18xf32>
    %720 = arith.mulf %719, %697 : vector<18x18xf32>
    %721 = arith.addf %687, %720 : vector<18x18xf32>
    %c236 = arith.constant 236 : index
    %722 = memref.load %arg2[%c236] : memref<288xf32, #tpu.memory_space<smem>>
    %723 = vector.broadcast %722 : f32 to vector<18x18xf32>
    %724 = arith.mulf %723, %697 : vector<18x18xf32>
    %725 = arith.addf %691, %724 : vector<18x18xf32>
    %c272 = arith.constant 272 : index
    %726 = memref.load %arg2[%c272] : memref<288xf32, #tpu.memory_space<smem>>
    %727 = vector.broadcast %726 : f32 to vector<18x18xf32>
    %728 = arith.mulf %727, %697 : vector<18x18xf32>
    %729 = arith.addf %695, %728 : vector<18x18xf32>
    %c0_92 = arith.constant 0 : index
    %c2_93 = arith.constant 2 : index
    %c1_94 = arith.constant 1 : index
    %c0_95 = arith.constant 0 : index
    %730 = vector.load %arg1[%c0_92, %c2_93, %c1_94, %c0_95] : memref<1x4x20x20xf32, #tpu.memory_space<vmem>>, vector<1x1x18x18xf32>
    %731 = vector.shape_cast %730 : vector<1x1x18x18xf32> to vector<18x18xf32>
    %c21 = arith.constant 21 : index
    %732 = memref.load %arg2[%c21] : memref<288xf32, #tpu.memory_space<smem>>
    %733 = vector.broadcast %732 : f32 to vector<18x18xf32>
    %734 = arith.mulf %733, %731 : vector<18x18xf32>
    %735 = arith.addf %701, %734 : vector<18x18xf32>
    %c57 = arith.constant 57 : index
    %736 = memref.load %arg2[%c57] : memref<288xf32, #tpu.memory_space<smem>>
    %737 = vector.broadcast %736 : f32 to vector<18x18xf32>
    %738 = arith.mulf %737, %731 : vector<18x18xf32>
    %739 = arith.addf %705, %738 : vector<18x18xf32>
    %c93 = arith.constant 93 : index
    %740 = memref.load %arg2[%c93] : memref<288xf32, #tpu.memory_space<smem>>
    %741 = vector.broadcast %740 : f32 to vector<18x18xf32>
    %742 = arith.mulf %741, %731 : vector<18x18xf32>
    %743 = arith.addf %709, %742 : vector<18x18xf32>
    %c129 = arith.constant 129 : index
    %744 = memref.load %arg2[%c129] : memref<288xf32, #tpu.memory_space<smem>>
    %745 = vector.broadcast %744 : f32 to vector<18x18xf32>
    %746 = arith.mulf %745, %731 : vector<18x18xf32>
    %747 = arith.addf %713, %746 : vector<18x18xf32>
    %c165 = arith.constant 165 : index
    %748 = memref.load %arg2[%c165] : memref<288xf32, #tpu.memory_space<smem>>
    %749 = vector.broadcast %748 : f32 to vector<18x18xf32>
    %750 = arith.mulf %749, %731 : vector<18x18xf32>
    %751 = arith.addf %717, %750 : vector<18x18xf32>
    %c201 = arith.constant 201 : index
    %752 = memref.load %arg2[%c201] : memref<288xf32, #tpu.memory_space<smem>>
    %753 = vector.broadcast %752 : f32 to vector<18x18xf32>
    %754 = arith.mulf %753, %731 : vector<18x18xf32>
    %755 = arith.addf %721, %754 : vector<18x18xf32>
    %c237 = arith.constant 237 : index
    %756 = memref.load %arg2[%c237] : memref<288xf32, #tpu.memory_space<smem>>
    %757 = vector.broadcast %756 : f32 to vector<18x18xf32>
    %758 = arith.mulf %757, %731 : vector<18x18xf32>
    %759 = arith.addf %725, %758 : vector<18x18xf32>
    %c273 = arith.constant 273 : index
    %760 = memref.load %arg2[%c273] : memref<288xf32, #tpu.memory_space<smem>>
    %761 = vector.broadcast %760 : f32 to vector<18x18xf32>
    %762 = arith.mulf %761, %731 : vector<18x18xf32>
    %763 = arith.addf %729, %762 : vector<18x18xf32>
    %c0_96 = arith.constant 0 : index
    %c2_97 = arith.constant 2 : index
    %c1_98 = arith.constant 1 : index
    %c1_99 = arith.constant 1 : index
    %764 = vector.load %arg1[%c0_96, %c2_97, %c1_98, %c1_99] : memref<1x4x20x20xf32, #tpu.memory_space<vmem>>, vector<1x1x18x18xf32>
    %765 = vector.shape_cast %764 : vector<1x1x18x18xf32> to vector<18x18xf32>
    %c22 = arith.constant 22 : index
    %766 = memref.load %arg2[%c22] : memref<288xf32, #tpu.memory_space<smem>>
    %767 = vector.broadcast %766 : f32 to vector<18x18xf32>
    %768 = arith.mulf %767, %765 : vector<18x18xf32>
    %769 = arith.addf %735, %768 : vector<18x18xf32>
    %c58 = arith.constant 58 : index
    %770 = memref.load %arg2[%c58] : memref<288xf32, #tpu.memory_space<smem>>
    %771 = vector.broadcast %770 : f32 to vector<18x18xf32>
    %772 = arith.mulf %771, %765 : vector<18x18xf32>
    %773 = arith.addf %739, %772 : vector<18x18xf32>
    %c94 = arith.constant 94 : index
    %774 = memref.load %arg2[%c94] : memref<288xf32, #tpu.memory_space<smem>>
    %775 = vector.broadcast %774 : f32 to vector<18x18xf32>
    %776 = arith.mulf %775, %765 : vector<18x18xf32>
    %777 = arith.addf %743, %776 : vector<18x18xf32>
    %c130 = arith.constant 130 : index
    %778 = memref.load %arg2[%c130] : memref<288xf32, #tpu.memory_space<smem>>
    %779 = vector.broadcast %778 : f32 to vector<18x18xf32>
    %780 = arith.mulf %779, %765 : vector<18x18xf32>
    %781 = arith.addf %747, %780 : vector<18x18xf32>
    %c166 = arith.constant 166 : index
    %782 = memref.load %arg2[%c166] : memref<288xf32, #tpu.memory_space<smem>>
    %783 = vector.broadcast %782 : f32 to vector<18x18xf32>
    %784 = arith.mulf %783, %765 : vector<18x18xf32>
    %785 = arith.addf %751, %784 : vector<18x18xf32>
    %c202 = arith.constant 202 : index
    %786 = memref.load %arg2[%c202] : memref<288xf32, #tpu.memory_space<smem>>
    %787 = vector.broadcast %786 : f32 to vector<18x18xf32>
    %788 = arith.mulf %787, %765 : vector<18x18xf32>
    %789 = arith.addf %755, %788 : vector<18x18xf32>
    %c238 = arith.constant 238 : index
    %790 = memref.load %arg2[%c238] : memref<288xf32, #tpu.memory_space<smem>>
    %791 = vector.broadcast %790 : f32 to vector<18x18xf32>
    %792 = arith.mulf %791, %765 : vector<18x18xf32>
    %793 = arith.addf %759, %792 : vector<18x18xf32>
    %c274 = arith.constant 274 : index
    %794 = memref.load %arg2[%c274] : memref<288xf32, #tpu.memory_space<smem>>
    %795 = vector.broadcast %794 : f32 to vector<18x18xf32>
    %796 = arith.mulf %795, %765 : vector<18x18xf32>
    %797 = arith.addf %763, %796 : vector<18x18xf32>
    %c0_100 = arith.constant 0 : index
    %c2_101 = arith.constant 2 : index
    %c1_102 = arith.constant 1 : index
    %c2_103 = arith.constant 2 : index
    %798 = vector.load %arg1[%c0_100, %c2_101, %c1_102, %c2_103] : memref<1x4x20x20xf32, #tpu.memory_space<vmem>>, vector<1x1x18x18xf32>
    %799 = vector.shape_cast %798 : vector<1x1x18x18xf32> to vector<18x18xf32>
    %c23 = arith.constant 23 : index
    %800 = memref.load %arg2[%c23] : memref<288xf32, #tpu.memory_space<smem>>
    %801 = vector.broadcast %800 : f32 to vector<18x18xf32>
    %802 = arith.mulf %801, %799 : vector<18x18xf32>
    %803 = arith.addf %769, %802 : vector<18x18xf32>
    %c59 = arith.constant 59 : index
    %804 = memref.load %arg2[%c59] : memref<288xf32, #tpu.memory_space<smem>>
    %805 = vector.broadcast %804 : f32 to vector<18x18xf32>
    %806 = arith.mulf %805, %799 : vector<18x18xf32>
    %807 = arith.addf %773, %806 : vector<18x18xf32>
    %c95 = arith.constant 95 : index
    %808 = memref.load %arg2[%c95] : memref<288xf32, #tpu.memory_space<smem>>
    %809 = vector.broadcast %808 : f32 to vector<18x18xf32>
    %810 = arith.mulf %809, %799 : vector<18x18xf32>
    %811 = arith.addf %777, %810 : vector<18x18xf32>
    %c131 = arith.constant 131 : index
    %812 = memref.load %arg2[%c131] : memref<288xf32, #tpu.memory_space<smem>>
    %813 = vector.broadcast %812 : f32 to vector<18x18xf32>
    %814 = arith.mulf %813, %799 : vector<18x18xf32>
    %815 = arith.addf %781, %814 : vector<18x18xf32>
    %c167 = arith.constant 167 : index
    %816 = memref.load %arg2[%c167] : memref<288xf32, #tpu.memory_space<smem>>
    %817 = vector.broadcast %816 : f32 to vector<18x18xf32>
    %818 = arith.mulf %817, %799 : vector<18x18xf32>
    %819 = arith.addf %785, %818 : vector<18x18xf32>
    %c203 = arith.constant 203 : index
    %820 = memref.load %arg2[%c203] : memref<288xf32, #tpu.memory_space<smem>>
    %821 = vector.broadcast %820 : f32 to vector<18x18xf32>
    %822 = arith.mulf %821, %799 : vector<18x18xf32>
    %823 = arith.addf %789, %822 : vector<18x18xf32>
    %c239 = arith.constant 239 : index
    %824 = memref.load %arg2[%c239] : memref<288xf32, #tpu.memory_space<smem>>
    %825 = vector.broadcast %824 : f32 to vector<18x18xf32>
    %826 = arith.mulf %825, %799 : vector<18x18xf32>
    %827 = arith.addf %793, %826 : vector<18x18xf32>
    %c275 = arith.constant 275 : index
    %828 = memref.load %arg2[%c275] : memref<288xf32, #tpu.memory_space<smem>>
    %829 = vector.broadcast %828 : f32 to vector<18x18xf32>
    %830 = arith.mulf %829, %799 : vector<18x18xf32>
    %831 = arith.addf %797, %830 : vector<18x18xf32>
    %c0_104 = arith.constant 0 : index
    %c2_105 = arith.constant 2 : index
    %c2_106 = arith.constant 2 : index
    %c0_107 = arith.constant 0 : index
    %832 = vector.load %arg1[%c0_104, %c2_105, %c2_106, %c0_107] : memref<1x4x20x20xf32, #tpu.memory_space<vmem>>, vector<1x1x18x18xf32>
    %833 = vector.shape_cast %832 : vector<1x1x18x18xf32> to vector<18x18xf32>
    %c24 = arith.constant 24 : index
    %834 = memref.load %arg2[%c24] : memref<288xf32, #tpu.memory_space<smem>>
    %835 = vector.broadcast %834 : f32 to vector<18x18xf32>
    %836 = arith.mulf %835, %833 : vector<18x18xf32>
    %837 = arith.addf %803, %836 : vector<18x18xf32>
    %c60 = arith.constant 60 : index
    %838 = memref.load %arg2[%c60] : memref<288xf32, #tpu.memory_space<smem>>
    %839 = vector.broadcast %838 : f32 to vector<18x18xf32>
    %840 = arith.mulf %839, %833 : vector<18x18xf32>
    %841 = arith.addf %807, %840 : vector<18x18xf32>
    %c96 = arith.constant 96 : index
    %842 = memref.load %arg2[%c96] : memref<288xf32, #tpu.memory_space<smem>>
    %843 = vector.broadcast %842 : f32 to vector<18x18xf32>
    %844 = arith.mulf %843, %833 : vector<18x18xf32>
    %845 = arith.addf %811, %844 : vector<18x18xf32>
    %c132 = arith.constant 132 : index
    %846 = memref.load %arg2[%c132] : memref<288xf32, #tpu.memory_space<smem>>
    %847 = vector.broadcast %846 : f32 to vector<18x18xf32>
    %848 = arith.mulf %847, %833 : vector<18x18xf32>
    %849 = arith.addf %815, %848 : vector<18x18xf32>
    %c168 = arith.constant 168 : index
    %850 = memref.load %arg2[%c168] : memref<288xf32, #tpu.memory_space<smem>>
    %851 = vector.broadcast %850 : f32 to vector<18x18xf32>
    %852 = arith.mulf %851, %833 : vector<18x18xf32>
    %853 = arith.addf %819, %852 : vector<18x18xf32>
    %c204 = arith.constant 204 : index
    %854 = memref.load %arg2[%c204] : memref<288xf32, #tpu.memory_space<smem>>
    %855 = vector.broadcast %854 : f32 to vector<18x18xf32>
    %856 = arith.mulf %855, %833 : vector<18x18xf32>
    %857 = arith.addf %823, %856 : vector<18x18xf32>
    %c240 = arith.constant 240 : index
    %858 = memref.load %arg2[%c240] : memref<288xf32, #tpu.memory_space<smem>>
    %859 = vector.broadcast %858 : f32 to vector<18x18xf32>
    %860 = arith.mulf %859, %833 : vector<18x18xf32>
    %861 = arith.addf %827, %860 : vector<18x18xf32>
    %c276 = arith.constant 276 : index
    %862 = memref.load %arg2[%c276] : memref<288xf32, #tpu.memory_space<smem>>
    %863 = vector.broadcast %862 : f32 to vector<18x18xf32>
    %864 = arith.mulf %863, %833 : vector<18x18xf32>
    %865 = arith.addf %831, %864 : vector<18x18xf32>
    %c0_108 = arith.constant 0 : index
    %c2_109 = arith.constant 2 : index
    %c2_110 = arith.constant 2 : index
    %c1_111 = arith.constant 1 : index
    %866 = vector.load %arg1[%c0_108, %c2_109, %c2_110, %c1_111] : memref<1x4x20x20xf32, #tpu.memory_space<vmem>>, vector<1x1x18x18xf32>
    %867 = vector.shape_cast %866 : vector<1x1x18x18xf32> to vector<18x18xf32>
    %c25 = arith.constant 25 : index
    %868 = memref.load %arg2[%c25] : memref<288xf32, #tpu.memory_space<smem>>
    %869 = vector.broadcast %868 : f32 to vector<18x18xf32>
    %870 = arith.mulf %869, %867 : vector<18x18xf32>
    %871 = arith.addf %837, %870 : vector<18x18xf32>
    %c61 = arith.constant 61 : index
    %872 = memref.load %arg2[%c61] : memref<288xf32, #tpu.memory_space<smem>>
    %873 = vector.broadcast %872 : f32 to vector<18x18xf32>
    %874 = arith.mulf %873, %867 : vector<18x18xf32>
    %875 = arith.addf %841, %874 : vector<18x18xf32>
    %c97 = arith.constant 97 : index
    %876 = memref.load %arg2[%c97] : memref<288xf32, #tpu.memory_space<smem>>
    %877 = vector.broadcast %876 : f32 to vector<18x18xf32>
    %878 = arith.mulf %877, %867 : vector<18x18xf32>
    %879 = arith.addf %845, %878 : vector<18x18xf32>
    %c133 = arith.constant 133 : index
    %880 = memref.load %arg2[%c133] : memref<288xf32, #tpu.memory_space<smem>>
    %881 = vector.broadcast %880 : f32 to vector<18x18xf32>
    %882 = arith.mulf %881, %867 : vector<18x18xf32>
    %883 = arith.addf %849, %882 : vector<18x18xf32>
    %c169 = arith.constant 169 : index
    %884 = memref.load %arg2[%c169] : memref<288xf32, #tpu.memory_space<smem>>
    %885 = vector.broadcast %884 : f32 to vector<18x18xf32>
    %886 = arith.mulf %885, %867 : vector<18x18xf32>
    %887 = arith.addf %853, %886 : vector<18x18xf32>
    %c205 = arith.constant 205 : index
    %888 = memref.load %arg2[%c205] : memref<288xf32, #tpu.memory_space<smem>>
    %889 = vector.broadcast %888 : f32 to vector<18x18xf32>
    %890 = arith.mulf %889, %867 : vector<18x18xf32>
    %891 = arith.addf %857, %890 : vector<18x18xf32>
    %c241 = arith.constant 241 : index
    %892 = memref.load %arg2[%c241] : memref<288xf32, #tpu.memory_space<smem>>
    %893 = vector.broadcast %892 : f32 to vector<18x18xf32>
    %894 = arith.mulf %893, %867 : vector<18x18xf32>
    %895 = arith.addf %861, %894 : vector<18x18xf32>
    %c277 = arith.constant 277 : index
    %896 = memref.load %arg2[%c277] : memref<288xf32, #tpu.memory_space<smem>>
    %897 = vector.broadcast %896 : f32 to vector<18x18xf32>
    %898 = arith.mulf %897, %867 : vector<18x18xf32>
    %899 = arith.addf %865, %898 : vector<18x18xf32>
    %c0_112 = arith.constant 0 : index
    %c2_113 = arith.constant 2 : index
    %c2_114 = arith.constant 2 : index
    %c2_115 = arith.constant 2 : index
    %900 = vector.load %arg1[%c0_112, %c2_113, %c2_114, %c2_115] : memref<1x4x20x20xf32, #tpu.memory_space<vmem>>, vector<1x1x18x18xf32>
    %901 = vector.shape_cast %900 : vector<1x1x18x18xf32> to vector<18x18xf32>
    %c26 = arith.constant 26 : index
    %902 = memref.load %arg2[%c26] : memref<288xf32, #tpu.memory_space<smem>>
    %903 = vector.broadcast %902 : f32 to vector<18x18xf32>
    %904 = arith.mulf %903, %901 : vector<18x18xf32>
    %905 = arith.addf %871, %904 : vector<18x18xf32>
    %c62 = arith.constant 62 : index
    %906 = memref.load %arg2[%c62] : memref<288xf32, #tpu.memory_space<smem>>
    %907 = vector.broadcast %906 : f32 to vector<18x18xf32>
    %908 = arith.mulf %907, %901 : vector<18x18xf32>
    %909 = arith.addf %875, %908 : vector<18x18xf32>
    %c98 = arith.constant 98 : index
    %910 = memref.load %arg2[%c98] : memref<288xf32, #tpu.memory_space<smem>>
    %911 = vector.broadcast %910 : f32 to vector<18x18xf32>
    %912 = arith.mulf %911, %901 : vector<18x18xf32>
    %913 = arith.addf %879, %912 : vector<18x18xf32>
    %c134 = arith.constant 134 : index
    %914 = memref.load %arg2[%c134] : memref<288xf32, #tpu.memory_space<smem>>
    %915 = vector.broadcast %914 : f32 to vector<18x18xf32>
    %916 = arith.mulf %915, %901 : vector<18x18xf32>
    %917 = arith.addf %883, %916 : vector<18x18xf32>
    %c170 = arith.constant 170 : index
    %918 = memref.load %arg2[%c170] : memref<288xf32, #tpu.memory_space<smem>>
    %919 = vector.broadcast %918 : f32 to vector<18x18xf32>
    %920 = arith.mulf %919, %901 : vector<18x18xf32>
    %921 = arith.addf %887, %920 : vector<18x18xf32>
    %c206 = arith.constant 206 : index
    %922 = memref.load %arg2[%c206] : memref<288xf32, #tpu.memory_space<smem>>
    %923 = vector.broadcast %922 : f32 to vector<18x18xf32>
    %924 = arith.mulf %923, %901 : vector<18x18xf32>
    %925 = arith.addf %891, %924 : vector<18x18xf32>
    %c242 = arith.constant 242 : index
    %926 = memref.load %arg2[%c242] : memref<288xf32, #tpu.memory_space<smem>>
    %927 = vector.broadcast %926 : f32 to vector<18x18xf32>
    %928 = arith.mulf %927, %901 : vector<18x18xf32>
    %929 = arith.addf %895, %928 : vector<18x18xf32>
    %c278 = arith.constant 278 : index
    %930 = memref.load %arg2[%c278] : memref<288xf32, #tpu.memory_space<smem>>
    %931 = vector.broadcast %930 : f32 to vector<18x18xf32>
    %932 = arith.mulf %931, %901 : vector<18x18xf32>
    %933 = arith.addf %899, %932 : vector<18x18xf32>
    %c0_116 = arith.constant 0 : index
    %c3_117 = arith.constant 3 : index
    %c0_118 = arith.constant 0 : index
    %c0_119 = arith.constant 0 : index
    %934 = vector.load %arg1[%c0_116, %c3_117, %c0_118, %c0_119] : memref<1x4x20x20xf32, #tpu.memory_space<vmem>>, vector<1x1x18x18xf32>
    %935 = vector.shape_cast %934 : vector<1x1x18x18xf32> to vector<18x18xf32>
    %c27 = arith.constant 27 : index
    %936 = memref.load %arg2[%c27] : memref<288xf32, #tpu.memory_space<smem>>
    %937 = vector.broadcast %936 : f32 to vector<18x18xf32>
    %938 = arith.mulf %937, %935 : vector<18x18xf32>
    %939 = arith.addf %905, %938 : vector<18x18xf32>
    %c63 = arith.constant 63 : index
    %940 = memref.load %arg2[%c63] : memref<288xf32, #tpu.memory_space<smem>>
    %941 = vector.broadcast %940 : f32 to vector<18x18xf32>
    %942 = arith.mulf %941, %935 : vector<18x18xf32>
    %943 = arith.addf %909, %942 : vector<18x18xf32>
    %c99 = arith.constant 99 : index
    %944 = memref.load %arg2[%c99] : memref<288xf32, #tpu.memory_space<smem>>
    %945 = vector.broadcast %944 : f32 to vector<18x18xf32>
    %946 = arith.mulf %945, %935 : vector<18x18xf32>
    %947 = arith.addf %913, %946 : vector<18x18xf32>
    %c135 = arith.constant 135 : index
    %948 = memref.load %arg2[%c135] : memref<288xf32, #tpu.memory_space<smem>>
    %949 = vector.broadcast %948 : f32 to vector<18x18xf32>
    %950 = arith.mulf %949, %935 : vector<18x18xf32>
    %951 = arith.addf %917, %950 : vector<18x18xf32>
    %c171 = arith.constant 171 : index
    %952 = memref.load %arg2[%c171] : memref<288xf32, #tpu.memory_space<smem>>
    %953 = vector.broadcast %952 : f32 to vector<18x18xf32>
    %954 = arith.mulf %953, %935 : vector<18x18xf32>
    %955 = arith.addf %921, %954 : vector<18x18xf32>
    %c207 = arith.constant 207 : index
    %956 = memref.load %arg2[%c207] : memref<288xf32, #tpu.memory_space<smem>>
    %957 = vector.broadcast %956 : f32 to vector<18x18xf32>
    %958 = arith.mulf %957, %935 : vector<18x18xf32>
    %959 = arith.addf %925, %958 : vector<18x18xf32>
    %c243 = arith.constant 243 : index
    %960 = memref.load %arg2[%c243] : memref<288xf32, #tpu.memory_space<smem>>
    %961 = vector.broadcast %960 : f32 to vector<18x18xf32>
    %962 = arith.mulf %961, %935 : vector<18x18xf32>
    %963 = arith.addf %929, %962 : vector<18x18xf32>
    %c279 = arith.constant 279 : index
    %964 = memref.load %arg2[%c279] : memref<288xf32, #tpu.memory_space<smem>>
    %965 = vector.broadcast %964 : f32 to vector<18x18xf32>
    %966 = arith.mulf %965, %935 : vector<18x18xf32>
    %967 = arith.addf %933, %966 : vector<18x18xf32>
    %c0_120 = arith.constant 0 : index
    %c3_121 = arith.constant 3 : index
    %c0_122 = arith.constant 0 : index
    %c1_123 = arith.constant 1 : index
    %968 = vector.load %arg1[%c0_120, %c3_121, %c0_122, %c1_123] : memref<1x4x20x20xf32, #tpu.memory_space<vmem>>, vector<1x1x18x18xf32>
    %969 = vector.shape_cast %968 : vector<1x1x18x18xf32> to vector<18x18xf32>
    %c28 = arith.constant 28 : index
    %970 = memref.load %arg2[%c28] : memref<288xf32, #tpu.memory_space<smem>>
    %971 = vector.broadcast %970 : f32 to vector<18x18xf32>
    %972 = arith.mulf %971, %969 : vector<18x18xf32>
    %973 = arith.addf %939, %972 : vector<18x18xf32>
    %c64 = arith.constant 64 : index
    %974 = memref.load %arg2[%c64] : memref<288xf32, #tpu.memory_space<smem>>
    %975 = vector.broadcast %974 : f32 to vector<18x18xf32>
    %976 = arith.mulf %975, %969 : vector<18x18xf32>
    %977 = arith.addf %943, %976 : vector<18x18xf32>
    %c100 = arith.constant 100 : index
    %978 = memref.load %arg2[%c100] : memref<288xf32, #tpu.memory_space<smem>>
    %979 = vector.broadcast %978 : f32 to vector<18x18xf32>
    %980 = arith.mulf %979, %969 : vector<18x18xf32>
    %981 = arith.addf %947, %980 : vector<18x18xf32>
    %c136 = arith.constant 136 : index
    %982 = memref.load %arg2[%c136] : memref<288xf32, #tpu.memory_space<smem>>
    %983 = vector.broadcast %982 : f32 to vector<18x18xf32>
    %984 = arith.mulf %983, %969 : vector<18x18xf32>
    %985 = arith.addf %951, %984 : vector<18x18xf32>
    %c172 = arith.constant 172 : index
    %986 = memref.load %arg2[%c172] : memref<288xf32, #tpu.memory_space<smem>>
    %987 = vector.broadcast %986 : f32 to vector<18x18xf32>
    %988 = arith.mulf %987, %969 : vector<18x18xf32>
    %989 = arith.addf %955, %988 : vector<18x18xf32>
    %c208 = arith.constant 208 : index
    %990 = memref.load %arg2[%c208] : memref<288xf32, #tpu.memory_space<smem>>
    %991 = vector.broadcast %990 : f32 to vector<18x18xf32>
    %992 = arith.mulf %991, %969 : vector<18x18xf32>
    %993 = arith.addf %959, %992 : vector<18x18xf32>
    %c244 = arith.constant 244 : index
    %994 = memref.load %arg2[%c244] : memref<288xf32, #tpu.memory_space<smem>>
    %995 = vector.broadcast %994 : f32 to vector<18x18xf32>
    %996 = arith.mulf %995, %969 : vector<18x18xf32>
    %997 = arith.addf %963, %996 : vector<18x18xf32>
    %c280 = arith.constant 280 : index
    %998 = memref.load %arg2[%c280] : memref<288xf32, #tpu.memory_space<smem>>
    %999 = vector.broadcast %998 : f32 to vector<18x18xf32>
    %1000 = arith.mulf %999, %969 : vector<18x18xf32>
    %1001 = arith.addf %967, %1000 : vector<18x18xf32>
    %c0_124 = arith.constant 0 : index
    %c3_125 = arith.constant 3 : index
    %c0_126 = arith.constant 0 : index
    %c2_127 = arith.constant 2 : index
    %1002 = vector.load %arg1[%c0_124, %c3_125, %c0_126, %c2_127] : memref<1x4x20x20xf32, #tpu.memory_space<vmem>>, vector<1x1x18x18xf32>
    %1003 = vector.shape_cast %1002 : vector<1x1x18x18xf32> to vector<18x18xf32>
    %c29 = arith.constant 29 : index
    %1004 = memref.load %arg2[%c29] : memref<288xf32, #tpu.memory_space<smem>>
    %1005 = vector.broadcast %1004 : f32 to vector<18x18xf32>
    %1006 = arith.mulf %1005, %1003 : vector<18x18xf32>
    %1007 = arith.addf %973, %1006 : vector<18x18xf32>
    %c65 = arith.constant 65 : index
    %1008 = memref.load %arg2[%c65] : memref<288xf32, #tpu.memory_space<smem>>
    %1009 = vector.broadcast %1008 : f32 to vector<18x18xf32>
    %1010 = arith.mulf %1009, %1003 : vector<18x18xf32>
    %1011 = arith.addf %977, %1010 : vector<18x18xf32>
    %c101 = arith.constant 101 : index
    %1012 = memref.load %arg2[%c101] : memref<288xf32, #tpu.memory_space<smem>>
    %1013 = vector.broadcast %1012 : f32 to vector<18x18xf32>
    %1014 = arith.mulf %1013, %1003 : vector<18x18xf32>
    %1015 = arith.addf %981, %1014 : vector<18x18xf32>
    %c137 = arith.constant 137 : index
    %1016 = memref.load %arg2[%c137] : memref<288xf32, #tpu.memory_space<smem>>
    %1017 = vector.broadcast %1016 : f32 to vector<18x18xf32>
    %1018 = arith.mulf %1017, %1003 : vector<18x18xf32>
    %1019 = arith.addf %985, %1018 : vector<18x18xf32>
    %c173 = arith.constant 173 : index
    %1020 = memref.load %arg2[%c173] : memref<288xf32, #tpu.memory_space<smem>>
    %1021 = vector.broadcast %1020 : f32 to vector<18x18xf32>
    %1022 = arith.mulf %1021, %1003 : vector<18x18xf32>
    %1023 = arith.addf %989, %1022 : vector<18x18xf32>
    %c209 = arith.constant 209 : index
    %1024 = memref.load %arg2[%c209] : memref<288xf32, #tpu.memory_space<smem>>
    %1025 = vector.broadcast %1024 : f32 to vector<18x18xf32>
    %1026 = arith.mulf %1025, %1003 : vector<18x18xf32>
    %1027 = arith.addf %993, %1026 : vector<18x18xf32>
    %c245 = arith.constant 245 : index
    %1028 = memref.load %arg2[%c245] : memref<288xf32, #tpu.memory_space<smem>>
    %1029 = vector.broadcast %1028 : f32 to vector<18x18xf32>
    %1030 = arith.mulf %1029, %1003 : vector<18x18xf32>
    %1031 = arith.addf %997, %1030 : vector<18x18xf32>
    %c281 = arith.constant 281 : index
    %1032 = memref.load %arg2[%c281] : memref<288xf32, #tpu.memory_space<smem>>
    %1033 = vector.broadcast %1032 : f32 to vector<18x18xf32>
    %1034 = arith.mulf %1033, %1003 : vector<18x18xf32>
    %1035 = arith.addf %1001, %1034 : vector<18x18xf32>
    %c0_128 = arith.constant 0 : index
    %c3_129 = arith.constant 3 : index
    %c1_130 = arith.constant 1 : index
    %c0_131 = arith.constant 0 : index
    %1036 = vector.load %arg1[%c0_128, %c3_129, %c1_130, %c0_131] : memref<1x4x20x20xf32, #tpu.memory_space<vmem>>, vector<1x1x18x18xf32>
    %1037 = vector.shape_cast %1036 : vector<1x1x18x18xf32> to vector<18x18xf32>
    %c30 = arith.constant 30 : index
    %1038 = memref.load %arg2[%c30] : memref<288xf32, #tpu.memory_space<smem>>
    %1039 = vector.broadcast %1038 : f32 to vector<18x18xf32>
    %1040 = arith.mulf %1039, %1037 : vector<18x18xf32>
    %1041 = arith.addf %1007, %1040 : vector<18x18xf32>
    %c66 = arith.constant 66 : index
    %1042 = memref.load %arg2[%c66] : memref<288xf32, #tpu.memory_space<smem>>
    %1043 = vector.broadcast %1042 : f32 to vector<18x18xf32>
    %1044 = arith.mulf %1043, %1037 : vector<18x18xf32>
    %1045 = arith.addf %1011, %1044 : vector<18x18xf32>
    %c102 = arith.constant 102 : index
    %1046 = memref.load %arg2[%c102] : memref<288xf32, #tpu.memory_space<smem>>
    %1047 = vector.broadcast %1046 : f32 to vector<18x18xf32>
    %1048 = arith.mulf %1047, %1037 : vector<18x18xf32>
    %1049 = arith.addf %1015, %1048 : vector<18x18xf32>
    %c138 = arith.constant 138 : index
    %1050 = memref.load %arg2[%c138] : memref<288xf32, #tpu.memory_space<smem>>
    %1051 = vector.broadcast %1050 : f32 to vector<18x18xf32>
    %1052 = arith.mulf %1051, %1037 : vector<18x18xf32>
    %1053 = arith.addf %1019, %1052 : vector<18x18xf32>
    %c174 = arith.constant 174 : index
    %1054 = memref.load %arg2[%c174] : memref<288xf32, #tpu.memory_space<smem>>
    %1055 = vector.broadcast %1054 : f32 to vector<18x18xf32>
    %1056 = arith.mulf %1055, %1037 : vector<18x18xf32>
    %1057 = arith.addf %1023, %1056 : vector<18x18xf32>
    %c210 = arith.constant 210 : index
    %1058 = memref.load %arg2[%c210] : memref<288xf32, #tpu.memory_space<smem>>
    %1059 = vector.broadcast %1058 : f32 to vector<18x18xf32>
    %1060 = arith.mulf %1059, %1037 : vector<18x18xf32>
    %1061 = arith.addf %1027, %1060 : vector<18x18xf32>
    %c246 = arith.constant 246 : index
    %1062 = memref.load %arg2[%c246] : memref<288xf32, #tpu.memory_space<smem>>
    %1063 = vector.broadcast %1062 : f32 to vector<18x18xf32>
    %1064 = arith.mulf %1063, %1037 : vector<18x18xf32>
    %1065 = arith.addf %1031, %1064 : vector<18x18xf32>
    %c282 = arith.constant 282 : index
    %1066 = memref.load %arg2[%c282] : memref<288xf32, #tpu.memory_space<smem>>
    %1067 = vector.broadcast %1066 : f32 to vector<18x18xf32>
    %1068 = arith.mulf %1067, %1037 : vector<18x18xf32>
    %1069 = arith.addf %1035, %1068 : vector<18x18xf32>
    %c0_132 = arith.constant 0 : index
    %c3_133 = arith.constant 3 : index
    %c1_134 = arith.constant 1 : index
    %c1_135 = arith.constant 1 : index
    %1070 = vector.load %arg1[%c0_132, %c3_133, %c1_134, %c1_135] : memref<1x4x20x20xf32, #tpu.memory_space<vmem>>, vector<1x1x18x18xf32>
    %1071 = vector.shape_cast %1070 : vector<1x1x18x18xf32> to vector<18x18xf32>
    %c31 = arith.constant 31 : index
    %1072 = memref.load %arg2[%c31] : memref<288xf32, #tpu.memory_space<smem>>
    %1073 = vector.broadcast %1072 : f32 to vector<18x18xf32>
    %1074 = arith.mulf %1073, %1071 : vector<18x18xf32>
    %1075 = arith.addf %1041, %1074 : vector<18x18xf32>
    %c67 = arith.constant 67 : index
    %1076 = memref.load %arg2[%c67] : memref<288xf32, #tpu.memory_space<smem>>
    %1077 = vector.broadcast %1076 : f32 to vector<18x18xf32>
    %1078 = arith.mulf %1077, %1071 : vector<18x18xf32>
    %1079 = arith.addf %1045, %1078 : vector<18x18xf32>
    %c103 = arith.constant 103 : index
    %1080 = memref.load %arg2[%c103] : memref<288xf32, #tpu.memory_space<smem>>
    %1081 = vector.broadcast %1080 : f32 to vector<18x18xf32>
    %1082 = arith.mulf %1081, %1071 : vector<18x18xf32>
    %1083 = arith.addf %1049, %1082 : vector<18x18xf32>
    %c139 = arith.constant 139 : index
    %1084 = memref.load %arg2[%c139] : memref<288xf32, #tpu.memory_space<smem>>
    %1085 = vector.broadcast %1084 : f32 to vector<18x18xf32>
    %1086 = arith.mulf %1085, %1071 : vector<18x18xf32>
    %1087 = arith.addf %1053, %1086 : vector<18x18xf32>
    %c175 = arith.constant 175 : index
    %1088 = memref.load %arg2[%c175] : memref<288xf32, #tpu.memory_space<smem>>
    %1089 = vector.broadcast %1088 : f32 to vector<18x18xf32>
    %1090 = arith.mulf %1089, %1071 : vector<18x18xf32>
    %1091 = arith.addf %1057, %1090 : vector<18x18xf32>
    %c211 = arith.constant 211 : index
    %1092 = memref.load %arg2[%c211] : memref<288xf32, #tpu.memory_space<smem>>
    %1093 = vector.broadcast %1092 : f32 to vector<18x18xf32>
    %1094 = arith.mulf %1093, %1071 : vector<18x18xf32>
    %1095 = arith.addf %1061, %1094 : vector<18x18xf32>
    %c247 = arith.constant 247 : index
    %1096 = memref.load %arg2[%c247] : memref<288xf32, #tpu.memory_space<smem>>
    %1097 = vector.broadcast %1096 : f32 to vector<18x18xf32>
    %1098 = arith.mulf %1097, %1071 : vector<18x18xf32>
    %1099 = arith.addf %1065, %1098 : vector<18x18xf32>
    %c283 = arith.constant 283 : index
    %1100 = memref.load %arg2[%c283] : memref<288xf32, #tpu.memory_space<smem>>
    %1101 = vector.broadcast %1100 : f32 to vector<18x18xf32>
    %1102 = arith.mulf %1101, %1071 : vector<18x18xf32>
    %1103 = arith.addf %1069, %1102 : vector<18x18xf32>
    %c0_136 = arith.constant 0 : index
    %c3_137 = arith.constant 3 : index
    %c1_138 = arith.constant 1 : index
    %c2_139 = arith.constant 2 : index
    %1104 = vector.load %arg1[%c0_136, %c3_137, %c1_138, %c2_139] : memref<1x4x20x20xf32, #tpu.memory_space<vmem>>, vector<1x1x18x18xf32>
    %1105 = vector.shape_cast %1104 : vector<1x1x18x18xf32> to vector<18x18xf32>
    %c32 = arith.constant 32 : index
    %1106 = memref.load %arg2[%c32] : memref<288xf32, #tpu.memory_space<smem>>
    %1107 = vector.broadcast %1106 : f32 to vector<18x18xf32>
    %1108 = arith.mulf %1107, %1105 : vector<18x18xf32>
    %1109 = arith.addf %1075, %1108 : vector<18x18xf32>
    %c68 = arith.constant 68 : index
    %1110 = memref.load %arg2[%c68] : memref<288xf32, #tpu.memory_space<smem>>
    %1111 = vector.broadcast %1110 : f32 to vector<18x18xf32>
    %1112 = arith.mulf %1111, %1105 : vector<18x18xf32>
    %1113 = arith.addf %1079, %1112 : vector<18x18xf32>
    %c104 = arith.constant 104 : index
    %1114 = memref.load %arg2[%c104] : memref<288xf32, #tpu.memory_space<smem>>
    %1115 = vector.broadcast %1114 : f32 to vector<18x18xf32>
    %1116 = arith.mulf %1115, %1105 : vector<18x18xf32>
    %1117 = arith.addf %1083, %1116 : vector<18x18xf32>
    %c140 = arith.constant 140 : index
    %1118 = memref.load %arg2[%c140] : memref<288xf32, #tpu.memory_space<smem>>
    %1119 = vector.broadcast %1118 : f32 to vector<18x18xf32>
    %1120 = arith.mulf %1119, %1105 : vector<18x18xf32>
    %1121 = arith.addf %1087, %1120 : vector<18x18xf32>
    %c176 = arith.constant 176 : index
    %1122 = memref.load %arg2[%c176] : memref<288xf32, #tpu.memory_space<smem>>
    %1123 = vector.broadcast %1122 : f32 to vector<18x18xf32>
    %1124 = arith.mulf %1123, %1105 : vector<18x18xf32>
    %1125 = arith.addf %1091, %1124 : vector<18x18xf32>
    %c212 = arith.constant 212 : index
    %1126 = memref.load %arg2[%c212] : memref<288xf32, #tpu.memory_space<smem>>
    %1127 = vector.broadcast %1126 : f32 to vector<18x18xf32>
    %1128 = arith.mulf %1127, %1105 : vector<18x18xf32>
    %1129 = arith.addf %1095, %1128 : vector<18x18xf32>
    %c248 = arith.constant 248 : index
    %1130 = memref.load %arg2[%c248] : memref<288xf32, #tpu.memory_space<smem>>
    %1131 = vector.broadcast %1130 : f32 to vector<18x18xf32>
    %1132 = arith.mulf %1131, %1105 : vector<18x18xf32>
    %1133 = arith.addf %1099, %1132 : vector<18x18xf32>
    %c284 = arith.constant 284 : index
    %1134 = memref.load %arg2[%c284] : memref<288xf32, #tpu.memory_space<smem>>
    %1135 = vector.broadcast %1134 : f32 to vector<18x18xf32>
    %1136 = arith.mulf %1135, %1105 : vector<18x18xf32>
    %1137 = arith.addf %1103, %1136 : vector<18x18xf32>
    %c0_140 = arith.constant 0 : index
    %c3_141 = arith.constant 3 : index
    %c2_142 = arith.constant 2 : index
    %c0_143 = arith.constant 0 : index
    %1138 = vector.load %arg1[%c0_140, %c3_141, %c2_142, %c0_143] : memref<1x4x20x20xf32, #tpu.memory_space<vmem>>, vector<1x1x18x18xf32>
    %1139 = vector.shape_cast %1138 : vector<1x1x18x18xf32> to vector<18x18xf32>
    %c33 = arith.constant 33 : index
    %1140 = memref.load %arg2[%c33] : memref<288xf32, #tpu.memory_space<smem>>
    %1141 = vector.broadcast %1140 : f32 to vector<18x18xf32>
    %1142 = arith.mulf %1141, %1139 : vector<18x18xf32>
    %1143 = arith.addf %1109, %1142 : vector<18x18xf32>
    %c69 = arith.constant 69 : index
    %1144 = memref.load %arg2[%c69] : memref<288xf32, #tpu.memory_space<smem>>
    %1145 = vector.broadcast %1144 : f32 to vector<18x18xf32>
    %1146 = arith.mulf %1145, %1139 : vector<18x18xf32>
    %1147 = arith.addf %1113, %1146 : vector<18x18xf32>
    %c105 = arith.constant 105 : index
    %1148 = memref.load %arg2[%c105] : memref<288xf32, #tpu.memory_space<smem>>
    %1149 = vector.broadcast %1148 : f32 to vector<18x18xf32>
    %1150 = arith.mulf %1149, %1139 : vector<18x18xf32>
    %1151 = arith.addf %1117, %1150 : vector<18x18xf32>
    %c141 = arith.constant 141 : index
    %1152 = memref.load %arg2[%c141] : memref<288xf32, #tpu.memory_space<smem>>
    %1153 = vector.broadcast %1152 : f32 to vector<18x18xf32>
    %1154 = arith.mulf %1153, %1139 : vector<18x18xf32>
    %1155 = arith.addf %1121, %1154 : vector<18x18xf32>
    %c177 = arith.constant 177 : index
    %1156 = memref.load %arg2[%c177] : memref<288xf32, #tpu.memory_space<smem>>
    %1157 = vector.broadcast %1156 : f32 to vector<18x18xf32>
    %1158 = arith.mulf %1157, %1139 : vector<18x18xf32>
    %1159 = arith.addf %1125, %1158 : vector<18x18xf32>
    %c213 = arith.constant 213 : index
    %1160 = memref.load %arg2[%c213] : memref<288xf32, #tpu.memory_space<smem>>
    %1161 = vector.broadcast %1160 : f32 to vector<18x18xf32>
    %1162 = arith.mulf %1161, %1139 : vector<18x18xf32>
    %1163 = arith.addf %1129, %1162 : vector<18x18xf32>
    %c249 = arith.constant 249 : index
    %1164 = memref.load %arg2[%c249] : memref<288xf32, #tpu.memory_space<smem>>
    %1165 = vector.broadcast %1164 : f32 to vector<18x18xf32>
    %1166 = arith.mulf %1165, %1139 : vector<18x18xf32>
    %1167 = arith.addf %1133, %1166 : vector<18x18xf32>
    %c285 = arith.constant 285 : index
    %1168 = memref.load %arg2[%c285] : memref<288xf32, #tpu.memory_space<smem>>
    %1169 = vector.broadcast %1168 : f32 to vector<18x18xf32>
    %1170 = arith.mulf %1169, %1139 : vector<18x18xf32>
    %1171 = arith.addf %1137, %1170 : vector<18x18xf32>
    %c0_144 = arith.constant 0 : index
    %c3_145 = arith.constant 3 : index
    %c2_146 = arith.constant 2 : index
    %c1_147 = arith.constant 1 : index
    %1172 = vector.load %arg1[%c0_144, %c3_145, %c2_146, %c1_147] : memref<1x4x20x20xf32, #tpu.memory_space<vmem>>, vector<1x1x18x18xf32>
    %1173 = vector.shape_cast %1172 : vector<1x1x18x18xf32> to vector<18x18xf32>
    %c34 = arith.constant 34 : index
    %1174 = memref.load %arg2[%c34] : memref<288xf32, #tpu.memory_space<smem>>
    %1175 = vector.broadcast %1174 : f32 to vector<18x18xf32>
    %1176 = arith.mulf %1175, %1173 : vector<18x18xf32>
    %1177 = arith.addf %1143, %1176 : vector<18x18xf32>
    %c70 = arith.constant 70 : index
    %1178 = memref.load %arg2[%c70] : memref<288xf32, #tpu.memory_space<smem>>
    %1179 = vector.broadcast %1178 : f32 to vector<18x18xf32>
    %1180 = arith.mulf %1179, %1173 : vector<18x18xf32>
    %1181 = arith.addf %1147, %1180 : vector<18x18xf32>
    %c106 = arith.constant 106 : index
    %1182 = memref.load %arg2[%c106] : memref<288xf32, #tpu.memory_space<smem>>
    %1183 = vector.broadcast %1182 : f32 to vector<18x18xf32>
    %1184 = arith.mulf %1183, %1173 : vector<18x18xf32>
    %1185 = arith.addf %1151, %1184 : vector<18x18xf32>
    %c142 = arith.constant 142 : index
    %1186 = memref.load %arg2[%c142] : memref<288xf32, #tpu.memory_space<smem>>
    %1187 = vector.broadcast %1186 : f32 to vector<18x18xf32>
    %1188 = arith.mulf %1187, %1173 : vector<18x18xf32>
    %1189 = arith.addf %1155, %1188 : vector<18x18xf32>
    %c178 = arith.constant 178 : index
    %1190 = memref.load %arg2[%c178] : memref<288xf32, #tpu.memory_space<smem>>
    %1191 = vector.broadcast %1190 : f32 to vector<18x18xf32>
    %1192 = arith.mulf %1191, %1173 : vector<18x18xf32>
    %1193 = arith.addf %1159, %1192 : vector<18x18xf32>
    %c214 = arith.constant 214 : index
    %1194 = memref.load %arg2[%c214] : memref<288xf32, #tpu.memory_space<smem>>
    %1195 = vector.broadcast %1194 : f32 to vector<18x18xf32>
    %1196 = arith.mulf %1195, %1173 : vector<18x18xf32>
    %1197 = arith.addf %1163, %1196 : vector<18x18xf32>
    %c250 = arith.constant 250 : index
    %1198 = memref.load %arg2[%c250] : memref<288xf32, #tpu.memory_space<smem>>
    %1199 = vector.broadcast %1198 : f32 to vector<18x18xf32>
    %1200 = arith.mulf %1199, %1173 : vector<18x18xf32>
    %1201 = arith.addf %1167, %1200 : vector<18x18xf32>
    %c286 = arith.constant 286 : index
    %1202 = memref.load %arg2[%c286] : memref<288xf32, #tpu.memory_space<smem>>
    %1203 = vector.broadcast %1202 : f32 to vector<18x18xf32>
    %1204 = arith.mulf %1203, %1173 : vector<18x18xf32>
    %1205 = arith.addf %1171, %1204 : vector<18x18xf32>
    %c0_148 = arith.constant 0 : index
    %c3_149 = arith.constant 3 : index
    %c2_150 = arith.constant 2 : index
    %c2_151 = arith.constant 2 : index
    %1206 = vector.load %arg1[%c0_148, %c3_149, %c2_150, %c2_151] : memref<1x4x20x20xf32, #tpu.memory_space<vmem>>, vector<1x1x18x18xf32>
    %1207 = vector.shape_cast %1206 : vector<1x1x18x18xf32> to vector<18x18xf32>
    %c35 = arith.constant 35 : index
    %1208 = memref.load %arg2[%c35] : memref<288xf32, #tpu.memory_space<smem>>
    %1209 = vector.broadcast %1208 : f32 to vector<18x18xf32>
    %1210 = arith.mulf %1209, %1207 : vector<18x18xf32>
    %1211 = arith.addf %1177, %1210 : vector<18x18xf32>
    %c71 = arith.constant 71 : index
    %1212 = memref.load %arg2[%c71] : memref<288xf32, #tpu.memory_space<smem>>
    %1213 = vector.broadcast %1212 : f32 to vector<18x18xf32>
    %1214 = arith.mulf %1213, %1207 : vector<18x18xf32>
    %1215 = arith.addf %1181, %1214 : vector<18x18xf32>
    %c107 = arith.constant 107 : index
    %1216 = memref.load %arg2[%c107] : memref<288xf32, #tpu.memory_space<smem>>
    %1217 = vector.broadcast %1216 : f32 to vector<18x18xf32>
    %1218 = arith.mulf %1217, %1207 : vector<18x18xf32>
    %1219 = arith.addf %1185, %1218 : vector<18x18xf32>
    %c143 = arith.constant 143 : index
    %1220 = memref.load %arg2[%c143] : memref<288xf32, #tpu.memory_space<smem>>
    %1221 = vector.broadcast %1220 : f32 to vector<18x18xf32>
    %1222 = arith.mulf %1221, %1207 : vector<18x18xf32>
    %1223 = arith.addf %1189, %1222 : vector<18x18xf32>
    %c179 = arith.constant 179 : index
    %1224 = memref.load %arg2[%c179] : memref<288xf32, #tpu.memory_space<smem>>
    %1225 = vector.broadcast %1224 : f32 to vector<18x18xf32>
    %1226 = arith.mulf %1225, %1207 : vector<18x18xf32>
    %1227 = arith.addf %1193, %1226 : vector<18x18xf32>
    %c215 = arith.constant 215 : index
    %1228 = memref.load %arg2[%c215] : memref<288xf32, #tpu.memory_space<smem>>
    %1229 = vector.broadcast %1228 : f32 to vector<18x18xf32>
    %1230 = arith.mulf %1229, %1207 : vector<18x18xf32>
    %1231 = arith.addf %1197, %1230 : vector<18x18xf32>
    %c251 = arith.constant 251 : index
    %1232 = memref.load %arg2[%c251] : memref<288xf32, #tpu.memory_space<smem>>
    %1233 = vector.broadcast %1232 : f32 to vector<18x18xf32>
    %1234 = arith.mulf %1233, %1207 : vector<18x18xf32>
    %1235 = arith.addf %1201, %1234 : vector<18x18xf32>
    %c287 = arith.constant 287 : index
    %1236 = memref.load %arg2[%c287] : memref<288xf32, #tpu.memory_space<smem>>
    %1237 = vector.broadcast %1236 : f32 to vector<18x18xf32>
    %1238 = arith.mulf %1237, %1207 : vector<18x18xf32>
    %1239 = arith.addf %1205, %1238 : vector<18x18xf32>
    %c0_152 = arith.constant 0 : index
    %1240 = memref.load %arg3[%c0_152] : memref<8xf32, #tpu.memory_space<smem>>
    %1241 = vector.broadcast %1240 : f32 to vector<80x80xf32>
    %c0_153 = arith.constant 0 : index
    %c0_154 = arith.constant 0 : index
    %c0_155 = arith.constant 0 : index
    %c0_156 = arith.constant 0 : index
    %1242 = vector.load %arg4[%c0_153, %c0_154, %c0_155, %c0_156] : memref<1x8x80x80xf32, #tpu.memory_space<vmem>>, vector<1x1x80x80xf32>
    %1243 = vector.shape_cast %1242 : vector<1x1x80x80xf32> to vector<80x80xf32>
    %1244 = vector.shape_cast %1241 : vector<80x80xf32> to vector<1x1x80x80xf32>
    tpu.vector_store %arg4[%c0_153, %c0_154, %c0_155, %c0_156], %1244 {strides = array<i32>} : memref<1x8x80x80xf32, #tpu.memory_space<vmem>>, vector<1x1x80x80xf32>,
    %c0_157 = arith.constant 0 : index
    %c0_158 = arith.constant 0 : index
    %c31_159 = arith.constant 31 : index
    %c31_160 = arith.constant 31 : index
    %1245 = vector.load %arg4[%c0_157, %c0_158, %c31_159, %c31_160] : memref<1x8x80x80xf32, #tpu.memory_space<vmem>>, vector<1x1x18x18xf32>
    %1246 = vector.shape_cast %1245 : vector<1x1x18x18xf32> to vector<18x18xf32>
    %1247 = vector.shape_cast %1211 : vector<18x18xf32> to vector<1x1x18x18xf32>
    tpu.vector_store %arg4[%c0_157, %c0_158, %c31_159, %c31_160], %1247 {strides = array<i32>} : memref<1x8x80x80xf32, #tpu.memory_space<vmem>>, vector<1x1x18x18xf32>,
    %c1_161 = arith.constant 1 : index
    %1248 = memref.load %arg3[%c1_161] : memref<8xf32, #tpu.memory_space<smem>>
    %1249 = vector.broadcast %1248 : f32 to vector<80x80xf32>
    %c0_162 = arith.constant 0 : index
    %c1_163 = arith.constant 1 : index
    %c0_164 = arith.constant 0 : index
    %c0_165 = arith.constant 0 : index
    %1250 = vector.load %arg4[%c0_162, %c1_163, %c0_164, %c0_165] : memref<1x8x80x80xf32, #tpu.memory_space<vmem>>, vector<1x1x80x80xf32>
    %1251 = vector.shape_cast %1250 : vector<1x1x80x80xf32> to vector<80x80xf32>
    %1252 = vector.shape_cast %1249 : vector<80x80xf32> to vector<1x1x80x80xf32>
    tpu.vector_store %arg4[%c0_162, %c1_163, %c0_164, %c0_165], %1252 {strides = array<i32>} : memref<1x8x80x80xf32, #tpu.memory_space<vmem>>, vector<1x1x80x80xf32>,
    %c0_166 = arith.constant 0 : index
    %c1_167 = arith.constant 1 : index
    %c31_168 = arith.constant 31 : index
    %c31_169 = arith.constant 31 : index
    %1253 = vector.load %arg4[%c0_166, %c1_167, %c31_168, %c31_169] : memref<1x8x80x80xf32, #tpu.memory_space<vmem>>, vector<1x1x18x18xf32>
    %1254 = vector.shape_cast %1253 : vector<1x1x18x18xf32> to vector<18x18xf32>
    %1255 = vector.shape_cast %1215 : vector<18x18xf32> to vector<1x1x18x18xf32>
    tpu.vector_store %arg4[%c0_166, %c1_167, %c31_168, %c31_169], %1255 {strides = array<i32>} : memref<1x8x80x80xf32, #tpu.memory_space<vmem>>, vector<1x1x18x18xf32>,
    %c2_170 = arith.constant 2 : index
    %1256 = memref.load %arg3[%c2_170] : memref<8xf32, #tpu.memory_space<smem>>
    %1257 = vector.broadcast %1256 : f32 to vector<80x80xf32>
    %c0_171 = arith.constant 0 : index
    %c2_172 = arith.constant 2 : index
    %c0_173 = arith.constant 0 : index
    %c0_174 = arith.constant 0 : index
    %1258 = vector.load %arg4[%c0_171, %c2_172, %c0_173, %c0_174] : memref<1x8x80x80xf32, #tpu.memory_space<vmem>>, vector<1x1x80x80xf32>
    %1259 = vector.shape_cast %1258 : vector<1x1x80x80xf32> to vector<80x80xf32>
    %1260 = vector.shape_cast %1257 : vector<80x80xf32> to vector<1x1x80x80xf32>
    tpu.vector_store %arg4[%c0_171, %c2_172, %c0_173, %c0_174], %1260 {strides = array<i32>} : memref<1x8x80x80xf32, #tpu.memory_space<vmem>>, vector<1x1x80x80xf32>,
    %c0_175 = arith.constant 0 : index
    %c2_176 = arith.constant 2 : index
    %c31_177 = arith.constant 31 : index
    %c31_178 = arith.constant 31 : index
    %1261 = vector.load %arg4[%c0_175, %c2_176, %c31_177, %c31_178] : memref<1x8x80x80xf32, #tpu.memory_space<vmem>>, vector<1x1x18x18xf32>
    %1262 = vector.shape_cast %1261 : vector<1x1x18x18xf32> to vector<18x18xf32>
    %1263 = vector.shape_cast %1219 : vector<18x18xf32> to vector<1x1x18x18xf32>
    tpu.vector_store %arg4[%c0_175, %c2_176, %c31_177, %c31_178], %1263 {strides = array<i32>} : memref<1x8x80x80xf32, #tpu.memory_space<vmem>>, vector<1x1x18x18xf32>,
    %c3_179 = arith.constant 3 : index
    %1264 = memref.load %arg3[%c3_179] : memref<8xf32, #tpu.memory_space<smem>>
    %1265 = vector.broadcast %1264 : f32 to vector<80x80xf32>
    %c0_180 = arith.constant 0 : index
    %c3_181 = arith.constant 3 : index
    %c0_182 = arith.constant 0 : index
    %c0_183 = arith.constant 0 : index
    %1266 = vector.load %arg4[%c0_180, %c3_181, %c0_182, %c0_183] : memref<1x8x80x80xf32, #tpu.memory_space<vmem>>, vector<1x1x80x80xf32>
    %1267 = vector.shape_cast %1266 : vector<1x1x80x80xf32> to vector<80x80xf32>
    %1268 = vector.shape_cast %1265 : vector<80x80xf32> to vector<1x1x80x80xf32>
    tpu.vector_store %arg4[%c0_180, %c3_181, %c0_182, %c0_183], %1268 {strides = array<i32>} : memref<1x8x80x80xf32, #tpu.memory_space<vmem>>, vector<1x1x80x80xf32>,
    %c0_184 = arith.constant 0 : index
    %c3_185 = arith.constant 3 : index
    %c31_186 = arith.constant 31 : index
    %c31_187 = arith.constant 31 : index
    %1269 = vector.load %arg4[%c0_184, %c3_185, %c31_186, %c31_187] : memref<1x8x80x80xf32, #tpu.memory_space<vmem>>, vector<1x1x18x18xf32>
    %1270 = vector.shape_cast %1269 : vector<1x1x18x18xf32> to vector<18x18xf32>
    %1271 = vector.shape_cast %1223 : vector<18x18xf32> to vector<1x1x18x18xf32>
    tpu.vector_store %arg4[%c0_184, %c3_185, %c31_186, %c31_187], %1271 {strides = array<i32>} : memref<1x8x80x80xf32, #tpu.memory_space<vmem>>, vector<1x1x18x18xf32>,
    %c4_188 = arith.constant 4 : index
    %1272 = memref.load %arg3[%c4_188] : memref<8xf32, #tpu.memory_space<smem>>
    %1273 = vector.broadcast %1272 : f32 to vector<80x80xf32>
    %c0_189 = arith.constant 0 : index
    %c4_190 = arith.constant 4 : index
    %c0_191 = arith.constant 0 : index
    %c0_192 = arith.constant 0 : index
    %1274 = vector.load %arg4[%c0_189, %c4_190, %c0_191, %c0_192] : memref<1x8x80x80xf32, #tpu.memory_space<vmem>>, vector<1x1x80x80xf32>
    %1275 = vector.shape_cast %1274 : vector<1x1x80x80xf32> to vector<80x80xf32>
    %1276 = vector.shape_cast %1273 : vector<80x80xf32> to vector<1x1x80x80xf32>
    tpu.vector_store %arg4[%c0_189, %c4_190, %c0_191, %c0_192], %1276 {strides = array<i32>} : memref<1x8x80x80xf32, #tpu.memory_space<vmem>>, vector<1x1x80x80xf32>,
    %c0_193 = arith.constant 0 : index
    %c4_194 = arith.constant 4 : index
    %c31_195 = arith.constant 31 : index
    %c31_196 = arith.constant 31 : index
    %1277 = vector.load %arg4[%c0_193, %c4_194, %c31_195, %c31_196] : memref<1x8x80x80xf32, #tpu.memory_space<vmem>>, vector<1x1x18x18xf32>
    %1278 = vector.shape_cast %1277 : vector<1x1x18x18xf32> to vector<18x18xf32>
    %1279 = vector.shape_cast %1227 : vector<18x18xf32> to vector<1x1x18x18xf32>
    tpu.vector_store %arg4[%c0_193, %c4_194, %c31_195, %c31_196], %1279 {strides = array<i32>} : memref<1x8x80x80xf32, #tpu.memory_space<vmem>>, vector<1x1x18x18xf32>,
    %c5_197 = arith.constant 5 : index
    %1280 = memref.load %arg3[%c5_197] : memref<8xf32, #tpu.memory_space<smem>>
    %1281 = vector.broadcast %1280 : f32 to vector<80x80xf32>
    %c0_198 = arith.constant 0 : index
    %c5_199 = arith.constant 5 : index
    %c0_200 = arith.constant 0 : index
    %c0_201 = arith.constant 0 : index
    %1282 = vector.load %arg4[%c0_198, %c5_199, %c0_200, %c0_201] : memref<1x8x80x80xf32, #tpu.memory_space<vmem>>, vector<1x1x80x80xf32>
    %1283 = vector.shape_cast %1282 : vector<1x1x80x80xf32> to vector<80x80xf32>
    %1284 = vector.shape_cast %1281 : vector<80x80xf32> to vector<1x1x80x80xf32>
    tpu.vector_store %arg4[%c0_198, %c5_199, %c0_200, %c0_201], %1284 {strides = array<i32>} : memref<1x8x80x80xf32, #tpu.memory_space<vmem>>, vector<1x1x80x80xf32>,
    %c0_202 = arith.constant 0 : index
    %c5_203 = arith.constant 5 : index
    %c31_204 = arith.constant 31 : index
    %c31_205 = arith.constant 31 : index
    %1285 = vector.load %arg4[%c0_202, %c5_203, %c31_204, %c31_205] : memref<1x8x80x80xf32, #tpu.memory_space<vmem>>, vector<1x1x18x18xf32>
    %1286 = vector.shape_cast %1285 : vector<1x1x18x18xf32> to vector<18x18xf32>
    %1287 = vector.shape_cast %1231 : vector<18x18xf32> to vector<1x1x18x18xf32>
    tpu.vector_store %arg4[%c0_202, %c5_203, %c31_204, %c31_205], %1287 {strides = array<i32>} : memref<1x8x80x80xf32, #tpu.memory_space<vmem>>, vector<1x1x18x18xf32>,
    %c6_206 = arith.constant 6 : index
    %1288 = memref.load %arg3[%c6_206] : memref<8xf32, #tpu.memory_space<smem>>
    %1289 = vector.broadcast %1288 : f32 to vector<80x80xf32>
    %c0_207 = arith.constant 0 : index
    %c6_208 = arith.constant 6 : index
    %c0_209 = arith.constant 0 : index
    %c0_210 = arith.constant 0 : index
    %1290 = vector.load %arg4[%c0_207, %c6_208, %c0_209, %c0_210] : memref<1x8x80x80xf32, #tpu.memory_space<vmem>>, vector<1x1x80x80xf32>
    %1291 = vector.shape_cast %1290 : vector<1x1x80x80xf32> to vector<80x80xf32>
    %1292 = vector.shape_cast %1289 : vector<80x80xf32> to vector<1x1x80x80xf32>
    tpu.vector_store %arg4[%c0_207, %c6_208, %c0_209, %c0_210], %1292 {strides = array<i32>} : memref<1x8x80x80xf32, #tpu.memory_space<vmem>>, vector<1x1x80x80xf32>,
    %c0_211 = arith.constant 0 : index
    %c6_212 = arith.constant 6 : index
    %c31_213 = arith.constant 31 : index
    %c31_214 = arith.constant 31 : index
    %1293 = vector.load %arg4[%c0_211, %c6_212, %c31_213, %c31_214] : memref<1x8x80x80xf32, #tpu.memory_space<vmem>>, vector<1x1x18x18xf32>
    %1294 = vector.shape_cast %1293 : vector<1x1x18x18xf32> to vector<18x18xf32>
    %1295 = vector.shape_cast %1235 : vector<18x18xf32> to vector<1x1x18x18xf32>
    tpu.vector_store %arg4[%c0_211, %c6_212, %c31_213, %c31_214], %1295 {strides = array<i32>} : memref<1x8x80x80xf32, #tpu.memory_space<vmem>>, vector<1x1x18x18xf32>,
    %c7_215 = arith.constant 7 : index
    %1296 = memref.load %arg3[%c7_215] : memref<8xf32, #tpu.memory_space<smem>>
    %1297 = vector.broadcast %1296 : f32 to vector<80x80xf32>
    %c0_216 = arith.constant 0 : index
    %c7_217 = arith.constant 7 : index
    %c0_218 = arith.constant 0 : index
    %c0_219 = arith.constant 0 : index
    %1298 = vector.load %arg4[%c0_216, %c7_217, %c0_218, %c0_219] : memref<1x8x80x80xf32, #tpu.memory_space<vmem>>, vector<1x1x80x80xf32>
    %1299 = vector.shape_cast %1298 : vector<1x1x80x80xf32> to vector<80x80xf32>
    %1300 = vector.shape_cast %1297 : vector<80x80xf32> to vector<1x1x80x80xf32>
    tpu.vector_store %arg4[%c0_216, %c7_217, %c0_218, %c0_219], %1300 {strides = array<i32>} : memref<1x8x80x80xf32, #tpu.memory_space<vmem>>, vector<1x1x80x80xf32>,
    %c0_220 = arith.constant 0 : index
    %c7_221 = arith.constant 7 : index
    %c31_222 = arith.constant 31 : index
    %c31_223 = arith.constant 31 : index
    %1301 = vector.load %arg4[%c0_220, %c7_221, %c31_222, %c31_223] : memref<1x8x80x80xf32, #tpu.memory_space<vmem>>, vector<1x1x18x18xf32>
    %1302 = vector.shape_cast %1301 : vector<1x1x18x18xf32> to vector<18x18xf32>
    %1303 = vector.shape_cast %1239 : vector<18x18xf32> to vector<1x1x18x18xf32>
    tpu.vector_store %arg4[%c0_220, %c7_221, %c31_222, %c31_223], %1303 {strides = array<i32>} : memref<1x8x80x80xf32, #tpu.memory_space<vmem>>, vector<1x1x18x18xf32>,
    return
  }
  func.func @transform_0(%arg0: i32) -> (i32, i32, i32, i32) {
    %c0_i32 = arith.constant 0 : i32
    %c0_i32_0 = arith.constant 0 : i32
    %c0_i32_1 = arith.constant 0 : i32
    %c0_i32_2 = arith.constant 0 : i32
    return %arg0, %c0_i32, %c0_i32_0, %c0_i32_1 : i32, i32, i32, i32
  }
  func.func @transform_1(%arg0: i32) -> i32 {
    %c0_i32 = arith.constant 0 : i32
    %c0_i32_0 = arith.constant 0 : i32
    return %c0_i32 : i32
  }
  func.func @transform_2(%arg0: i32) -> i32 {
    %c0_i32 = arith.constant 0 : i32
    %c0_i32_0 = arith.constant 0 : i32
    return %c0_i32 : i32
  }
  func.func @transform_3(%arg0: i32) -> (i32, i32, i32, i32) {
    %c0_i32 = arith.constant 0 : i32
    %c0_i32_0 = arith.constant 0 : i32
    %c0_i32_1 = arith.constant 0 : i32
    %c0_i32_2 = arith.constant 0 : i32
    return %arg0, %c0_i32, %c0_i32_0, %c0_i32_1 : i32, i32, i32, i32
  }
}

</mosaic_0001>

<bundles_post_ra>
// kernel: tpu_custom_call.1
= control target key start
LH: loop header
LB: loop body
LE: loop exit
PB: predicated region body
PF: predicated region fallthrough
CT: control target
= control target key end

     0   :  { %8 = vsyncpa [#allocation4], 0  ;;  %s11801_s0 = inlined_call_operand.vmem [shape: f32[2,4,20,20], index: 0, kind: input, shape index: {}]   ;;  %s11802_s1 = inlined_call_operand.vmem [shape: f32[288], index: 1, kind: input, shape index: {}]   ;;  %s11803_s2 = inlined_call_operand.vmem [shape: f32[8], index: 2, kind: input, shape index: {}]   ;;  %s11804_s3 = inlined_call_operand.hbm [shape: f32[2,8,80,80], index: 3, kind: output, shape index: {}]  }
   0x1   :  { %9 = vsyncpa [#allocation6], 0 }
   0x2   :  { %10 = vsyncpa [#allocation3], 0 }
   0x3   :  { %12 = vsyncpa [#allocation3 + $0x1], 0  ;;  %s5844_s12 = smov 0   ;;  %s5846_s13 = smov 0  }
   0x4   :  { %s5848_s14 = smov 0   ;;  %s5850_s15 = smov 0  }
   0x5 LB: > { %s5865_s16 = sadd.s32 4294967295, %s5814_s15   ;;  %s5181_s17 = sadd.s32 4294967294, %s5814_s15   ;;  %s5814_s15 = sphi %s5850_s15, %s12994_s15   ;;  %s5810_s14 = sphi %s5848_s14, %s12993_s14   ;;  %s5806_s13 = sphi %s5846_s13, %s12992_s13   ;;  %s5802_s12 = sphi %s5844_s12, %s12991_s12  }
   0x6   : > { %s5869_s18 = sadd.s32 1, %s5814_s15   ;;  %s93_s19 = sadd.s32 1, %s5810_s14 }
   0x7   : > { %s90_s20 = ssub.s32 %s5814_s15, %s5869_s18  ;;  %p103_p0 = scmp.ne.s32.totalorder %s5810_s14, %s5806_s13 }
   0x8   : > { %p91_p1 = scmp.eq.s32.totalorder %s90_s20, 0  ;;  %p104_p2 = scmp.eq.s32.totalorder %s5865_s16, 1 }
   0x9   : > { %p109_p3 = scmp.ne.s32.totalorder %s5806_s13, %s5802_s12  ;;  %p110_p4 = scmp.eq.s32.totalorder %s5181_s17, 1 }
   0xa   : > { %s5880_s21 = scalar_select %p91_p1, %s5810_s14, %s93_s19  }
   0xb   : > { %p5882_p5 = por %p104_p2, %p103_p0  ;;  %p5886_p6 = por %p110_p4, %p109_p3 }
   0xc   : > { %p5182_p7 = scmp.ge.s32.totalorder %s5814_s15, 1  ;;  %p117_p8 = scmp.lt.s32.totalorder %s5814_s15, 3 }
   0xd   : > { %s11812_s22 = scalar_select %p5882_p5, 1, 0 }
   0xe   : > { %s11813_s23 = scalar_select %p5886_p6, 1, 0 }
   0xf   : > { %p11805_p9 = scmp.eq.s32.totalorder %s5865_s16, 0  ;;  %p5893_p10 = pnand %p5182_p7, %p117_p8 }
  0x10   : > { %s130_s27 = sshll.u32 %s11802_s1, 4  ;;  %s141_s30 = sshll.u32 %s11803_s2, 4  ;;  %s131_s27 = int_to_ptr.vmem [resolvable:$true] %s130_s27  ;;  %s142_s30 = int_to_ptr.vmem [resolvable:$true] %s141_s30 }
  0x11   : > { %s11814_s24 = scalar_select %p5893_p10, 1, 0 }
  0x12   : > { %p5625_p11 = pneg %p5893_p10  ;;  %s5714_s5 = scalar_lea.vmem %s131_s27, 48 }
  0x13   : > { %p5715_p13 = scmp.ne.s32.totalorder %s131_s27, %s5714_s5  ;;  %s5721_s6 = scalar_lea.vmem %s131_s27, 64 }
  0x14   : > { %p5907_p12 = pnand %p11805_p9, %p5625_p11  ;;  %p5722_p3 = scmp.lt.s32.totalorder %s131_s27, %s131_s27 }
  0x15   : > { %p5723_p4 = scmp.lt.s32.totalorder %s5721_s6, %s5714_s5 }
  0x16   : > { %p5716_p0 = pneg %p5907_p12 }
  0x17   : > { %p5724_p7 = por %p5723_p4, %p5722_p3 }
  0x18   : > { %p5717_p1 = pnand %p5716_p0, %p5715_p13 }
  0x1a   : > { %p5718_p2 = pneg %p5717_p1 }
  0x1c   : > { %p5725_p8 = pnand %p5724_p7, %p5718_p2 }
  0x1e   : > { %5728 = shalt.err (!%p5725_p8)
}
  0x1f   : > { %s5816_s7 = smov [#allocation2]   ;;  %s5729_s8 = scalar_lea.vmem %s142_s30, 16 }
  0x20   : > { %5628 = dma.vmem_to_smem (!%p5907_p12), %s131_s27, 48, %s5816_s7, [#allocation4]  }
  0x21   : > { %p5730_p11 = scmp.ne.s32.totalorder %s142_s30, %s5729_s8  ;;  %p5737_p5 = scmp.lt.s32.totalorder %s142_s30, %s142_s30 }
  0x22   : > { %p5738_p13 = scmp.lt.s32.totalorder %s5729_s8, %s5729_s8 }
  0x23   : > { %p5732_p9 = pnand %p5730_p11, %p5716_p0 }
  0x24   : > { %p5739_p1 = por %p5738_p13, %p5737_p5 }
  0x25   : > { %p5733_p6 = pneg %p5732_p9 }
  0x27   : > { %p5740_p10 = pnand %p5739_p1, %p5733_p6 }
  0x29   : > { %5743 = shalt.err (!%p5740_p10)
}
  0x2a   : > { %s5817_s9 = smov [#allocation5]   ;;  %p11816_p2 = scmp.ne.s32.totalorder %s11814_s24, 0 }
  0x2b   : > { %5631 = dma.vmem_to_smem (!%p5907_p12), %s142_s30, 16, %s5817_s9, [#allocation6]  }
  0x2c   : > { %162 = sbr.rel (%p11816_p2) target bundleno = 1469 (0x5bd), region = 32 }
  0x33   : > { %p11817_p3 = scmp.eq.s32.totalorder %s5865_s16, 0 }
  0x35   : > { %5789 = dma.done.wait (%p11817_p3), [#allocation4], 48   ;;  %p11818_p4 = pmov %p11817_p3 }
  0x36   : > { %p11819_p9 = pmov %p11817_p3 }
  0x37   : > { %5791 = vsyncadd (%p11818_p4), [#allocation4], 4294967248 }
  0x38   : > { %5793 = dma.done.wait (%p11819_p9), [#allocation6], 16   ;;  %p11820_p5 = pmov %p11817_p3 }
  0x3a   : > { %5795 = vsyncadd (%p11820_p5), [#allocation6], 4294967280 }
  0x3b   : > { %172 = sfence }
  0x3c   : > { %p191_p6 = scmp.lt.s32.totalorder %s5865_s16, 1  ;;  %s5204_s10 = sld [smem:[#allocation2 + $0x1]]  ;;  %vm4859_vm0 = vcmask 654336   ;;  %vm4882_vm1 = vcmask 400632   ;;  %vm4885_vm2 = vcmask 394488  }
  0x3d   : > { %s5205_s11 = sld [smem:[#allocation2 + $0x25]]  ;;  %s5206_s26 = sld [smem:[#allocation2 + $0x49]] }
  0x3e   : > { %s192_s17 = scalar_select %p191_p6, %s5865_s16, 1 }
  0x3f   : > { %s5818_s27 = smov 127   ;;  %s5207_s28 = sld [smem:[#allocation2 + $0x6d]] }
  0x40   : > { %s5613_s19 = smul.u32 96, %s192_s17  ;;  %s5208_s29 = sld [smem:[#allocation2 + $0x91]] }
  0x41   : > { %s5209_s30 = sld [smem:[#allocation2 + $0xb5]]  ;;  %s5210_s4 = sld [smem:[#allocation2 + $0xd9]] }
  0x42   : > { %s5938_s25 = scalar_lea.vmem %s11801_s0, %s5613_s19  ;;  %v280_v0 = vstv %s5204_s10  ;;  %s5211_s5 = sld [smem:[#allocation2 + $0xfd]] }
  0x43   : > { %v5941_v1 = vld [vmem:[%s5938_s25 + $0x10] sm:$0x3]  ;;  %v5944_v2 = vld [vmem:[%s5938_s25] sm:$0xff]  ;;  %v300_v3 = vstv %s5205_s11  ;;  %v5947_v4 = vld [vmem:[%s5938_s25 + $0x8] sm:$0xff]  ;;  %s5212_s6 = sld [smem:[#allocation2 + $0x2]]  ;;  %s5213_s7 = sld [smem:[#allocation2 + $0x26]] }
  0x44   : > { %v283_v5 = vmul.f32 %v280_v0, %v5941_v1  ;;  %v281_v6 = vmul.f32 %v280_v0, %v5944_v2  ;;  %v301_v7 = vmul.f32 %v300_v3, %v5944_v2  ;;  %v282_v8 = vmul.f32 %v280_v0, %v5947_v4  ;;  %s5214_s8 = sld [smem:[#allocation2 + $0x4a]]  ;;  %s5819_s9 = smov 126  }
  0x45   : > { %v303_v9 = vmul.f32 %v300_v3, %v5941_v1  ;;  %v302_v10 = vmul.f32 %v300_v3, %v5947_v4  ;;  %v320_v11 = vstv %s5206_s26  ;;  %v340_v14 = vstv %s5207_s28  ;;  %s5215_s10 = sld [smem:[#allocation2 + $0x6e]]  ;;  %s5216_s11 = sld [smem:[#allocation2 + $0x92]] }
  0x46   : > { %291 = vrot.lane.b32.xlu1 %v283_v5, %s5818_s27  ;;  %287 = vrot.lane.b32.xlu0 %v281_v6, %s5818_s27  ;;  %v322_v12 = vmul.f32 %v320_v11, %v5947_v4  ;;  %v321_v13 = vmul.f32 %v320_v11, %v5944_v2  ;;  %v341_v15 = vmul.f32 %v340_v14, %v5944_v2  ;;  %v360_v19 = vstv %s5208_s29  ;;  %s5217_s17 = sld [smem:[#allocation2 + $0xb6]]  ;;  %s5218_s19 = sld [smem:[#allocation2 + $0xda]]  ;;  %v6044_v6 = vld [vmem:[%s5938_s25 + $0x9] sm:$0xff] }
  0x47   : > { %v323_v16 = vmul.f32 %v320_v11, %v5941_v1  ;;  %v343_v17 = vmul.f32 %v340_v14, %v5941_v1  ;;  %v342_v18 = vmul.f32 %v340_v14, %v5947_v4  ;;  %v362_v20 = vmul.f32 %v360_v19, %v5947_v4  ;;  %s5219_s20 = sld [smem:[#allocation2 + $0xfe]]  ;;  %s5228_s24 = sld [smem:[#allocation2 + $0x4]] }
  0x48   : > { %v361_v21 = vmul.f32 %v360_v19, %v5944_v2  ;;  %v380_v22 = vstv %s5209_s30  ;;  %v363_v24 = vmul.f32 %v360_v19, %v5941_v1  ;;  %v400_v27 = vstv %s5210_s4  ;;  %s5229_s26 = sld [smem:[#allocation2 + $0x28]]  ;;  %s5230_s28 = sld [smem:[#allocation2 + $0x4c]] }
  0x49   : > { %v381_v23 = vmul.f32 %v380_v22, %v5944_v2  ;;  %v383_v25 = vmul.f32 %v380_v22, %v5941_v1  ;;  %v382_v26 = vmul.f32 %v380_v22, %v5947_v4  ;;  %v402_v28 = vmul.f32 %v400_v27, %v5947_v4  ;;  %s5231_s29 = sld [smem:[#allocation2 + $0x70]]  ;;  %s5232_s30 = sld [smem:[#allocation2 + $0x94]] }
  0x4a   : > { %307 = vrot.lane.b32.xlu1 %v301_v7, %s5818_s27  ;;  %289 = vrot.lane.b32.xlu0 %v282_v8, %s5818_s27  ;;  %v401_v29 = vmul.f32 %v400_v27, %v5944_v2  ;;  %v420_v30 = vstv %s5211_s5  ;;  %v403_v32 = vmul.f32 %v400_v27, %v5941_v1  ;;  %v440_v35 = vstv %s5212_s6  ;;  %s5233_s4 = sld [smem:[#allocation2 + $0xb8]]  ;;  %s5234_s5 = sld [smem:[#allocation2 + $0xdc]] }
  0x4b   : > { %v421_v31 = vmul.f32 %v420_v30, %v5944_v2  ;;  %v423_v33 = vmul.f32 %v420_v30, %v5941_v1  ;;  %v422_v34 = vmul.f32 %v420_v30, %v5947_v4  ;;  %v442_v36 = vmul.f32 %v440_v35, %v5947_v4  ;;  %v6047_v8 = vld [vmem:[%s5938_s25 + $0x1] sm:$0xff]  ;;  %s5235_s6 = sld [smem:[#allocation2 + $0x100]]  ;;  %p12989_p12 = scmp.ne.s32.totalorder %s11812_s22, 0 }
  0x4c   : > { %v441_v37 = vmul.f32 %v440_v35, %v5944_v2  ;;  %v460_v38 = vstv %s5213_s7  ;;  %v443_v40 = vmul.f32 %v440_v35, %v5941_v1  ;;  %v480_v43 = vstv %s5214_s8  ;;  %s5236_s7 = sld [smem:[#allocation2 + $0x5]]  ;;  %s5237_s8 = sld [smem:[#allocation2 + $0x29]] }
  0x4d   : > { %v461_v39 = vmul.f32 %v460_v38, %v5944_v2  ;;  %v463_v41 = vmul.f32 %v460_v38, %v5941_v1  ;;  %v462_v42 = vmul.f32 %v460_v38, %v5947_v4  ;;  %v482_v44 = vmul.f32 %v480_v43, %v5947_v4 }
  0x4e   : > { %311 = vrot.lane.b32.xlu1 %v303_v9, %s5818_s27  ;;  %309 = vrot.lane.b32.xlu0 %v302_v10, %s5818_s27  ;;  %v481_v45 = vmul.f32 %v480_v43, %v5944_v2  ;;  %v500_v46 = vstv %s5215_s10  ;;  %v483_v48 = vmul.f32 %v480_v43, %v5941_v1  ;;  %v520_v51 = vstv %s5216_s11  ;;  %s5238_s10 = sld [smem:[#allocation2 + $0x4d]]  ;;  %s215_s11 = sld [smem:[#allocation2]] }
  0x4f   : > { %v501_v47 = vmul.f32 %v500_v46, %v5944_v2  ;;  %v503_v49 = vmul.f32 %v500_v46, %v5941_v1  ;;  %v502_v50 = vmul.f32 %v500_v46, %v5947_v4  ;;  %v522_v52 = vmul.f32 %v520_v51, %v5947_v4 }
  0x50   : > { %v521_v53 = vmul.f32 %v520_v51, %v5944_v2  ;;  %v540_v54 = vstv %s5217_s17  ;;  %v523_v56 = vmul.f32 %v520_v51, %v5941_v1  ;;  %v560_v59 = vstv %s5218_s19  ;;  %s5197_s17 = sld [smem:[#allocation2 + $0x24]]  ;;  %s5239_s19 = sld [smem:[#allocation2 + $0x71]] }
  0x51   : > { %v541_v55 = vmul.f32 %v540_v54, %v5944_v2  ;;  %v543_v57 = vmul.f32 %v540_v54, %v5941_v1  ;;  %v542_v58 = vmul.f32 %v540_v54, %v5947_v4  ;;  %v562_v60 = vmul.f32 %v560_v59, %v5947_v4 }
  0x52   : > { %329 = vrot.lane.b32.xlu1 %v322_v12, %s5818_s27  ;;  %327 = vrot.lane.b32.xlu0 %v321_v13, %s5818_s27  ;;  %v561_v61 = vmul.f32 %v560_v59, %v5944_v2  ;;  %v580_v62 = vstv %s5219_s20  ;;  %v563_v0 = vmul.f32 %v560_v59, %v5941_v1  ;;  %v667_v7 = vstv %s5228_s24  ;;  %s196_s20 = sld [smem:[#allocation5]]  ;;  %s5190_s24 = sld [smem:[#allocation5 + $0x1]] }
  0x53   : > { %v581_v63 = vmul.f32 %v580_v62, %v5944_v2  ;;  %v583_v3 = vmul.f32 %v580_v62, %v5941_v1  ;;  %v582_v5 = vmul.f32 %v580_v62, %v5947_v4  ;;  %v669_v9 = vmul.f32 %v667_v7, %v6044_v6  ;;  %v6054_v12 = vld [vmem:[%s5938_s25 + $0x11] sm:$0x3] }
  0x54   : > { %v668_v10 = vmul.f32 %v667_v7, %v6047_v8  ;;  %v687_v11 = vstv %s5229_s26  ;;  %v670_v4 = vmul.f32 %v667_v7, %v6054_v12  ;;  %v827_v51 = vstv %s5236_s7  ;;  %s5220_s26 = sld [smem:[#allocation2 + $0x3]] }
  0x55   : > { %v688_v1 = vmul.f32 %v687_v11, %v6047_v8  ;;  %v690_v13 = vmul.f32 %v687_v11, %v6054_v12  ;;  %v689_v14 = vmul.f32 %v687_v11, %v6044_v6  ;;  %v829_v54 = vmul.f32 %v827_v51, %v6044_v6  ;;  %s6193_s7 = sld [smem:[#allocation5 + $0x3]] }
  0x56   : > { %347 = vrot.lane.b32.xlu1 %v341_v15, %s5818_s27  ;;  %331 = vrot.lane.b32.xlu0 %v323_v16, %s5818_s27  ;;  %v707_v15 = vstv %s5230_s28  ;;  %s5198_s28 = sld [smem:[#allocation2 + $0x48]] }
  0x57   : > { %v709_v16 = vmul.f32 %v707_v15, %v6044_v6 }
  0x5a   : > { %351 = vrot.lane.b32.xlu1 %v343_v17, %s5818_s27  ;;  %349 = vrot.lane.b32.xlu0 %v342_v18, %s5818_s27  ;;  %v708_v17 = vmul.f32 %v707_v15, %v6047_v8  ;;  %v727_v18 = vstv %s5231_s29  ;;  %s5240_s29 = sld [smem:[#allocation2 + $0x95]] }
  0x5b   : > { %v728_v19 = vmul.f32 %v727_v18, %v6047_v8  ;;  %v729_v22 = vmul.f32 %v727_v18, %v6044_v6 }
  0x5e   : > { %369 = vrot.lane.b32.xlu1 %v362_v20, %s5818_s27  ;;  %367 = vrot.lane.b32.xlu0 %v361_v21, %s5818_s27  ;;  %v710_v20 = vmul.f32 %v707_v15, %v6054_v12  ;;  %v730_v21 = vmul.f32 %v727_v18, %v6054_v12 }
  0x62   : > { %387 = vrot.lane.b32.xlu1 %v381_v23, %s5818_s27  ;;  %371 = vrot.lane.b32.xlu0 %v363_v24, %s5818_s27  ;;  %v747_v23 = vstv %s5232_s30  ;;  %s5221_s30 = sld [smem:[#allocation2 + $0x27]] }
  0x63   : > { %v748_v27 = vmul.f32 %v747_v23, %v6047_v8 }
  0x66   : > { %391 = vrot.lane.b32.xlu1 %v383_v25, %s5818_s27  ;;  %389 = vrot.lane.b32.xlu0 %v382_v26, %s5818_s27  ;;  %v749_v26 = vmul.f32 %v747_v23, %v6044_v6 }
  0x6a   : > { %409 = vrot.lane.b32.xlu1 %v402_v28, %s5818_s27  ;;  %407 = vrot.lane.b32.xlu0 %v401_v29, %s5818_s27  ;;  %v767_v28 = vstv %s5233_s4  ;;  %s5199_s4 = sld [smem:[#allocation2 + $0x6c]] }
  0x6b   : > { %v770_v35 = vmul.f32 %v767_v28, %v6054_v12 }
  0x6e   : > { %427 = vrot.lane.b32.xlu1 %v421_v31, %s5818_s27  ;;  %411 = vrot.lane.b32.xlu0 %v403_v32, %s5818_s27  ;;  %v768_v31 = vmul.f32 %v767_v28, %v6047_v8  ;;  %v750_v32 = vmul.f32 %v747_v23, %v6054_v12 }
  0x72   : > { %431 = vrot.lane.b32.xlu1 %v423_v33, %s5818_s27  ;;  %429 = vrot.lane.b32.xlu0 %v422_v34, %s5818_s27 }
  0x76   : > { %449 = vrot.lane.b32.xlu1 %v442_v36, %s5819_s9  ;;  %447 = vrot.lane.b32.xlu0 %v441_v37, %s5819_s9  ;;  %v769_v36 = vmul.f32 %v767_v28, %v6044_v6  ;;  %v787_v37 = vstv %s5234_s5  ;;  %s5241_s5 = sld [smem:[#allocation2 + $0xb9]] }
  0x77   : > { %v790_v46 = vmul.f32 %v787_v37, %v6054_v12 }
  0x7a   : > { %467 = vrot.lane.b32.xlu1 %v461_v39, %s5819_s9  ;;  %451 = vrot.lane.b32.xlu0 %v443_v40, %s5819_s9  ;;  %v789_v40 = vmul.f32 %v787_v37, %v6044_v6 }
  0x7e   : > { %471 = vrot.lane.b32.xlu1 %v463_v41, %s5819_s9  ;;  %469 = vrot.lane.b32.xlu0 %v462_v42, %s5819_s9  ;;  %v788_v41 = vmul.f32 %v787_v37, %v6047_v8  ;;  %v807_v42 = vstv %s5235_s6  ;;  %s6177_s6 = sld [smem:[#allocation5 + $0x2]] }
  0x82   : > { %489 = vrot.lane.b32.xlu1 %v482_v44, %s5819_s9  ;;  %487 = vrot.lane.b32.xlu0 %v481_v45, %s5819_s9  ;;  %v808_v45 = vmul.f32 %v807_v42, %v6047_v8 }
  0x86   : > { %507 = vrot.lane.b32.xlu1 %v501_v47, %s5819_s9  ;;  %491 = vrot.lane.b32.xlu0 %v483_v48, %s5819_s9 }
  0x8a   : > { %511 = vrot.lane.b32.xlu1 %v503_v49, %s5819_s9  ;;  %509 = vrot.lane.b32.xlu0 %v502_v50, %s5819_s9  ;;  %v810_v49 = vmul.f32 %v807_v42, %v6054_v12  ;;  %v809_v50 = vmul.f32 %v807_v42, %v6044_v6  ;;  %v6199_v42 = vstv %s5221_s30  ;;  %s6269_s30 = sld [smem:[#allocation2 + $0x7]] }
  0x8e   : > { %529 = vrot.lane.b32.xlu1 %v522_v52, %s5819_s9  ;;  %527 = vrot.lane.b32.xlu0 %v521_v53, %s5819_s9 }
  0x92   : > { %547 = vrot.lane.b32.xlu1 %v541_v55, %s5819_s9  ;;  %531 = vrot.lane.b32.xlu0 %v523_v56, %s5819_s9  ;;  %v828_v55 = vmul.f32 %v827_v51, %v6047_v8  ;;  %v847_v56 = vstv %s5237_s8  ;;  %s6201_s8 = sld [smem:[#allocation2 + $0x4b]] }
  0x93   : > { %v848_v59 = vmul.f32 %v847_v56, %v6047_v8 }
  0x96   : > { %551 = vrot.lane.b32.xlu1 %v543_v57, %s5819_s9  ;;  %549 = vrot.lane.b32.xlu0 %v542_v58, %s5819_s9 }
  0x9a   : > { %569 = vrot.lane.b32.xlu1 %v562_v60, %s5819_s9  ;;  %567 = vrot.lane.b32.xlu0 %v561_v61, %s5819_s9  ;;  %v830_v60 = vmul.f32 %v827_v51, %v6054_v12 }
  0x9e   : > { %587 = vrot.lane.b32.xlu1 %v581_v63, %s5819_s9  ;;  %571 = vrot.lane.b32.xlu0 %v563_v0, %s5819_s9  ;;  %v850_v63 = vmul.f32 %v847_v56, %v6054_v12  ;;  %v849_v0 = vmul.f32 %v847_v56, %v6044_v6  ;;  %v612_v56 = vmul.f32 %v6199_v42, %v6047_v8 }
  0xa2   : > { %591 = vrot.lane.b32.xlu1 %v583_v3, %s5819_s9  ;;  %589 = vrot.lane.b32.xlu0 %v582_v5, %s5819_s9  ;;  %v867_v3 = vstv %s5238_s10  ;;  %v6148_v5 = vstv %s215_s11  ;;  %s5200_s10 = sld [smem:[#allocation2 + $0x90]]  ;;  %s5242_s11 = sld [smem:[#allocation2 + $0xdd]] }
  0xa3   : > { %v868_v11 = vmul.f32 %v867_v3, %v6047_v8 }
  0xa6   : > { %676 = vrot.lane.b32.xlu1 %v669_v9, %s5818_s27  ;;  %674 = vrot.lane.b32.xlu0 %v668_v10, %s5818_s27  ;;  %v869_v10 = vmul.f32 %v867_v3, %v6044_v6 }
  0xaa   : > { %694 = vrot.lane.b32.xlu1 %v688_v1, %s5818_s27  ;;  %678 = vrot.lane.b32.xlu0 %v670_v4, %s5818_s27  ;;  %v217_v1 = vmul.f32 %v6148_v5, %v5944_v2  ;;  %v6160_v4 = vstv %s5197_s17  ;;  %s5223_s17 = sld [smem:[#allocation2 + $0x6f]] }
  0xae   : > { %698 = vrot.lane.b32.xlu1 %v690_v13, %s5818_s27  ;;  %696 = vrot.lane.b32.xlu0 %v689_v14, %s5818_s27  ;;  %v887_v13 = vstv %s5239_s19  ;;  %v6162_v14 = vstv %s196_s20  ;;  %s5201_s19 = sld [smem:[#allocation2 + $0xb4]]  ;;  %s5243_s20 = sld [smem:[#allocation2 + $0x101]] }
  0xaf   : > { %11821 = vst [vmem:[#allocation11_spill] sm:$0xff] %v6162_v14  ;;  %v888_v18 = vmul.f32 %v887_v13, %v6047_v8  ;;  %v890_v28 = vmul.f32 %v887_v13, %v6054_v12 }
  0xb2   : > { %716 = vrot.lane.b32.xlu1 %v709_v16, %s5818_s27  ;;  %714 = vrot.lane.b32.xlu0 %v708_v17, %s5818_s27  ;;  %v225_v17 = vmul.f32 %v6160_v4, %v5944_v2 }
  0xb6   : > { %734 = vrot.lane.b32.xlu1 %v728_v19, %s5818_s27  ;;  %718 = vrot.lane.b32.xlu0 %v710_v20, %s5818_s27  ;;  %v870_v19 = vmul.f32 %v867_v3, %v6054_v12  ;;  %v220_v20 = vadd.f32 %v217_v1, %v6162_v14  ;;  %v6229_v1 = vstv %s6193_s7  ;;  %s6294_s7 = sld [smem:[#allocation2 + $0xfc]] }
  0xb8   : > { %v6076_v24 = vpop.permute.xlu1 %291  ;;  %v6078_v25 = vpop.permute.xlu0 %287 }
  0xba   : > { %738 = vrot.lane.b32.xlu1 %v730_v21, %s5818_s27  ;;  %736 = vrot.lane.b32.xlu0 %v729_v22, %s5818_s27  ;;  %v6175_v21 = vstv %s5190_s24  ;;  %s6233_s24 = sld [smem:[#allocation5 + $0x4]] }
  0xbc   : > { %v6084_v29 = vpop.permute.xlu1 %307  ;;  %v6086_v30 = vpop.permute.xlu0 %289 }
  0xbe   : > { %756 = vrot.lane.b32.xlu1 %v749_v26, %s5818_s27  ;;  %754 = vrot.lane.b32.xlu0 %v748_v27, %s5818_s27  ;;  %v6183_v26 = vstv %s5220_s26  ;;  %v228_v27 = vadd.f32 %v225_v17, %v6175_v21  ;;  %s6250_s26 = sld [smem:[#allocation5 + $0x5]] }
  0xbf   : > { %v604_v37 = vmul.f32 %v6183_v26, %v6047_v8 }
  0xc0   : > { %v6092_v33 = vpop.permute.xlu1 %311  ;;  %v6094_v34 = vpop.permute.xlu0 %309  ;;  %v316_v51 = vadd.f32 %v6084_v29, %v228_v27 }
  0xc2   : > { %774 = vrot.lane.b32.xlu1 %v768_v31, %s5818_s27  ;;  %758 = vrot.lane.b32.xlu0 %v750_v32, %s5818_s27  ;;  %v889_v31 = vmul.f32 %v887_v13, %v6044_v6  ;;  %v296_v32 = vadd.f32 %v6078_v25, %v220_v20 }
  0xc4   : > { %v6100_v38 = vpop.permute.xlu1 %329  ;;  %v6102_v39 = vpop.permute.xlu0 %327 }
  0xc6   : > { %778 = vrot.lane.b32.xlu1 %v770_v35, %s5818_s27  ;;  %776 = vrot.lane.b32.xlu0 %v769_v36, %s5818_s27  ;;  %v6191_v35 = vstv %s5198_s28  ;;  %v907_v36 = vstv %s5240_s29  ;;  %s6258_s28 = sld [smem:[#allocation2 + $0x93]]  ;;  %s5202_s29 = sld [smem:[#allocation2 + $0xd8]] }
  0xc7   : > { %v233_v25 = vmul.f32 %v6191_v35, %v5944_v2 }
  0xc8   : > { %v6108_v43 = vpop.permute.xlu1 %347  ;;  %v6110_v44 = vpop.permute.xlu0 %331 }
  0xca   : > { %796 = vrot.lane.b32.xlu1 %v789_v40, %s5818_s27  ;;  %794 = vrot.lane.b32.xlu0 %v788_v41, %s5818_s27 }
  0xcc   : > { %v6116_v47 = vpop.permute.xlu1 %351  ;;  %v6118_v48 = vpop.permute.xlu0 %349 }
  0xce   : > { %814 = vrot.lane.b32.xlu1 %v808_v45, %s5818_s27  ;;  %798 = vrot.lane.b32.xlu0 %v790_v46, %s5818_s27  ;;  %v6205_v46 = vstv %s5199_s4  ;;  %s5225_s4 = sld [smem:[#allocation2 + $0xb7]] }
  0xcf   : > { %v241_v29 = vmul.f32 %v6205_v46, %v5944_v2 }
  0xd0   : > { %v6124_v52 = vpop.permute.xlu1 %369  ;;  %v6126_v53 = vpop.permute.xlu0 %367 }
  0xd1   : > { %v244_v20 = vadd.f32 %v241_v29, %v6229_v1 }
  0xd2   : > { %818 = vrot.lane.b32.xlu1 %v810_v49, %s5818_s27  ;;  %816 = vrot.lane.b32.xlu0 %v809_v50, %s5818_s27  ;;  %v909_v49 = vmul.f32 %v907_v36, %v6044_v6  ;;  %v908_v50 = vmul.f32 %v907_v36, %v6047_v8 }
  0xd4   : > { %v6132_v57 = vpop.permute.xlu1 %387  ;;  %v6134_v58 = vpop.permute.xlu0 %371 }
  0xd6   : > { %836 = vrot.lane.b32.xlu1 %v829_v54, %s5819_s9  ;;  %834 = vrot.lane.b32.xlu0 %v828_v55, %s5819_s9  ;;  %v927_v54 = vstv %s5241_s5  ;;  %s5253_s5 = sld [smem:[#allocation2 + $0x2b]] }
  0xd7   : > { %v928_v3 = vmul.f32 %v927_v54, %v6047_v8  ;;  %v930_v27 = vmul.f32 %v927_v54, %v6054_v12 }
  0xd8   : > { %v6140_v61 = vpop.permute.xlu1 %391  ;;  %v6142_v62 = vpop.permute.xlu0 %389 }
  0xda   : > { %854 = vrot.lane.b32.xlu1 %v848_v59, %s5819_s9  ;;  %838 = vrot.lane.b32.xlu0 %v830_v60, %s5819_s9  ;;  %v6217_v59 = vstv %s6177_s6  ;;  %s6292_s6 = sld [smem:[#allocation5 + $0x6]] }
  0xdc   : > { %v6150_v7 = vpop.permute.xlu1 %409  ;;  %v6152_v9 = vpop.permute.xlu0 %407 }
  0xde   : > { %858 = vrot.lane.b32.xlu1 %v850_v63, %s5819_s9  ;;  %856 = vrot.lane.b32.xlu0 %v849_v0, %s5819_s9 }
  0xe0   : > { %v6164_v15 = vpop.permute.xlu1 %427  ;;  %v6166_v16 = vpop.permute.xlu0 %411 }
  0xe2   : > { %876 = vrot.lane.b32.xlu1 %v869_v10, %s5819_s9  ;;  %874 = vrot.lane.b32.xlu0 %v868_v11, %s5819_s9  ;;  %v910_v10 = vmul.f32 %v907_v36, %v6054_v12  ;;  %v236_v11 = vadd.f32 %v233_v25, %v6217_v59  ;;  %v947_v36 = vstv %s5242_s11  ;;  %v6256_v25 = vstv %s5223_s17  ;;  %s5254_s11 = sld [smem:[#allocation2 + $0x4f]] }
  0xe3   : > { %v628_v29 = vmul.f32 %v6256_v25, %v6047_v8  ;;  %s5227_s17 = sld [smem:[#allocation2 + $0xff]] }
  0xe4   : > { %v6179_v22 = vpop.permute.xlu1 %431  ;;  %v6181_v23 = vpop.permute.xlu0 %429 }
  0xe6   : > { %894 = vrot.lane.b32.xlu1 %v888_v18, %s5819_s9  ;;  %878 = vrot.lane.b32.xlu0 %v870_v19, %s5819_s9  ;;  %v6240_v19 = vstv %s6201_s8  ;;  %s6320_s8 = sld [smem:[#allocation5 + $0x7]] }
  0xe8   : > { %v6197_v40 = vpop.permute.xlu1 %449  ;;  %v448_v41 = vpop.permute.xlu0 %447 }
  0xe9   : > { %v456_v45 = vadd.f32 %v448_v41, %v296_v32  ;;  %v6248_v32 = vstv %s5200_s10  ;;  %s5226_s10 = sld [smem:[#allocation2 + $0xdb]] }
  0xea   : > { %898 = vrot.lane.b32.xlu1 %v890_v28, %s5819_s9  ;;  %896 = vrot.lane.b32.xlu0 %v889_v31, %s5819_s9  ;;  %v929_v28 = vmul.f32 %v927_v54, %v6044_v6  ;;  %v336_v31 = vadd.f32 %v6102_v39, %v236_v11  ;;  %v249_v39 = vmul.f32 %v6248_v32, %v5944_v2 }
  0xeb   : > { %v6212_v55 = vadd.f32 %v604_v37, %v456_v45  ;;  %v620_v37 = vmul.f32 %v6240_v19, %v6047_v8  ;;  %v948_v54 = vmul.f32 %v947_v36, %v6047_v8 }
  0xec   : > { %v468_v60 = vpop.permute.xlu1 %467  ;;  %v6219_v63 = vpop.permute.xlu0 %451 }
  0xed   : > { %11822 = vst [vmem:[#allocation12_spill] sm:$0xff] %v6212_v55  ;;  %v476_v0 = vadd.f32 %v468_v60, %v316_v51  ;;  %v949_v51 = vmul.f32 %v947_v36, %v6044_v6  ;;  %v967_v60 = vstv %s5243_s20  ;;  %v1074_v55 = vstv %s5253_s5  ;;  %s5256_s20 = sld [smem:[#allocation2 + $0x97]]  ;;  %s5263_s5 = sld [smem:[#allocation2 + $0x74]] }
  0xee   : > { %916 = vrot.lane.b32.xlu1 %v909_v49, %s5819_s9  ;;  %914 = vrot.lane.b32.xlu0 %v908_v50, %s5819_s9  ;;  %v6262_v50 = vstv %s5201_s19  ;;  %s5255_s19 = sld [smem:[#allocation2 + $0x73]] }
  0xef   : > { %v6231_v13 = vadd.f32 %v612_v56, %v476_v0  ;;  %v356_v56 = vadd.f32 %v6108_v43, %v244_v20  ;;  %v257_v43 = vmul.f32 %v6262_v50, %v5944_v2  ;;  %v968_v20 = vmul.f32 %v967_v60, %v6047_v8 }
  0xf0   : > { %v6235_v17 = vpop.permute.xlu1 %471  ;;  %v6237_v18 = vpop.permute.xlu0 %469 }
  0xf1   : > { %11823 = vst [vmem:[#allocation13_spill] sm:$0xff] %v6231_v13  ;;  %11824 = vst [vmem:[#allocation14_spill] sm:$0xff] %v6237_v18 }
  0xf2   : > { %934 = vrot.lane.b32.xlu1 %v928_v3, %s5819_s9  ;;  %918 = vrot.lane.b32.xlu0 %v910_v10, %s5819_s9  ;;  %v6276_v3 = vstv %s6233_s24  ;;  %s5257_s24 = sld [smem:[#allocation2 + $0xbb]] }
  0xf4   : > { %v6254_v41 = vpop.permute.xlu1 %489  ;;  %v488_v45 = vpop.permute.xlu0 %487 }
  0xf5   : > { %11825 = vst [vmem:[#allocation15_spill] sm:$0xff] %v6254_v41  ;;  %v496_v49 = vadd.f32 %v488_v45, %v336_v31  ;;  %v252_v31 = vadd.f32 %v249_v39, %v6276_v3  ;;  %v970_v39 = vmul.f32 %v967_v60, %v6054_v12  ;;  %v6358_v41 = vstv %s6320_s8  ;;  %s5266_s8 = sld [smem:[#allocation2 + $0xe0]] }
  0xf6   : > { %938 = vrot.lane.b32.xlu1 %v930_v27, %s5819_s9  ;;  %936 = vrot.lane.b32.xlu0 %v929_v28, %s5819_s9  ;;  %v950_v28 = vmul.f32 %v947_v36, %v6054_v12 }
  0xf7   : > { %v6271_v0 = vadd.f32 %v620_v37, %v496_v49  ;;  %v6288_v37 = vstv %s6250_s26  ;;  %s5258_s26 = sld [smem:[#allocation2 + $0xdf]] }
  0xf8   : > { %v508_v10 = vpop.permute.xlu1 %507  ;;  %v6278_v11 = vpop.permute.xlu0 %491  ;;  %v260_v36 = vadd.f32 %v257_v43, %v6288_v37 }
  0xf9   : > { %11826 = vst [vmem:[#allocation16_spill] sm:$0xff] %v6271_v0  ;;  %11827 = vst [vmem:[#allocation17_spill] sm:$0xff] %v6278_v11  ;;  %v516_v27 = vadd.f32 %v508_v10, %v356_v56  ;;  %v969_v56 = vmul.f32 %v967_v60, %v6044_v6  ;;  %v6309_v10 = vstv %s5202_s29  ;;  %v6316_v0 = vld [vmem:[%s5938_s25 + $0x2] sm:$0xff]  ;;  %v6324_v6 = vstv %s5225_s4  ;;  %s5260_s29 = sld [smem:[#allocation2 + $0x8]] }
  0xfa   : > { %956 = vrot.lane.b32.xlu1 %v949_v51, %s5819_s9  ;;  %954 = vrot.lane.b32.xlu0 %v948_v54, %s5819_s9  ;;  %v6301_v54 = vstv %s6258_s28  ;;  %v265_v60 = vmul.f32 %v6309_v10, %v5944_v2  ;;  %v396_v13 = vadd.f32 %v6132_v57, %v260_v36  ;;  %v1075_v57 = vmul.f32 %v1074_v55, %v6316_v0  ;;  %s5259_s28 = sld [smem:[#allocation2 + $0x103]]  ;;  %s5262_s4 = sld [smem:[#allocation2 + $0x50]] }
  0xfb   : > { %v6290_v45 = vadd.f32 %v628_v29, %v516_v27  ;;  %v376_v29 = vadd.f32 %v6126_v53, %v252_v31  ;;  %v6312_v27 = vld [vmem:[%s5938_s25 + $0xa] sm:$0xff]  ;;  %v636_v43 = vmul.f32 %v6301_v54, %v6047_v8 }
  0xfc   : > { %v6296_v49 = vpop.permute.xlu1 %511  ;;  %v6298_v51 = vpop.permute.xlu0 %509 }
  0xfd   : > { %11828 = vst [vmem:[#allocation18_spill] sm:$0xff] %v6290_v45  ;;  %11829 = vst [vmem:[#allocation19_spill] sm:$0xff] %v6296_v49  ;;  %v1054_v45 = vstv %s6269_s30  ;;  %s5261_s30 = sld [smem:[#allocation2 + $0x2c]] }
  0xfe   : > { %11830 = vst [vmem:[#allocation20_spill] sm:$0xff] %v6298_v51  ;;  %974 = vrot.lane.b32.xlu1 %v968_v20, %s5819_s9  ;;  %958 = vrot.lane.b32.xlu0 %v950_v28, %s5819_s9  ;;  %v1056_v28 = vmul.f32 %v1054_v45, %v6312_v27  ;;  %v1055_v31 = vmul.f32 %v1054_v45, %v6316_v0 }
 0x100   : > { %v6322_v20 = vpop.permute.xlu1 %529  ;;  %v528_v12 = vpop.permute.xlu0 %527 }
 0x101   : > { %11831 = vst [vmem:[#allocation21_spill] sm:$0xff] %v6322_v20  ;;  %v536_v53 = vadd.f32 %v528_v12, %v376_v29  ;;  %v6334_v20 = vld [vmem:[%s5938_s25 + $0x12] sm:$0x3]  ;;  %v644_v29 = vmul.f32 %v6324_v6, %v6047_v8  ;;  %v6341_v12 = vstv %s6292_s6  ;;  %s5264_s6 = sld [smem:[#allocation2 + $0x98]] }
 0x102   : > { %978 = vrot.lane.b32.xlu1 %v970_v39, %s5819_s9  ;;  %976 = vrot.lane.b32.xlu0 %v969_v56, %s5819_s9  ;;  %v6344_v39 = vstv %s6294_s7  ;;  %v1057_v36 = vmul.f32 %v1054_v45, %v6334_v20  ;;  %v1077_v45 = vmul.f32 %v1074_v55, %v6334_v20  ;;  %s5265_s7 = sld [smem:[#allocation2 + $0xbc]] }
 0x103   : > { %v6336_v51 = vadd.f32 %v636_v43, %v536_v53  ;;  %v268_v43 = vadd.f32 %v265_v60, %v6341_v12  ;;  %v273_v53 = vmul.f32 %v6344_v39, %v5944_v2  ;;  %v1076_v60 = vmul.f32 %v1074_v55, %v6312_v27 }
 0x104   : > { %v548_v56 = vpop.permute.xlu1 %547  ;;  %v6346_v49 = vpop.permute.xlu0 %531 }
 0x105   : > { %11832 = vst [vmem:[#allocation22_spill] sm:$0xff] %v6336_v51  ;;  %11833 = vst [vmem:[#allocation23_spill] sm:$0xff] %v6346_v49  ;;  %v556_v11 = vadd.f32 %v548_v56, %v396_v13  ;;  %v416_v2 = vadd.f32 %v6152_v9, %v268_v43  ;;  %v1114_v43 = vstv %s5255_s19  ;;  %s5281_s19 = sld [smem:[#allocation2 + $0x52]] }
 0x106   : > { %1063 = vrot.lane.b32.xlu1 %v1056_v28, %s5818_s27  ;;  %1061 = vrot.lane.b32.xlu0 %v1055_v31, %s5818_s27  ;;  %v6364_v28 = vstv %s5226_s10  ;;  %v1094_v31 = vstv %s5254_s11  ;;  %s5267_s10 = sld [smem:[#allocation2 + $0x104]]  ;;  %s5279_s11 = sld [smem:[#allocation2 + $0xa]] }
 0x107   : > { %v6355_v51 = vadd.f32 %v644_v29, %v556_v11  ;;  %v276_v11 = vadd.f32 %v273_v53, %v6358_v41  ;;  %v652_v29 = vmul.f32 %v6364_v28, %v6047_v8  ;;  %v1096_v55 = vmul.f32 %v1094_v31, %v6312_v27 }
 0x108   : > { %v6360_v49 = vpop.permute.xlu1 %551  ;;  %v6362_v13 = vpop.permute.xlu0 %549  ;;  %v1095_v9 = vmul.f32 %v1094_v31, %v6316_v0 }
 0x109   : > { %11834 = vst [vmem:[#allocation24_spill] sm:$0xff] %v6355_v51  ;;  %11835 = vst [vmem:[#allocation25_spill] sm:$0xff] %v6360_v49 }
 0x10a   : > { %11836 = vst [vmem:[#allocation26_spill] sm:$0xff] %v6362_v13  ;;  %1081 = vrot.lane.b32.xlu1 %v1075_v57, %s5818_s27  ;;  %1065 = vrot.lane.b32.xlu0 %v1057_v36, %s5818_s27  ;;  %v6376_v13 = vstv %s5227_s17  ;;  %v436_v36 = vadd.f32 %v6164_v15, %v276_v11  ;;  %s5280_s17 = sld [smem:[#allocation2 + $0x2e]] }
 0x10c   : > { %v6374_v56 = vpop.permute.xlu1 %569  ;;  %v568_v51 = vpop.permute.xlu0 %567 }
 0x10d   : > { %11837 = vst [vmem:[#allocation27_spill] sm:$0xff] %v6374_v56  ;;  %v576_v57 = vadd.f32 %v568_v51, %v416_v2  ;;  %v660_v56 = vmul.f32 %v6376_v13, %v6047_v8  ;;  %v1117_v8 = vmul.f32 %v1114_v43, %v6334_v20 }
 0x10e   : > { %1085 = vrot.lane.b32.xlu1 %v1077_v45, %s5818_s27  ;;  %1083 = vrot.lane.b32.xlu0 %v1076_v60, %s5818_s27  ;;  %v1115_v45 = vmul.f32 %v1114_v43, %v6316_v0  ;;  %v1097_v60 = vmul.f32 %v1094_v31, %v6334_v20 }
 0x10f   : > { %v6383_v53 = vadd.f32 %v652_v29, %v576_v57  ;;  %v1134_v29 = vstv %s5256_s20  ;;  %s5282_s20 = sld [smem:[#allocation2 + $0x76]] }
 0x110   : > { %v588_v49 = vpop.permute.xlu1 %587  ;;  %v6387_v18 = vpop.permute.xlu0 %571  ;;  %v1136_v31 = vmul.f32 %v1134_v29, %v6312_v27 }
 0x111   : > { %11838 = vst [vmem:[#allocation28_spill] sm:$0xff] %v6383_v53  ;;  %11839 = vst [vmem:[#allocation29_spill] sm:$0xff] %v6387_v18  ;;  %v596_v51 = vadd.f32 %v588_v49, %v436_v36  ;;  %v1116_v49 = vmul.f32 %v1114_v43, %v6312_v27 }
 0x112   : > { %1103 = vrot.lane.b32.xlu1 %v1096_v55, %s5818_s27  ;;  %1101 = vrot.lane.b32.xlu0 %v1095_v9, %s5818_s27  ;;  %v1154_v9 = vstv %s5257_s24  ;;  %s5283_s24 = sld [smem:[#allocation2 + $0x9a]] }
 0x113   : > { %v6393_v15 = vadd.f32 %v660_v56, %v596_v51  ;;  %v1135_v56 = vmul.f32 %v1134_v29, %v6316_v0  ;;  %v1155_v43 = vmul.f32 %v1154_v9, %v6316_v0 }
 0x114   : > { %v6395_v2 = vpop.permute.xlu1 %591  ;;  %v6397_v11 = vpop.permute.xlu0 %589 }
 0x115   : > { %11840 = vst [vmem:[#allocation30_spill] sm:$0xff] %v6393_v15  ;;  %11841 = vst [vmem:[#allocation31_spill] sm:$0xff] %v6395_v2  ;;  %v1156_v15 = vmul.f32 %v1154_v9, %v6312_v27 }
 0x116   : > { %11842 = vst [vmem:[#allocation32_spill] sm:$0xff] %v6397_v11  ;;  %1121 = vrot.lane.b32.xlu1 %v1115_v45, %s5818_s27  ;;  %1105 = vrot.lane.b32.xlu0 %v1097_v60, %s5818_s27  ;;  %v1137_v45 = vmul.f32 %v1134_v29, %v6334_v20 }
 0x118   : > { %v6403_v57 = vpop.permute.xlu1 %676  ;;  %v6405_v55 = vpop.permute.xlu0 %674 }
 0x119   : > { %11843 = vst [vmem:[#allocation33_spill] sm:$0xff] %v6403_v57  ;;  %11844 = vst [vmem:[#allocation34_spill] sm:$0xff] %v6405_v55 }
 0x11a   : > { %1125 = vrot.lane.b32.xlu1 %v1117_v8, %s5818_s27  ;;  %1123 = vrot.lane.b32.xlu0 %v1116_v49, %s5818_s27  ;;  %v1157_v49 = vmul.f32 %v1154_v9, %v6334_v20 }
 0x11c   : > { %v6411_v36 = vpop.permute.xlu1 %694  ;;  %v6413_v51 = vpop.permute.xlu0 %678 }
 0x11d   : > { %11845 = vst [vmem:[#allocation35_spill] sm:$0xff] %v6411_v36  ;;  %11846 = vst [vmem:[#allocation36_spill] sm:$0xff] %v6413_v51 }
 0x11e   : > { %1143 = vrot.lane.b32.xlu1 %v1136_v31, %s5818_s27  ;;  %1141 = vrot.lane.b32.xlu0 %v1135_v56, %s5818_s27  ;;  %v1174_v31 = vstv %s5258_s26  ;;  %s5284_s26 = sld [smem:[#allocation2 + $0xbe]] }
 0x11f   : > { %v1176_v29 = vmul.f32 %v1174_v31, %v6312_v27 }
 0x120   : > { %v6419_v60 = vpop.permute.xlu1 %698  ;;  %v6421_v8 = vpop.permute.xlu0 %696 }
 0x121   : > { %11847 = vst [vmem:[#allocation37_spill] sm:$0xff] %v6419_v60  ;;  %11848 = vst [vmem:[#allocation38_spill] sm:$0xff] %v6421_v8  ;;  %v1175_v8 = vmul.f32 %v1174_v31, %v6316_v0 }
 0x122   : > { %1161 = vrot.lane.b32.xlu1 %v1155_v43, %s5818_s27  ;;  %1145 = vrot.lane.b32.xlu0 %v1137_v45, %s5818_s27  ;;  %v1194_v43 = vstv %s5259_s28  ;;  %s5285_s28 = sld [smem:[#allocation2 + $0xe2]] }
 0x123   : > { %v1195_v9 = vmul.f32 %v1194_v43, %v6316_v0 }
 0x124   : > { %v6427_v53 = vpop.permute.xlu1 %716  ;;  %v6429_v56 = vpop.permute.xlu0 %714 }
 0x125   : > { %11849 = vst [vmem:[#allocation39_spill] sm:$0xff] %v6427_v53  ;;  %11850 = vst [vmem:[#allocation40_spill] sm:$0xff] %v6429_v56 }
 0x126   : > { %1165 = vrot.lane.b32.xlu1 %v1157_v49, %s5818_s27  ;;  %1163 = vrot.lane.b32.xlu0 %v1156_v15, %s5818_s27  ;;  %v1177_v49 = vmul.f32 %v1174_v31, %v6334_v20 }
 0x128   : > { %v6435_v45 = vpop.permute.xlu1 %734  ;;  %v6437_v60 = vpop.permute.xlu0 %718 }
 0x129   : > { %11851 = vst [vmem:[#allocation41_spill] sm:$0xff] %v6435_v45  ;;  %11852 = vst [vmem:[#allocation42_spill] sm:$0xff] %v6437_v60  ;;  %v1197_v45 = vmul.f32 %v1194_v43, %v6334_v20  ;;  %v1196_v60 = vmul.f32 %v1194_v43, %v6312_v27 }
 0x12a   : > { %1183 = vrot.lane.b32.xlu1 %v1176_v29, %s5818_s27  ;;  %1181 = vrot.lane.b32.xlu0 %v1175_v8, %s5818_s27  ;;  %v1214_v29 = vstv %s5260_s29  ;;  %s5286_s29 = sld [smem:[#allocation2 + $0x106]] }
 0x12b   : > { %v1216_v31 = vmul.f32 %v1214_v29, %v6312_v27 }
 0x12c   : > { %v6443_v15 = vpop.permute.xlu1 %738  ;;  %v6445_v56 = vpop.permute.xlu0 %736 }
 0x12d   : > { %11853 = vst [vmem:[#allocation43_spill] sm:$0xff] %v6443_v15  ;;  %11854 = vst [vmem:[#allocation44_spill] sm:$0xff] %v6445_v56  ;;  %v1215_v56 = vmul.f32 %v1214_v29, %v6316_v0 }
 0x12e   : > { %1201 = vrot.lane.b32.xlu1 %v1195_v9, %s5818_s27  ;;  %1185 = vrot.lane.b32.xlu0 %v1177_v49, %s5818_s27  ;;  %v1234_v9 = vstv %s5261_s30  ;;  %s5287_s30 = sld [smem:[#allocation2 + $0xb]] }
 0x12f   : > { %v1235_v43 = vmul.f32 %v1234_v9, %v6316_v0 }
 0x130   : > { %v6451_v53 = vpop.permute.xlu1 %756  ;;  %v6453_v8 = vpop.permute.xlu0 %754 }
 0x131   : > { %11855 = vst [vmem:[#allocation45_spill] sm:$0xff] %v6451_v53  ;;  %11856 = vst [vmem:[#allocation46_spill] sm:$0xff] %v6453_v8 }
 0x132   : > { %1205 = vrot.lane.b32.xlu1 %v1197_v45, %s5818_s27  ;;  %1203 = vrot.lane.b32.xlu0 %v1196_v60, %s5818_s27  ;;  %v1217_v45 = vmul.f32 %v1214_v29, %v6334_v20 }
 0x134   : > { %v6459_v49 = vpop.permute.xlu1 %774  ;;  %v6461_v15 = vpop.permute.xlu0 %758 }
 0x135   : > { %11857 = vst [vmem:[#allocation47_spill] sm:$0xff] %v6459_v49  ;;  %11858 = vst [vmem:[#allocation48_spill] sm:$0xff] %v6461_v15  ;;  %v1237_v49 = vmul.f32 %v1234_v9, %v6334_v20  ;;  %v1236_v15 = vmul.f32 %v1234_v9, %v6312_v27 }
 0x136   : > { %1223 = vrot.lane.b32.xlu1 %v1216_v31, %s5819_s9  ;;  %1221 = vrot.lane.b32.xlu0 %v1215_v56, %s5819_s9  ;;  %v1254_v31 = vstv %s5262_s4  ;;  %s5288_s4 = sld [smem:[#allocation2 + $0x2f]] }
 0x137   : > { %v1256_v29 = vmul.f32 %v1254_v31, %v6312_v27 }
 0x138   : > { %v6467_v60 = vpop.permute.xlu1 %778  ;;  %v6469_v8 = vpop.permute.xlu0 %776 }
 0x139   : > { %11859 = vst [vmem:[#allocation49_spill] sm:$0xff] %v6467_v60  ;;  %11860 = vst [vmem:[#allocation50_spill] sm:$0xff] %v6469_v8  ;;  %v1255_v8 = vmul.f32 %v1254_v31, %v6316_v0 }
 0x13a   : > { %1241 = vrot.lane.b32.xlu1 %v1235_v43, %s5819_s9  ;;  %1225 = vrot.lane.b32.xlu0 %v1217_v45, %s5819_s9  ;;  %v1274_v43 = vstv %s5263_s5  ;;  %s5289_s5 = sld [smem:[#allocation2 + $0x53]] }
 0x13b   : > { %v1275_v9 = vmul.f32 %v1274_v43, %v6316_v0 }
 0x13c   : > { %v6475_v53 = vpop.permute.xlu1 %796  ;;  %v6477_v56 = vpop.permute.xlu0 %794 }
 0x13d   : > { %11861 = vst [vmem:[#allocation51_spill] sm:$0xff] %v6475_v53  ;;  %11862 = vst [vmem:[#allocation52_spill] sm:$0xff] %v6477_v56 }
 0x13e   : > { %1245 = vrot.lane.b32.xlu1 %v1237_v49, %s5819_s9  ;;  %1243 = vrot.lane.b32.xlu0 %v1236_v15, %s5819_s9  ;;  %v1257_v49 = vmul.f32 %v1254_v31, %v6334_v20 }
 0x140   : > { %v6483_v45 = vpop.permute.xlu1 %814  ;;  %v6485_v60 = vpop.permute.xlu0 %798 }
 0x141   : > { %11863 = vst [vmem:[#allocation53_spill] sm:$0xff] %v6483_v45  ;;  %11864 = vst [vmem:[#allocation54_spill] sm:$0xff] %v6485_v60  ;;  %v1277_v45 = vmul.f32 %v1274_v43, %v6334_v20  ;;  %v1276_v60 = vmul.f32 %v1274_v43, %v6312_v27 }
 0x142   : > { %1263 = vrot.lane.b32.xlu1 %v1256_v29, %s5819_s9  ;;  %1261 = vrot.lane.b32.xlu0 %v1255_v8, %s5819_s9  ;;  %v1294_v29 = vstv %s5264_s6  ;;  %s5290_s6 = sld [smem:[#allocation2 + $0x77]] }
 0x143   : > { %v1296_v31 = vmul.f32 %v1294_v29, %v6312_v27 }
 0x144   : > { %v6491_v15 = vpop.permute.xlu1 %818  ;;  %v6493_v56 = vpop.permute.xlu0 %816 }
 0x145   : > { %11865 = vst [vmem:[#allocation55_spill] sm:$0xff] %v6491_v15  ;;  %11866 = vst [vmem:[#allocation56_spill] sm:$0xff] %v6493_v56  ;;  %v1295_v56 = vmul.f32 %v1294_v29, %v6316_v0 }
 0x146   : > { %1281 = vrot.lane.b32.xlu1 %v1275_v9, %s5819_s9  ;;  %1265 = vrot.lane.b32.xlu0 %v1257_v49, %s5819_s9  ;;  %v1314_v9 = vstv %s5265_s7  ;;  %s5291_s7 = sld [smem:[#allocation2 + $0x9b]] }
 0x147   : > { %v1315_v43 = vmul.f32 %v1314_v9, %v6316_v0 }
 0x148   : > { %v6499_v53 = vpop.permute.xlu1 %836  ;;  %v6501_v8 = vpop.permute.xlu0 %834 }
 0x149   : > { %11867 = vst [vmem:[#allocation57_spill] sm:$0xff] %v6499_v53  ;;  %11868 = vst [vmem:[#allocation58_spill] sm:$0xff] %v6501_v8 }
 0x14a   : > { %1285 = vrot.lane.b32.xlu1 %v1277_v45, %s5819_s9  ;;  %1283 = vrot.lane.b32.xlu0 %v1276_v60, %s5819_s9  ;;  %v1297_v45 = vmul.f32 %v1294_v29, %v6334_v20 }
 0x14c   : > { %v6507_v49 = vpop.permute.xlu1 %854  ;;  %v6509_v15 = vpop.permute.xlu0 %838 }
 0x14d   : > { %11869 = vst [vmem:[#allocation59_spill] sm:$0xff] %v6507_v49  ;;  %11870 = vst [vmem:[#allocation60_spill] sm:$0xff] %v6509_v15  ;;  %v1317_v49 = vmul.f32 %v1314_v9, %v6334_v20  ;;  %v1316_v15 = vmul.f32 %v1314_v9, %v6312_v27 }
 0x14e   : > { %1303 = vrot.lane.b32.xlu1 %v1296_v31, %s5819_s9  ;;  %1301 = vrot.lane.b32.xlu0 %v1295_v56, %s5819_s9  ;;  %v1334_v31 = vstv %s5266_s8  ;;  %s5292_s8 = sld [smem:[#allocation2 + $0xbf]] }
 0x14f   : > { %v1336_v29 = vmul.f32 %v1334_v31, %v6312_v27 }
 0x150   : > { %v6515_v60 = vpop.permute.xlu1 %858  ;;  %v6517_v8 = vpop.permute.xlu0 %856 }
 0x151   : > { %11871 = vst [vmem:[#allocation61_spill] sm:$0xff] %v6515_v60  ;;  %11872 = vst [vmem:[#allocation62_spill] sm:$0xff] %v6517_v8  ;;  %v1335_v8 = vmul.f32 %v1334_v31, %v6316_v0 }
 0x152   : > { %1321 = vrot.lane.b32.xlu1 %v1315_v43, %s5819_s9  ;;  %1305 = vrot.lane.b32.xlu0 %v1297_v45, %s5819_s9  ;;  %v1354_v43 = vstv %s5267_s10  ;;  %s5293_s10 = sld [smem:[#allocation2 + $0xe3]] }
 0x154   : > { %v6523_v53 = vpop.permute.xlu1 %876  ;;  %v6525_v56 = vpop.permute.xlu0 %874 }
 0x155   : > { %11873 = vst [vmem:[#allocation63_spill] sm:$0xff] %v6523_v53  ;;  %11874 = vst [vmem:[#allocation64_spill] sm:$0xff] %v6525_v56 }
 0x156   : > { %1325 = vrot.lane.b32.xlu1 %v1317_v49, %s5819_s9  ;;  %1323 = vrot.lane.b32.xlu0 %v1316_v15, %s5819_s9  ;;  %v1355_v49 = vmul.f32 %v1354_v43, %v6316_v0  ;;  %v1337_v15 = vmul.f32 %v1334_v31, %v6334_v20  ;;  %v6551_v0 = vld [vmem:[%s5938_s25 + $0x18] sm:$0xff] }
 0x158   : > { %v6531_v45 = vpop.permute.xlu1 %894  ;;  %v6533_v9 = vpop.permute.xlu0 %878 }
 0x159   : > { %11875 = vst [vmem:[#allocation65_spill] sm:$0xff] %v6531_v45  ;;  %11876 = vst [vmem:[#allocation66_spill] sm:$0xff] %v6533_v9  ;;  %v1357_v9 = vmul.f32 %v1354_v43, %v6334_v20  ;;  %v6548_v45 = vld [vmem:[%s5938_s25 + $0x20] sm:$0xff]  ;;  %v1462_v20 = vstv %s5280_s17  ;;  %s5306_s17 = sld [smem:[#allocation2 + $0xd]] }
 0x15a   : > { %1343 = vrot.lane.b32.xlu1 %v1336_v29, %s5819_s9  ;;  %1341 = vrot.lane.b32.xlu0 %v1335_v8, %s5819_s9  ;;  %v1356_v29 = vmul.f32 %v1354_v43, %v6312_v27  ;;  %v1442_v8 = vstv %s5279_s11  ;;  %s5294_s11 = sld [smem:[#allocation2 + $0x107]] }
 0x15c   : > { %v6539_v56 = vpop.permute.xlu1 %898  ;;  %v6541_v53 = vpop.permute.xlu0 %896 }
 0x15d   : > { %11877 = vst [vmem:[#allocation67_spill] sm:$0xff] %v6539_v56  ;;  %11878 = vst [vmem:[#allocation68_spill] sm:$0xff] %v6541_v53  ;;  %v6562_v53 = vld [vmem:[%s5938_s25 + $0x28] sm:$0x3] }
 0x15e   : > { %1361 = vrot.lane.b32.xlu1 %v1355_v49, %s5819_s9  ;;  %1345 = vrot.lane.b32.xlu0 %v1337_v15, %s5819_s9  ;;  %v1444_v49 = vmul.f32 %v6548_v45, %v1442_v8  ;;  %v1443_v15 = vmul.f32 %v6551_v0, %v1442_v8 }
 0x160   : > { %v6553_v31 = vpop.permute.xlu1 %916  ;;  %v6555_v60 = vpop.permute.xlu0 %914 }
 0x161   : > { %11879 = vst [vmem:[#allocation69_spill] sm:$0xff] %v6553_v31  ;;  %11880 = vst [vmem:[#allocation70_spill] sm:$0xff] %v6555_v60 }
 0x162   : > { %1365 = vrot.lane.b32.xlu1 %v1357_v9, %s5819_s9  ;;  %1363 = vrot.lane.b32.xlu0 %v1356_v29, %s5819_s9  ;;  %v1463_v9 = vmul.f32 %v6551_v0, %v1462_v20  ;;  %v1445_v29 = vmul.f32 %v6562_v53, %v1442_v8 }
 0x164   : > { %v6564_v27 = vpop.permute.xlu1 %934  ;;  %v6566_v43 = vpop.permute.xlu0 %918 }
 0x165   : > { %11881 = vst [vmem:[#allocation71_spill] sm:$0xff] %v6564_v27  ;;  %11882 = vst [vmem:[#allocation72_spill] sm:$0xff] %v6566_v43  ;;  %v1465_v27 = vmul.f32 %v6562_v53, %v1462_v20  ;;  %v1464_v43 = vmul.f32 %v6548_v45, %v1462_v20 }
 0x166   : > { %1451 = vrot.lane.b32.xlu1 %v1444_v49, %s5818_s27  ;;  %1449 = vrot.lane.b32.xlu0 %v1443_v15, %s5818_s27  ;;  %v1482_v49 = vstv %s5281_s19  ;;  %s5307_s19 = sld [smem:[#allocation2 + $0x31]] }
 0x167   : > { %v1484_v8 = vmul.f32 %v6548_v45, %v1482_v49 }
 0x168   : > { %v6572_v60 = vpop.permute.xlu1 %938  ;;  %v6574_v31 = vpop.permute.xlu0 %936 }
 0x169   : > { %11883 = vst [vmem:[#allocation73_spill] sm:$0xff] %v6572_v60  ;;  %11884 = vst [vmem:[#allocation74_spill] sm:$0xff] %v6574_v31  ;;  %v1483_v31 = vmul.f32 %v6551_v0, %v1482_v49 }
 0x16a   : > { %1469 = vrot.lane.b32.xlu1 %v1463_v9, %s5818_s27  ;;  %1453 = vrot.lane.b32.xlu0 %v1445_v29, %s5818_s27  ;;  %v1502_v9 = vstv %s5282_s20  ;;  %s5308_s20 = sld [smem:[#allocation2 + $0x55]] }
 0x16b   : > { %v1503_v20 = vmul.f32 %v6551_v0, %v1502_v9 }
 0x16c   : > { %v6580_v56 = vpop.permute.xlu1 %956  ;;  %v6582_v15 = vpop.permute.xlu0 %954 }
 0x16d   : > { %11885 = vst [vmem:[#allocation75_spill] sm:$0xff] %v6580_v56  ;;  %11886 = vst [vmem:[#allocation76_spill] sm:$0xff] %v6582_v15 }
 0x16e   : > { %1473 = vrot.lane.b32.xlu1 %v1465_v27, %s5818_s27  ;;  %1471 = vrot.lane.b32.xlu0 %v1464_v43, %s5818_s27  ;;  %v1485_v27 = vmul.f32 %v6562_v53, %v1482_v49 }
 0x170   : > { %v6588_v29 = vpop.permute.xlu1 %974  ;;  %v6590_v60 = vpop.permute.xlu0 %958 }
 0x171   : > { %11887 = vst [vmem:[#allocation77_spill] sm:$0xff] %v6588_v29  ;;  %11888 = vst [vmem:[#allocation78_spill] sm:$0xff] %v6590_v60  ;;  %v1505_v29 = vmul.f32 %v6562_v53, %v1502_v9  ;;  %v1504_v60 = vmul.f32 %v6548_v45, %v1502_v9 }
 0x172   : > { %1491 = vrot.lane.b32.xlu1 %v1484_v8, %s5818_s27  ;;  %1489 = vrot.lane.b32.xlu0 %v1483_v31, %s5818_s27  ;;  %v1522_v8 = vstv %s5283_s24  ;;  %s5309_s24 = sld [smem:[#allocation2 + $0x79]] }
 0x173   : > { %v1524_v49 = vmul.f32 %v6548_v45, %v1522_v8 }
 0x174   : > { %v6596_v43 = vpop.permute.xlu1 %978  ;;  %v6598_v15 = vpop.permute.xlu0 %976 }
 0x175   : > { %11889 = vst [vmem:[#allocation79_spill] sm:$0xff] %v6596_v43  ;;  %11890 = vst [vmem:[#allocation80_spill] sm:$0xff] %v6598_v15  ;;  %v1523_v15 = vmul.f32 %v6551_v0, %v1522_v8 }
 0x176   : > { %1509 = vrot.lane.b32.xlu1 %v1503_v20, %s5818_s27  ;;  %1493 = vrot.lane.b32.xlu0 %v1485_v27, %s5818_s27  ;;  %v1542_v20 = vstv %s5284_s26  ;;  %s5310_s26 = sld [smem:[#allocation2 + $0x9d]] }
 0x177   : > { %v1543_v9 = vmul.f32 %v6551_v0, %v1542_v20 }
 0x178   : > { %v6604_v56 = vpop.permute.xlu1 %1063  ;;  %v6606_v31 = vpop.permute.xlu0 %1061 }
 0x179   : > { %11891 = vst [vmem:[#allocation81_spill] sm:$0xff] %v6604_v56  ;;  %11892 = vst [vmem:[#allocation82_spill] sm:$0xff] %v6606_v31 }
 0x17a   : > { %1513 = vrot.lane.b32.xlu1 %v1505_v29, %s5818_s27  ;;  %1511 = vrot.lane.b32.xlu0 %v1504_v60, %s5818_s27  ;;  %v1525_v29 = vmul.f32 %v6562_v53, %v1522_v8 }
 0x17c   : > { %v6612_v27 = vpop.permute.xlu1 %1081  ;;  %v6614_v43 = vpop.permute.xlu0 %1065 }
 0x17d   : > { %11893 = vst [vmem:[#allocation83_spill] sm:$0xff] %v6612_v27  ;;  %11894 = vst [vmem:[#allocation84_spill] sm:$0xff] %v6614_v43  ;;  %v1545_v27 = vmul.f32 %v6562_v53, %v1542_v20  ;;  %v1544_v43 = vmul.f32 %v6548_v45, %v1542_v20 }
 0x17e   : > { %1531 = vrot.lane.b32.xlu1 %v1524_v49, %s5818_s27  ;;  %1529 = vrot.lane.b32.xlu0 %v1523_v15, %s5818_s27  ;;  %v1562_v49 = vstv %s5285_s28  ;;  %s5311_s28 = sld [smem:[#allocation2 + $0xc1]] }
 0x17f   : > { %v1564_v8 = vmul.f32 %v6548_v45, %v1562_v49 }
 0x180   : > { %v6620_v60 = vpop.permute.xlu1 %1085  ;;  %v6622_v31 = vpop.permute.xlu0 %1083 }
 0x181   : > { %11895 = vst [vmem:[#allocation85_spill] sm:$0xff] %v6620_v60  ;;  %11896 = vst [vmem:[#allocation86_spill] sm:$0xff] %v6622_v31  ;;  %v1563_v31 = vmul.f32 %v6551_v0, %v1562_v49 }
 0x182   : > { %1549 = vrot.lane.b32.xlu1 %v1543_v9, %s5818_s27  ;;  %1533 = vrot.lane.b32.xlu0 %v1525_v29, %s5818_s27  ;;  %v1582_v9 = vstv %s5286_s29  ;;  %s5312_s29 = sld [smem:[#allocation2 + $0xe5]] }
 0x183   : > { %v1583_v20 = vmul.f32 %v6551_v0, %v1582_v9 }
 0x184   : > { %v6628_v56 = vpop.permute.xlu1 %1103  ;;  %v6630_v15 = vpop.permute.xlu0 %1101 }
 0x185   : > { %11897 = vst [vmem:[#allocation87_spill] sm:$0xff] %v6628_v56  ;;  %11898 = vst [vmem:[#allocation88_spill] sm:$0xff] %v6630_v15 }
 0x186   : > { %1553 = vrot.lane.b32.xlu1 %v1545_v27, %s5818_s27  ;;  %1551 = vrot.lane.b32.xlu0 %v1544_v43, %s5818_s27  ;;  %v1565_v27 = vmul.f32 %v6562_v53, %v1562_v49 }
 0x188   : > { %v6636_v29 = vpop.permute.xlu1 %1121  ;;  %v6638_v60 = vpop.permute.xlu0 %1105 }
 0x189   : > { %11899 = vst [vmem:[#allocation89_spill] sm:$0xff] %v6636_v29  ;;  %11900 = vst [vmem:[#allocation90_spill] sm:$0xff] %v6638_v60  ;;  %v1585_v29 = vmul.f32 %v6562_v53, %v1582_v9  ;;  %v1584_v60 = vmul.f32 %v6548_v45, %v1582_v9 }
 0x18a   : > { %1571 = vrot.lane.b32.xlu1 %v1564_v8, %s5818_s27  ;;  %1569 = vrot.lane.b32.xlu0 %v1563_v31, %s5818_s27  ;;  %v1602_v8 = vstv %s5287_s30  ;;  %s5313_s30 = sld [smem:[#allocation2 + $0x109]] }
 0x18b   : > { %v1604_v49 = vmul.f32 %v6548_v45, %v1602_v8 }
 0x18c   : > { %v6644_v43 = vpop.permute.xlu1 %1125  ;;  %v6646_v15 = vpop.permute.xlu0 %1123 }
 0x18d   : > { %11901 = vst [vmem:[#allocation91_spill] sm:$0xff] %v6644_v43  ;;  %11902 = vst [vmem:[#allocation92_spill] sm:$0xff] %v6646_v15  ;;  %v1603_v15 = vmul.f32 %v6551_v0, %v1602_v8 }
 0x18e   : > { %1589 = vrot.lane.b32.xlu1 %v1583_v20, %s5818_s27  ;;  %1573 = vrot.lane.b32.xlu0 %v1565_v27, %s5818_s27  ;;  %v1622_v20 = vstv %s5288_s4  ;;  %s5314_s4 = sld [smem:[#allocation2 + $0xe]] }
 0x18f   : > { %v1623_v9 = vmul.f32 %v6551_v0, %v1622_v20 }
 0x190   : > { %v6652_v56 = vpop.permute.xlu1 %1143  ;;  %v6654_v31 = vpop.permute.xlu0 %1141 }
 0x191   : > { %11903 = vst [vmem:[#allocation93_spill] sm:$0xff] %v6652_v56  ;;  %11904 = vst [vmem:[#allocation94_spill] sm:$0xff] %v6654_v31 }
 0x192   : > { %1593 = vrot.lane.b32.xlu1 %v1585_v29, %s5818_s27  ;;  %1591 = vrot.lane.b32.xlu0 %v1584_v60, %s5818_s27  ;;  %v1605_v29 = vmul.f32 %v6562_v53, %v1602_v8 }
 0x194   : > { %v6660_v27 = vpop.permute.xlu1 %1161  ;;  %v6662_v43 = vpop.permute.xlu0 %1145 }
 0x195   : > { %11905 = vst [vmem:[#allocation95_spill] sm:$0xff] %v6660_v27  ;;  %11906 = vst [vmem:[#allocation96_spill] sm:$0xff] %v6662_v43  ;;  %v1625_v27 = vmul.f32 %v6562_v53, %v1622_v20  ;;  %v1624_v43 = vmul.f32 %v6548_v45, %v1622_v20 }
 0x196   : > { %1611 = vrot.lane.b32.xlu1 %v1604_v49, %s5819_s9  ;;  %1609 = vrot.lane.b32.xlu0 %v1603_v15, %s5819_s9  ;;  %v1642_v49 = vstv %s5289_s5  ;;  %s5315_s5 = sld [smem:[#allocation2 + $0x32]] }
 0x197   : > { %v1644_v8 = vmul.f32 %v6548_v45, %v1642_v49 }
 0x198   : > { %v6668_v60 = vpop.permute.xlu1 %1165  ;;  %v6670_v31 = vpop.permute.xlu0 %1163 }
 0x199   : > { %11907 = vst [vmem:[#allocation97_spill] sm:$0xff] %v6668_v60  ;;  %11908 = vst [vmem:[#allocation98_spill] sm:$0xff] %v6670_v31  ;;  %v1643_v31 = vmul.f32 %v6551_v0, %v1642_v49 }
 0x19a   : > { %1629 = vrot.lane.b32.xlu1 %v1623_v9, %s5819_s9  ;;  %1613 = vrot.lane.b32.xlu0 %v1605_v29, %s5819_s9  ;;  %v1662_v9 = vstv %s5290_s6  ;;  %s5316_s6 = sld [smem:[#allocation2 + $0x56]] }
 0x19b   : > { %v1663_v20 = vmul.f32 %v6551_v0, %v1662_v9 }
 0x19c   : > { %v6676_v56 = vpop.permute.xlu1 %1183  ;;  %v6678_v15 = vpop.permute.xlu0 %1181 }
 0x19d   : > { %11909 = vst [vmem:[#allocation99_spill] sm:$0xff] %v6676_v56  ;;  %11910 = vst [vmem:[#allocation100_spill] sm:$0xff] %v6678_v15 }
 0x19e   : > { %1633 = vrot.lane.b32.xlu1 %v1625_v27, %s5819_s9  ;;  %1631 = vrot.lane.b32.xlu0 %v1624_v43, %s5819_s9  ;;  %v1645_v27 = vmul.f32 %v6562_v53, %v1642_v49 }
 0x1a0   : > { %v6684_v29 = vpop.permute.xlu1 %1201  ;;  %v6686_v60 = vpop.permute.xlu0 %1185 }
 0x1a1   : > { %11911 = vst [vmem:[#allocation101_spill] sm:$0xff] %v6684_v29  ;;  %11912 = vst [vmem:[#allocation102_spill] sm:$0xff] %v6686_v60  ;;  %v1665_v29 = vmul.f32 %v6562_v53, %v1662_v9  ;;  %v1664_v60 = vmul.f32 %v6548_v45, %v1662_v9 }
 0x1a2   : > { %1651 = vrot.lane.b32.xlu1 %v1644_v8, %s5819_s9  ;;  %1649 = vrot.lane.b32.xlu0 %v1643_v31, %s5819_s9  ;;  %v1682_v8 = vstv %s5291_s7  ;;  %s5317_s7 = sld [smem:[#allocation2 + $0x7a]] }
 0x1a3   : > { %v1684_v49 = vmul.f32 %v6548_v45, %v1682_v8 }
 0x1a4   : > { %v6692_v43 = vpop.permute.xlu1 %1205  ;;  %v6694_v15 = vpop.permute.xlu0 %1203 }
 0x1a5   : > { %11913 = vst [vmem:[#allocation103_spill] sm:$0xff] %v6692_v43  ;;  %11914 = vst [vmem:[#allocation104_spill] sm:$0xff] %v6694_v15  ;;  %v1683_v15 = vmul.f32 %v6551_v0, %v1682_v8 }
 0x1a6   : > { %1669 = vrot.lane.b32.xlu1 %v1663_v20, %s5819_s9  ;;  %1653 = vrot.lane.b32.xlu0 %v1645_v27, %s5819_s9  ;;  %v1702_v20 = vstv %s5292_s8  ;;  %s5318_s8 = sld [smem:[#allocation2 + $0x9e]] }
 0x1a7   : > { %v1703_v9 = vmul.f32 %v6551_v0, %v1702_v20 }
 0x1a8   : > { %v6700_v56 = vpop.permute.xlu1 %1223  ;;  %v6702_v31 = vpop.permute.xlu0 %1221 }
 0x1a9   : > { %11915 = vst [vmem:[#allocation105_spill] sm:$0xff] %v6700_v56  ;;  %11916 = vst [vmem:[#allocation106_spill] sm:$0xff] %v6702_v31 }
 0x1aa   : > { %1673 = vrot.lane.b32.xlu1 %v1665_v29, %s5819_s9  ;;  %1671 = vrot.lane.b32.xlu0 %v1664_v60, %s5819_s9  ;;  %v1685_v29 = vmul.f32 %v6562_v53, %v1682_v8 }
 0x1ac   : > { %v6708_v27 = vpop.permute.xlu1 %1241  ;;  %v6710_v43 = vpop.permute.xlu0 %1225 }
 0x1ad   : > { %11917 = vst [vmem:[#allocation107_spill] sm:$0xff] %v6708_v27  ;;  %11918 = vst [vmem:[#allocation108_spill] sm:$0xff] %v6710_v43  ;;  %v1705_v27 = vmul.f32 %v6562_v53, %v1702_v20  ;;  %v1704_v43 = vmul.f32 %v6548_v45, %v1702_v20 }
 0x1ae   : > { %1691 = vrot.lane.b32.xlu1 %v1684_v49, %s5819_s9  ;;  %1689 = vrot.lane.b32.xlu0 %v1683_v15, %s5819_s9  ;;  %v1722_v49 = vstv %s5293_s10  ;;  %s5319_s10 = sld [smem:[#allocation2 + $0xc2]] }
 0x1af   : > { %v1724_v8 = vmul.f32 %v6548_v45, %v1722_v49 }
 0x1b0   : > { %v6716_v60 = vpop.permute.xlu1 %1245  ;;  %v6718_v31 = vpop.permute.xlu0 %1243 }
 0x1b1   : > { %11919 = vst [vmem:[#allocation109_spill] sm:$0xff] %v6716_v60  ;;  %11920 = vst [vmem:[#allocation110_spill] sm:$0xff] %v6718_v31  ;;  %v1723_v31 = vmul.f32 %v6551_v0, %v1722_v49 }
 0x1b2   : > { %1709 = vrot.lane.b32.xlu1 %v1703_v9, %s5819_s9  ;;  %1693 = vrot.lane.b32.xlu0 %v1685_v29, %s5819_s9  ;;  %v1742_v9 = vstv %s5294_s11  ;;  %s5320_s11 = sld [smem:[#allocation2 + $0xe6]] }
 0x1b4   : > { %v6724_v56 = vpop.permute.xlu1 %1263  ;;  %v6726_v15 = vpop.permute.xlu0 %1261 }
 0x1b5   : > { %11921 = vst [vmem:[#allocation111_spill] sm:$0xff] %v6724_v56  ;;  %11922 = vst [vmem:[#allocation112_spill] sm:$0xff] %v6726_v15 }
 0x1b6   : > { %1713 = vrot.lane.b32.xlu1 %v1705_v27, %s5819_s9  ;;  %1711 = vrot.lane.b32.xlu0 %v1704_v43, %s5819_s9  ;;  %v1743_v27 = vmul.f32 %v6551_v0, %v1742_v9  ;;  %v1725_v43 = vmul.f32 %v6562_v53, %v1722_v49  ;;  %v6752_v0 = vld [vmem:[%s5938_s25 + $0x19] sm:$0xff] }
 0x1b8   : > { %v6732_v29 = vpop.permute.xlu1 %1281  ;;  %v6734_v20 = vpop.permute.xlu0 %1265 }
 0x1b9   : > { %11923 = vst [vmem:[#allocation113_spill] sm:$0xff] %v6732_v29  ;;  %11924 = vst [vmem:[#allocation114_spill] sm:$0xff] %v6734_v20  ;;  %v1745_v20 = vmul.f32 %v6562_v53, %v1742_v9  ;;  %v6749_v29 = vld [vmem:[%s5938_s25 + $0x21] sm:$0xff]  ;;  %v1849_v53 = vstv %s5307_s19  ;;  %s5333_s19 = sld [smem:[#allocation2 + $0x10]] }
 0x1ba   : > { %1731 = vrot.lane.b32.xlu1 %v1724_v8, %s5819_s9  ;;  %1729 = vrot.lane.b32.xlu0 %v1723_v31, %s5819_s9  ;;  %v1744_v8 = vmul.f32 %v6548_v45, %v1742_v9  ;;  %v1829_v31 = vstv %s5306_s17  ;;  %s5321_s17 = sld [smem:[#allocation2 + $0x10a]] }
 0x1bc   : > { %v6740_v15 = vpop.permute.xlu1 %1285  ;;  %v6742_v56 = vpop.permute.xlu0 %1283 }
 0x1bd   : > { %11925 = vst [vmem:[#allocation115_spill] sm:$0xff] %v6740_v15  ;;  %11926 = vst [vmem:[#allocation116_spill] sm:$0xff] %v6742_v56  ;;  %v6763_v56 = vld [vmem:[%s5938_s25 + $0x29] sm:$0x3] }
 0x1be   : > { %1749 = vrot.lane.b32.xlu1 %v1743_v27, %s5819_s9  ;;  %1733 = vrot.lane.b32.xlu0 %v1725_v43, %s5819_s9  ;;  %v1831_v27 = vmul.f32 %v6749_v29, %v1829_v31  ;;  %v1830_v43 = vmul.f32 %v6752_v0, %v1829_v31 }
 0x1c0   : > { %v6754_v49 = vpop.permute.xlu1 %1303  ;;  %v6756_v60 = vpop.permute.xlu0 %1301 }
 0x1c1   : > { %11927 = vst [vmem:[#allocation117_spill] sm:$0xff] %v6754_v49  ;;  %11928 = vst [vmem:[#allocation118_spill] sm:$0xff] %v6756_v60 }
 0x1c2   : > { %1753 = vrot.lane.b32.xlu1 %v1745_v20, %s5819_s9  ;;  %1751 = vrot.lane.b32.xlu0 %v1744_v8, %s5819_s9  ;;  %v1850_v20 = vmul.f32 %v6752_v0, %v1849_v53  ;;  %v1832_v8 = vmul.f32 %v6763_v56, %v1829_v31 }
 0x1c4   : > { %v6765_v45 = vpop.permute.xlu1 %1321  ;;  %v6767_v9 = vpop.permute.xlu0 %1305 }
 0x1c5   : > { %11929 = vst [vmem:[#allocation119_spill] sm:$0xff] %v6765_v45  ;;  %11930 = vst [vmem:[#allocation120_spill] sm:$0xff] %v6767_v9  ;;  %v1852_v45 = vmul.f32 %v6763_v56, %v1849_v53  ;;  %v1851_v9 = vmul.f32 %v6749_v29, %v1849_v53 }
 0x1c6   : > { %1838 = vrot.lane.b32.xlu1 %v1831_v27, %s5818_s27  ;;  %1836 = vrot.lane.b32.xlu0 %v1830_v43, %s5818_s27  ;;  %v1869_v27 = vstv %s5308_s20  ;;  %s5334_s20 = sld [smem:[#allocation2 + $0x34]] }
 0x1c7   : > { %v1871_v31 = vmul.f32 %v6749_v29, %v1869_v27 }
 0x1c8   : > { %v6773_v60 = vpop.permute.xlu1 %1325  ;;  %v6775_v49 = vpop.permute.xlu0 %1323 }
 0x1c9   : > { %11931 = vst [vmem:[#allocation121_spill] sm:$0xff] %v6773_v60  ;;  %11932 = vst [vmem:[#allocation122_spill] sm:$0xff] %v6775_v49  ;;  %v1870_v49 = vmul.f32 %v6752_v0, %v1869_v27 }
 0x1ca   : > { %1856 = vrot.lane.b32.xlu1 %v1850_v20, %s5818_s27  ;;  %1840 = vrot.lane.b32.xlu0 %v1832_v8, %s5818_s27  ;;  %v1889_v20 = vstv %s5309_s24  ;;  %s5335_s24 = sld [smem:[#allocation2 + $0x58]] }
 0x1cb   : > { %v1890_v53 = vmul.f32 %v6752_v0, %v1889_v20 }
 0x1cc   : > { %v6781_v15 = vpop.permute.xlu1 %1343  ;;  %v6783_v43 = vpop.permute.xlu0 %1341 }
 0x1cd   : > { %11933 = vst [vmem:[#allocation123_spill] sm:$0xff] %v6781_v15  ;;  %11934 = vst [vmem:[#allocation124_spill] sm:$0xff] %v6783_v43 }
 0x1ce   : > { %1860 = vrot.lane.b32.xlu1 %v1852_v45, %s5818_s27  ;;  %1858 = vrot.lane.b32.xlu0 %v1851_v9, %s5818_s27  ;;  %v1872_v45 = vmul.f32 %v6763_v56, %v1869_v27 }
 0x1d0   : > { %v6789_v8 = vpop.permute.xlu1 %1361  ;;  %v6791_v60 = vpop.permute.xlu0 %1345 }
 0x1d1   : > { %11935 = vst [vmem:[#allocation125_spill] sm:$0xff] %v6789_v8  ;;  %11936 = vst [vmem:[#allocation126_spill] sm:$0xff] %v6791_v60  ;;  %v1892_v8 = vmul.f32 %v6763_v56, %v1889_v20  ;;  %v1891_v60 = vmul.f32 %v6749_v29, %v1889_v20 }
 0x1d2   : > { %1878 = vrot.lane.b32.xlu1 %v1871_v31, %s5818_s27  ;;  %1876 = vrot.lane.b32.xlu0 %v1870_v49, %s5818_s27  ;;  %v1909_v31 = vstv %s5310_s26  ;;  %s5336_s26 = sld [smem:[#allocation2 + $0x7c]] }
 0x1d3   : > { %v1911_v27 = vmul.f32 %v6749_v29, %v1909_v31 }
 0x1d4   : > { %v6797_v9 = vpop.permute.xlu1 %1365  ;;  %v6799_v43 = vpop.permute.xlu0 %1363 }
 0x1d5   : > { %11937 = vst [vmem:[#allocation127_spill] sm:$0xff] %v6797_v9  ;;  %11938 = vst [vmem:[#allocation128_spill] sm:$0xff] %v6799_v43  ;;  %v1910_v43 = vmul.f32 %v6752_v0, %v1909_v31 }
 0x1d6   : > { %1896 = vrot.lane.b32.xlu1 %v1890_v53, %s5818_s27  ;;  %1880 = vrot.lane.b32.xlu0 %v1872_v45, %s5818_s27  ;;  %v1929_v53 = vstv %s5311_s28  ;;  %s5337_s28 = sld [smem:[#allocation2 + $0xa0]] }
 0x1d7   : > { %v1930_v20 = vmul.f32 %v6752_v0, %v1929_v53 }
 0x1d8   : > { %v6805_v15 = vpop.permute.xlu1 %1451  ;;  %v6807_v49 = vpop.permute.xlu0 %1449 }
 0x1d9   : > { %11939 = vst [vmem:[#allocation129_spill] sm:$0xff] %v6805_v15  ;;  %11940 = vst [vmem:[#allocation130_spill] sm:$0xff] %v6807_v49 }
 0x1da   : > { %1900 = vrot.lane.b32.xlu1 %v1892_v8, %s5818_s27  ;;  %1898 = vrot.lane.b32.xlu0 %v1891_v60, %s5818_s27  ;;  %v1912_v8 = vmul.f32 %v6763_v56, %v1909_v31 }
 0x1dc   : > { %v6813_v45 = vpop.permute.xlu1 %1469  ;;  %v6815_v9 = vpop.permute.xlu0 %1453 }
 0x1dd   : > { %11941 = vst [vmem:[#allocation131_spill] sm:$0xff] %v6813_v45  ;;  %11942 = vst [vmem:[#allocation132_spill] sm:$0xff] %v6815_v9  ;;  %v1932_v45 = vmul.f32 %v6763_v56, %v1929_v53  ;;  %v1931_v9 = vmul.f32 %v6749_v29, %v1929_v53 }
 0x1de   : > { %1918 = vrot.lane.b32.xlu1 %v1911_v27, %s5818_s27  ;;  %1916 = vrot.lane.b32.xlu0 %v1910_v43, %s5818_s27  ;;  %v1949_v27 = vstv %s5312_s29  ;;  %s5338_s29 = sld [smem:[#allocation2 + $0xc4]] }
 0x1df   : > { %v1951_v31 = vmul.f32 %v6749_v29, %v1949_v27 }
 0x1e0   : > { %v6821_v60 = vpop.permute.xlu1 %1473  ;;  %v6823_v49 = vpop.permute.xlu0 %1471 }
 0x1e1   : > { %11943 = vst [vmem:[#allocation133_spill] sm:$0xff] %v6821_v60  ;;  %11944 = vst [vmem:[#allocation134_spill] sm:$0xff] %v6823_v49  ;;  %v1950_v49 = vmul.f32 %v6752_v0, %v1949_v27 }
 0x1e2   : > { %1936 = vrot.lane.b32.xlu1 %v1930_v20, %s5818_s27  ;;  %1920 = vrot.lane.b32.xlu0 %v1912_v8, %s5818_s27  ;;  %v1969_v20 = vstv %s5313_s30  ;;  %s5339_s30 = sld [smem:[#allocation2 + $0xe8]] }
 0x1e3   : > { %v1970_v53 = vmul.f32 %v6752_v0, %v1969_v20 }
 0x1e4   : > { %v6829_v15 = vpop.permute.xlu1 %1491  ;;  %v6831_v43 = vpop.permute.xlu0 %1489 }
 0x1e5   : > { %11945 = vst [vmem:[#allocation135_spill] sm:$0xff] %v6829_v15  ;;  %11946 = vst [vmem:[#allocation136_spill] sm:$0xff] %v6831_v43 }
 0x1e6   : > { %1940 = vrot.lane.b32.xlu1 %v1932_v45, %s5818_s27  ;;  %1938 = vrot.lane.b32.xlu0 %v1931_v9, %s5818_s27  ;;  %v1952_v45 = vmul.f32 %v6763_v56, %v1949_v27 }
 0x1e8   : > { %v6837_v8 = vpop.permute.xlu1 %1509  ;;  %v6839_v60 = vpop.permute.xlu0 %1493 }
 0x1e9   : > { %11947 = vst [vmem:[#allocation137_spill] sm:$0xff] %v6837_v8  ;;  %11948 = vst [vmem:[#allocation138_spill] sm:$0xff] %v6839_v60  ;;  %v1972_v8 = vmul.f32 %v6763_v56, %v1969_v20  ;;  %v1971_v60 = vmul.f32 %v6749_v29, %v1969_v20 }
 0x1ea   : > { %1958 = vrot.lane.b32.xlu1 %v1951_v31, %s5818_s27  ;;  %1956 = vrot.lane.b32.xlu0 %v1950_v49, %s5818_s27  ;;  %v1989_v31 = vstv %s5314_s4  ;;  %s5340_s4 = sld [smem:[#allocation2 + $0x10c]] }
 0x1eb   : > { %v1991_v27 = vmul.f32 %v6749_v29, %v1989_v31 }
 0x1ec   : > { %v6845_v9 = vpop.permute.xlu1 %1513  ;;  %v6847_v43 = vpop.permute.xlu0 %1511 }
 0x1ed   : > { %11949 = vst [vmem:[#allocation139_spill] sm:$0xff] %v6845_v9  ;;  %11950 = vst [vmem:[#allocation140_spill] sm:$0xff] %v6847_v43  ;;  %v1990_v43 = vmul.f32 %v6752_v0, %v1989_v31 }
 0x1ee   : > { %1976 = vrot.lane.b32.xlu1 %v1970_v53, %s5818_s27  ;;  %1960 = vrot.lane.b32.xlu0 %v1952_v45, %s5818_s27  ;;  %v2009_v53 = vstv %s5315_s5  ;;  %s5341_s5 = sld [smem:[#allocation2 + $0x11]] }
 0x1ef   : > { %v2010_v20 = vmul.f32 %v6752_v0, %v2009_v53 }
 0x1f0   : > { %v6853_v15 = vpop.permute.xlu1 %1531  ;;  %v6855_v49 = vpop.permute.xlu0 %1529 }
 0x1f1   : > { %11951 = vst [vmem:[#allocation141_spill] sm:$0xff] %v6853_v15  ;;  %11952 = vst [vmem:[#allocation142_spill] sm:$0xff] %v6855_v49 }
 0x1f2   : > { %1980 = vrot.lane.b32.xlu1 %v1972_v8, %s5818_s27  ;;  %1978 = vrot.lane.b32.xlu0 %v1971_v60, %s5818_s27  ;;  %v1992_v8 = vmul.f32 %v6763_v56, %v1989_v31 }
 0x1f4   : > { %v6861_v45 = vpop.permute.xlu1 %1549  ;;  %v6863_v9 = vpop.permute.xlu0 %1533 }
 0x1f5   : > { %11953 = vst [vmem:[#allocation143_spill] sm:$0xff] %v6861_v45  ;;  %11954 = vst [vmem:[#allocation144_spill] sm:$0xff] %v6863_v9  ;;  %v2012_v45 = vmul.f32 %v6763_v56, %v2009_v53  ;;  %v2011_v9 = vmul.f32 %v6749_v29, %v2009_v53 }
 0x1f6   : > { %1998 = vrot.lane.b32.xlu1 %v1991_v27, %s5819_s9  ;;  %1996 = vrot.lane.b32.xlu0 %v1990_v43, %s5819_s9  ;;  %v2029_v27 = vstv %s5316_s6  ;;  %s5342_s6 = sld [smem:[#allocation2 + $0x35]] }
 0x1f7   : > { %v2031_v31 = vmul.f32 %v6749_v29, %v2029_v27 }
 0x1f8   : > { %v6869_v60 = vpop.permute.xlu1 %1553  ;;  %v6871_v49 = vpop.permute.xlu0 %1551 }
 0x1f9   : > { %11955 = vst [vmem:[#allocation145_spill] sm:$0xff] %v6869_v60  ;;  %11956 = vst [vmem:[#allocation146_spill] sm:$0xff] %v6871_v49  ;;  %v2030_v49 = vmul.f32 %v6752_v0, %v2029_v27 }
 0x1fa   : > { %2016 = vrot.lane.b32.xlu1 %v2010_v20, %s5819_s9  ;;  %2000 = vrot.lane.b32.xlu0 %v1992_v8, %s5819_s9  ;;  %v2049_v20 = vstv %s5317_s7  ;;  %s5343_s7 = sld [smem:[#allocation2 + $0x59]] }
 0x1fb   : > { %v2050_v53 = vmul.f32 %v6752_v0, %v2049_v20 }
 0x1fc   : > { %v6877_v15 = vpop.permute.xlu1 %1571  ;;  %v6879_v43 = vpop.permute.xlu0 %1569 }
 0x1fd   : > { %11957 = vst [vmem:[#allocation147_spill] sm:$0xff] %v6877_v15  ;;  %11958 = vst [vmem:[#allocation148_spill] sm:$0xff] %v6879_v43 }
 0x1fe   : > { %2020 = vrot.lane.b32.xlu1 %v2012_v45, %s5819_s9  ;;  %2018 = vrot.lane.b32.xlu0 %v2011_v9, %s5819_s9  ;;  %v2032_v45 = vmul.f32 %v6763_v56, %v2029_v27 }
 0x200   : > { %v6885_v8 = vpop.permute.xlu1 %1589  ;;  %v6887_v60 = vpop.permute.xlu0 %1573 }
 0x201   : > { %11959 = vst [vmem:[#allocation149_spill] sm:$0xff] %v6885_v8  ;;  %11960 = vst [vmem:[#allocation150_spill] sm:$0xff] %v6887_v60  ;;  %v2052_v8 = vmul.f32 %v6763_v56, %v2049_v20  ;;  %v2051_v60 = vmul.f32 %v6749_v29, %v2049_v20 }
 0x202   : > { %2038 = vrot.lane.b32.xlu1 %v2031_v31, %s5819_s9  ;;  %2036 = vrot.lane.b32.xlu0 %v2030_v49, %s5819_s9  ;;  %v2069_v31 = vstv %s5318_s8  ;;  %s5344_s8 = sld [smem:[#allocation2 + $0x7d]] }
 0x203   : > { %v2071_v27 = vmul.f32 %v6749_v29, %v2069_v31 }
 0x204   : > { %v6893_v9 = vpop.permute.xlu1 %1593  ;;  %v6895_v43 = vpop.permute.xlu0 %1591 }
 0x205   : > { %11961 = vst [vmem:[#allocation151_spill] sm:$0xff] %v6893_v9  ;;  %11962 = vst [vmem:[#allocation152_spill] sm:$0xff] %v6895_v43  ;;  %v2070_v43 = vmul.f32 %v6752_v0, %v2069_v31 }
 0x206   : > { %2056 = vrot.lane.b32.xlu1 %v2050_v53, %s5819_s9  ;;  %2040 = vrot.lane.b32.xlu0 %v2032_v45, %s5819_s9  ;;  %v2089_v53 = vstv %s5319_s10  ;;  %s5345_s10 = sld [smem:[#allocation2 + $0xa1]] }
 0x207   : > { %v2090_v20 = vmul.f32 %v6752_v0, %v2089_v53 }
 0x208   : > { %v6901_v15 = vpop.permute.xlu1 %1611  ;;  %v6903_v49 = vpop.permute.xlu0 %1609 }
 0x209   : > { %11963 = vst [vmem:[#allocation153_spill] sm:$0xff] %v6901_v15  ;;  %11964 = vst [vmem:[#allocation154_spill] sm:$0xff] %v6903_v49 }
 0x20a   : > { %2060 = vrot.lane.b32.xlu1 %v2052_v8, %s5819_s9  ;;  %2058 = vrot.lane.b32.xlu0 %v2051_v60, %s5819_s9  ;;  %v2072_v8 = vmul.f32 %v6763_v56, %v2069_v31 }
 0x20c   : > { %v6909_v45 = vpop.permute.xlu1 %1629  ;;  %v6911_v9 = vpop.permute.xlu0 %1613 }
 0x20d   : > { %11965 = vst [vmem:[#allocation155_spill] sm:$0xff] %v6909_v45  ;;  %11966 = vst [vmem:[#allocation156_spill] sm:$0xff] %v6911_v9  ;;  %v2092_v45 = vmul.f32 %v6763_v56, %v2089_v53  ;;  %v2091_v9 = vmul.f32 %v6749_v29, %v2089_v53 }
 0x20e   : > { %2078 = vrot.lane.b32.xlu1 %v2071_v27, %s5819_s9  ;;  %2076 = vrot.lane.b32.xlu0 %v2070_v43, %s5819_s9  ;;  %v2109_v27 = vstv %s5320_s11  ;;  %s5346_s11 = sld [smem:[#allocation2 + $0xc5]] }
 0x20f   : > { %v2111_v31 = vmul.f32 %v6749_v29, %v2109_v27 }
 0x210   : > { %v6917_v60 = vpop.permute.xlu1 %1633  ;;  %v6919_v49 = vpop.permute.xlu0 %1631 }
 0x211   : > { %11967 = vst [vmem:[#allocation157_spill] sm:$0xff] %v6917_v60  ;;  %11968 = vst [vmem:[#allocation158_spill] sm:$0xff] %v6919_v49  ;;  %v2110_v49 = vmul.f32 %v6752_v0, %v2109_v27 }
 0x212   : > { %2096 = vrot.lane.b32.xlu1 %v2090_v20, %s5819_s9  ;;  %2080 = vrot.lane.b32.xlu0 %v2072_v8, %s5819_s9  ;;  %v2129_v20 = vstv %s5321_s17  ;;  %s5347_s17 = sld [smem:[#allocation2 + $0xe9]] }
 0x214   : > { %v6925_v15 = vpop.permute.xlu1 %1651  ;;  %v6927_v43 = vpop.permute.xlu0 %1649 }
 0x215   : > { %11969 = vst [vmem:[#allocation159_spill] sm:$0xff] %v6925_v15  ;;  %11970 = vst [vmem:[#allocation160_spill] sm:$0xff] %v6927_v43 }
 0x216   : > { %2100 = vrot.lane.b32.xlu1 %v2092_v45, %s5819_s9  ;;  %2098 = vrot.lane.b32.xlu0 %v2091_v9, %s5819_s9  ;;  %v2130_v45 = vmul.f32 %v6752_v0, %v2129_v20  ;;  %v2112_v9 = vmul.f32 %v6763_v56, %v2109_v27  ;;  %v6953_v0 = vld [vmem:[%s5938_s25 + $0x1a] sm:$0xff] }
 0x218   : > { %v6933_v8 = vpop.permute.xlu1 %1669  ;;  %v6935_v53 = vpop.permute.xlu0 %1653 }
 0x219   : > { %11971 = vst [vmem:[#allocation161_spill] sm:$0xff] %v6933_v8  ;;  %11972 = vst [vmem:[#allocation162_spill] sm:$0xff] %v6935_v53  ;;  %v2132_v53 = vmul.f32 %v6763_v56, %v2129_v20  ;;  %v6950_v8 = vld [vmem:[%s5938_s25 + $0x22] sm:$0xff]  ;;  %v2236_v56 = vstv %s5334_s20  ;;  %s5360_s20 = sld [smem:[#allocation2 + $0x13]] }
 0x21a   : > { %2118 = vrot.lane.b32.xlu1 %v2111_v31, %s5819_s9  ;;  %2116 = vrot.lane.b32.xlu0 %v2110_v49, %s5819_s9  ;;  %v2131_v31 = vmul.f32 %v6749_v29, %v2129_v20  ;;  %v2216_v49 = vstv %s5333_s19  ;;  %s5348_s19 = sld [smem:[#allocation2 + $0x10d]] }
 0x21c   : > { %v6941_v43 = vpop.permute.xlu1 %1673  ;;  %v6943_v15 = vpop.permute.xlu0 %1671 }
 0x21d   : > { %11973 = vst [vmem:[#allocation163_spill] sm:$0xff] %v6941_v43  ;;  %11974 = vst [vmem:[#allocation164_spill] sm:$0xff] %v6943_v15  ;;  %v6964_v15 = vld [vmem:[%s5938_s25 + $0x2a] sm:$0x3] }
 0x21e   : > { %2136 = vrot.lane.b32.xlu1 %v2130_v45, %s5819_s9  ;;  %2120 = vrot.lane.b32.xlu0 %v2112_v9, %s5819_s9  ;;  %v2218_v45 = vmul.f32 %v6950_v8, %v2216_v49  ;;  %v2217_v9 = vmul.f32 %v6953_v0, %v2216_v49 }
 0x220   : > { %v6955_v27 = vpop.permute.xlu1 %1691  ;;  %v6957_v60 = vpop.permute.xlu0 %1689 }
 0x221   : > { %11975 = vst [vmem:[#allocation165_spill] sm:$0xff] %v6955_v27  ;;  %11976 = vst [vmem:[#allocation166_spill] sm:$0xff] %v6957_v60 }
 0x222   : > { %2140 = vrot.lane.b32.xlu1 %v2132_v53, %s5819_s9  ;;  %2138 = vrot.lane.b32.xlu0 %v2131_v31, %s5819_s9  ;;  %v2237_v53 = vmul.f32 %v6953_v0, %v2236_v56  ;;  %v2219_v31 = vmul.f32 %v6964_v15, %v2216_v49 }
 0x224   : > { %v6966_v29 = vpop.permute.xlu1 %1709  ;;  %v6968_v20 = vpop.permute.xlu0 %1693 }
 0x225   : > { %11977 = vst [vmem:[#allocation167_spill] sm:$0xff] %v6966_v29  ;;  %11978 = vst [vmem:[#allocation168_spill] sm:$0xff] %v6968_v20  ;;  %v2239_v29 = vmul.f32 %v6964_v15, %v2236_v56  ;;  %v2238_v20 = vmul.f32 %v6950_v8, %v2236_v56 }
 0x226   : > { %2225 = vrot.lane.b32.xlu1 %v2218_v45, %s5818_s27  ;;  %2223 = vrot.lane.b32.xlu0 %v2217_v9, %s5818_s27  ;;  %v2256_v45 = vstv %s5335_s24  ;;  %s5361_s24 = sld [smem:[#allocation2 + $0x37]] }
 0x227   : > { %v2258_v49 = vmul.f32 %v6950_v8, %v2256_v45 }
 0x228   : > { %v6974_v60 = vpop.permute.xlu1 %1713  ;;  %v6976_v27 = vpop.permute.xlu0 %1711 }
 0x229   : > { %11979 = vst [vmem:[#allocation169_spill] sm:$0xff] %v6974_v60  ;;  %11980 = vst [vmem:[#allocation170_spill] sm:$0xff] %v6976_v27  ;;  %v2257_v27 = vmul.f32 %v6953_v0, %v2256_v45 }
 0x22a   : > { %2243 = vrot.lane.b32.xlu1 %v2237_v53, %s5818_s27  ;;  %2227 = vrot.lane.b32.xlu0 %v2219_v31, %s5818_s27  ;;  %v2276_v53 = vstv %s5336_s26  ;;  %s5362_s26 = sld [smem:[#allocation2 + $0x5b]] }
 0x22b   : > { %v2277_v56 = vmul.f32 %v6953_v0, %v2276_v53 }
 0x22c   : > { %v6982_v43 = vpop.permute.xlu1 %1731  ;;  %v6984_v9 = vpop.permute.xlu0 %1729 }
 0x22d   : > { %11981 = vst [vmem:[#allocation171_spill] sm:$0xff] %v6982_v43  ;;  %11982 = vst [vmem:[#allocation172_spill] sm:$0xff] %v6984_v9 }
 0x22e   : > { %2247 = vrot.lane.b32.xlu1 %v2239_v29, %s5818_s27  ;;  %2245 = vrot.lane.b32.xlu0 %v2238_v20, %s5818_s27  ;;  %v2259_v29 = vmul.f32 %v6964_v15, %v2256_v45 }
 0x230   : > { %v6990_v31 = vpop.permute.xlu1 %1749  ;;  %v6992_v60 = vpop.permute.xlu0 %1733 }
 0x231   : > { %11983 = vst [vmem:[#allocation173_spill] sm:$0xff] %v6990_v31  ;;  %11984 = vst [vmem:[#allocation174_spill] sm:$0xff] %v6992_v60  ;;  %v2279_v31 = vmul.f32 %v6964_v15, %v2276_v53  ;;  %v2278_v60 = vmul.f32 %v6950_v8, %v2276_v53 }
 0x232   : > { %2265 = vrot.lane.b32.xlu1 %v2258_v49, %s5818_s27  ;;  %2263 = vrot.lane.b32.xlu0 %v2257_v27, %s5818_s27  ;;  %v2296_v49 = vstv %s5337_s28  ;;  %s5363_s28 = sld [smem:[#allocation2 + $0x7f]] }
 0x233   : > { %v2298_v45 = vmul.f32 %v6950_v8, %v2296_v49 }
 0x234   : > { %v6998_v20 = vpop.permute.xlu1 %1753  ;;  %v7000_v9 = vpop.permute.xlu0 %1751 }
 0x235   : > { %11985 = vst [vmem:[#allocation175_spill] sm:$0xff] %v6998_v20  ;;  %11986 = vst [vmem:[#allocation176_spill] sm:$0xff] %v7000_v9  ;;  %v2297_v9 = vmul.f32 %v6953_v0, %v2296_v49 }
 0x236   : > { %2283 = vrot.lane.b32.xlu1 %v2277_v56, %s5818_s27  ;;  %2267 = vrot.lane.b32.xlu0 %v2259_v29, %s5818_s27  ;;  %v2316_v56 = vstv %s5338_s29  ;;  %s5364_s29 = sld [smem:[#allocation2 + $0xa3]] }
 0x237   : > { %v2317_v53 = vmul.f32 %v6953_v0, %v2316_v56 }
 0x238   : > { %v7006_v43 = vpop.permute.xlu1 %1838  ;;  %v7008_v27 = vpop.permute.xlu0 %1836 }
 0x239   : > { %11987 = vst [vmem:[#allocation177_spill] sm:$0xff] %v7006_v43  ;;  %11988 = vst [vmem:[#allocation178_spill] sm:$0xff] %v7008_v27 }
 0x23a   : > { %2287 = vrot.lane.b32.xlu1 %v2279_v31, %s5818_s27  ;;  %2285 = vrot.lane.b32.xlu0 %v2278_v60, %s5818_s27  ;;  %v2299_v31 = vmul.f32 %v6964_v15, %v2296_v49 }
 0x23c   : > { %v7014_v29 = vpop.permute.xlu1 %1856  ;;  %v7016_v20 = vpop.permute.xlu0 %1840 }
 0x23d   : > { %11989 = vst [vmem:[#allocation179_spill] sm:$0xff] %v7014_v29  ;;  %11990 = vst [vmem:[#allocation180_spill] sm:$0xff] %v7016_v20  ;;  %v2319_v29 = vmul.f32 %v6964_v15, %v2316_v56  ;;  %v2318_v20 = vmul.f32 %v6950_v8, %v2316_v56 }
 0x23e   : > { %2305 = vrot.lane.b32.xlu1 %v2298_v45, %s5818_s27  ;;  %2303 = vrot.lane.b32.xlu0 %v2297_v9, %s5818_s27  ;;  %v2336_v45 = vstv %s5339_s30  ;;  %s5365_s30 = sld [smem:[#allocation2 + $0xc7]] }
 0x23f   : > { %v2338_v49 = vmul.f32 %v6950_v8, %v2336_v45 }
 0x240   : > { %v7022_v60 = vpop.permute.xlu1 %1860  ;;  %v7024_v27 = vpop.permute.xlu0 %1858 }
 0x241   : > { %11991 = vst [vmem:[#allocation181_spill] sm:$0xff] %v7022_v60  ;;  %11992 = vst [vmem:[#allocation182_spill] sm:$0xff] %v7024_v27  ;;  %v2337_v27 = vmul.f32 %v6953_v0, %v2336_v45 }
 0x242   : > { %2323 = vrot.lane.b32.xlu1 %v2317_v53, %s5818_s27  ;;  %2307 = vrot.lane.b32.xlu0 %v2299_v31, %s5818_s27  ;;  %v2356_v53 = vstv %s5340_s4  ;;  %s5366_s4 = sld [smem:[#allocation2 + $0xeb]] }
 0x243   : > { %v2357_v56 = vmul.f32 %v6953_v0, %v2356_v53 }
 0x244   : > { %v7030_v43 = vpop.permute.xlu1 %1878  ;;  %v7032_v9 = vpop.permute.xlu0 %1876 }
 0x245   : > { %11993 = vst [vmem:[#allocation183_spill] sm:$0xff] %v7030_v43  ;;  %11994 = vst [vmem:[#allocation184_spill] sm:$0xff] %v7032_v9 }
 0x246   : > { %2327 = vrot.lane.b32.xlu1 %v2319_v29, %s5818_s27  ;;  %2325 = vrot.lane.b32.xlu0 %v2318_v20, %s5818_s27  ;;  %v2339_v29 = vmul.f32 %v6964_v15, %v2336_v45 }
 0x248   : > { %v7038_v31 = vpop.permute.xlu1 %1896  ;;  %v7040_v60 = vpop.permute.xlu0 %1880 }
 0x249   : > { %11995 = vst [vmem:[#allocation185_spill] sm:$0xff] %v7038_v31  ;;  %11996 = vst [vmem:[#allocation186_spill] sm:$0xff] %v7040_v60  ;;  %v2359_v31 = vmul.f32 %v6964_v15, %v2356_v53  ;;  %v2358_v60 = vmul.f32 %v6950_v8, %v2356_v53 }
 0x24a   : > { %2345 = vrot.lane.b32.xlu1 %v2338_v49, %s5818_s27  ;;  %2343 = vrot.lane.b32.xlu0 %v2337_v27, %s5818_s27  ;;  %v2376_v49 = vstv %s5341_s5  ;;  %s5367_s5 = sld [smem:[#allocation2 + $0x10f]] }
 0x24b   : > { %v2378_v45 = vmul.f32 %v6950_v8, %v2376_v49 }
 0x24c   : > { %v7046_v20 = vpop.permute.xlu1 %1900  ;;  %v7048_v9 = vpop.permute.xlu0 %1898 }
 0x24d   : > { %11997 = vst [vmem:[#allocation187_spill] sm:$0xff] %v7046_v20  ;;  %11998 = vst [vmem:[#allocation188_spill] sm:$0xff] %v7048_v9  ;;  %v2377_v9 = vmul.f32 %v6953_v0, %v2376_v49 }
 0x24e   : > { %2363 = vrot.lane.b32.xlu1 %v2357_v56, %s5818_s27  ;;  %2347 = vrot.lane.b32.xlu0 %v2339_v29, %s5818_s27  ;;  %v2396_v56 = vstv %s5342_s6  ;;  %s5368_s6 = sld [smem:[#allocation2 + $0x14]] }
 0x24f   : > { %v2397_v53 = vmul.f32 %v6953_v0, %v2396_v56 }
 0x250   : > { %v7054_v43 = vpop.permute.xlu1 %1918  ;;  %v7056_v27 = vpop.permute.xlu0 %1916 }
 0x251   : > { %11999 = vst [vmem:[#allocation189_spill] sm:$0xff] %v7054_v43  ;;  %12000 = vst [vmem:[#allocation190_spill] sm:$0xff] %v7056_v27 }
 0x252   : > { %2367 = vrot.lane.b32.xlu1 %v2359_v31, %s5818_s27  ;;  %2365 = vrot.lane.b32.xlu0 %v2358_v60, %s5818_s27  ;;  %v2379_v31 = vmul.f32 %v6964_v15, %v2376_v49 }
 0x254   : > { %v7062_v29 = vpop.permute.xlu1 %1936  ;;  %v7064_v20 = vpop.permute.xlu0 %1920 }
 0x255   : > { %12001 = vst [vmem:[#allocation191_spill] sm:$0xff] %v7062_v29  ;;  %12002 = vst [vmem:[#allocation192_spill] sm:$0xff] %v7064_v20  ;;  %v2399_v29 = vmul.f32 %v6964_v15, %v2396_v56  ;;  %v2398_v20 = vmul.f32 %v6950_v8, %v2396_v56 }
 0x256   : > { %2385 = vrot.lane.b32.xlu1 %v2378_v45, %s5819_s9  ;;  %2383 = vrot.lane.b32.xlu0 %v2377_v9, %s5819_s9  ;;  %v2416_v45 = vstv %s5343_s7  ;;  %s5369_s7 = sld [smem:[#allocation2 + $0x38]] }
 0x257   : > { %v2418_v49 = vmul.f32 %v6950_v8, %v2416_v45 }
 0x258   : > { %v7070_v60 = vpop.permute.xlu1 %1940  ;;  %v7072_v27 = vpop.permute.xlu0 %1938 }
 0x259   : > { %12003 = vst [vmem:[#allocation193_spill] sm:$0xff] %v7070_v60  ;;  %12004 = vst [vmem:[#allocation194_spill] sm:$0xff] %v7072_v27  ;;  %v2417_v27 = vmul.f32 %v6953_v0, %v2416_v45 }
 0x25a   : > { %2403 = vrot.lane.b32.xlu1 %v2397_v53, %s5819_s9  ;;  %2387 = vrot.lane.b32.xlu0 %v2379_v31, %s5819_s9  ;;  %v2436_v53 = vstv %s5344_s8  ;;  %s5370_s8 = sld [smem:[#allocation2 + $0x5c]] }
 0x25b   : > { %v2437_v56 = vmul.f32 %v6953_v0, %v2436_v53 }
 0x25c   : > { %v7078_v43 = vpop.permute.xlu1 %1958  ;;  %v7080_v9 = vpop.permute.xlu0 %1956 }
 0x25d   : > { %12005 = vst [vmem:[#allocation195_spill] sm:$0xff] %v7078_v43  ;;  %12006 = vst [vmem:[#allocation196_spill] sm:$0xff] %v7080_v9 }
 0x25e   : > { %2407 = vrot.lane.b32.xlu1 %v2399_v29, %s5819_s9  ;;  %2405 = vrot.lane.b32.xlu0 %v2398_v20, %s5819_s9  ;;  %v2419_v29 = vmul.f32 %v6964_v15, %v2416_v45 }
 0x260   : > { %v7086_v31 = vpop.permute.xlu1 %1976  ;;  %v7088_v60 = vpop.permute.xlu0 %1960 }
 0x261   : > { %12007 = vst [vmem:[#allocation197_spill] sm:$0xff] %v7086_v31  ;;  %12008 = vst [vmem:[#allocation198_spill] sm:$0xff] %v7088_v60  ;;  %v2439_v31 = vmul.f32 %v6964_v15, %v2436_v53  ;;  %v2438_v60 = vmul.f32 %v6950_v8, %v2436_v53 }
 0x262   : > { %2425 = vrot.lane.b32.xlu1 %v2418_v49, %s5819_s9  ;;  %2423 = vrot.lane.b32.xlu0 %v2417_v27, %s5819_s9  ;;  %v2456_v49 = vstv %s5345_s10  ;;  %s5371_s10 = sld [smem:[#allocation2 + $0x80]] }
 0x263   : > { %v2458_v45 = vmul.f32 %v6950_v8, %v2456_v49 }
 0x264   : > { %v7094_v20 = vpop.permute.xlu1 %1980  ;;  %v7096_v9 = vpop.permute.xlu0 %1978 }
 0x265   : > { %12009 = vst [vmem:[#allocation199_spill] sm:$0xff] %v7094_v20  ;;  %12010 = vst [vmem:[#allocation200_spill] sm:$0xff] %v7096_v9  ;;  %v2457_v9 = vmul.f32 %v6953_v0, %v2456_v49 }
 0x266   : > { %2443 = vrot.lane.b32.xlu1 %v2437_v56, %s5819_s9  ;;  %2427 = vrot.lane.b32.xlu0 %v2419_v29, %s5819_s9  ;;  %v2476_v56 = vstv %s5346_s11  ;;  %s5372_s11 = sld [smem:[#allocation2 + $0xa4]] }
 0x267   : > { %v2477_v53 = vmul.f32 %v6953_v0, %v2476_v56 }
 0x268   : > { %v7102_v43 = vpop.permute.xlu1 %1998  ;;  %v7104_v27 = vpop.permute.xlu0 %1996 }
 0x269   : > { %12011 = vst [vmem:[#allocation201_spill] sm:$0xff] %v7102_v43  ;;  %12012 = vst [vmem:[#allocation202_spill] sm:$0xff] %v7104_v27 }
 0x26a   : > { %2447 = vrot.lane.b32.xlu1 %v2439_v31, %s5819_s9  ;;  %2445 = vrot.lane.b32.xlu0 %v2438_v60, %s5819_s9  ;;  %v2459_v31 = vmul.f32 %v6964_v15, %v2456_v49 }
 0x26c   : > { %v7110_v29 = vpop.permute.xlu1 %2016  ;;  %v7112_v20 = vpop.permute.xlu0 %2000 }
 0x26d   : > { %12013 = vst [vmem:[#allocation203_spill] sm:$0xff] %v7110_v29  ;;  %12014 = vst [vmem:[#allocation204_spill] sm:$0xff] %v7112_v20  ;;  %v2479_v29 = vmul.f32 %v6964_v15, %v2476_v56  ;;  %v2478_v20 = vmul.f32 %v6950_v8, %v2476_v56 }
 0x26e   : > { %2465 = vrot.lane.b32.xlu1 %v2458_v45, %s5819_s9  ;;  %2463 = vrot.lane.b32.xlu0 %v2457_v9, %s5819_s9  ;;  %v2496_v45 = vstv %s5347_s17  ;;  %s5373_s17 = sld [smem:[#allocation2 + $0xc8]] }
 0x26f   : > { %v2498_v49 = vmul.f32 %v6950_v8, %v2496_v45 }
 0x270   : > { %v7118_v60 = vpop.permute.xlu1 %2020  ;;  %v7120_v27 = vpop.permute.xlu0 %2018 }
 0x271   : > { %12015 = vst [vmem:[#allocation205_spill] sm:$0xff] %v7118_v60  ;;  %12016 = vst [vmem:[#allocation206_spill] sm:$0xff] %v7120_v27  ;;  %v2497_v27 = vmul.f32 %v6953_v0, %v2496_v45 }
 0x272   : > { %2483 = vrot.lane.b32.xlu1 %v2477_v53, %s5819_s9  ;;  %2467 = vrot.lane.b32.xlu0 %v2459_v31, %s5819_s9  ;;  %v2516_v53 = vstv %s5348_s19  ;;  %s5374_s19 = sld [smem:[#allocation2 + $0xec]] }
 0x274   : > { %v7126_v43 = vpop.permute.xlu1 %2038  ;;  %v7128_v9 = vpop.permute.xlu0 %2036 }
 0x275   : > { %12017 = vst [vmem:[#allocation207_spill] sm:$0xff] %v7126_v43  ;;  %12018 = vst [vmem:[#allocation208_spill] sm:$0xff] %v7128_v9 }
 0x276   : > { %2487 = vrot.lane.b32.xlu1 %v2479_v29, %s5819_s9  ;;  %2485 = vrot.lane.b32.xlu0 %v2478_v20, %s5819_s9  ;;  %v2517_v29 = vmul.f32 %v6953_v0, %v2516_v53  ;;  %v2499_v20 = vmul.f32 %v6964_v15, %v2496_v45  ;;  %v7154_v0 = vld [vmem:[%s5938_s25 + $0x30] sm:$0xff] }
 0x278   : > { %v7134_v31 = vpop.permute.xlu1 %2056  ;;  %v7136_v56 = vpop.permute.xlu0 %2040 }
 0x279   : > { %12019 = vst [vmem:[#allocation209_spill] sm:$0xff] %v7134_v31  ;;  %12020 = vst [vmem:[#allocation210_spill] sm:$0xff] %v7136_v56  ;;  %v2519_v56 = vmul.f32 %v6964_v15, %v2516_v53  ;;  %v7151_v31 = vld [vmem:[%s5938_s25 + $0x38] sm:$0xff]  ;;  %v2624_v15 = vstv %s5361_s24  ;;  %s5387_s24 = sld [smem:[#allocation2 + $0x16]] }
 0x27a   : > { %2505 = vrot.lane.b32.xlu1 %v2498_v49, %s5819_s9  ;;  %2503 = vrot.lane.b32.xlu0 %v2497_v27, %s5819_s9  ;;  %v2518_v49 = vmul.f32 %v6950_v8, %v2516_v53  ;;  %v2604_v27 = vstv %s5360_s20  ;;  %s5375_s20 = sld [smem:[#allocation2 + $0x110]] }
 0x27c   : > { %v7142_v9 = vpop.permute.xlu1 %2060  ;;  %v7144_v43 = vpop.permute.xlu0 %2058 }
 0x27d   : > { %12021 = vst [vmem:[#allocation211_spill] sm:$0xff] %v7142_v9  ;;  %12022 = vst [vmem:[#allocation212_spill] sm:$0xff] %v7144_v43  ;;  %v7165_v43 = vld [vmem:[%s5938_s25 + $0x40] sm:$0x3] }
 0x27e   : > { %2523 = vrot.lane.b32.xlu1 %v2517_v29, %s5819_s9  ;;  %2507 = vrot.lane.b32.xlu0 %v2499_v20, %s5819_s9  ;;  %v2606_v29 = vmul.f32 %v7151_v31, %v2604_v27  ;;  %v2605_v20 = vmul.f32 %v7154_v0, %v2604_v27 }
 0x280   : > { %v7156_v45 = vpop.permute.xlu1 %2078  ;;  %v7158_v60 = vpop.permute.xlu0 %2076 }
 0x281   : > { %12023 = vst [vmem:[#allocation213_spill] sm:$0xff] %v7156_v45  ;;  %12024 = vst [vmem:[#allocation214_spill] sm:$0xff] %v7158_v60 }
 0x282   : > { %2527 = vrot.lane.b32.xlu1 %v2519_v56, %s5819_s9  ;;  %2525 = vrot.lane.b32.xlu0 %v2518_v49, %s5819_s9  ;;  %v2625_v56 = vmul.f32 %v7154_v0, %v2624_v15  ;;  %v2607_v49 = vmul.f32 %v7165_v43, %v2604_v27 }
 0x284   : > { %v7167_v8 = vpop.permute.xlu1 %2096  ;;  %v7169_v53 = vpop.permute.xlu0 %2080 }
 0x285   : > { %12025 = vst [vmem:[#allocation215_spill] sm:$0xff] %v7167_v8  ;;  %12026 = vst [vmem:[#allocation216_spill] sm:$0xff] %v7169_v53  ;;  %v2627_v8 = vmul.f32 %v7165_v43, %v2624_v15  ;;  %v2626_v53 = vmul.f32 %v7151_v31, %v2624_v15 }
 0x286   : > { %2613 = vrot.lane.b32.xlu1 %v2606_v29, %s5818_s27  ;;  %2611 = vrot.lane.b32.xlu0 %v2605_v20, %s5818_s27  ;;  %v2644_v29 = vstv %s5362_s26  ;;  %s5388_s26 = sld [smem:[#allocation2 + $0x3a]] }
 0x287   : > { %v2646_v27 = vmul.f32 %v7151_v31, %v2644_v29 }
 0x288   : > { %v7175_v60 = vpop.permute.xlu1 %2100  ;;  %v7177_v45 = vpop.permute.xlu0 %2098 }
 0x289   : > { %12027 = vst [vmem:[#allocation217_spill] sm:$0xff] %v7175_v60  ;;  %12028 = vst [vmem:[#allocation218_spill] sm:$0xff] %v7177_v45  ;;  %v2645_v45 = vmul.f32 %v7154_v0, %v2644_v29 }
 0x28a   : > { %2631 = vrot.lane.b32.xlu1 %v2625_v56, %s5818_s27  ;;  %2615 = vrot.lane.b32.xlu0 %v2607_v49, %s5818_s27  ;;  %v2664_v56 = vstv %s5363_s28  ;;  %s5389_s28 = sld [smem:[#allocation2 + $0x5e]] }
 0x28b   : > { %v2665_v15 = vmul.f32 %v7154_v0, %v2664_v56 }
 0x28c   : > { %v7183_v9 = vpop.permute.xlu1 %2118  ;;  %v7185_v20 = vpop.permute.xlu0 %2116 }
 0x28d   : > { %12029 = vst [vmem:[#allocation219_spill] sm:$0xff] %v7183_v9  ;;  %12030 = vst [vmem:[#allocation220_spill] sm:$0xff] %v7185_v20 }
 0x28e   : > { %2635 = vrot.lane.b32.xlu1 %v2627_v8, %s5818_s27  ;;  %2633 = vrot.lane.b32.xlu0 %v2626_v53, %s5818_s27  ;;  %v2647_v8 = vmul.f32 %v7165_v43, %v2644_v29 }
 0x290   : > { %v7191_v49 = vpop.permute.xlu1 %2136  ;;  %v7193_v60 = vpop.permute.xlu0 %2120 }
 0x291   : > { %12031 = vst [vmem:[#allocation221_spill] sm:$0xff] %v7191_v49  ;;  %12032 = vst [vmem:[#allocation222_spill] sm:$0xff] %v7193_v60  ;;  %v2667_v49 = vmul.f32 %v7165_v43, %v2664_v56  ;;  %v2666_v60 = vmul.f32 %v7151_v31, %v2664_v56 }
 0x292   : > { %2653 = vrot.lane.b32.xlu1 %v2646_v27, %s5818_s27  ;;  %2651 = vrot.lane.b32.xlu0 %v2645_v45, %s5818_s27  ;;  %v2684_v27 = vstv %s5364_s29  ;;  %s5390_s29 = sld [smem:[#allocation2 + $0x82]] }
 0x293   : > { %v2686_v29 = vmul.f32 %v7151_v31, %v2684_v27 }
 0x294   : > { %v7199_v53 = vpop.permute.xlu1 %2140  ;;  %v7201_v20 = vpop.permute.xlu0 %2138 }
 0x295   : > { %12033 = vst [vmem:[#allocation223_spill] sm:$0xff] %v7199_v53  ;;  %12034 = vst [vmem:[#allocation224_spill] sm:$0xff] %v7201_v20  ;;  %v2685_v20 = vmul.f32 %v7154_v0, %v2684_v27 }
 0x296   : > { %2671 = vrot.lane.b32.xlu1 %v2665_v15, %s5818_s27  ;;  %2655 = vrot.lane.b32.xlu0 %v2647_v8, %s5818_s27  ;;  %v2704_v15 = vstv %s5365_s30  ;;  %s5391_s30 = sld [smem:[#allocation2 + $0xa6]] }
 0x297   : > { %v2705_v56 = vmul.f32 %v7154_v0, %v2704_v15 }
 0x298   : > { %v7207_v9 = vpop.permute.xlu1 %2225  ;;  %v7209_v45 = vpop.permute.xlu0 %2223 }
 0x299   : > { %12035 = vst [vmem:[#allocation225_spill] sm:$0xff] %v7207_v9  ;;  %12036 = vst [vmem:[#allocation226_spill] sm:$0xff] %v7209_v45 }
 0x29a   : > { %2675 = vrot.lane.b32.xlu1 %v2667_v49, %s5818_s27  ;;  %2673 = vrot.lane.b32.xlu0 %v2666_v60, %s5818_s27  ;;  %v2687_v49 = vmul.f32 %v7165_v43, %v2684_v27 }
 0x29c   : > { %v7215_v8 = vpop.permute.xlu1 %2243  ;;  %v7217_v53 = vpop.permute.xlu0 %2227 }
 0x29d   : > { %12037 = vst [vmem:[#allocation227_spill] sm:$0xff] %v7215_v8  ;;  %12038 = vst [vmem:[#allocation228_spill] sm:$0xff] %v7217_v53  ;;  %v2707_v8 = vmul.f32 %v7165_v43, %v2704_v15  ;;  %v2706_v53 = vmul.f32 %v7151_v31, %v2704_v15 }
 0x29e   : > { %2693 = vrot.lane.b32.xlu1 %v2686_v29, %s5818_s27  ;;  %2691 = vrot.lane.b32.xlu0 %v2685_v20, %s5818_s27  ;;  %v2724_v29 = vstv %s5366_s4  ;;  %s5392_s4 = sld [smem:[#allocation2 + $0xca]] }
 0x29f   : > { %v2726_v27 = vmul.f32 %v7151_v31, %v2724_v29 }
 0x2a0   : > { %v7223_v60 = vpop.permute.xlu1 %2247  ;;  %v7225_v45 = vpop.permute.xlu0 %2245 }
 0x2a1   : > { %12039 = vst [vmem:[#allocation229_spill] sm:$0xff] %v7223_v60  ;;  %12040 = vst [vmem:[#allocation230_spill] sm:$0xff] %v7225_v45  ;;  %v2725_v45 = vmul.f32 %v7154_v0, %v2724_v29 }
 0x2a2   : > { %2711 = vrot.lane.b32.xlu1 %v2705_v56, %s5818_s27  ;;  %2695 = vrot.lane.b32.xlu0 %v2687_v49, %s5818_s27  ;;  %v2744_v56 = vstv %s5367_s5  ;;  %s5393_s5 = sld [smem:[#allocation2 + $0xee]] }
 0x2a3   : > { %v2745_v15 = vmul.f32 %v7154_v0, %v2744_v56 }
 0x2a4   : > { %v7231_v9 = vpop.permute.xlu1 %2265  ;;  %v7233_v20 = vpop.permute.xlu0 %2263 }
 0x2a5   : > { %12041 = vst [vmem:[#allocation231_spill] sm:$0xff] %v7231_v9  ;;  %12042 = vst [vmem:[#allocation232_spill] sm:$0xff] %v7233_v20 }
 0x2a6   : > { %2715 = vrot.lane.b32.xlu1 %v2707_v8, %s5818_s27  ;;  %2713 = vrot.lane.b32.xlu0 %v2706_v53, %s5818_s27  ;;  %v2727_v8 = vmul.f32 %v7165_v43, %v2724_v29 }
 0x2a8   : > { %v7239_v49 = vpop.permute.xlu1 %2283  ;;  %v7241_v60 = vpop.permute.xlu0 %2267 }
 0x2a9   : > { %12043 = vst [vmem:[#allocation233_spill] sm:$0xff] %v7239_v49  ;;  %12044 = vst [vmem:[#allocation234_spill] sm:$0xff] %v7241_v60  ;;  %v2747_v49 = vmul.f32 %v7165_v43, %v2744_v56  ;;  %v2746_v60 = vmul.f32 %v7151_v31, %v2744_v56 }
 0x2aa   : > { %2733 = vrot.lane.b32.xlu1 %v2726_v27, %s5818_s27  ;;  %2731 = vrot.lane.b32.xlu0 %v2725_v45, %s5818_s27  ;;  %v2764_v27 = vstv %s5368_s6  ;;  %s5394_s6 = sld [smem:[#allocation2 + $0x112]] }
 0x2ab   : > { %v2766_v29 = vmul.f32 %v7151_v31, %v2764_v27 }
 0x2ac   : > { %v7247_v53 = vpop.permute.xlu1 %2287  ;;  %v7249_v20 = vpop.permute.xlu0 %2285 }
 0x2ad   : > { %12045 = vst [vmem:[#allocation235_spill] sm:$0xff] %v7247_v53  ;;  %12046 = vst [vmem:[#allocation236_spill] sm:$0xff] %v7249_v20  ;;  %v2765_v20 = vmul.f32 %v7154_v0, %v2764_v27 }
 0x2ae   : > { %2751 = vrot.lane.b32.xlu1 %v2745_v15, %s5818_s27  ;;  %2735 = vrot.lane.b32.xlu0 %v2727_v8, %s5818_s27  ;;  %v2784_v15 = vstv %s5369_s7  ;;  %s5395_s7 = sld [smem:[#allocation2 + $0x17]] }
 0x2af   : > { %v2785_v56 = vmul.f32 %v7154_v0, %v2784_v15 }
 0x2b0   : > { %v7255_v9 = vpop.permute.xlu1 %2305  ;;  %v7257_v45 = vpop.permute.xlu0 %2303 }
 0x2b1   : > { %12047 = vst [vmem:[#allocation237_spill] sm:$0xff] %v7255_v9  ;;  %12048 = vst [vmem:[#allocation238_spill] sm:$0xff] %v7257_v45 }
 0x2b2   : > { %2755 = vrot.lane.b32.xlu1 %v2747_v49, %s5818_s27  ;;  %2753 = vrot.lane.b32.xlu0 %v2746_v60, %s5818_s27  ;;  %v2767_v49 = vmul.f32 %v7165_v43, %v2764_v27 }
 0x2b4   : > { %v7263_v8 = vpop.permute.xlu1 %2323  ;;  %v7265_v53 = vpop.permute.xlu0 %2307 }
 0x2b5   : > { %12049 = vst [vmem:[#allocation239_spill] sm:$0xff] %v7263_v8  ;;  %12050 = vst [vmem:[#allocation240_spill] sm:$0xff] %v7265_v53  ;;  %v2787_v8 = vmul.f32 %v7165_v43, %v2784_v15  ;;  %v2786_v53 = vmul.f32 %v7151_v31, %v2784_v15 }
 0x2b6   : > { %2773 = vrot.lane.b32.xlu1 %v2766_v29, %s5819_s9  ;;  %2771 = vrot.lane.b32.xlu0 %v2765_v20, %s5819_s9  ;;  %v2804_v29 = vstv %s5370_s8  ;;  %s5396_s8 = sld [smem:[#allocation2 + $0x3b]] }
 0x2b7   : > { %v2806_v27 = vmul.f32 %v7151_v31, %v2804_v29 }
 0x2b8   : > { %v7271_v60 = vpop.permute.xlu1 %2327  ;;  %v7273_v45 = vpop.permute.xlu0 %2325 }
 0x2b9   : > { %12051 = vst [vmem:[#allocation241_spill] sm:$0xff] %v7271_v60  ;;  %12052 = vst [vmem:[#allocation242_spill] sm:$0xff] %v7273_v45  ;;  %v2805_v45 = vmul.f32 %v7154_v0, %v2804_v29 }
 0x2ba   : > { %2791 = vrot.lane.b32.xlu1 %v2785_v56, %s5819_s9  ;;  %2775 = vrot.lane.b32.xlu0 %v2767_v49, %s5819_s9  ;;  %v2824_v56 = vstv %s5371_s10  ;;  %s5397_s10 = sld [smem:[#allocation2 + $0x5f]] }
 0x2bb   : > { %v2825_v15 = vmul.f32 %v7154_v0, %v2824_v56 }
 0x2bc   : > { %v7279_v9 = vpop.permute.xlu1 %2345  ;;  %v7281_v20 = vpop.permute.xlu0 %2343 }
 0x2bd   : > { %12053 = vst [vmem:[#allocation243_spill] sm:$0xff] %v7279_v9  ;;  %12054 = vst [vmem:[#allocation244_spill] sm:$0xff] %v7281_v20 }
 0x2be   : > { %2795 = vrot.lane.b32.xlu1 %v2787_v8, %s5819_s9  ;;  %2793 = vrot.lane.b32.xlu0 %v2786_v53, %s5819_s9  ;;  %v2807_v8 = vmul.f32 %v7165_v43, %v2804_v29 }
 0x2c0   : > { %v7287_v49 = vpop.permute.xlu1 %2363  ;;  %v7289_v60 = vpop.permute.xlu0 %2347 }
 0x2c1   : > { %12055 = vst [vmem:[#allocation245_spill] sm:$0xff] %v7287_v49  ;;  %12056 = vst [vmem:[#allocation246_spill] sm:$0xff] %v7289_v60  ;;  %v2827_v49 = vmul.f32 %v7165_v43, %v2824_v56  ;;  %v2826_v60 = vmul.f32 %v7151_v31, %v2824_v56 }
 0x2c2   : > { %2813 = vrot.lane.b32.xlu1 %v2806_v27, %s5819_s9  ;;  %2811 = vrot.lane.b32.xlu0 %v2805_v45, %s5819_s9  ;;  %v2844_v27 = vstv %s5372_s11  ;;  %s5398_s11 = sld [smem:[#allocation2 + $0x83]] }
 0x2c3   : > { %v2846_v29 = vmul.f32 %v7151_v31, %v2844_v27 }
 0x2c4   : > { %v7295_v53 = vpop.permute.xlu1 %2367  ;;  %v7297_v20 = vpop.permute.xlu0 %2365 }
 0x2c5   : > { %12057 = vst [vmem:[#allocation247_spill] sm:$0xff] %v7295_v53  ;;  %12058 = vst [vmem:[#allocation248_spill] sm:$0xff] %v7297_v20  ;;  %v2845_v20 = vmul.f32 %v7154_v0, %v2844_v27 }
 0x2c6   : > { %2831 = vrot.lane.b32.xlu1 %v2825_v15, %s5819_s9  ;;  %2815 = vrot.lane.b32.xlu0 %v2807_v8, %s5819_s9  ;;  %v2864_v15 = vstv %s5373_s17  ;;  %s5399_s17 = sld [smem:[#allocation2 + $0xa7]] }
 0x2c7   : > { %v2865_v56 = vmul.f32 %v7154_v0, %v2864_v15 }
 0x2c8   : > { %v7303_v9 = vpop.permute.xlu1 %2385  ;;  %v7305_v45 = vpop.permute.xlu0 %2383 }
 0x2c9   : > { %12059 = vst [vmem:[#allocation249_spill] sm:$0xff] %v7303_v9  ;;  %12060 = vst [vmem:[#allocation250_spill] sm:$0xff] %v7305_v45 }
 0x2ca   : > { %2835 = vrot.lane.b32.xlu1 %v2827_v49, %s5819_s9  ;;  %2833 = vrot.lane.b32.xlu0 %v2826_v60, %s5819_s9  ;;  %v2847_v49 = vmul.f32 %v7165_v43, %v2844_v27 }
 0x2cc   : > { %v7311_v8 = vpop.permute.xlu1 %2403  ;;  %v7313_v53 = vpop.permute.xlu0 %2387 }
 0x2cd   : > { %12061 = vst [vmem:[#allocation251_spill] sm:$0xff] %v7311_v8  ;;  %12062 = vst [vmem:[#allocation252_spill] sm:$0xff] %v7313_v53  ;;  %v2867_v8 = vmul.f32 %v7165_v43, %v2864_v15  ;;  %v2866_v53 = vmul.f32 %v7151_v31, %v2864_v15 }
 0x2ce   : > { %2853 = vrot.lane.b32.xlu1 %v2846_v29, %s5819_s9  ;;  %2851 = vrot.lane.b32.xlu0 %v2845_v20, %s5819_s9  ;;  %v2884_v29 = vstv %s5374_s19  ;;  %s5400_s19 = sld [smem:[#allocation2 + $0xcb]] }
 0x2cf   : > { %v2886_v27 = vmul.f32 %v7151_v31, %v2884_v29 }
 0x2d0   : > { %v7319_v60 = vpop.permute.xlu1 %2407  ;;  %v7321_v45 = vpop.permute.xlu0 %2405 }
 0x2d1   : > { %12063 = vst [vmem:[#allocation253_spill] sm:$0xff] %v7319_v60  ;;  %12064 = vst [vmem:[#allocation254_spill] sm:$0xff] %v7321_v45  ;;  %v2885_v45 = vmul.f32 %v7154_v0, %v2884_v29 }
 0x2d2   : > { %2871 = vrot.lane.b32.xlu1 %v2865_v56, %s5819_s9  ;;  %2855 = vrot.lane.b32.xlu0 %v2847_v49, %s5819_s9  ;;  %v2904_v56 = vstv %s5375_s20  ;;  %s5401_s20 = sld [smem:[#allocation2 + $0xef]] }
 0x2d4   : > { %v7327_v9 = vpop.permute.xlu1 %2425  ;;  %v7329_v20 = vpop.permute.xlu0 %2423 }
 0x2d5   : > { %12065 = vst [vmem:[#allocation255_spill] sm:$0xff] %v7327_v9  ;;  %12066 = vst [vmem:[#allocation256_spill] sm:$0xff] %v7329_v20 }
 0x2d6   : > { %2875 = vrot.lane.b32.xlu1 %v2867_v8, %s5819_s9  ;;  %2873 = vrot.lane.b32.xlu0 %v2866_v53, %s5819_s9  ;;  %v2905_v8 = vmul.f32 %v7154_v0, %v2904_v56  ;;  %v2887_v53 = vmul.f32 %v7165_v43, %v2884_v29  ;;  %v7355_v0 = vld [vmem:[%s5938_s25 + $0x31] sm:$0xff] }
 0x2d8   : > { %v7335_v49 = vpop.permute.xlu1 %2443  ;;  %v7337_v15 = vpop.permute.xlu0 %2427 }
 0x2d9   : > { %12067 = vst [vmem:[#allocation257_spill] sm:$0xff] %v7335_v49  ;;  %12068 = vst [vmem:[#allocation258_spill] sm:$0xff] %v7337_v15  ;;  %v2907_v15 = vmul.f32 %v7165_v43, %v2904_v56  ;;  %v7352_v49 = vld [vmem:[%s5938_s25 + $0x39] sm:$0xff]  ;;  %v3011_v43 = vstv %s5388_s26  ;;  %s5414_s26 = sld [smem:[#allocation2 + $0x19]] }
 0x2da   : > { %2893 = vrot.lane.b32.xlu1 %v2886_v27, %s5819_s9  ;;  %2891 = vrot.lane.b32.xlu0 %v2885_v45, %s5819_s9  ;;  %v2906_v27 = vmul.f32 %v7151_v31, %v2904_v56  ;;  %v2991_v45 = vstv %s5387_s24  ;;  %s5402_s24 = sld [smem:[#allocation2 + $0x113]] }
 0x2dc   : > { %v7343_v20 = vpop.permute.xlu1 %2447  ;;  %v7345_v9 = vpop.permute.xlu0 %2445 }
 0x2dd   : > { %12069 = vst [vmem:[#allocation259_spill] sm:$0xff] %v7343_v20  ;;  %12070 = vst [vmem:[#allocation260_spill] sm:$0xff] %v7345_v9  ;;  %v7366_v9 = vld [vmem:[%s5938_s25 + $0x41] sm:$0x3] }
 0x2de   : > { %2911 = vrot.lane.b32.xlu1 %v2905_v8, %s5819_s9  ;;  %2895 = vrot.lane.b32.xlu0 %v2887_v53, %s5819_s9  ;;  %v2993_v8 = vmul.f32 %v7352_v49, %v2991_v45  ;;  %v2992_v53 = vmul.f32 %v7355_v0, %v2991_v45 }
 0x2e0   : > { %v7357_v29 = vpop.permute.xlu1 %2465  ;;  %v7359_v60 = vpop.permute.xlu0 %2463 }
 0x2e1   : > { %12071 = vst [vmem:[#allocation261_spill] sm:$0xff] %v7357_v29  ;;  %12072 = vst [vmem:[#allocation262_spill] sm:$0xff] %v7359_v60 }
 0x2e2   : > { %2915 = vrot.lane.b32.xlu1 %v2907_v15, %s5819_s9  ;;  %2913 = vrot.lane.b32.xlu0 %v2906_v27, %s5819_s9  ;;  %v3012_v15 = vmul.f32 %v7355_v0, %v3011_v43  ;;  %v2994_v27 = vmul.f32 %v7366_v9, %v2991_v45 }
 0x2e4   : > { %v7368_v31 = vpop.permute.xlu1 %2483  ;;  %v7370_v56 = vpop.permute.xlu0 %2467 }
 0x2e5   : > { %12073 = vst [vmem:[#allocation263_spill] sm:$0xff] %v7368_v31  ;;  %12074 = vst [vmem:[#allocation264_spill] sm:$0xff] %v7370_v56  ;;  %v3014_v31 = vmul.f32 %v7366_v9, %v3011_v43  ;;  %v3013_v56 = vmul.f32 %v7352_v49, %v3011_v43 }
 0x2e6   : > { %3000 = vrot.lane.b32.xlu1 %v2993_v8, %s5818_s27  ;;  %2998 = vrot.lane.b32.xlu0 %v2992_v53, %s5818_s27  ;;  %v3031_v8 = vstv %s5389_s28  ;;  %s5415_s28 = sld [smem:[#allocation2 + $0x3d]] }
 0x2e7   : > { %v3033_v45 = vmul.f32 %v7352_v49, %v3031_v8 }
 0x2e8   : > { %v7376_v60 = vpop.permute.xlu1 %2487  ;;  %v7378_v29 = vpop.permute.xlu0 %2485 }
 0x2e9   : > { %12075 = vst [vmem:[#allocation265_spill] sm:$0xff] %v7376_v60  ;;  %12076 = vst [vmem:[#allocation266_spill] sm:$0xff] %v7378_v29  ;;  %v3032_v29 = vmul.f32 %v7355_v0, %v3031_v8 }
 0x2ea   : > { %3018 = vrot.lane.b32.xlu1 %v3012_v15, %s5818_s27  ;;  %3002 = vrot.lane.b32.xlu0 %v2994_v27, %s5818_s27  ;;  %v3051_v15 = vstv %s5390_s29  ;;  %s5416_s29 = sld [smem:[#allocation2 + $0x61]] }
 0x2eb   : > { %v3052_v43 = vmul.f32 %v7355_v0, %v3051_v15 }
 0x2ec   : > { %v7384_v20 = vpop.permute.xlu1 %2505  ;;  %v7386_v53 = vpop.permute.xlu0 %2503 }
 0x2ed   : > { %12077 = vst [vmem:[#allocation267_spill] sm:$0xff] %v7384_v20  ;;  %12078 = vst [vmem:[#allocation268_spill] sm:$0xff] %v7386_v53 }
 0x2ee   : > { %3022 = vrot.lane.b32.xlu1 %v3014_v31, %s5818_s27  ;;  %3020 = vrot.lane.b32.xlu0 %v3013_v56, %s5818_s27  ;;  %v3034_v31 = vmul.f32 %v7366_v9, %v3031_v8 }
 0x2f0   : > { %v7392_v27 = vpop.permute.xlu1 %2523  ;;  %v7394_v60 = vpop.permute.xlu0 %2507 }
 0x2f1   : > { %12079 = vst [vmem:[#allocation269_spill] sm:$0xff] %v7392_v27  ;;  %12080 = vst [vmem:[#allocation270_spill] sm:$0xff] %v7394_v60  ;;  %v3054_v27 = vmul.f32 %v7366_v9, %v3051_v15  ;;  %v3053_v60 = vmul.f32 %v7352_v49, %v3051_v15 }
 0x2f2   : > { %3040 = vrot.lane.b32.xlu1 %v3033_v45, %s5818_s27  ;;  %3038 = vrot.lane.b32.xlu0 %v3032_v29, %s5818_s27  ;;  %v3071_v45 = vstv %s5391_s30  ;;  %s5417_s30 = sld [smem:[#allocation2 + $0x85]] }
 0x2f3   : > { %v3073_v8 = vmul.f32 %v7352_v49, %v3071_v45 }
 0x2f4   : > { %v7400_v56 = vpop.permute.xlu1 %2527  ;;  %v7402_v53 = vpop.permute.xlu0 %2525 }
 0x2f5   : > { %12081 = vst [vmem:[#allocation271_spill] sm:$0xff] %v7400_v56  ;;  %12082 = vst [vmem:[#allocation272_spill] sm:$0xff] %v7402_v53  ;;  %v3072_v53 = vmul.f32 %v7355_v0, %v3071_v45 }
 0x2f6   : > { %3058 = vrot.lane.b32.xlu1 %v3052_v43, %s5818_s27  ;;  %3042 = vrot.lane.b32.xlu0 %v3034_v31, %s5818_s27  ;;  %v3091_v43 = vstv %s5392_s4  ;;  %s5418_s4 = sld [smem:[#allocation2 + $0xa9]] }
 0x2f7   : > { %v3092_v15 = vmul.f32 %v7355_v0, %v3091_v43 }
 0x2f8   : > { %v7408_v20 = vpop.permute.xlu1 %2613  ;;  %v7410_v29 = vpop.permute.xlu0 %2611 }
 0x2f9   : > { %12083 = vst [vmem:[#allocation273_spill] sm:$0xff] %v7408_v20  ;;  %12084 = vst [vmem:[#allocation274_spill] sm:$0xff] %v7410_v29 }
 0x2fa   : > { %3062 = vrot.lane.b32.xlu1 %v3054_v27, %s5818_s27  ;;  %3060 = vrot.lane.b32.xlu0 %v3053_v60, %s5818_s27  ;;  %v3074_v27 = vmul.f32 %v7366_v9, %v3071_v45 }
 0x2fc   : > { %v7416_v31 = vpop.permute.xlu1 %2631  ;;  %v7418_v56 = vpop.permute.xlu0 %2615 }
 0x2fd   : > { %12085 = vst [vmem:[#allocation275_spill] sm:$0xff] %v7416_v31  ;;  %12086 = vst [vmem:[#allocation276_spill] sm:$0xff] %v7418_v56  ;;  %v3094_v31 = vmul.f32 %v7366_v9, %v3091_v43  ;;  %v3093_v56 = vmul.f32 %v7352_v49, %v3091_v43 }
 0x2fe   : > { %3080 = vrot.lane.b32.xlu1 %v3073_v8, %s5818_s27  ;;  %3078 = vrot.lane.b32.xlu0 %v3072_v53, %s5818_s27  ;;  %v3111_v8 = vstv %s5393_s5  ;;  %s5419_s5 = sld [smem:[#allocation2 + $0xcd]] }
 0x2ff   : > { %v3113_v45 = vmul.f32 %v7352_v49, %v3111_v8 }
 0x300   : > { %v7424_v60 = vpop.permute.xlu1 %2635  ;;  %v7426_v29 = vpop.permute.xlu0 %2633 }
 0x301   : > { %12087 = vst [vmem:[#allocation277_spill] sm:$0xff] %v7424_v60  ;;  %12088 = vst [vmem:[#allocation278_spill] sm:$0xff] %v7426_v29  ;;  %v3112_v29 = vmul.f32 %v7355_v0, %v3111_v8 }
 0x302   : > { %3098 = vrot.lane.b32.xlu1 %v3092_v15, %s5818_s27  ;;  %3082 = vrot.lane.b32.xlu0 %v3074_v27, %s5818_s27  ;;  %v3131_v15 = vstv %s5394_s6  ;;  %s5420_s6 = sld [smem:[#allocation2 + $0xf1]] }
 0x303   : > { %v3132_v43 = vmul.f32 %v7355_v0, %v3131_v15 }
 0x304   : > { %v7432_v20 = vpop.permute.xlu1 %2653  ;;  %v7434_v53 = vpop.permute.xlu0 %2651 }
 0x305   : > { %12089 = vst [vmem:[#allocation279_spill] sm:$0xff] %v7432_v20  ;;  %12090 = vst [vmem:[#allocation280_spill] sm:$0xff] %v7434_v53 }
 0x306   : > { %3102 = vrot.lane.b32.xlu1 %v3094_v31, %s5818_s27  ;;  %3100 = vrot.lane.b32.xlu0 %v3093_v56, %s5818_s27  ;;  %v3114_v31 = vmul.f32 %v7366_v9, %v3111_v8 }
 0x308   : > { %v7440_v27 = vpop.permute.xlu1 %2671  ;;  %v7442_v60 = vpop.permute.xlu0 %2655 }
 0x309   : > { %12091 = vst [vmem:[#allocation281_spill] sm:$0xff] %v7440_v27  ;;  %12092 = vst [vmem:[#allocation282_spill] sm:$0xff] %v7442_v60  ;;  %v3134_v27 = vmul.f32 %v7366_v9, %v3131_v15  ;;  %v3133_v60 = vmul.f32 %v7352_v49, %v3131_v15 }
 0x30a   : > { %3120 = vrot.lane.b32.xlu1 %v3113_v45, %s5818_s27  ;;  %3118 = vrot.lane.b32.xlu0 %v3112_v29, %s5818_s27  ;;  %v3151_v45 = vstv %s5395_s7  ;;  %s5421_s7 = sld [smem:[#allocation2 + $0x115]] }
 0x30b   : > { %v3153_v8 = vmul.f32 %v7352_v49, %v3151_v45 }
 0x30c   : > { %v7448_v56 = vpop.permute.xlu1 %2675  ;;  %v7450_v53 = vpop.permute.xlu0 %2673 }
 0x30d   : > { %12093 = vst [vmem:[#allocation283_spill] sm:$0xff] %v7448_v56  ;;  %12094 = vst [vmem:[#allocation284_spill] sm:$0xff] %v7450_v53  ;;  %v3152_v53 = vmul.f32 %v7355_v0, %v3151_v45 }
 0x30e   : > { %3138 = vrot.lane.b32.xlu1 %v3132_v43, %s5818_s27  ;;  %3122 = vrot.lane.b32.xlu0 %v3114_v31, %s5818_s27  ;;  %v3171_v43 = vstv %s5396_s8  ;;  %s5422_s8 = sld [smem:[#allocation2 + $0x1a]] }
 0x30f   : > { %v3172_v15 = vmul.f32 %v7355_v0, %v3171_v43 }
 0x310   : > { %v7456_v20 = vpop.permute.xlu1 %2693  ;;  %v7458_v29 = vpop.permute.xlu0 %2691 }
 0x311   : > { %12095 = vst [vmem:[#allocation285_spill] sm:$0xff] %v7456_v20  ;;  %12096 = vst [vmem:[#allocation286_spill] sm:$0xff] %v7458_v29 }
 0x312   : > { %3142 = vrot.lane.b32.xlu1 %v3134_v27, %s5818_s27  ;;  %3140 = vrot.lane.b32.xlu0 %v3133_v60, %s5818_s27  ;;  %v3154_v27 = vmul.f32 %v7366_v9, %v3151_v45 }
 0x314   : > { %v7464_v31 = vpop.permute.xlu1 %2711  ;;  %v7466_v56 = vpop.permute.xlu0 %2695 }
 0x315   : > { %12097 = vst [vmem:[#allocation287_spill] sm:$0xff] %v7464_v31  ;;  %12098 = vst [vmem:[#allocation288_spill] sm:$0xff] %v7466_v56  ;;  %v3174_v31 = vmul.f32 %v7366_v9, %v3171_v43  ;;  %v3173_v56 = vmul.f32 %v7352_v49, %v3171_v43 }
 0x316   : > { %3160 = vrot.lane.b32.xlu1 %v3153_v8, %s5819_s9  ;;  %3158 = vrot.lane.b32.xlu0 %v3152_v53, %s5819_s9  ;;  %v3191_v8 = vstv %s5397_s10  ;;  %s5423_s10 = sld [smem:[#allocation2 + $0x3e]] }
 0x317   : > { %v3193_v45 = vmul.f32 %v7352_v49, %v3191_v8 }
 0x318   : > { %v7472_v60 = vpop.permute.xlu1 %2715  ;;  %v7474_v29 = vpop.permute.xlu0 %2713 }
 0x319   : > { %12099 = vst [vmem:[#allocation289_spill] sm:$0xff] %v7472_v60  ;;  %12100 = vst [vmem:[#allocation290_spill] sm:$0xff] %v7474_v29  ;;  %v3192_v29 = vmul.f32 %v7355_v0, %v3191_v8 }
 0x31a   : > { %3178 = vrot.lane.b32.xlu1 %v3172_v15, %s5819_s9  ;;  %3162 = vrot.lane.b32.xlu0 %v3154_v27, %s5819_s9  ;;  %v3211_v15 = vstv %s5398_s11  ;;  %s5424_s11 = sld [smem:[#allocation2 + $0x62]] }
 0x31b   : > { %v3212_v43 = vmul.f32 %v7355_v0, %v3211_v15 }
 0x31c   : > { %v7480_v20 = vpop.permute.xlu1 %2733  ;;  %v7482_v53 = vpop.permute.xlu0 %2731 }
 0x31d   : > { %12101 = vst [vmem:[#allocation291_spill] sm:$0xff] %v7480_v20  ;;  %12102 = vst [vmem:[#allocation292_spill] sm:$0xff] %v7482_v53 }
 0x31e   : > { %3182 = vrot.lane.b32.xlu1 %v3174_v31, %s5819_s9  ;;  %3180 = vrot.lane.b32.xlu0 %v3173_v56, %s5819_s9  ;;  %v3194_v31 = vmul.f32 %v7366_v9, %v3191_v8 }
 0x320   : > { %v7488_v27 = vpop.permute.xlu1 %2751  ;;  %v7490_v60 = vpop.permute.xlu0 %2735 }
 0x321   : > { %12103 = vst [vmem:[#allocation293_spill] sm:$0xff] %v7488_v27  ;;  %12104 = vst [vmem:[#allocation294_spill] sm:$0xff] %v7490_v60  ;;  %v3214_v27 = vmul.f32 %v7366_v9, %v3211_v15  ;;  %v3213_v60 = vmul.f32 %v7352_v49, %v3211_v15 }
 0x322   : > { %3200 = vrot.lane.b32.xlu1 %v3193_v45, %s5819_s9  ;;  %3198 = vrot.lane.b32.xlu0 %v3192_v29, %s5819_s9  ;;  %v3231_v45 = vstv %s5399_s17  ;;  %s7679_s17 = sld [smem:[#allocation2 + $0x86]] }
 0x323   : > { %v3233_v8 = vmul.f32 %v7352_v49, %v3231_v45 }
 0x324   : > { %v7496_v56 = vpop.permute.xlu1 %2755  ;;  %v7498_v53 = vpop.permute.xlu0 %2753 }
 0x325   : > { %12105 = vst [vmem:[#allocation295_spill] sm:$0xff] %v7496_v56  ;;  %12106 = vst [vmem:[#allocation296_spill] sm:$0xff] %v7498_v53  ;;  %v3232_v53 = vmul.f32 %v7355_v0, %v3231_v45 }
 0x326   : > { %3218 = vrot.lane.b32.xlu1 %v3212_v43, %s5819_s9  ;;  %3202 = vrot.lane.b32.xlu0 %v3194_v31, %s5819_s9  ;;  %v3251_v43 = vstv %s5400_s19  ;;  %s7726_s19 = sld [smem:[#allocation2 + $0x6]] }
 0x327   : > { %v3252_v15 = vmul.f32 %v7355_v0, %v3251_v43 }
 0x328   : > { %v7504_v20 = vpop.permute.xlu1 %2773  ;;  %v7506_v29 = vpop.permute.xlu0 %2771 }
 0x329   : > { %12107 = vst [vmem:[#allocation297_spill] sm:$0xff] %v7504_v20  ;;  %12108 = vst [vmem:[#allocation298_spill] sm:$0xff] %v7506_v29 }
 0x32a   : > { %3222 = vrot.lane.b32.xlu1 %v3214_v27, %s5819_s9  ;;  %3220 = vrot.lane.b32.xlu0 %v3213_v60, %s5819_s9  ;;  %v3234_v27 = vmul.f32 %v7366_v9, %v3231_v45 }
 0x32c   : > { %v7512_v31 = vpop.permute.xlu1 %2791  ;;  %v7514_v56 = vpop.permute.xlu0 %2775 }
 0x32d   : > { %12109 = vst [vmem:[#allocation299_spill] sm:$0xff] %v7512_v31  ;;  %12110 = vst [vmem:[#allocation300_spill] sm:$0xff] %v7514_v56  ;;  %v3254_v31 = vmul.f32 %v7366_v9, %v3251_v43  ;;  %v3253_v56 = vmul.f32 %v7352_v49, %v3251_v43 }
 0x32e   : > { %3240 = vrot.lane.b32.xlu1 %v3233_v8, %s5819_s9  ;;  %3238 = vrot.lane.b32.xlu0 %v3232_v53, %s5819_s9  ;;  %v3271_v8 = vstv %s5401_s20  ;;  %s7729_s20 = sld [smem:[#allocation2 + $0xaa]] }
 0x32f   : > { %v3273_v45 = vmul.f32 %v7352_v49, %v3271_v8 }
 0x330   : > { %v7520_v60 = vpop.permute.xlu1 %2795  ;;  %v7522_v29 = vpop.permute.xlu0 %2793 }
 0x331   : > { %12111 = vst [vmem:[#allocation301_spill] sm:$0xff] %v7520_v60  ;;  %12112 = vst [vmem:[#allocation302_spill] sm:$0xff] %v7522_v29  ;;  %v3272_v29 = vmul.f32 %v7355_v0, %v3271_v8 }
 0x332   : > { %3258 = vrot.lane.b32.xlu1 %v3252_v15, %s5819_s9  ;;  %3242 = vrot.lane.b32.xlu0 %v3234_v27, %s5819_s9  ;;  %v3291_v15 = vstv %s5402_s24  ;;  %s7759_s24 = sld [smem:[#allocation2 + $0x2a]] }
 0x334   : > { %v7528_v20 = vpop.permute.xlu1 %2813  ;;  %v7530_v53 = vpop.permute.xlu0 %2811 }
 0x335   : > { %12113 = vst [vmem:[#allocation303_spill] sm:$0xff] %v7528_v20  ;;  %12114 = vst [vmem:[#allocation304_spill] sm:$0xff] %v7530_v53 }
 0x336   : > { %3262 = vrot.lane.b32.xlu1 %v3254_v31, %s5819_s9  ;;  %3260 = vrot.lane.b32.xlu0 %v3253_v56, %s5819_s9  ;;  %v3292_v31 = vmul.f32 %v7355_v0, %v3291_v15  ;;  %v3274_v56 = vmul.f32 %v7366_v9, %v3271_v8  ;;  %v7556_v0 = vld [vmem:[%s5938_s25 + $0x32] sm:$0xff] }
 0x338   : > { %v7536_v27 = vpop.permute.xlu1 %2831  ;;  %v7538_v43 = vpop.permute.xlu0 %2815 }
 0x339   : > { %12115 = vst [vmem:[#allocation305_spill] sm:$0xff] %v7536_v27  ;;  %12116 = vst [vmem:[#allocation306_spill] sm:$0xff] %v7538_v43  ;;  %v3294_v43 = vmul.f32 %v7366_v9, %v3291_v15  ;;  %v7553_v27 = vld [vmem:[%s5938_s25 + $0x3a] sm:$0xff]  ;;  %v3398_v9 = vstv %s5415_s28  ;;  %s7784_s28 = sld [smem:[#allocation2 + $0xce]] }
 0x33a   : > { %3280 = vrot.lane.b32.xlu1 %v3273_v45, %s5819_s9  ;;  %3278 = vrot.lane.b32.xlu0 %v3272_v29, %s5819_s9  ;;  %v3293_v45 = vmul.f32 %v7352_v49, %v3291_v15  ;;  %v3378_v29 = vstv %s5414_s26  ;;  %s7764_s26 = sld [smem:[#allocation2 + $0x4e]] }
 0x33c   : > { %v7544_v53 = vpop.permute.xlu1 %2835  ;;  %v7546_v20 = vpop.permute.xlu0 %2833 }
 0x33d   : > { %12117 = vst [vmem:[#allocation307_spill] sm:$0xff] %v7544_v53  ;;  %12118 = vst [vmem:[#allocation308_spill] sm:$0xff] %v7546_v20  ;;  %v7567_v20 = vld [vmem:[%s5938_s25 + $0x42] sm:$0x3] }
 0x33e   : > { %3298 = vrot.lane.b32.xlu1 %v3292_v31, %s5819_s9  ;;  %3282 = vrot.lane.b32.xlu0 %v3274_v56, %s5819_s9  ;;  %v3380_v31 = vmul.f32 %v7553_v27, %v3378_v29  ;;  %v3379_v56 = vmul.f32 %v7556_v0, %v3378_v29 }
 0x340   : > { %v7558_v8 = vpop.permute.xlu1 %2853  ;;  %v7560_v60 = vpop.permute.xlu0 %2851 }
 0x341   : > { %12119 = vst [vmem:[#allocation309_spill] sm:$0xff] %v7558_v8  ;;  %12120 = vst [vmem:[#allocation310_spill] sm:$0xff] %v7560_v60 }
 0x342   : > { %3302 = vrot.lane.b32.xlu1 %v3294_v43, %s5819_s9  ;;  %3300 = vrot.lane.b32.xlu0 %v3293_v45, %s5819_s9  ;;  %v3399_v43 = vmul.f32 %v7556_v0, %v3398_v9  ;;  %v3381_v45 = vmul.f32 %v7567_v20, %v3378_v29 }
 0x344   : > { %v7569_v49 = vpop.permute.xlu1 %2871  ;;  %v7571_v15 = vpop.permute.xlu0 %2855 }
 0x345   : > { %12121 = vst [vmem:[#allocation311_spill] sm:$0xff] %v7569_v49  ;;  %12122 = vst [vmem:[#allocation312_spill] sm:$0xff] %v7571_v15  ;;  %v3401_v49 = vmul.f32 %v7567_v20, %v3398_v9  ;;  %v3400_v15 = vmul.f32 %v7553_v27, %v3398_v9 }
 0x346   : > { %3387 = vrot.lane.b32.xlu1 %v3380_v31, %s5818_s27  ;;  %3385 = vrot.lane.b32.xlu0 %v3379_v56, %s5818_s27  ;;  %v3418_v31 = vstv %s5416_s29  ;;  %s7798_s29 = sld [smem:[#allocation2 + $0x72]] }
 0x347   : > { %v3420_v29 = vmul.f32 %v7553_v27, %v3418_v31 }
 0x348   : > { %v7577_v60 = vpop.permute.xlu1 %2875  ;;  %v7579_v8 = vpop.permute.xlu0 %2873 }
 0x349   : > { %12123 = vst [vmem:[#allocation313_spill] sm:$0xff] %v7577_v60  ;;  %12124 = vst [vmem:[#allocation314_spill] sm:$0xff] %v7579_v8  ;;  %v3419_v8 = vmul.f32 %v7556_v0, %v3418_v31 }
 0x34a   : > { %3405 = vrot.lane.b32.xlu1 %v3399_v43, %s5818_s27  ;;  %3389 = vrot.lane.b32.xlu0 %v3381_v45, %s5818_s27  ;;  %v3438_v43 = vstv %s5417_s30  ;;  %s7819_s30 = sld [smem:[#allocation2 + $0x96]] }
 0x34b   : > { %v3439_v9 = vmul.f32 %v7556_v0, %v3438_v43 }
 0x34c   : > { %v7585_v53 = vpop.permute.xlu1 %2893  ;;  %v7587_v56 = vpop.permute.xlu0 %2891 }
 0x34d   : > { %12125 = vst [vmem:[#allocation315_spill] sm:$0xff] %v7585_v53  ;;  %12126 = vst [vmem:[#allocation316_spill] sm:$0xff] %v7587_v56 }
 0x34e   : > { %3409 = vrot.lane.b32.xlu1 %v3401_v49, %s5818_s27  ;;  %3407 = vrot.lane.b32.xlu0 %v3400_v15, %s5818_s27  ;;  %v3421_v49 = vmul.f32 %v7567_v20, %v3418_v31 }
 0x350   : > { %v7593_v45 = vpop.permute.xlu1 %2911  ;;  %v7595_v60 = vpop.permute.xlu0 %2895 }
 0x351   : > { %12127 = vst [vmem:[#allocation317_spill] sm:$0xff] %v7593_v45  ;;  %12128 = vst [vmem:[#allocation318_spill] sm:$0xff] %v7595_v60  ;;  %v3441_v45 = vmul.f32 %v7567_v20, %v3438_v43  ;;  %v3440_v60 = vmul.f32 %v7553_v27, %v3438_v43 }
 0x352   : > { %3427 = vrot.lane.b32.xlu1 %v3420_v29, %s5818_s27  ;;  %3425 = vrot.lane.b32.xlu0 %v3419_v8, %s5818_s27  ;;  %v3458_v29 = vstv %s5418_s4  ;;  %s7846_s4 = sld [smem:[#allocation2 + $0xba]] }
 0x353   : > { %v3460_v31 = vmul.f32 %v7553_v27, %v3458_v29 }
 0x354   : > { %v7601_v15 = vpop.permute.xlu1 %2915  ;;  %v7603_v56 = vpop.permute.xlu0 %2913 }
 0x355   : > { %12129 = vst [vmem:[#allocation319_spill] sm:$0xff] %v7601_v15  ;;  %12130 = vst [vmem:[#allocation320_spill] sm:$0xff] %v7603_v56  ;;  %v3459_v56 = vmul.f32 %v7556_v0, %v3458_v29 }
 0x356   : > { %3445 = vrot.lane.b32.xlu1 %v3439_v9, %s5818_s27  ;;  %3429 = vrot.lane.b32.xlu0 %v3421_v49, %s5818_s27  ;;  %v3478_v9 = vstv %s5419_s5  ;;  %s7868_s5 = sld [smem:[#allocation2 + $0xde]] }
 0x357   : > { %v3479_v43 = vmul.f32 %v7556_v0, %v3478_v9 }
 0x358   : > { %v7609_v53 = vpop.permute.xlu1 %3000  ;;  %v7611_v8 = vpop.permute.xlu0 %2998 }
 0x359   : > { %12131 = vst [vmem:[#allocation321_spill] sm:$0xff] %v7609_v53  ;;  %12132 = vst [vmem:[#allocation322_spill] sm:$0xff] %v7611_v8 }
 0x35a   : > { %3449 = vrot.lane.b32.xlu1 %v3441_v45, %s5818_s27  ;;  %3447 = vrot.lane.b32.xlu0 %v3440_v60, %s5818_s27  ;;  %v3461_v45 = vmul.f32 %v7567_v20, %v3458_v29 }
 0x35c   : > { %v7617_v49 = vpop.permute.xlu1 %3018  ;;  %v7619_v15 = vpop.permute.xlu0 %3002 }
 0x35d   : > { %12133 = vst [vmem:[#allocation323_spill] sm:$0xff] %v7617_v49  ;;  %12134 = vst [vmem:[#allocation324_spill] sm:$0xff] %v7619_v15  ;;  %v3481_v49 = vmul.f32 %v7567_v20, %v3478_v9  ;;  %v3480_v15 = vmul.f32 %v7553_v27, %v3478_v9 }
 0x35e   : > { %3467 = vrot.lane.b32.xlu1 %v3460_v31, %s5818_s27  ;;  %3465 = vrot.lane.b32.xlu0 %v3459_v56, %s5818_s27  ;;  %v3498_v31 = vstv %s5420_s6  ;;  %s7889_s6 = sld [smem:[#allocation2 + $0xf2]] }
 0x35f   : > { %v3500_v29 = vmul.f32 %v7553_v27, %v3498_v31 }
 0x360   : > { %v7625_v60 = vpop.permute.xlu1 %3022  ;;  %v7627_v8 = vpop.permute.xlu0 %3020 }
 0x361   : > { %12135 = vst [vmem:[#allocation325_spill] sm:$0xff] %v7625_v60  ;;  %12136 = vst [vmem:[#allocation326_spill] sm:$0xff] %v7627_v8  ;;  %v3499_v8 = vmul.f32 %v7556_v0, %v3498_v31 }
 0x362   : > { %3485 = vrot.lane.b32.xlu1 %v3479_v43, %s5818_s27  ;;  %3469 = vrot.lane.b32.xlu0 %v3461_v45, %s5818_s27  ;;  %v3518_v43 = vstv %s5421_s7  ;;  %s7905_s7 = sld [smem:[#allocation2 + $0x102]] }
 0x363   : > { %v3519_v9 = vmul.f32 %v7556_v0, %v3518_v43 }
 0x364   : > { %v7633_v53 = vpop.permute.xlu1 %3040  ;;  %v7635_v56 = vpop.permute.xlu0 %3038 }
 0x365   : > { %12137 = vst [vmem:[#allocation327_spill] sm:$0xff] %v7633_v53  ;;  %12138 = vst [vmem:[#allocation328_spill] sm:$0xff] %v7635_v56 }
 0x366   : > { %3489 = vrot.lane.b32.xlu1 %v3481_v49, %s5818_s27  ;;  %3487 = vrot.lane.b32.xlu0 %v3480_v15, %s5818_s27  ;;  %v3501_v49 = vmul.f32 %v7567_v20, %v3498_v31 }
 0x368   : > { %v7641_v45 = vpop.permute.xlu1 %3058  ;;  %v7643_v60 = vpop.permute.xlu0 %3042 }
 0x369   : > { %12139 = vst [vmem:[#allocation329_spill] sm:$0xff] %v7641_v45  ;;  %12140 = vst [vmem:[#allocation330_spill] sm:$0xff] %v7643_v60  ;;  %v3521_v60 = vmul.f32 %v7567_v20, %v3518_v43 }
 0x36a   : > { %3507 = vrot.lane.b32.xlu1 %v3500_v29, %s5818_s27  ;;  %3505 = vrot.lane.b32.xlu0 %v3499_v8, %s5818_s27  ;;  %v3520_v29 = vmul.f32 %v7553_v27, %v3518_v43  ;;  %v3538_v8 = vstv %s5422_s8  ;;  %v5680_v43 = vld [vmem:[%s5938_s25 + $0x10] sm:$0x3]  ;;  %s7942_s8 = sld [smem:[#allocation2 + $0x116]] }
 0x36b   : > { %v3540_v31 = vmul.f32 %v7553_v27, %v3538_v8  ;;  %v219_v51 = vmul.f32 %v5680_v43, %v6148_v5  ;;  %v267_v11 = vmul.f32 %v5680_v43, %v6309_v10  ;;  %v275_v2 = vmul.f32 %v5680_v43, %v6344_v39 }
 0x36c   : > { %v7649_v15 = vpop.permute.xlu1 %3062  ;;  %v7651_v56 = vpop.permute.xlu0 %3060 }
 0x36d   : > { %12141 = vst [vmem:[#allocation331_spill] sm:$0xff] %v7649_v15  ;;  %12142 = vst [vmem:[#allocation332_spill] sm:$0xff] %v7651_v56  ;;  %v3558_v56 = vstv %s5423_s10  ;;  %s8017_s10 = sld [smem:[#allocation2 + $0x1c]] }
 0x36e   : > { %3525 = vrot.lane.b32.xlu1 %v3519_v9, %s5818_s27  ;;  %3509 = vrot.lane.b32.xlu0 %v3501_v49, %s5818_s27  ;;  %v3539_v9 = vmul.f32 %v7556_v0, %v3538_v8  ;;  %v3559_v36 = vmul.f32 %v7556_v0, %v3558_v56 }
 0x370   : > { %v7657_v45 = vpop.permute.xlu1 %3080  ;;  %v7659_v53 = vpop.permute.xlu0 %3078 }
 0x371   : > { %12143 = vst [vmem:[#allocation333_spill] sm:$0xff] %v7657_v45  ;;  %12144 = vst [vmem:[#allocation334_spill] sm:$0xff] %v7659_v53  ;;  %v5681_v45 = vld [vmem:[%s5938_s25 + $0x8] sm:$0xff] }
 0x372   : > { %3529 = vrot.lane.b32.xlu1 %v3521_v60, %s5818_s27  ;;  %3527 = vrot.lane.b32.xlu0 %v3520_v29, %s5818_s27  ;;  %v218_v53 = vmul.f32 %v5681_v45, %v6148_v5  ;;  %v227_v60 = vmul.f32 %v5680_v43, %v6160_v4  ;;  %v226_v29 = vmul.f32 %v5681_v45, %v6160_v4 }
 0x373   : > { %v7686_v5 = vadd.f32 %v219_v51, %v6162_v14  ;;  %v234_v51 = vmul.f32 %v5681_v45, %v6191_v35 }
 0x374   : > { %v7665_v49 = vpop.permute.xlu1 %3098  ;;  %v7667_v15 = vpop.permute.xlu0 %3082  ;;  %v7689_v57 = vadd.f32 %v218_v53, %v6162_v14  ;;  %v7692_v4 = vadd.f32 %v227_v60, %v6175_v21  ;;  %v243_v53 = vmul.f32 %v5680_v43, %v6205_v46  ;;  %v3578_v14 = vstv %s5424_s11  ;;  %s8038_s11 = sld [smem:[#allocation2 + $0x9]] }
 0x375   : > { %12145 = vst [vmem:[#allocation335_spill] sm:$0xff] %v7665_v49  ;;  %12146 = vst [vmem:[#allocation336_spill] sm:$0xff] %v7667_v15  ;;  %v3541_v49 = vmul.f32 %v7567_v20, %v3538_v8  ;;  %v3561_v8 = vmul.f32 %v7567_v20, %v3558_v56  ;;  %v242_v60 = vmul.f32 %v5681_v45, %v6205_v46 }
 0x376   : > { %3547 = vrot.lane.b32.xlu1 %v3540_v31, %s5819_s9  ;;  %3545 = vrot.lane.b32.xlu0 %v3539_v9, %s5819_s9  ;;  %v7695_v31 = vadd.f32 %v226_v29, %v6175_v21  ;;  %v3560_v9 = vmul.f32 %v7553_v27, %v3558_v56  ;;  %v250_v21 = vmul.f32 %v5681_v45, %v6248_v32 }
 0x377   : > { %v251_v29 = vmul.f32 %v5680_v43, %v6248_v32  ;;  %v258_v56 = vmul.f32 %v5681_v45, %v6262_v50  ;;  %v274_v46 = vmul.f32 %v5681_v45, %v6344_v39  ;;  %v3580_v32 = vmul.f32 %v7553_v27, %v3578_v14 }
 0x378   : > { %v7681_v15 = vpop.permute.xlu1 %3102  ;;  %v7683_v55 = vpop.permute.xlu0 %3100  ;;  %v7724_v18 = vadd.f32 %v243_v53, %v6229_v1  ;;  %v7732_v39 = vadd.f32 %v242_v60, %v6229_v1  ;;  %v3581_v60 = vmul.f32 %v7567_v20, %v3578_v14 }
 0x379   : > { %12147 = vst [vmem:[#allocation337_spill] sm:$0xff] %v7681_v15  ;;  %12148 = vst [vmem:[#allocation338_spill] sm:$0xff] %v7683_v55  ;;  %v235_v55 = vmul.f32 %v5680_v43, %v6191_v35  ;;  %v266_v35 = vmul.f32 %v5681_v45, %v6309_v10  ;;  %v3598_v10 = vstv %s7679_s17  ;;  %v7735_v45 = vadd.f32 %v250_v21, %v6276_v3  ;;  %s8052_s17 = sld [smem:[#allocation2 + $0x2d]] }
 0x37a   : > { %3565 = vrot.lane.b32.xlu1 %v3559_v36, %s5819_s9  ;;  %3549 = vrot.lane.b32.xlu0 %v3541_v49, %s5819_s9  ;;  %v259_v36 = vmul.f32 %v5680_v43, %v6262_v50  ;;  %v7738_v43 = vadd.f32 %v251_v29, %v6276_v3  ;;  %v7757_v3 = vadd.f32 %v275_v2, %v6358_v41  ;;  %v5683_v2 = vld [vmem:[%s5938_s25 + $0x11] sm:$0x3] }
 0x37b   : > { %v238_v50 = vadd.f32 %v235_v55, %v6217_v59  ;;  %v7751_v1 = vadd.f32 %v266_v35, %v6341_v12  ;;  %v7762_v53 = vadd.f32 %v274_v46, %v6358_v41  ;;  %v7776_v21 = vmul.f32 %v5683_v2, %v6183_v26 }
 0x37c   : > { %v7708_v49 = vpop.permute.xlu1 %3120  ;;  %v7710_v15 = vpop.permute.xlu0 %3118  ;;  %v7779_v41 = vmul.f32 %v5683_v2, %v6199_v42  ;;  %v7811_v46 = vmul.f32 %v5683_v2, %v6324_v6 }
 0x37d   : > { %12149 = vst [vmem:[#allocation339_spill] sm:$0xff] %v7708_v49  ;;  %12150 = vst [vmem:[#allocation340_spill] sm:$0xff] %v7710_v15  ;;  %v3579_v49 = vmul.f32 %v7556_v0, %v3578_v14  ;;  %v237_v15 = vadd.f32 %v234_v51, %v6217_v59  ;;  %v7741_v59 = vadd.f32 %v259_v36, %v6288_v37 }
 0x37e   : > { %3569 = vrot.lane.b32.xlu1 %v3561_v8, %s5819_s9  ;;  %3567 = vrot.lane.b32.xlu0 %v3560_v9, %s5819_s9  ;;  %v7748_v9 = vadd.f32 %v258_v56, %v6288_v37  ;;  %v7754_v51 = vadd.f32 %v267_v11, %v6341_v12  ;;  %v3599_v37 = vmul.f32 %v7556_v0, %v3598_v10  ;;  %v5682_v12 = vld [vmem:[%s5938_s25 + $0x9] sm:$0xff] }
 0x37f   : > { %v7772_v11 = vmul.f32 %v5682_v12, %v6183_v26  ;;  %v7782_v29 = vmul.f32 %v5682_v12, %v6199_v42  ;;  %v7787_v36 = vmul.f32 %v5682_v12, %v6240_v19  ;;  %v7790_v14 = vmul.f32 %v5683_v2, %v6240_v19 }
 0x380   : > { %v7743_v55 = vpop.permute.xlu1 %3138  ;;  %v7745_v8 = vpop.permute.xlu0 %3122  ;;  %v7796_v26 = vmul.f32 %v5682_v12, %v6256_v25  ;;  %v7805_v35 = vmul.f32 %v5682_v12, %v6301_v54  ;;  %v7808_v19 = vmul.f32 %v5683_v2, %v6301_v54  ;;  %v3600_v54 = vmul.f32 %v7553_v27, %v3598_v10 }
 0x381   : > { %12151 = vst [vmem:[#allocation341_spill] sm:$0xff] %v7743_v55  ;;  %12152 = vst [vmem:[#allocation342_spill] sm:$0xff] %v7745_v8  ;;  %v990_v8 = vstv %s7726_s19  ;;  %v3618_v55 = vstv %s7729_s20  ;;  %s8054_s19 = sld [smem:[#allocation2 + $0x40]]  ;;  %s8068_s20 = sld [smem:[#allocation2 + $0x51]] }
 0x382   : > { %3587 = vrot.lane.b32.xlu1 %v3580_v32, %s5819_s9  ;;  %3585 = vrot.lane.b32.xlu0 %v3579_v49, %s5819_s9  ;;  %v7793_v49 = vmul.f32 %v5683_v2, %v6256_v25  ;;  %v7814_v25 = vmul.f32 %v5682_v12, %v6324_v6  ;;  %v7817_v32 = vmul.f32 %v5682_v12, %v6364_v28 }
 0x383   : > { %v7829_v6 = vmul.f32 %v5683_v2, %v6376_v13 }
 0x384   : > { %v7800_v42 = vpop.permute.xlu1 %3142  ;;  %v7802_v56 = vpop.permute.xlu0 %3140 }
 0x385   : > { %12153 = vst [vmem:[#allocation343_spill] sm:$0xff] %v7800_v42  ;;  %12154 = vst [vmem:[#allocation344_spill] sm:$0xff] %v7802_v56  ;;  %v3601_v56 = vmul.f32 %v7567_v20, %v3598_v10  ;;  %v7826_v42 = vmul.f32 %v5683_v2, %v6364_v28  ;;  %v7841_v10 = vadd.f32 %v6092_v33, %v7692_v4  ;;  %v1006_v4 = vstv %s7764_s26  ;;  %s8120_s26 = sld [smem:[#allocation2 + $0x99]] }
 0x386   : > { %3605 = vrot.lane.b32.xlu1 %v3599_v37, %s5819_s9  ;;  %3589 = vrot.lane.b32.xlu0 %v3581_v60, %s5819_s9  ;;  %12155 = vst [vmem:[#allocation345_spill] sm:$0xff] %v7829_v6  ;;  %v7835_v37 = vadd.f32 %v6076_v24, %v7686_v5  ;;  %v297_v60 = vadd.f32 %v6086_v30, %v7689_v57  ;;  %v998_v57 = vstv %s7759_s24  ;;  %s8071_s24 = sld [smem:[#allocation2 + $0x75]] }
 0x387   : > { %v7844_v28 = vmul.f32 %v5682_v12, %v6376_v13  ;;  %v317_v24 = vadd.f32 %v6094_v34, %v7695_v31  ;;  %v7855_v30 = vadd.f32 %v6100_v38, %v237_v15  ;;  %v7858_v33 = vadd.f32 %v6110_v44, %v238_v50  ;;  %v7862_v13 = vld [vmem:[%s5938_s25 + $0xa] sm:$0xff]  ;;  %v7883_v31 = vld [vmem:[%s5938_s25 + $0x2] sm:$0xff] }
 0x388   : > { %v7848_v2 = vpop.permute.xlu1 %3160  ;;  %v7850_v6 = vpop.permute.xlu0 %3158  ;;  %v7865_v5 = vmul.f32 %v7862_v13, %v990_v8  ;;  %v3620_v34 = vmul.f32 %v7553_v27, %v3618_v55  ;;  %v3619_v38 = vmul.f32 %v7556_v0, %v3618_v55  ;;  %v7876_v44 = vadd.f32 %v6116_v47, %v7724_v18  ;;  %v7899_v18 = vld [vmem:[%s5938_s25 + $0x12] sm:$0x3] }
 0x389   : > { %12156 = vst [vmem:[#allocation346_spill] sm:$0xff] %v7848_v2  ;;  %12157 = vst [vmem:[#allocation347_spill] sm:$0xff] %v7850_v6  ;;  %v7880_v15 = vadd.f32 %v6118_v48, %v7732_v39  ;;  %v7886_v50 = vmul.f32 %v7883_v31, %v990_v8  ;;  %v3638_v12 = vstv %s7784_s28  ;;  %v7896_v47 = vmul.f32 %v7883_v31, %v998_v57  ;;  %s8137_s28 = sld [smem:[#allocation2 + $0x64]] }
 0x38a   : > { %3609 = vrot.lane.b32.xlu1 %v3601_v56, %s5819_s9  ;;  %3607 = vrot.lane.b32.xlu0 %v3600_v54, %s5819_s9  ;;  %v7893_v56 = vadd.f32 %v6124_v52, %v7735_v45  ;;  %v7902_v48 = vmul.f32 %v7899_v18, %v990_v8  ;;  %v1014_v39 = vstv %s7798_s29  ;;  %v7913_v2 = vadd.f32 %v6134_v58, %v7738_v43  ;;  %s8156_s29 = sld [smem:[#allocation2 + $0xbd]] }
 0x38b   : > { %v7916_v52 = vmul.f32 %v7899_v18, %v998_v57  ;;  %v7919_v45 = vmul.f32 %v7862_v13, %v998_v57  ;;  %v7922_v8 = vmul.f32 %v7862_v13, %v1006_v4  ;;  %v3639_v58 = vmul.f32 %v7556_v0, %v3638_v12 }
 0x38c   : > { %12158 = vst [vmem:[#allocation348_spill] sm:$0xff] %v7902_v48  ;;  %v7907_v54 = vpop.permute.xlu1 %3178  ;;  %v7909_v6 = vpop.permute.xlu0 %3162  ;;  %v7925_v48 = vmul.f32 %v7883_v31, %v1006_v4  ;;  %v3621_v43 = vmul.f32 %v7567_v20, %v3618_v55  ;;  %v398_v57 = vadd.f32 %v6140_v61, %v7741_v59  ;;  %v7947_v55 = vmul.f32 %v7899_v18, %v1014_v39 }
 0x38d   : > { %12159 = vst [vmem:[#allocation349_spill] sm:$0xff] %v7907_v54  ;;  %12160 = vst [vmem:[#allocation350_spill] sm:$0xff] %v7909_v6  ;;  %v1022_v54 = vstv %s7819_s30  ;;  %v397_v6 = vadd.f32 %v6142_v62, %v7748_v9  ;;  %v7950_v61 = vmul.f32 %v7862_v13, %v1014_v39  ;;  %v1030_v59 = vstv %s7846_s4  ;;  %s8199_s30 = sld [smem:[#allocation2 + $0x88]]  ;;  %s8214_s4 = sld [smem:[#allocation2 + $0xe1]] }
 0x38e   : > { %12161 = vst [vmem:[#allocation351_spill] sm:$0xff] %v7922_v8  ;;  %12162 = vst [vmem:[#allocation352_spill] sm:$0xff] %v7925_v48  ;;  %3627 = vrot.lane.b32.xlu1 %v3620_v34, %s5819_s9  ;;  %3625 = vrot.lane.b32.xlu0 %v3619_v38, %s5819_s9  ;;  %v7937_v8 = vmul.f32 %v7883_v31, %v1014_v39  ;;  %v7940_v48 = vmul.f32 %v7899_v18, %v1006_v4 }
 0x38f   : > { %v417_v34 = vadd.f32 %v6150_v7, %v7751_v1  ;;  %12163 = vst [vmem:[#allocation353_spill] sm:$0xff] %v7950_v61  ;;  %v418_v4 = vadd.f32 %v6166_v16, %v7754_v51  ;;  %v457_v38 = vadd.f32 %v6197_v40, %v297_v60  ;;  %v7961_v7 = vmul.f32 %v7862_v13, %v1022_v54 }
 0x390   : > { %v7953_v62 = vpop.permute.xlu1 %3182  ;;  %v7955_v9 = vpop.permute.xlu0 %3180  ;;  %v7964_v1 = vmul.f32 %v7883_v31, %v1022_v54  ;;  %v438_v39 = vadd.f32 %v6179_v22, %v7757_v3  ;;  %v1038_v61 = vstv %s7868_s5  ;;  %v3640_v16 = vmul.f32 %v7553_v27, %v3638_v12  ;;  %v12167_v3 = vld [vmem:[#allocation14_spill] sm:$0xff]  ;;  %s8236_s5 = sld [smem:[#allocation2 + $0x105]] }
 0x391   : > { %12164 = vst [vmem:[#allocation354_spill] sm:$0xff] %v7953_v62  ;;  %12165 = vst [vmem:[#allocation355_spill] sm:$0xff] %v7955_v9  ;;  %v3641_v9 = vmul.f32 %v7567_v20, %v3638_v12  ;;  %v437_v40 = vadd.f32 %v6181_v23, %v7762_v53  ;;  %v458_v51 = vadd.f32 %v6219_v63, %v7835_v37  ;;  %v3658_v62 = vstv %s7889_s6  ;;  %s8298_s6 = sld [smem:[#allocation2 + $0xac]] }
 0x392   : > { %12166 = vst [vmem:[#allocation356_spill] sm:$0xff] %v7964_v1  ;;  %3645 = vrot.lane.b32.xlu1 %v3639_v58, %s5819_s9  ;;  %3629 = vrot.lane.b32.xlu0 %v3621_v43, %s5819_s9  ;;  %v7978_v60 = vmul.f32 %v7883_v31, %v1030_v59  ;;  %v478_v22 = vadd.f32 %v6235_v17, %v7841_v10  ;;  %v1046_v12 = vstv %s7905_s7  ;;  %s8342_s7 = sld [smem:[#allocation2 + $0xd0]] }
 0x393   : > { %v477_v58 = vadd.f32 %v12167_v3, %v317_v24  ;;  %v7985_v43 = vmul.f32 %v7899_v18, %v1022_v54  ;;  %v608_v63 = vadd.f32 %v7772_v11, %v457_v38  ;;  %v7994_v53 = vmul.f32 %v7899_v18, %v1030_v59 }
 0x394   : > { %v7988_v1 = vpop.permute.xlu1 %3200  ;;  %v7990_v23 = vpop.permute.xlu0 %3198  ;;  %v7997_v37 = vmul.f32 %v7862_v13, %v1030_v59  ;;  %v8000_v17 = vmul.f32 %v7862_v13, %v1038_v61  ;;  %v8003_v10 = vmul.f32 %v7883_v31, %v1038_v61  ;;  %v3660_v24 = vmul.f32 %v7553_v27, %v3658_v62 }
 0x395   : > { %12168 = vst [vmem:[#allocation14_spill] sm:$0xff] %v7988_v1  ;;  %12169 = vst [vmem:[#allocation357_spill] sm:$0xff] %v7990_v23  ;;  %v3659_v11 = vmul.f32 %v7556_v0, %v3658_v62  ;;  %v609_v54 = vadd.f32 %v7776_v21, %v458_v51  ;;  %v8011_v38 = vmul.f32 %v7883_v31, %v1046_v12  ;;  %v3678_v3 = vstv %s7942_s8  ;;  %v12174_v23 = vld [vmem:[#allocation15_spill] sm:$0xff]  ;;  %s8411_s8 = sld [smem:[#allocation2 + $0xc]] }
 0x396   : > { %12170 = vst [vmem:[#allocation358_spill] sm:$0xff] %v8000_v17  ;;  %12171 = vst [vmem:[#allocation359_spill] sm:$0xff] %v8003_v10  ;;  %3649 = vrot.lane.b32.xlu1 %v3641_v9, %s5819_s9  ;;  %3647 = vrot.lane.b32.xlu0 %v3640_v16, %s5819_s9  ;;  %v8014_v59 = vmul.f32 %v7899_v18, %v1038_v61  ;;  %v497_v9 = vadd.f32 %v12174_v23, %v7855_v30  ;;  %v12177_v61 = vld [vmem:[#allocation17_spill] sm:$0xff]  ;;  %v12179_v17 = vld [vmem:[#allocation20_spill] sm:$0xff] }
 0x397   : > { %12172 = vst [vmem:[#allocation360_spill] sm:$0xff] %v8011_v38  ;;  %v617_v16 = vadd.f32 %v7779_v41, %v478_v22  ;;  %v616_v1 = vadd.f32 %v7782_v29, %v477_v58  ;;  %v8024_v10 = vmul.f32 %v7899_v18, %v1046_v12  ;;  %v498_v51 = vadd.f32 %v12177_v61, %v7858_v33  ;;  %v12180_v41 = vld [vmem:[#allocation21_spill] sm:$0xff]  ;;  %v12181_v29 = vld [vmem:[#allocation23_spill] sm:$0xff] }
 0x398   : > { %12173 = vst [vmem:[#allocation361_spill] sm:$0xff] %v8014_v59  ;;  %v8026_v21 = vpop.permute.xlu1 %3218  ;;  %v8028_v31 = vpop.permute.xlu0 %3202  ;;  %v12178_v59 = vld [vmem:[#allocation19_spill] sm:$0xff]  ;;  %v517_v30 = vadd.f32 %v12179_v17, %v7880_v15  ;;  %v537_v22 = vadd.f32 %v12180_v41, %v7893_v56  ;;  %v538_v18 = vadd.f32 %v12181_v29, %v7913_v2  ;;  %v3679_v33 = vmul.f32 %v7556_v0, %v3678_v3  ;;  %v12185_v2 = vld [vmem:[#allocation29_spill] sm:$0xff]  ;;  %v12187_v0 = vld [vmem:[#allocation32_spill] sm:$0xff] }
 0x399   : > { %12175 = vst [vmem:[#allocation15_spill] sm:$0xff] %v8026_v21  ;;  %12176 = vst [vmem:[#allocation362_spill] sm:$0xff] %v8028_v31  ;;  %v518_v38 = vadd.f32 %v12178_v59, %v7876_v44  ;;  %v3661_v58 = vmul.f32 %v7567_v20, %v3658_v62  ;;  %v12182_v44 = vld [vmem:[#allocation25_spill] sm:$0xff]  ;;  %v12183_v59 = vld [vmem:[#allocation26_spill] sm:$0xff]  ;;  %v8050_v56 = vmul.f32 %v7862_v13, %v1046_v12 }
 0x39a   : > { %3667 = vrot.lane.b32.xlu1 %v3660_v24, %s5819_s9  ;;  %3665 = vrot.lane.b32.xlu0 %v3659_v11, %s5819_s9  ;;  %v558_v23 = vadd.f32 %v12182_v44, %v398_v57  ;;  %v557_v15 = vadd.f32 %v12183_v59, %v397_v6  ;;  %v12184_v17 = vld [vmem:[#allocation27_spill] sm:$0xff]  ;;  %v578_v24 = vadd.f32 %v12185_v2, %v418_v4  ;;  %v12224_v31 = vld [vmem:[#allocation49_spill] sm:$0xff] }
 0x39b   : > { %v577_v61 = vadd.f32 %v12184_v17, %v417_v34  ;;  %v12186_v11 = vld [vmem:[#allocation31_spill] sm:$0xff]  ;;  %v597_v29 = vadd.f32 %v12187_v0, %v437_v40  ;;  %v624_v62 = vadd.f32 %v7787_v36, %v497_v9  ;;  %v625_v13 = vadd.f32 %v7790_v14, %v498_v51  ;;  %v8083_v40 = vld [vmem:[%s5938_s25 + $0x50] sm:$0xff]  ;;  %v12202_v0 = vld [vmem:[#allocation16_spill] sm:$0xff] }
 0x39c   : > { %v598_v41 = vadd.f32 %v12186_v11, %v438_v39  ;;  %v8060_v57 = vpop.permute.xlu1 %3222  ;;  %v8062_v6 = vpop.permute.xlu0 %3220  ;;  %v633_v34 = vadd.f32 %v7793_v49, %v518_v38  ;;  %v632_v12 = vadd.f32 %v7796_v26, %v517_v30  ;;  %v640_v4 = vadd.f32 %v7805_v35, %v537_v22  ;;  %v8087_v38 = vld [vmem:[%s5938_s25 + $0x48] sm:$0xff]  ;;  %v12190_v9 = vld [vmem:[#allocation33_spill] sm:$0xff]  ;;  %v12195_v22 = vld [vmem:[#allocation34_spill] sm:$0xff] }
 0x39d   : > { %12188 = vst [vmem:[#allocation17_spill] sm:$0xff] %v8060_v57  ;;  %12189 = vst [vmem:[#allocation19_spill] sm:$0xff] %v8062_v6  ;;  %v641_v39 = vadd.f32 %v7808_v19, %v538_v18  ;;  %v3681_v36 = vmul.f32 %v7567_v20, %v3678_v3  ;;  %v3680_v14 = vmul.f32 %v7553_v27, %v3678_v3  ;;  %v3766_v19 = vstv %s8017_s10  ;;  %v12191_v27 = vld [vmem:[#allocation345_spill] sm:$0xff]  ;;  %v12194_v30 = vld [vmem:[#allocation12_spill] sm:$0xff]  ;;  %s8423_s10 = sld [smem:[#allocation2 + $0x30]] }
 0x39e   : > { %3685 = vrot.lane.b32.xlu1 %v3679_v33, %s5819_s9  ;;  %3669 = vrot.lane.b32.xlu0 %v3661_v58, %s5819_s9  ;;  %v649_v49 = vadd.f32 %v7811_v46, %v558_v23  ;;  %v648_v26 = vadd.f32 %v7814_v25, %v557_v15  ;;  %v8080_v35 = vadd.f32 %v7817_v32, %v577_v61  ;;  %v12196_v18 = vld [vmem:[#allocation13_spill] sm:$0xff]  ;;  %v12198_v58 = vld [vmem:[#allocation36_spill] sm:$0xff]  ;;  %v1378_v23 = vstv %s8038_s11  ;;  %v12200_v61 = vld [vmem:[#allocation38_spill] sm:$0xff]  ;;  %s8426_s11 = sld [smem:[#allocation2 + $0xf4]] }
 0x39f   : > { %v8090_v51 = vadd.f32 %v12190_v9, %v608_v63  ;;  %v8093_v20 = vadd.f32 %v7826_v42, %v578_v24  ;;  %v8096_v3 = vadd.f32 %v12191_v27, %v598_v41  ;;  %v8099_v46 = vadd.f32 %v7844_v28, %v597_v29  ;;  %v12197_v42 = vld [vmem:[#allocation35_spill] sm:$0xff]  ;;  %v12199_v28 = vld [vmem:[#allocation37_spill] sm:$0xff]  ;;  %v8135_v41 = vld [vmem:[%s5938_s25 + $0x58] sm:$0x3] }
 0x3a0   : > { %v8101_v25 = vpop.permute.xlu1 %3240  ;;  %v8103_v32 = vpop.permute.xlu0 %3238  ;;  %v8107_v63 = vadd.f32 %v12195_v22, %v12194_v30  ;;  %v8111_v33 = vadd.f32 %v12197_v42, %v12196_v18  ;;  %v8114_v44 = vadd.f32 %v12198_v58, %v609_v54  ;;  %v8118_v59 = vadd.f32 %v12199_v28, %v617_v16  ;;  %v12201_v54 = vld [vmem:[#allocation39_spill] sm:$0xff]  ;;  %v12203_v29 = vld [vmem:[#allocation40_spill] sm:$0xff]  ;;  %v12205_v9 = vld [vmem:[#allocation41_spill] sm:$0xff] }
 0x3a1   : > { %12192 = vst [vmem:[#allocation20_spill] sm:$0xff] %v8101_v25  ;;  %12193 = vst [vmem:[#allocation21_spill] sm:$0xff] %v8103_v32  ;;  %v3768_v15 = vmul.f32 %v8083_v40, %v3766_v19  ;;  %v3767_v17 = vmul.f32 %v8087_v38, %v3766_v19  ;;  %v8127_v2 = vadd.f32 %v12200_v61, %v616_v1  ;;  %v1386_v11 = vstv %s8052_s17  ;;  %v12206_v27 = vld [vmem:[#allocation42_spill] sm:$0xff]  ;;  %v12209_v58 = vld [vmem:[#allocation43_spill] sm:$0xff]  ;;  %s8446_s17 = sld [smem:[#allocation2 + $0x54]] }
 0x3a2   : > { %3689 = vrot.lane.b32.xlu1 %v3681_v36, %s5819_s9  ;;  %3687 = vrot.lane.b32.xlu0 %v3680_v14, %s5819_s9  ;;  %v8130_v24 = vadd.f32 %v12201_v54, %v624_v62  ;;  %v3786_v16 = vstv %s8054_s19  ;;  %v8141_v36 = vadd.f32 %v12203_v29, %v12202_v0  ;;  %v12204_v14 = vld [vmem:[#allocation18_spill] sm:$0xff]  ;;  %v8148_v30 = vadd.f32 %v12206_v27, %v625_v13  ;;  %v8151_v62 = vld [vmem:[%s5938_s25 + $0x20] sm:$0xff]  ;;  %v12210_v61 = vld [vmem:[#allocation44_spill] sm:$0xff]  ;;  %s8458_s19 = sld [smem:[#allocation2 + $0x118]] }
 0x3a3   : > { %v8145_v1 = vadd.f32 %v12205_v9, %v12204_v14  ;;  %v8154_v22 = vmul.f32 %v8151_v62, %v1378_v23  ;;  %v8163_v28 = vadd.f32 %v12209_v58, %v633_v34  ;;  %v8166_v54 = vadd.f32 %v12210_v61, %v632_v12  ;;  %v8169_v13 = vld [vmem:[%s5938_s25 + $0x18] sm:$0xff]  ;;  %v12212_v12 = vld [vmem:[#allocation45_spill] sm:$0xff]  ;;  %v8191_v32 = vld [vmem:[%s5938_s25 + $0x28] sm:$0x3] }
 0x3a4   : > { %v8158_v18 = vpop.permute.xlu1 %3258  ;;  %v8160_v42 = vpop.permute.xlu0 %3242  ;;  %v8172_v0 = vmul.f32 %v8169_v13, %v1378_v23  ;;  %v1394_v29 = vstv %s8068_s20  ;;  %v8176_v14 = vmul.f32 %v8169_v13, %v1386_v11  ;;  %v1402_v9 = vstv %s8071_s24  ;;  %v12213_v61 = vld [vmem:[#allocation22_spill] sm:$0xff]  ;;  %s8472_s20 = sld [smem:[#allocation2 + $0x78]]  ;;  %s8498_s24 = sld [smem:[#allocation2 + $0x9c]] }
 0x3a5   : > { %12207 = vst [vmem:[#allocation23_spill] sm:$0xff] %v8158_v18  ;;  %12208 = vst [vmem:[#allocation25_spill] sm:$0xff] %v8160_v42  ;;  %v3787_v34 = vmul.f32 %v8087_v38, %v3786_v16  ;;  %v3769_v27 = vmul.f32 %v8135_v41, %v3766_v19  ;;  %v8184_v58 = vadd.f32 %v12212_v12, %v640_v4  ;;  %v12214_v42 = vld [vmem:[#allocation46_spill] sm:$0xff]  ;;  %v12218_v19 = vld [vmem:[#allocation47_spill] sm:$0xff] }
 0x3a6   : > { %12211 = vst [vmem:[#allocation26_spill] sm:$0xff] %v8176_v14  ;;  %3775 = vrot.lane.b32.xlu1 %v3768_v15, %s5818_s27  ;;  %3773 = vrot.lane.b32.xlu0 %v3767_v17, %s5818_s27  ;;  %v8188_v18 = vadd.f32 %v12214_v42, %v12213_v61  ;;  %v8194_v25 = vmul.f32 %v8191_v32, %v1378_v23  ;;  %v12217_v17 = vld [vmem:[#allocation24_spill] sm:$0xff] }
 0x3a7   : > { %v8197_v15 = vmul.f32 %v8191_v32, %v1386_v11  ;;  %v8203_v6 = vadd.f32 %v12218_v19, %v12217_v17  ;;  %v12219_v4 = vld [vmem:[#allocation48_spill] sm:$0xff]  ;;  %v8209_v42 = vmul.f32 %v8151_v62, %v1386_v11  ;;  %v8212_v61 = vmul.f32 %v8151_v62, %v1394_v29  ;;  %v12225_v17 = vld [vmem:[#allocation50_spill] sm:$0xff] }
 0x3a8   : > { %12215 = vst [vmem:[#allocation27_spill] sm:$0xff] %v8194_v25  ;;  %v8206_v12 = vadd.f32 %v12219_v4, %v641_v39  ;;  %v8216_v23 = vpop.permute.xlu1 %3262  ;;  %v8218_v57 = vpop.permute.xlu0 %3260  ;;  %v8221_v21 = vadd.f32 %v12224_v31, %v649_v49  ;;  %v8224_v19 = vadd.f32 %v12225_v17, %v648_v26  ;;  %v8227_v39 = vmul.f32 %v8169_v13, %v1394_v29  ;;  %v12229_v26 = vld [vmem:[#allocation51_spill] sm:$0xff]  ;;  %v12240_v25 = vld [vmem:[#allocation58_spill] sm:$0xff] }
 0x3a9   : > { %12216 = vst [vmem:[#allocation29_spill] sm:$0xff] %v8197_v15  ;;  %12220 = vst [vmem:[#allocation31_spill] sm:$0xff] %v8209_v42  ;;  %v8230_v11 = vmul.f32 %v8169_v13, %v1402_v9  ;;  %v8233_v4 = vmul.f32 %v8191_v32, %v1394_v29  ;;  %v3789_v31 = vmul.f32 %v8135_v41, %v3786_v16 }
 0x3aa   : > { %12221 = vst [vmem:[#allocation32_spill] sm:$0xff] %v8212_v61  ;;  %12222 = vst [vmem:[#allocation33_spill] sm:$0xff] %v8216_v23  ;;  %v1410_v23 = vstv %s8120_s26  ;;  %3793 = vrot.lane.b32.xlu1 %v3787_v34, %s5818_s27  ;;  %3777 = vrot.lane.b32.xlu0 %v3769_v27, %s5818_s27  ;;  %v3788_v49 = vmul.f32 %v8083_v40, %v3786_v16  ;;  %v8244_v17 = vadd.f32 %v12229_v26, %v8080_v35  ;;  %v12233_v61 = vld [vmem:[#allocation30_spill] sm:$0xff]  ;;  %v12234_v34 = vld [vmem:[#allocation53_spill] sm:$0xff]  ;;  %s8530_s26 = sld [smem:[#allocation2 + $0xc0]] }
 0x3ab   : > { %12223 = vst [vmem:[#allocation345_spill] sm:$0xff] %v8218_v57  ;;  %12226 = vst [vmem:[#allocation12_spill] sm:$0xff] %v8227_v39  ;;  %v12230_v57 = vld [vmem:[#allocation28_spill] sm:$0xff]  ;;  %v8251_v29 = vmul.f32 %v8191_v32, %v1402_v9  ;;  %v8256_v42 = vadd.f32 %v12234_v34, %v12233_v61  ;;  %v12235_v27 = vld [vmem:[#allocation54_spill] sm:$0xff]  ;;  %v8263_v16 = vmul.f32 %v8151_v62, %v1402_v9  ;;  %v1418_v35 = vstv %s8156_s29  ;;  %s8578_s29 = sld [smem:[#allocation2 + $0x1d]] }
 0x3ac   : > { %12227 = vst [vmem:[#allocation34_spill] sm:$0xff] %v8230_v11  ;;  %12228 = vst [vmem:[#allocation13_spill] sm:$0xff] %v8233_v4  ;;  %v12231_v11 = vld [vmem:[#allocation52_spill] sm:$0xff]  ;;  %v3806_v4 = vstv %s8137_s28  ;;  %v8260_v15 = vadd.f32 %v12235_v27, %v8093_v20  ;;  %v8266_v26 = vpop.permute.xlu1 %3280  ;;  %v843_v61 = vadd.f32 %v12240_v25, %v8107_v63  ;;  %v8275_v34 = vmul.f32 %v8151_v62, %v1410_v23  ;;  %v12243_v9 = vld [vmem:[#allocation55_spill] sm:$0xff]  ;;  %s8559_s28 = sld [smem:[#allocation2 + $0xe4]] }
 0x3ad   : > { %v8248_v39 = vadd.f32 %v12231_v11, %v12230_v57  ;;  %12232 = vst [vmem:[#allocation35_spill] sm:$0xff] %v8251_v29  ;;  %12236 = vst [vmem:[#allocation36_spill] sm:$0xff] %v8263_v16  ;;  %v8268_v57 = vpop.permute.xlu0 %3278  ;;  %v12239_v11 = vld [vmem:[#allocation57_spill] sm:$0xff]  ;;  %v8278_v20 = vmul.f32 %v8169_v13, %v1410_v23  ;;  %v8282_v27 = vadd.f32 %v12243_v9, %v8096_v3  ;;  %v12244_v25 = vld [vmem:[#allocation56_spill] sm:$0xff]  ;;  %v3826_v3 = vstv %s8199_s30  ;;  %s8628_s30 = sld [smem:[#allocation2 + $0x108]] }
 0x3ae   : > { %12237 = vst [vmem:[#allocation37_spill] sm:$0xff] %v8266_v26  ;;  %12238 = vst [vmem:[#allocation38_spill] sm:$0xff] %v8268_v57  ;;  %v844_v29 = vadd.f32 %v12239_v11, %v8090_v51  ;;  %3797 = vrot.lane.b32.xlu1 %v3789_v31, %s5818_s27  ;;  %3795 = vrot.lane.b32.xlu0 %v3788_v49, %s5818_s27  ;;  %v3808_v51 = vmul.f32 %v8083_v40, %v3806_v4  ;;  %v12245_v57 = vld [vmem:[#allocation59_spill] sm:$0xff]  ;;  %v12247_v31 = vld [vmem:[#allocation60_spill] sm:$0xff] }
 0x3af   : > { %12241 = vst [vmem:[#allocation39_spill] sm:$0xff] %v8275_v34  ;;  %12242 = vst [vmem:[#allocation16_spill] sm:$0xff] %v8278_v20  ;;  %v3807_v11 = vmul.f32 %v8087_v38, %v3806_v4  ;;  %v8290_v63 = vadd.f32 %v12244_v25, %v8099_v46  ;;  %v863_v26 = vadd.f32 %v12245_v57, %v8111_v33  ;;  %v1426_v46 = vstv %s8214_s4  ;;  %v12251_v33 = vld [vmem:[#allocation61_spill] sm:$0xff]  ;;  %s8630_s4 = sld [smem:[#allocation2 + $0x41]] }
 0x3b0   : > { %v8295_v20 = vmul.f32 %v8169_v13, %v1418_v35  ;;  %v845_v49 = vadd.f32 %v12247_v31, %v8114_v44  ;;  %v8303_v9 = vmul.f32 %v8191_v32, %v1410_v23  ;;  %v8306_v34 = vmul.f32 %v8191_v32, %v1418_v35  ;;  %v8309_v25 = vpop.permute.xlu1 %3298  ;;  %v12252_v23 = vld [vmem:[#allocation62_spill] sm:$0xff] }
 0x3b1   : > { %12249 = vst [vmem:[#allocation41_spill] sm:$0xff] %v8309_v25  ;;  %v8311_v16 = vpop.permute.xlu0 %3282  ;;  %v865_v57 = vadd.f32 %v12251_v33, %v8118_v59  ;;  %v8319_v14 = vadd.f32 %v7886_v50, %v843_v61  ;;  %v8322_v44 = vmul.f32 %v8151_v62, %v1418_v35  ;;  %v864_v31 = vadd.f32 %v12252_v23, %v8127_v2  ;;  %v12256_v61 = vld [vmem:[#allocation64_spill] sm:$0xff]  ;;  %v12258_v33 = vld [vmem:[#allocation66_spill] sm:$0xff]  ;;  %v12262_v25 = vld [vmem:[#allocation67_spill] sm:$0xff] }
 0x3b2   : > { %12246 = vst [vmem:[#allocation40_spill] sm:$0xff] %v8295_v20  ;;  %12248 = vst [vmem:[#allocation18_spill] sm:$0xff] %v8306_v34  ;;  %v8316_v20 = vadd.f32 %v7865_v5, %v844_v29  ;;  %v1434_v34 = vstv %s8236_s5  ;;  %3815 = vrot.lane.b32.xlu1 %v3808_v51, %s5818_s27  ;;  %3813 = vrot.lane.b32.xlu0 %v3807_v11, %s5818_s27  ;;  %v3809_v59 = vmul.f32 %v8135_v41, %v3806_v4  ;;  %v12253_v5 = vld [vmem:[#allocation63_spill] sm:$0xff]  ;;  %v12257_v11 = vld [vmem:[#allocation65_spill] sm:$0xff]  ;;  %s8717_s5 = sld [smem:[#allocation2 + $0x65]] }
 0x3b3   : > { %12250 = vst [vmem:[#allocation42_spill] sm:$0xff] %v8311_v16  ;;  %v3827_v16 = vmul.f32 %v8087_v38, %v3826_v3  ;;  %v884_v29 = vadd.f32 %v12253_v5, %v8130_v24  ;;  %v8334_v50 = vadd.f32 %v7896_v47, %v863_v26  ;;  %v8337_v35 = vmul.f32 %v8151_v62, %v1426_v46  ;;  %v12259_v23 = vld [vmem:[#allocation348_spill] sm:$0xff] }
 0x3b4   : > { %v8340_v2 = vmul.f32 %v8169_v13, %v1426_v46  ;;  %v883_v51 = vadd.f32 %v12256_v61, %v8141_v36  ;;  %v903_v4 = vadd.f32 %v12257_v11, %v8145_v1  ;;  %v885_v24 = vadd.f32 %v12258_v33, %v8148_v30  ;;  %v8353_v26 = vpop.permute.xlu1 %3302  ;;  %v12269_v11 = vld [vmem:[#allocation70_spill] sm:$0xff] }
 0x3b5   : > { %12254 = vst [vmem:[#allocation43_spill] sm:$0xff] %v8337_v35  ;;  %v8351_v47 = vadd.f32 %v12259_v23, %v845_v49  ;;  %12260 = vst [vmem:[#allocation45_spill] sm:$0xff] %v8353_v26  ;;  %v8355_v5 = vpop.permute.xlu0 %3300  ;;  %v8360_v35 = vadd.f32 %v7916_v52, %v865_v57  ;;  %v8363_v36 = vmul.f32 %v8169_v13, %v1434_v34  ;;  %v3846_v57 = vstv %s8298_s6  ;;  %s8760_s6 = sld [smem:[#allocation2 + $0x89]] }
 0x3b6   : > { %12255 = vst [vmem:[#allocation44_spill] sm:$0xff] %v8340_v2  ;;  %12261 = vst [vmem:[#allocation22_spill] sm:$0xff] %v8355_v5  ;;  %v905_v2 = vadd.f32 %v12262_v25, %v8163_v28  ;;  %v8366_v1 = vmul.f32 %v8191_v32, %v1426_v46  ;;  %v8369_v30 = vadd.f32 %v7919_v45, %v864_v31  ;;  %3833 = vrot.lane.b32.xlu1 %v3827_v16, %s5818_s27  ;;  %v12263_v25 = vld [vmem:[#allocation351_spill] sm:$0xff]  ;;  %v12264_v45 = vld [vmem:[#allocation68_spill] sm:$0xff] }
 0x3b7   : > { %3817 = vrot.lane.b32.xlu0 %v3809_v59, %s5818_s27  ;;  %v3829_v49 = vmul.f32 %v8135_v41, %v3826_v3  ;;  %v3828_v28 = vmul.f32 %v8083_v40, %v3826_v3  ;;  %v8376_v52 = vadd.f32 %v12263_v25, %v884_v29  ;;  %v8379_v13 = vmul.f32 %v8191_v32, %v1434_v34  ;;  %v12265_v16 = vld [vmem:[#allocation352_spill] sm:$0xff]  ;;  %v12322_v5 = vld [vmem:[#allocation105_spill] sm:$0xff] }
 0x3b8   : > { %v8382_v46 = vmul.f32 %v8151_v62, %v1434_v34  ;;  %v904_v31 = vadd.f32 %v12264_v45, %v8166_v54  ;;  %v8388_v61 = vadd.f32 %v12265_v16, %v883_v51  ;;  %v8391_v59 = vadd.f32 %v7937_v8, %v903_v4  ;;  %v8396_v29 = vpop.permute.xlu1 %3387  ;;  %v12268_v62 = vld [vmem:[#allocation69_spill] sm:$0xff]  ;;  %v12270_v51 = vld [vmem:[#allocation71_spill] sm:$0xff] }
 0x3b9   : > { %v8394_v3 = vadd.f32 %v7940_v48, %v885_v24  ;;  %12266 = vst [vmem:[#allocation46_spill] sm:$0xff] %v8396_v29  ;;  %v8398_v32 = vpop.permute.xlu0 %3385  ;;  %v924_v34 = vadd.f32 %v12268_v62, %v8184_v58  ;;  %v923_v54 = vadd.f32 %v12269_v11, %v8188_v18  ;;  %v943_v33 = vadd.f32 %v12270_v51, %v8203_v6  ;;  %v12271_v48 = vld [vmem:[#allocation72_spill] sm:$0xff]  ;;  %v12272_v18 = vld [vmem:[#allocation73_spill] sm:$0xff]  ;;  %v12273_v6 = vld [vmem:[#allocation74_spill] sm:$0xff] }
 0x3ba   : > { %12267 = vst [vmem:[#allocation24_spill] sm:$0xff] %v8398_v32  ;;  %v8407_v8 = vadd.f32 %v7947_v55, %v905_v2  ;;  %v925_v4 = vadd.f32 %v12271_v48, %v8206_v12  ;;  %3837 = vrot.lane.b32.xlu1 %v3829_v49, %s5818_s27  ;;  %v3848_v58 = vmul.f32 %v8083_v40, %v3846_v57  ;;  %v12274_v2 = vld [vmem:[#allocation75_spill] sm:$0xff]  ;;  %v3866_v12 = vstv %s8342_s7  ;;  %v12275_v49 = vld [vmem:[#allocation76_spill] sm:$0xff]  ;;  %v12276_v45 = vld [vmem:[#allocation77_spill] sm:$0xff]  ;;  %s8791_s7 = sld [smem:[#allocation2 + $0xf]] }
 0x3bb   : > { %3835 = vrot.lane.b32.xlu0 %v3828_v28, %s5818_s27  ;;  %v3847_v24 = vmul.f32 %v8087_v38, %v3846_v57  ;;  %v945_v23 = vadd.f32 %v12272_v18, %v8221_v21  ;;  %v944_v55 = vadd.f32 %v12273_v6, %v8224_v19  ;;  %v964_v25 = vadd.f32 %v12274_v2, %v8244_v17  ;;  %v12277_v62 = vld [vmem:[#allocation78_spill] sm:$0xff]  ;;  %v12278_v11 = vld [vmem:[#allocation79_spill] sm:$0xff]  ;;  %v12281_v48 = vld [vmem:[#allocation80_spill] sm:$0xff] }
 0x3bc   : > { %v963_v28 = vadd.f32 %v12275_v49, %v8248_v39  ;;  %v983_v16 = vadd.f32 %v12276_v45, %v8256_v42  ;;  %v965_v21 = vadd.f32 %v12277_v62, %v8260_v15  ;;  %v985_v19 = vadd.f32 %v12278_v11, %v8282_v27  ;;  %v8436_v51 = vpop.permute.xlu1 %3405  ;;  %v12282_v6 = vld [vmem:[#allocation353_spill] sm:$0xff]  ;;  %v12283_v49 = vld [vmem:[#allocation356_spill] sm:$0xff] }
 0x3bd   : > { %12279 = vst [vmem:[#allocation47_spill] sm:$0xff] %v8436_v51  ;;  %v8438_v17 = vpop.permute.xlu0 %3389  ;;  %v984_v18 = vadd.f32 %v12281_v48, %v8290_v63  ;;  %v1019_v2 = vadd.f32 %v12282_v6, %v904_v31  ;;  %v1027_v39 = vadd.f32 %v7961_v7, %v924_v34  ;;  %v1026_v32 = vadd.f32 %v12283_v49, %v923_v54  ;;  %v12284_v34 = vld [vmem:[#allocation358_spill] sm:$0xff]  ;;  %v12287_v45 = vld [vmem:[#allocation361_spill] sm:$0xff]  ;;  %v12293_v62 = vld [vmem:[#allocation84_spill] sm:$0xff] }
 0x3be   : > { %12280 = vst [vmem:[#allocation48_spill] sm:$0xff] %v8438_v17  ;;  %v1034_v42 = vadd.f32 %v7978_v60, %v943_v33  ;;  %3855 = vrot.lane.b32.xlu1 %v3848_v58, %s5818_s27  ;;  %v3867_v15 = vmul.f32 %v8087_v38, %v3866_v12  ;;  %v3849_v27 = vmul.f32 %v8135_v41, %v3846_v57  ;;  %v12285_v60 = vld [vmem:[#allocation359_spill] sm:$0xff]  ;;  %v12286_v58 = vld [vmem:[#allocation360_spill] sm:$0xff]  ;;  %v1765_v11 = vstv %s8411_s8  ;;  %v12311_v17 = vld [vmem:[#allocation98_spill] sm:$0xff]  ;;  %s8812_s8 = sld [smem:[#allocation2 + $0x33]] }
 0x3bf   : > { %3853 = vrot.lane.b32.xlu0 %v3847_v24, %s5818_s27  ;;  %v1028_v63 = vadd.f32 %v7985_v43, %v925_v4  ;;  %v1036_v31 = vadd.f32 %v7994_v53, %v945_v23  ;;  %v1035_v7 = vadd.f32 %v7997_v37, %v944_v55  ;;  %v8456_v54 = vadd.f32 %v12284_v34, %v964_v25  ;;  %v12290_v4 = vld [vmem:[#allocation81_spill] sm:$0xff]  ;;  %v12291_v55 = vld [vmem:[#allocation82_spill] sm:$0xff]  ;;  %v12296_v6 = vld [vmem:[#allocation87_spill] sm:$0xff] }
 0x3c0   : > { %v8461_v33 = vadd.f32 %v12285_v60, %v963_v28  ;;  %v8464_v24 = vadd.f32 %v12286_v58, %v983_v16  ;;  %v8467_v57 = vadd.f32 %v12287_v45, %v965_v21  ;;  %v8470_v43 = vadd.f32 %v8024_v10, %v985_v19  ;;  %v8474_v53 = vpop.permute.xlu1 %3409  ;;  %v12292_v28 = vld [vmem:[#allocation83_spill] sm:$0xff] }
 0x3c1   : > { %12288 = vst [vmem:[#allocation49_spill] sm:$0xff] %v8474_v53  ;;  %v8476_v37 = vpop.permute.xlu0 %3407  ;;  %v8480_v23 = vadd.f32 %v12290_v4, %v8316_v20  ;;  %v8484_v25 = vadd.f32 %v12291_v55, %v8319_v14  ;;  %v8488_v10 = vadd.f32 %v12292_v28, %v8334_v50  ;;  %v8491_v16 = vadd.f32 %v8050_v56, %v984_v18  ;;  %v12294_v50 = vld [vmem:[#allocation85_spill] sm:$0xff]  ;;  %v8550_v55 = vld [vmem:[%s5938_s25 + $0x19] sm:$0xff] }
 0x3c2   : > { %12289 = vst [vmem:[#allocation50_spill] sm:$0xff] %v8476_v37  ;;  %v8495_v21 = vadd.f32 %v12293_v62, %v8351_v47  ;;  %3873 = vrot.lane.b32.xlu1 %v3867_v15, %s5818_s27  ;;  %v3869_v14 = vmul.f32 %v8135_v41, %v3866_v12  ;;  %v3868_v20 = vmul.f32 %v8083_v40, %v3866_v12  ;;  %v12295_v47 = vld [vmem:[#allocation86_spill] sm:$0xff]  ;;  %v1773_v48 = vstv %s8423_s10  ;;  %v12297_v15 = vld [vmem:[#allocation88_spill] sm:$0xff]  ;;  %v12298_v12 = vld [vmem:[#allocation89_spill] sm:$0xff]  ;;  %s8826_s10 = sld [smem:[#allocation2 + $0x57]] }
 0x3c3   : > { %3857 = vrot.lane.b32.xlu0 %v3849_v27, %s5818_s27  ;;  %v8506_v56 = vadd.f32 %v12294_v50, %v8360_v35  ;;  %v8510_v19 = vadd.f32 %v12295_v47, %v8369_v30  ;;  %v3886_v18 = vstv %s8426_s11  ;;  %v8516_v49 = vadd.f32 %v12296_v6, %v8376_v52  ;;  %v12299_v35 = vld [vmem:[#allocation90_spill] sm:$0xff]  ;;  %v12302_v52 = vld [vmem:[#allocation91_spill] sm:$0xff]  ;;  %v12304_v47 = vld [vmem:[#allocation93_spill] sm:$0xff]  ;;  %s8836_s11 = sld [smem:[#allocation2 + $0xad]] }
 0x3c4   : > { %v8520_v27 = vadd.f32 %v12297_v15, %v8388_v61  ;;  %v8524_v34 = vadd.f32 %v12298_v12, %v8391_v59  ;;  %v8528_v60 = vadd.f32 %v12299_v35, %v8394_v3  ;;  %v8532_v30 = vpop.permute.xlu1 %3427  ;;  %v8538_v45 = vadd.f32 %v12302_v52, %v8407_v8  ;;  %v12303_v61 = vld [vmem:[#allocation92_spill] sm:$0xff]  ;;  %v12305_v15 = vld [vmem:[#allocation94_spill] sm:$0xff]  ;;  %v12310_v37 = vld [vmem:[#allocation97_spill] sm:$0xff] }
 0x3c5   : > { %12300 = vst [vmem:[#allocation51_spill] sm:$0xff] %v8532_v30  ;;  %v8534_v58 = vpop.permute.xlu0 %3425  ;;  %v8541_v4 = vadd.f32 %v12303_v61, %v1019_v2  ;;  %v8544_v59 = vld [vmem:[%s5938_s25 + $0x21] sm:$0xff]  ;;  %v8553_v28 = vmul.f32 %v8550_v55, %v1765_v11  ;;  %v8556_v62 = vmul.f32 %v8550_v55, %v1773_v48  ;;  %v1781_v8 = vstv %s8446_s17  ;;  %v8572_v35 = vld [vmem:[%s5938_s25 + $0x29] sm:$0x3]  ;;  %s8850_s17 = sld [smem:[#allocation2 + $0x7b]] }
 0x3c6   : > { %12301 = vst [vmem:[#allocation28_spill] sm:$0xff] %v8534_v58  ;;  %v8547_v3 = vmul.f32 %v8544_v59, %v1765_v11  ;;  %3877 = vrot.lane.b32.xlu1 %v3869_v14, %s5818_s27  ;;  %v3888_v2 = vmul.f32 %v8083_v40, %v3886_v18  ;;  %v3887_v50 = vmul.f32 %v8087_v38, %v3886_v18  ;;  %v3906_v61 = vstv %s8458_s19  ;;  %v12306_v14 = vld [vmem:[#allocation95_spill] sm:$0xff]  ;;  %v12309_v30 = vld [vmem:[#allocation96_spill] sm:$0xff]  ;;  %s8894_s19 = sld [smem:[#allocation2 + $0xd1]] }
 0x3c7   : > { %3875 = vrot.lane.b32.xlu0 %v3868_v20, %s5818_s27  ;;  %v8566_v6 = vadd.f32 %v12304_v47, %v1027_v39  ;;  %v8569_v12 = vadd.f32 %v12305_v15, %v1026_v32  ;;  %v8575_v52 = vmul.f32 %v8572_v35, %v1765_v11  ;;  %v8581_v20 = vadd.f32 %v12306_v14, %v1034_v42 }
 0x3c8   : > { %v8584_v58 = vmul.f32 %v8572_v35, %v1773_v48  ;;  %v8587_v39 = vmul.f32 %v8544_v59, %v1773_v48  ;;  %v1789_v32 = vstv %s8472_s20  ;;  %v8590_v47 = vpop.permute.xlu1 %3445  ;;  %v8595_v11 = vadd.f32 %v12309_v30, %v1028_v63  ;;  %s8909_s20 = sld [smem:[#allocation2 + $0x9f]] }
 0x3c9   : > { %12307 = vst [vmem:[#allocation52_spill] sm:$0xff] %v8590_v47  ;;  %v8592_v15 = vpop.permute.xlu0 %3429  ;;  %v8598_v53 = vadd.f32 %v12310_v37, %v1036_v31  ;;  %v8601_v42 = vmul.f32 %v8544_v59, %v1781_v8  ;;  %v8604_v14 = vmul.f32 %v8550_v55, %v1781_v8  ;;  %v8607_v48 = vadd.f32 %v12311_v17, %v1035_v7  ;;  %v12312_v37 = vld [vmem:[#allocation99_spill] sm:$0xff] }
 0x3ca   : > { %12308 = vst [vmem:[#allocation30_spill] sm:$0xff] %v8592_v15  ;;  %v1797_v51 = vstv %s8498_s24  ;;  %3895 = vrot.lane.b32.xlu1 %v3888_v2, %s5818_s27  ;;  %v3907_v63 = vmul.f32 %v8087_v38, %v3906_v61  ;;  %v3889_v31 = vmul.f32 %v8135_v41, %v3886_v18  ;;  %v8616_v30 = vadd.f32 %v12312_v37, %v8456_v54  ;;  %v12313_v15 = vld [vmem:[#allocation100_spill] sm:$0xff]  ;;  %v12316_v18 = vld [vmem:[#allocation101_spill] sm:$0xff]  ;;  %v12321_v37 = vld [vmem:[#allocation102_spill] sm:$0xff]  ;;  %s8935_s24 = sld [smem:[#allocation2 + $0xc3]] }
 0x3cb   : > { %3893 = vrot.lane.b32.xlu0 %v3887_v50, %s5818_s27  ;;  %v8620_v47 = vadd.f32 %v12313_v15, %v8461_v33  ;;  %v8623_v17 = vmul.f32 %v8550_v55, %v1789_v32  ;;  %v8626_v7 = vmul.f32 %v8572_v35, %v1781_v8  ;;  %v8634_v2 = vadd.f32 %v12316_v18, %v8464_v24  ;;  %v12323_v18 = vld [vmem:[#allocation106_spill] sm:$0xff] }
 0x3cc   : > { %v8637_v54 = vmul.f32 %v8572_v35, %v1789_v32  ;;  %v8640_v33 = vmul.f32 %v8544_v59, %v1789_v32  ;;  %v1805_v50 = vstv %s8530_s26  ;;  %v8643_v15 = vpop.permute.xlu1 %3449  ;;  %v8649_v29 = vadd.f32 %v12321_v37, %v8467_v57  ;;  %s8969_s26 = sld [smem:[#allocation2 + $0xe7]] }
 0x3cd   : > { %12314 = vst [vmem:[#allocation53_spill] sm:$0xff] %v8623_v17  ;;  %12315 = vst [vmem:[#allocation54_spill] sm:$0xff] %v8626_v7  ;;  %v8645_v8 = vpop.permute.xlu0 %3447  ;;  %v1231_v24 = vadd.f32 %v12322_v5, %v8480_v23  ;;  %v1230_v26 = vadd.f32 %v12323_v18, %v8484_v25  ;;  %v8659_v32 = vmul.f32 %v8550_v55, %v1797_v51  ;;  %v12326_v5 = vld [vmem:[#allocation103_spill] sm:$0xff]  ;;  %v12327_v25 = vld [vmem:[#allocation104_spill] sm:$0xff] }
 0x3ce   : > { %12317 = vst [vmem:[#allocation57_spill] sm:$0xff] %v8637_v54  ;;  %12318 = vst [vmem:[#allocation58_spill] sm:$0xff] %v8640_v33  ;;  %v8656_v54 = vmul.f32 %v8544_v59, %v1797_v51  ;;  %v1813_v33 = vstv %s8559_s28  ;;  %3913 = vrot.lane.b32.xlu1 %v3907_v63, %s5818_s27  ;;  %v3909_v57 = vmul.f32 %v8135_v41, %v3906_v61  ;;  %v12329_v63 = vld [vmem:[#allocation107_spill] sm:$0xff]  ;;  %s9005_s28 = sld [smem:[#allocation2 + $0xf5]] }
 0x3cf   : > { %12319 = vst [vmem:[#allocation55_spill] sm:$0xff] %v8643_v15  ;;  %12320 = vst [vmem:[#allocation56_spill] sm:$0xff] %v8645_v8  ;;  %3897 = vrot.lane.b32.xlu0 %v3889_v31, %s5818_s27  ;;  %v3908_v37 = vmul.f32 %v8083_v40, %v3906_v61  ;;  %v8668_v23 = vadd.f32 %v12326_v5, %v8470_v43  ;;  %v8672_v18 = vadd.f32 %v12327_v25, %v8491_v16  ;;  %v12335_v25 = vld [vmem:[#allocation108_spill] sm:$0xff]  ;;  %v12347_v7 = vld [vmem:[#allocation115_spill] sm:$0xff] }
 0x3d0   : > { %12324 = vst [vmem:[#allocation59_spill] sm:$0xff] %v8656_v54  ;;  %12325 = vst [vmem:[#allocation60_spill] sm:$0xff] %v8659_v32  ;;  %v8675_v8 = vmul.f32 %v8550_v55, %v1805_v50  ;;  %v3926_v15 = vstv %s8578_s29  ;;  %v1250_v32 = vadd.f32 %v12329_v63, %v8488_v10  ;;  %v8681_v31 = vmul.f32 %v8572_v35, %v1797_v51  ;;  %v8689_v16 = vpop.permute.xlu1 %3467  ;;  %s9019_s29 = sld [smem:[#allocation2 + $0x10b]] }
 0x3d1   : > { %v8684_v61 = vmul.f32 %v8572_v35, %v1805_v50  ;;  %v8687_v43 = vmul.f32 %v8544_v59, %v1805_v50  ;;  %12333 = vst [vmem:[#allocation65_spill] sm:$0xff] %v8689_v16  ;;  %v8691_v5 = vpop.permute.xlu0 %3465  ;;  %v8696_v10 = vadd.f32 %v8154_v22, %v1231_v24  ;;  %v8699_v51 = vadd.f32 %v8172_v0, %v1230_v26  ;;  %v12338_v22 = vld [vmem:[#allocation109_spill] sm:$0xff]  ;;  %v12339_v0 = vld [vmem:[#allocation110_spill] sm:$0xff]  ;;  %v12340_v16 = vld [vmem:[#allocation111_spill] sm:$0xff] }
 0x3d2   : > { %12328 = vst [vmem:[#allocation61_spill] sm:$0xff] %v8675_v8  ;;  %12330 = vst [vmem:[#allocation62_spill] sm:$0xff] %v8681_v31  ;;  %v1232_v8 = vadd.f32 %v12335_v25, %v8495_v21  ;;  %v8702_v63 = vmul.f32 %v8544_v59, %v1813_v33  ;;  %3917 = vrot.lane.b32.xlu1 %v3909_v57, %s5818_s27  ;;  %v3928_v50 = vmul.f32 %v8083_v40, %v3926_v15  ;;  %v12341_v57 = vld [vmem:[#allocation112_spill] sm:$0xff]  ;;  %v12343_v31 = vld [vmem:[#allocation26_spill] sm:$0xff] }
 0x3d3   : > { %12331 = vst [vmem:[#allocation63_spill] sm:$0xff] %v8684_v61  ;;  %12332 = vst [vmem:[#allocation64_spill] sm:$0xff] %v8687_v43  ;;  %v8705_v61 = vmul.f32 %v8550_v55, %v1813_v33  ;;  %3915 = vrot.lane.b32.xlu0 %v3908_v37, %s5818_s27  ;;  %v3927_v21 = vmul.f32 %v8087_v38, %v3926_v15  ;;  %v1252_v24 = vadd.f32 %v12338_v22, %v8506_v56 }
 0x3d4   : > { %12334 = vst [vmem:[#allocation66_spill] sm:$0xff] %v8691_v5  ;;  %12336 = vst [vmem:[#allocation348_spill] sm:$0xff] %v8702_v63  ;;  %v1251_v26 = vadd.f32 %v12339_v0, %v8510_v19  ;;  %v1821_v25 = vstv %s8628_s30  ;;  %v3946_v5 = vstv %s8630_s4  ;;  %v1270_v37 = vadd.f32 %v12341_v57, %v8520_v27  ;;  %v12342_v63 = vld [vmem:[#allocation113_spill] sm:$0xff]  ;;  %v8728_v56 = vpop.permute.xlu1 %3485  ;;  %v12346_v19 = vld [vmem:[#allocation114_spill] sm:$0xff]  ;;  %s9055_s30 = sld [smem:[#allocation2 + $0x119]]  ;;  %s9134_s4 = sld [smem:[#allocation2 + $0x1f]] }
 0x3d5   : > { %12337 = vst [vmem:[#allocation67_spill] sm:$0xff] %v8705_v61  ;;  %v1271_v61 = vadd.f32 %v12340_v16, %v8516_v49  ;;  %v1290_v43 = vadd.f32 %v12342_v63, %v8524_v34  ;;  %v8726_v54 = vadd.f32 %v12343_v31, %v1250_v32  ;;  %12344 = vst [vmem:[#allocation351_spill] sm:$0xff] %v8728_v56  ;;  %v8730_v22 = vpop.permute.xlu0 %3469  ;;  %v12348_v49 = vld [vmem:[#allocation116_spill] sm:$0xff]  ;;  %v12349_v27 = vld [vmem:[#allocation27_spill] sm:$0xff] }
 0x3d6   : > { %12345 = vst [vmem:[#allocation68_spill] sm:$0xff] %v8730_v22  ;;  %v1272_v0 = vadd.f32 %v12346_v19, %v8528_v60  ;;  %v1292_v17 = vadd.f32 %v12347_v7, %v8538_v45  ;;  %v1291_v16 = vadd.f32 %v12348_v49, %v8541_v4  ;;  %v8739_v57 = vadd.f32 %v12349_v27, %v1232_v8  ;;  %v12350_v31 = vld [vmem:[#allocation29_spill] sm:$0xff]  ;;  %v12351_v45 = vld [vmem:[#allocation31_spill] sm:$0xff]  ;;  %v12352_v8 = vld [vmem:[#allocation32_spill] sm:$0xff] }
 0x3d7   : > { %v8742_v34 = vmul.f32 %v8550_v55, %v1821_v25  ;;  %3935 = vrot.lane.b32.xlu1 %v3928_v50, %s5819_s9  ;;  %3933 = vrot.lane.b32.xlu0 %v3927_v21, %s5819_s9  ;;  %v3947_v32 = vmul.f32 %v8087_v38, %v3946_v5  ;;  %v3929_v60 = vmul.f32 %v8135_v41, %v3926_v15  ;;  %v12353_v21 = vld [vmem:[#allocation12_spill] sm:$0xff]  ;;  %v12354_v15 = vld [vmem:[#allocation34_spill] sm:$0xff] }
 0x3d8   : > { %v8749_v63 = vadd.f32 %v12350_v31, %v1252_v24  ;;  %v8752_v7 = vadd.f32 %v12351_v45, %v1251_v26  ;;  %v8755_v4 = vmul.f32 %v8572_v35, %v1813_v33  ;;  %v8758_v55 = vmul.f32 %v8572_v35, %v1821_v25  ;;  %v8774_v33 = vpop.permute.xlu1 %3489  ;;  %v12357_v35 = vld [vmem:[#allocation117_spill] sm:$0xff]  ;;  %v12359_v45 = vld [vmem:[#allocation35_spill] sm:$0xff] }
 0x3d9   : > { %v8763_v50 = vadd.f32 %v12352_v8, %v1271_v61  ;;  %v8766_v19 = vadd.f32 %v12353_v21, %v1270_v37  ;;  %v8769_v24 = vadd.f32 %v12354_v15, %v1290_v43  ;;  %v8772_v26 = vmul.f32 %v8544_v59, %v1821_v25  ;;  %12355 = vst [vmem:[#allocation352_spill] sm:$0xff] %v8774_v33  ;;  %v8776_v49 = vpop.permute.xlu0 %3487  ;;  %v12358_v31 = vld [vmem:[#allocation13_spill] sm:$0xff]  ;;  %v12360_v8 = vld [vmem:[#allocation36_spill] sm:$0xff]  ;;  %v12361_v59 = vld [vmem:[#allocation118_spill] sm:$0xff] }
 0x3da   : > { %12356 = vst [vmem:[#allocation69_spill] sm:$0xff] %v8776_v49  ;;  %v1311_v27 = vadd.f32 %v12357_v35, %v8566_v6  ;;  %v8781_v61 = vadd.f32 %v12358_v31, %v1272_v0  ;;  %v8784_v37 = vadd.f32 %v12359_v45, %v1292_v17  ;;  %v8787_v43 = vadd.f32 %v12360_v8, %v1291_v16  ;;  %v12362_v21 = vld [vmem:[#allocation119_spill] sm:$0xff]  ;;  %v12363_v15 = vld [vmem:[#allocation120_spill] sm:$0xff]  ;;  %v12364_v35 = vld [vmem:[#allocation121_spill] sm:$0xff] }
 0x3db   : > { %v1310_v25 = vadd.f32 %v12361_v59, %v8569_v12  ;;  %3953 = vrot.lane.b32.xlu1 %v3947_v32, %s5819_s9  ;;  %3937 = vrot.lane.b32.xlu0 %v3929_v60, %s5819_s9  ;;  %v3949_v6 = vmul.f32 %v8135_v41, %v3946_v5  ;;  %v3948_v0 = vmul.f32 %v8083_v40, %v3946_v5  ;;  %v3966_v12 = vstv %s8717_s5  ;;  %v12365_v45 = vld [vmem:[#allocation122_spill] sm:$0xff]  ;;  %v12366_v32 = vld [vmem:[#allocation123_spill] sm:$0xff]  ;;  %v12367_v59 = vld [vmem:[#allocation124_spill] sm:$0xff]  ;;  %s9181_s5 = sld [smem:[#allocation2 + $0x43]] }
 0x3dc   : > { %v1330_v17 = vadd.f32 %v12362_v21, %v8581_v20  ;;  %v1312_v16 = vadd.f32 %v12363_v15, %v8595_v11  ;;  %v1332_v31 = vadd.f32 %v12364_v35, %v8598_v53  ;;  %v1331_v8 = vadd.f32 %v12365_v45, %v8607_v48  ;;  %v12368_v5 = vld [vmem:[#allocation125_spill] sm:$0xff]  ;;  %v8814_v20 = vpop.permute.xlu1 %3507  ;;  %v12371_v53 = vld [vmem:[#allocation126_spill] sm:$0xff]  ;;  %v12372_v48 = vld [vmem:[#allocation127_spill] sm:$0xff] }
 0x3dd   : > { %v1351_v60 = vadd.f32 %v12366_v32, %v8616_v30  ;;  %v1350_v49 = vadd.f32 %v12367_v59, %v8620_v47  ;;  %v1370_v33 = vadd.f32 %v12368_v5, %v8634_v2  ;;  %12369 = vst [vmem:[#allocation70_spill] sm:$0xff] %v8814_v20  ;;  %v8816_v11 = vpop.permute.xlu0 %3505  ;;  %v1352_v21 = vadd.f32 %v12371_v53, %v8649_v29  ;;  %v12373_v30 = vld [vmem:[#allocation128_spill] sm:$0xff]  ;;  %v12374_v47 = vld [vmem:[#allocation39_spill] sm:$0xff]  ;;  %v12404_v20 = vld [vmem:[#allocation145_spill] sm:$0xff] }
 0x3de   : > { %12370 = vst [vmem:[#allocation71_spill] sm:$0xff] %v8816_v11  ;;  %v1372_v15 = vadd.f32 %v12372_v48, %v8668_v23  ;;  %v1371_v35 = vadd.f32 %v12373_v30, %v8672_v18  ;;  %v1415_v45 = vadd.f32 %v12374_v47, %v1311_v27  ;;  %v12375_v32 = vld [vmem:[#allocation16_spill] sm:$0xff]  ;;  %v3968_v59 = vmul.f32 %v8083_v40, %v3966_v12  ;;  %v12377_v48 = vld [vmem:[#allocation18_spill] sm:$0xff] }
 0x3df   : > { %v1414_v2 = vadd.f32 %v12375_v32, %v1310_v25  ;;  %3957 = vrot.lane.b32.xlu1 %v3949_v6, %s5819_s9  ;;  %3955 = vrot.lane.b32.xlu0 %v3948_v0, %s5819_s9  ;;  %v3967_v29 = vmul.f32 %v8087_v38, %v3966_v12  ;;  %v12376_v5 = vld [vmem:[#allocation40_spill] sm:$0xff]  ;;  %v1416_v23 = vadd.f32 %v8303_v9, %v1312_v16  ;;  %v3986_v27 = vstv %s8760_s6  ;;  %v12378_v6 = vld [vmem:[#allocation43_spill] sm:$0xff]  ;;  %v12382_v16 = vld [vmem:[#allocation129_spill] sm:$0xff]  ;;  %s9191_s6 = sld [smem:[#allocation2 + $0x12]] }
 0x3e0   : > { %v1422_v53 = vadd.f32 %v12376_v5, %v1330_v17  ;;  %v1424_v18 = vadd.f32 %v12377_v48, %v1332_v31  ;;  %v8839_v25 = vadd.f32 %v8322_v44, %v1331_v8  ;;  %v8842_v30 = vadd.f32 %v12378_v6, %v1351_v60  ;;  %v12379_v0 = vld [vmem:[#allocation44_spill] sm:$0xff]  ;;  %v8852_v9 = vpop.permute.xlu1 %3525 }
 0x3e1   : > { %v8845_v47 = vadd.f32 %v12379_v0, %v1350_v49  ;;  %v8848_v32 = vadd.f32 %v8363_v36, %v1370_v33  ;;  %12380 = vst [vmem:[#allocation72_spill] sm:$0xff] %v8852_v9  ;;  %v8854_v17 = vpop.permute.xlu0 %3509  ;;  %v8858_v31 = vadd.f32 %v12382_v16, %v8696_v10  ;;  %v8861_v44 = vadd.f32 %v8366_v1, %v1352_v21  ;;  %v12383_v33 = vld [vmem:[#allocation130_spill] sm:$0xff]  ;;  %v12389_v5 = vld [vmem:[#allocation136_spill] sm:$0xff] }
 0x3e2   : > { %12381 = vst [vmem:[#allocation73_spill] sm:$0xff] %v8854_v17  ;;  %v8864_v8 = vadd.f32 %v8379_v13, %v1372_v15  ;;  %v8867_v36 = vadd.f32 %v8382_v46, %v1371_v35  ;;  %v8871_v49 = vadd.f32 %v12383_v33, %v8699_v51  ;;  %v2152_v60 = vstv %s8791_s7  ;;  %v12384_v13 = vld [vmem:[#allocation131_spill] sm:$0xff]  ;;  %v12385_v46 = vld [vmem:[#allocation132_spill] sm:$0xff]  ;;  %v12386_v51 = vld [vmem:[#allocation133_spill] sm:$0xff]  ;;  %s9205_s7 = sld [smem:[#allocation2 + $0x36]] }
 0x3e3   : > { %3975 = vrot.lane.b32.xlu1 %v3968_v59, %s5819_s9  ;;  %3973 = vrot.lane.b32.xlu0 %v3967_v29, %s5819_s9  ;;  %v3987_v10 = vmul.f32 %v8087_v38, %v3986_v27  ;;  %v3969_v1 = vmul.f32 %v8135_v41, %v3966_v12  ;;  %v8880_v21 = vadd.f32 %v12384_v13, %v8726_v54  ;;  %v12387_v59 = vld [vmem:[#allocation134_spill] sm:$0xff]  ;;  %v12388_v12 = vld [vmem:[#allocation135_spill] sm:$0xff]  ;;  %v12401_v11 = vld [vmem:[#allocation144_spill] sm:$0xff] }
 0x3e4   : > { %v8884_v15 = vadd.f32 %v12385_v46, %v8739_v57  ;;  %v8888_v35 = vadd.f32 %v12386_v51, %v8749_v63  ;;  %v8892_v29 = vadd.f32 %v12387_v59, %v8752_v7  ;;  %v8898_v54 = vadd.f32 %v12388_v12, %v8763_v50  ;;  %v12390_v57 = vld [vmem:[#allocation137_spill] sm:$0xff]  ;;  %v8911_v7 = vpop.permute.xlu1 %3529  ;;  %v12393_v16 = vld [vmem:[#allocation138_spill] sm:$0xff]  ;;  %v12394_v33 = vld [vmem:[#allocation139_spill] sm:$0xff] }
 0x3e5   : > { %v8902_v48 = vadd.f32 %v12389_v5, %v8766_v19  ;;  %v8906_v6 = vadd.f32 %v12390_v57, %v8769_v24  ;;  %v2160_v63 = vstv %s8812_s8  ;;  %12391 = vst [vmem:[#allocation74_spill] sm:$0xff] %v8911_v7  ;;  %v8913_v0 = vpop.permute.xlu0 %3527  ;;  %v8917_v50 = vadd.f32 %v12393_v16, %v8781_v61  ;;  %v8924_v13 = vld [vmem:[%s5938_s25 + $0x22] sm:$0xff]  ;;  %v8930_v46 = vld [vmem:[%s5938_s25 + $0x1a] sm:$0xff]  ;;  %v12396_v57 = vld [vmem:[#allocation141_spill] sm:$0xff]  ;;  %s9236_s8 = sld [smem:[#allocation2 + $0x5a]] }
 0x3e6   : > { %12392 = vst [vmem:[#allocation75_spill] sm:$0xff] %v8913_v0  ;;  %v8921_v19 = vadd.f32 %v12394_v33, %v8784_v37  ;;  %v8927_v24 = vmul.f32 %v8924_v13, %v2152_v60  ;;  %v8933_v51 = vmul.f32 %v8930_v46, %v2152_v60  ;;  %v12395_v61 = vld [vmem:[#allocation140_spill] sm:$0xff]  ;;  %v2168_v37 = vstv %s8826_s10  ;;  %v12397_v7 = vld [vmem:[#allocation142_spill] sm:$0xff]  ;;  %s9254_s10 = sld [smem:[#allocation2 + $0x7e]] }
 0x3e7   : > { %v8939_v59 = vadd.f32 %v12395_v61, %v8787_v43  ;;  %3993 = vrot.lane.b32.xlu1 %v3987_v10, %s5819_s9  ;;  %3977 = vrot.lane.b32.xlu0 %v3969_v1, %s5819_s9  ;;  %v3989_v12 = vmul.f32 %v8135_v41, %v3986_v27  ;;  %v3988_v5 = vmul.f32 %v8083_v40, %v3986_v27  ;;  %v8953_v0 = vld [vmem:[%s5938_s25 + $0x2a] sm:$0x3]  ;;  %v4006_v61 = vstv %s8836_s11  ;;  %s9278_s11 = sld [smem:[#allocation2 + $0x67]] }
 0x3e8   : > { %v8947_v16 = vadd.f32 %v12396_v57, %v1415_v45  ;;  %v8950_v33 = vmul.f32 %v8930_v46, %v2160_v63  ;;  %v8956_v43 = vmul.f32 %v8953_v0, %v2152_v60  ;;  %v8960_v10 = vadd.f32 %v12397_v7, %v1414_v2  ;;  %v8971_v57 = vpop.permute.xlu1 %3547  ;;  %v12400_v60 = vld [vmem:[#allocation143_spill] sm:$0xff] }
 0x3e9   : > { %v8963_v1 = vmul.f32 %v8953_v0, %v2160_v63  ;;  %v8966_v27 = vmul.f32 %v8924_v13, %v2160_v63  ;;  %v2176_v45 = vstv %s8850_s17  ;;  %12398 = vst [vmem:[#allocation76_spill] sm:$0xff] %v8971_v57  ;;  %v8973_v17 = vpop.permute.xlu0 %3545  ;;  %v8976_v9 = vadd.f32 %v12400_v60, %v1422_v53  ;;  %s9310_s17 = sld [smem:[#allocation2 + $0xa2]] }
 0x3ea   : > { %12399 = vst [vmem:[#allocation77_spill] sm:$0xff] %v8973_v17  ;;  %v8979_v2 = vadd.f32 %v12401_v11, %v1416_v23  ;;  %v8982_v7 = vmul.f32 %v8924_v13, %v2168_v37  ;;  %v8985_v63 = vmul.f32 %v8930_v46, %v2168_v37  ;;  %v8988_v22 = vadd.f32 %v12404_v20, %v1424_v18  ;;  %v12405_v11 = vld [vmem:[#allocation146_spill] sm:$0xff]  ;;  %v12408_v18 = vld [vmem:[#allocation147_spill] sm:$0xff] }
 0x3eb   : > { %3997 = vrot.lane.b32.xlu1 %v3989_v12, %s5819_s9  ;;  %3995 = vrot.lane.b32.xlu0 %v3988_v5, %s5819_s9  ;;  %v4008_v53 = vmul.f32 %v8083_v40, %v4006_v61  ;;  %v4007_v60 = vmul.f32 %v8087_v38, %v4006_v61  ;;  %v8996_v23 = vadd.f32 %v12405_v11, %v8839_v25  ;;  %v4026_v20 = vstv %s8894_s19  ;;  %v12409_v5 = vld [vmem:[#allocation148_spill] sm:$0xff]  ;;  %s9340_s19 = sld [smem:[#allocation2 + $0x8b]] }
 0x3ec   : > { %12402 = vst [vmem:[#allocation78_spill] sm:$0xff] %v8982_v7  ;;  %12403 = vst [vmem:[#allocation79_spill] sm:$0xff] %v8985_v63  ;;  %v8999_v17 = vmul.f32 %v8930_v46, %v2176_v45  ;;  %v9002_v57 = vmul.f32 %v8953_v0, %v2168_v37  ;;  %v9009_v12 = vadd.f32 %v12408_v18, %v8842_v30  ;;  %v2184_v11 = vstv %s8909_s20  ;;  %v12414_v30 = vld [vmem:[#allocation150_spill] sm:$0xff]  ;;  %s9356_s20 = sld [smem:[#allocation2 + $0xc6]] }
 0x3ed   : > { %v9013_v56 = vadd.f32 %v12409_v5, %v8845_v47  ;;  %v9016_v25 = vmul.f32 %v8953_v0, %v2176_v45  ;;  %v9023_v37 = vpop.permute.xlu0 %3549  ;;  %v9031_v18 = vadd.f32 %v12414_v30, %v8861_v44  ;;  %v9034_v47 = vmul.f32 %v8924_v13, %v2176_v45  ;;  %v12418_v30 = vld [vmem:[#allocation154_spill] sm:$0xff] }
 0x3ee   : > { %12406 = vst [vmem:[#allocation80_spill] sm:$0xff] %v8999_v17  ;;  %12407 = vst [vmem:[#allocation353_spill] sm:$0xff] %v9002_v57  ;;  %v9021_v17 = vpop.permute.xlu1 %3565  ;;  %v12413_v57 = vld [vmem:[#allocation149_spill] sm:$0xff]  ;;  %v2192_v5 = vstv %s8935_s24  ;;  %v1618_v45 = vadd.f32 %v12418_v30, %v8871_v49  ;;  %v2200_v49 = vstv %s8969_s26  ;;  %s9372_s24 = sld [smem:[#allocation2 + $0xea]]  ;;  %s9423_s26 = sld [smem:[#allocation2 + $0x10e]] }
 0x3ef   : > { %12410 = vst [vmem:[#allocation356_spill] sm:$0xff] %v9016_v25  ;;  %12411 = vst [vmem:[#allocation358_spill] sm:$0xff] %v9021_v17  ;;  %v9027_v63 = vadd.f32 %v12413_v57, %v8848_v32  ;;  %v12416_v25 = vld [vmem:[#allocation153_spill] sm:$0xff]  ;;  %4015 = vrot.lane.b32.xlu1 %v4008_v53, %s5819_s9  ;;  %4013 = vrot.lane.b32.xlu0 %v4007_v60, %s5819_s9  ;;  %v4009_v32 = vmul.f32 %v8135_v41, %v4006_v61  ;;  %v12417_v57 = vld [vmem:[#allocation151_spill] sm:$0xff] }
 0x3f0   : > { %12412 = vst [vmem:[#allocation359_spill] sm:$0xff] %v9023_v37  ;;  %12415 = vst [vmem:[#allocation360_spill] sm:$0xff] %v9034_v47  ;;  %v1619_v7 = vadd.f32 %v12416_v25, %v8858_v31  ;;  %v4027_v37 = vmul.f32 %v8087_v38, %v4026_v20  ;;  %v9045_v44 = vadd.f32 %v12417_v57, %v8864_v8  ;;  %v12421_v53 = vld [vmem:[#allocation152_spill] sm:$0xff]  ;;  %v12422_v61 = vld [vmem:[#allocation155_spill] sm:$0xff] }
 0x3f1   : > { %v9050_v17 = vmul.f32 %v8924_v13, %v2184_v11  ;;  %v9053_v31 = vmul.f32 %v8930_v46, %v2184_v11  ;;  %v9059_v60 = vadd.f32 %v12421_v53, %v8867_v36  ;;  %v1638_v25 = vadd.f32 %v12422_v61, %v8880_v21  ;;  %v9069_v30 = vpop.permute.xlu0 %3567 }
 0x3f2   : > { %v9064_v8 = vmul.f32 %v8930_v46, %v2192_v5  ;;  %v9067_v57 = vpop.permute.xlu1 %3569  ;;  %12424 = vst [vmem:[#allocation83_spill] sm:$0xff] %v9069_v30  ;;  %v9074_v47 = vmul.f32 %v8953_v0, %v2184_v11  ;;  %v9077_v36 = vmul.f32 %v8953_v0, %v2192_v5  ;;  %v9080_v21 = vmul.f32 %v8924_v13, %v2192_v5 }
 0x3f3   : > { %12419 = vst [vmem:[#allocation361_spill] sm:$0xff] %v9050_v17  ;;  %12420 = vst [vmem:[#allocation81_spill] sm:$0xff] %v9053_v31  ;;  %v12425_v31 = vld [vmem:[#allocation156_spill] sm:$0xff]  ;;  %v9083_v53 = vadd.f32 %v8547_v3, %v1619_v7  ;;  %4033 = vrot.lane.b32.xlu1 %v4027_v37, %s5819_s9  ;;  %4017 = vrot.lane.b32.xlu0 %v4009_v32, %s5819_s9  ;;  %v4029_v61 = vmul.f32 %v8135_v41, %v4026_v20  ;;  %v4046_v30 = vstv %s9005_s28  ;;  %v12430_v3 = vld [vmem:[#allocation157_spill] sm:$0xff]  ;;  %s9444_s28 = sld [smem:[#allocation2 + $0xaf]] }
 0x3f4   : > { %12423 = vst [vmem:[#allocation82_spill] sm:$0xff] %v9067_v57  ;;  %v1620_v17 = vadd.f32 %v12425_v31, %v8884_v15  ;;  %12426 = vst [vmem:[#allocation84_spill] sm:$0xff] %v9077_v36  ;;  %v4028_v15 = vmul.f32 %v8083_v40, %v4026_v20  ;;  %v9090_v11 = vadd.f32 %v8553_v28, %v1618_v45  ;;  %v12431_v37 = vld [vmem:[#allocation158_spill] sm:$0xff]  ;;  %v2208_v20 = vstv %s9019_s29  ;;  %s9487_s29 = sld [smem:[#allocation2 + $0xd3]] }
 0x3f5   : > { %12427 = vst [vmem:[#allocation85_spill] sm:$0xff] %v9080_v21  ;;  %v9093_v31 = vmul.f32 %v8924_v13, %v2200_v49  ;;  %v9096_v5 = vmul.f32 %v8930_v46, %v2200_v49  ;;  %v1640_v7 = vadd.f32 %v12430_v3, %v8888_v35  ;;  %v1639_v32 = vadd.f32 %v12431_v37, %v8892_v29  ;;  %v9109_v45 = vpop.permute.xlu0 %3585  ;;  %v12436_v35 = vld [vmem:[#allocation161_spill] sm:$0xff] }
 0x3f6   : > { %v9104_v57 = vadd.f32 %v8556_v62, %v1638_v25  ;;  %v9107_v28 = vpop.permute.xlu1 %3587  ;;  %12433 = vst [vmem:[#allocation89_spill] sm:$0xff] %v9109_v45  ;;  %v1678_v3 = vadd.f32 %v12436_v35, %v8906_v6  ;;  %v9118_v29 = vadd.f32 %v8575_v52, %v1620_v17  ;;  %v12437_v62 = vld [vmem:[#allocation162_spill] sm:$0xff]  ;;  %v4048_v37 = vmul.f32 %v8083_v40, %v4046_v30 }
 0x3f7   : > { %12428 = vst [vmem:[#allocation86_spill] sm:$0xff] %v9093_v31  ;;  %12429 = vst [vmem:[#allocation87_spill] sm:$0xff] %v9096_v5  ;;  %v12434_v31 = vld [vmem:[#allocation159_spill] sm:$0xff]  ;;  %v12435_v5 = vld [vmem:[#allocation160_spill] sm:$0xff]  ;;  %v1660_v25 = vadd.f32 %v12437_v62, %v8917_v50  ;;  %4037 = vrot.lane.b32.xlu1 %v4029_v61, %s5819_s9  ;;  %4035 = vrot.lane.b32.xlu0 %v4028_v15, %s5819_s9  ;;  %v9131_v52 = vmul.f32 %v8930_v46, %v2208_v20  ;;  %v4066_v17 = vstv %s9055_s30  ;;  %s9569_s30 = sld [smem:[#allocation2 + $0xf7]] }
 0x3f8   : > { %12432 = vst [vmem:[#allocation88_spill] sm:$0xff] %v9107_v28  ;;  %v1659_v21 = vadd.f32 %v12434_v31, %v8898_v54  ;;  %v1658_v36 = vadd.f32 %v12435_v5, %v8902_v48  ;;  %v4047_v54 = vmul.f32 %v8087_v38, %v4046_v30  ;;  %v12438_v31 = vld [vmem:[#allocation163_spill] sm:$0xff]  ;;  %v12439_v5 = vld [vmem:[#allocation164_spill] sm:$0xff]  ;;  %v9137_v50 = vadd.f32 %v8584_v58, %v1640_v7  ;;  %v12442_v58 = vld [vmem:[#allocation53_spill] sm:$0xff] }
 0x3f9   : > { %v1680_v48 = vadd.f32 %v12438_v31, %v8921_v19  ;;  %v1679_v6 = vadd.f32 %v12439_v5, %v8939_v59  ;;  %v9140_v61 = vadd.f32 %v8587_v39, %v1639_v32  ;;  %v9143_v15 = vmul.f32 %v8953_v0, %v2200_v49  ;;  %v9150_v59 = vpop.permute.xlu0 %3589  ;;  %v12443_v49 = vld [vmem:[#allocation54_spill] sm:$0xff]  ;;  %v12446_v31 = vld [vmem:[#allocation57_spill] sm:$0xff] }
 0x3fa   : > { %v9146_v19 = vmul.f32 %v8953_v0, %v2208_v20  ;;  %v9148_v35 = vpop.permute.xlu1 %3605  ;;  %12441 = vst [vmem:[#allocation91_spill] sm:$0xff] %v9150_v59  ;;  %v9153_v46 = vadd.f32 %v8601_v42, %v1659_v21  ;;  %v9156_v62 = vadd.f32 %v8604_v14, %v1658_v36  ;;  %v9159_v7 = vadd.f32 %v12442_v58, %v1678_v3  ;;  %v12444_v14 = vld [vmem:[#allocation165_spill] sm:$0xff]  ;;  %v12445_v21 = vld [vmem:[#allocation166_spill] sm:$0xff] }
 0x3fb   : > { %12440 = vst [vmem:[#allocation90_spill] sm:$0xff] %v9148_v35  ;;  %v9162_v39 = vmul.f32 %v8924_v13, %v2208_v20  ;;  %v9165_v32 = vadd.f32 %v12443_v49, %v1660_v25  ;;  %4055 = vrot.lane.b32.xlu1 %v4048_v37, %s5819_s9  ;;  %4053 = vrot.lane.b32.xlu0 %v4047_v54, %s5819_s9  ;;  %v12447_v20 = vld [vmem:[#allocation58_spill] sm:$0xff]  ;;  %v12448_v37 = vld [vmem:[#allocation167_spill] sm:$0xff]  ;;  %v12450_v5 = vld [vmem:[#allocation169_spill] sm:$0xff]  ;;  %v4193_v59 = vstv %s9278_s11  ;;  %s9701_s11 = sld [smem:[#allocation2 + $0x20]] }
 0x3fc   : > { %v4067_v0 = vmul.f32 %v8087_v38, %v4066_v17  ;;  %v4049_v42 = vmul.f32 %v8135_v41, %v4046_v30  ;;  %v1699_v36 = vadd.f32 %v12444_v14, %v8947_v16  ;;  %v1698_v3 = vadd.f32 %v12445_v21, %v8960_v10  ;;  %v12449_v38 = vld [vmem:[#allocation168_spill] sm:$0xff]  ;;  %v12451_v58 = vld [vmem:[#allocation170_spill] sm:$0xff]  ;;  %v12454_v49 = vld [vmem:[#allocation171_spill] sm:$0xff] }
 0x3fd   : > { %v9176_v13 = vadd.f32 %v12446_v31, %v1680_v48  ;;  %v9179_v25 = vadd.f32 %v12447_v20, %v1679_v6  ;;  %v1718_v54 = vadd.f32 %v12448_v37, %v8976_v9  ;;  %v1700_v30 = vadd.f32 %v12449_v38, %v8979_v2  ;;  %v9195_v6 = vpop.permute.xlu0 %3607  ;;  %v12455_v2 = vld [vmem:[#allocation172_spill] sm:$0xff]  ;;  %v12458_v20 = vld [vmem:[#allocation175_spill] sm:$0xff]  ;;  %v12493_v35 = vld [vmem:[#allocation194_spill] sm:$0xff] }
 0x3fe   : > { %v1720_v16 = vadd.f32 %v12450_v5, %v8988_v22  ;;  %v1719_v10 = vadd.f32 %v12451_v58, %v8996_v23  ;;  %v9193_v48 = vpop.permute.xlu1 %3609  ;;  %12453 = vst [vmem:[#allocation93_spill] sm:$0xff] %v9195_v6  ;;  %v1739_v9 = vadd.f32 %v12454_v49, %v9009_v12  ;;  %v1738_v14 = vadd.f32 %v12455_v2, %v9013_v56  ;;  %v12456_v22 = vld [vmem:[#allocation173_spill] sm:$0xff]  ;;  %v12457_v23 = vld [vmem:[#allocation174_spill] sm:$0xff]  ;;  %v12459_v56 = vld [vmem:[#allocation176_spill] sm:$0xff] }
 0x3ff   : > { %12452 = vst [vmem:[#allocation92_spill] sm:$0xff] %v9193_v48  ;;  %v1758_v21 = vadd.f32 %v12456_v22, %v9027_v63  ;;  %v1740_v31 = vadd.f32 %v12457_v23, %v9031_v18  ;;  %v1760_v37 = vadd.f32 %v12458_v20, %v9045_v44  ;;  %4073 = vrot.lane.b32.xlu1 %v4067_v0, %s5819_s9  ;;  %v12460_v63 = vld [vmem:[#allocation59_spill] sm:$0xff]  ;;  %v12461_v49 = vld [vmem:[#allocation60_spill] sm:$0xff]  ;;  %v9218_v2 = vld [vmem:[%s5938_s25 + $0x51] sm:$0xff]  ;;  %v4153_v22 = vstv %s9134_s4  ;;  %s9594_s4 = sld [smem:[#allocation2 + $0x15]] }
 0x400   : > { %4057 = vrot.lane.b32.xlu0 %v4049_v42, %s5819_s9  ;;  %v4069_v12 = vmul.f32 %v8135_v41, %v4066_v17  ;;  %v4068_v38 = vmul.f32 %v8083_v40, %v4066_v17  ;;  %v1759_v5 = vadd.f32 %v12459_v56, %v9059_v60  ;;  %v1802_v58 = vadd.f32 %v12460_v63, %v1699_v36  ;;  %v9222_v23 = vld [vmem:[%s5938_s25 + $0x49] sm:$0xff]  ;;  %v12463_v42 = vld [vmem:[#allocation62_spill] sm:$0xff]  ;;  %v12464_v41 = vld [vmem:[#allocation63_spill] sm:$0xff] }
 0x401   : > { %v1801_v18 = vadd.f32 %v12461_v49, %v1698_v3  ;;  %v12462_v44 = vld [vmem:[#allocation61_spill] sm:$0xff]  ;;  %v9228_v20 = vadd.f32 %v12463_v42, %v1700_v30  ;;  %v9231_v40 = vadd.f32 %v12464_v41, %v1720_v16  ;;  %v12465_v17 = vld [vmem:[#allocation64_spill] sm:$0xff]  ;;  %v9240_v3 = vpop.permute.xlu0 %3625  ;;  %v12469_v63 = vld [vmem:[#allocation67_spill] sm:$0xff]  ;;  %v9249_v16 = vadd.f32 %v8742_v34, %v1758_v21 }
 0x402   : > { %v9225_v0 = vadd.f32 %v12462_v44, %v1718_v54  ;;  %v9234_v60 = vadd.f32 %v12465_v17, %v1719_v10  ;;  %v9238_v36 = vpop.permute.xlu1 %3627  ;;  %12467 = vst [vmem:[#allocation95_spill] sm:$0xff] %v9240_v3  ;;  %v12468_v56 = vld [vmem:[#allocation348_spill] sm:$0xff]  ;;  %v9246_v30 = vadd.f32 %v12469_v63, %v1738_v14  ;;  %v9252_v10 = vadd.f32 %v8755_v4, %v1740_v31  ;;  %v12470_v34 = vld [vmem:[#allocation177_spill] sm:$0xff]  ;;  %v12471_v4 = vld [vmem:[#allocation178_spill] sm:$0xff] }
 0x403   : > { %12466 = vst [vmem:[#allocation94_spill] sm:$0xff] %v9238_v36  ;;  %v9243_v54 = vadd.f32 %v12468_v56, %v1739_v9  ;;  %v9257_v49 = vadd.f32 %v8758_v55, %v1760_v37  ;;  %4077 = vrot.lane.b32.xlu1 %v4069_v12, %s5819_s9  ;;  %v4155_v9 = vmul.f32 %v9218_v2, %v4153_v22  ;;  %v4173_v37 = vstv %s9181_s5  ;;  %v9276_v12 = vld [vmem:[%s5938_s25 + $0x59] sm:$0x3]  ;;  %v12473_v42 = vld [vmem:[#allocation180_spill] sm:$0xff]  ;;  %v12474_v41 = vld [vmem:[#allocation181_spill] sm:$0xff]  ;;  %s9609_s5 = sld [smem:[#allocation2 + $0x39]] }
 0x404   : > { %4075 = vrot.lane.b32.xlu0 %v4068_v38, %s5819_s9  ;;  %v4154_v14 = vmul.f32 %v9222_v23, %v4153_v22  ;;  %v9265_v21 = vadd.f32 %v12470_v34, %v9083_v53  ;;  %v9269_v31 = vadd.f32 %v12471_v4, %v9090_v11  ;;  %v9272_v55 = vadd.f32 %v8772_v26, %v1759_v5  ;;  %v12472_v38 = vld [vmem:[#allocation179_spill] sm:$0xff]  ;;  %v12477_v56 = vld [vmem:[#allocation182_spill] sm:$0xff]  ;;  %v12486_v3 = vld [vmem:[#allocation189_spill] sm:$0xff] }
 0x405   : > { %v9282_v44 = vadd.f32 %v12472_v38, %v9104_v57  ;;  %v9286_v53 = vadd.f32 %v12473_v42, %v9118_v29  ;;  %v9290_v11 = vadd.f32 %v12474_v41, %v9137_v50  ;;  %v2540_v26 = vstv %s9191_s6  ;;  %v9295_v17 = vpop.permute.xlu0 %3629  ;;  %v12478_v57 = vld [vmem:[#allocation183_spill] sm:$0xff]  ;;  %v12479_v29 = vld [vmem:[#allocation184_spill] sm:$0xff]  ;;  %v12480_v38 = vld [vmem:[#allocation185_spill] sm:$0xff]  ;;  %s9611_s6 = sld [smem:[#allocation2 + $0x11b]] }
 0x406   : > { %v9293_v5 = vpop.permute.xlu1 %3645  ;;  %12476 = vst [vmem:[#allocation97_spill] sm:$0xff] %v9295_v17  ;;  %v9299_v63 = vadd.f32 %v12477_v56, %v9140_v61  ;;  %v9303_v34 = vadd.f32 %v12478_v57, %v9153_v46  ;;  %v9307_v4 = vadd.f32 %v12479_v29, %v9156_v62  ;;  %v2548_v50 = vstv %s9205_s7  ;;  %v12481_v62 = vld [vmem:[#allocation186_spill] sm:$0xff]  ;;  %v12482_v56 = vld [vmem:[#allocation187_spill] sm:$0xff]  ;;  %s9630_s7 = sld [smem:[#allocation2 + $0x5d]] }
 0x407   : > { %12475 = vst [vmem:[#allocation96_spill] sm:$0xff] %v9293_v5  ;;  %v9314_v42 = vadd.f32 %v12480_v38, %v9159_v7  ;;  %4162 = vrot.lane.b32.xlu1 %v4155_v9, %s5818_s27  ;;  %v4174_v61 = vmul.f32 %v9222_v23, %v4173_v37  ;;  %v4156_v46 = vmul.f32 %v9276_v12, %v4153_v22  ;;  %v9329_v29 = vld [vmem:[%s5938_s25 + $0x38] sm:$0xff]  ;;  %v9335_v9 = vld [vmem:[%s5938_s25 + $0x30] sm:$0xff]  ;;  %v9350_v38 = vld [vmem:[%s5938_s25 + $0x40] sm:$0x3] }
 0x408   : > { %4160 = vrot.lane.b32.xlu0 %v4154_v14, %s5818_s27  ;;  %v9322_v41 = vadd.f32 %v12481_v62, %v9165_v32  ;;  %v9326_v57 = vadd.f32 %v12482_v56, %v9176_v13  ;;  %v9332_v7 = vmul.f32 %v9329_v29, %v2540_v26  ;;  %v9338_v14 = vmul.f32 %v9335_v9, %v2540_v26  ;;  %v12483_v32 = vld [vmem:[#allocation188_spill] sm:$0xff] }
 0x409   : > { %v9344_v22 = vadd.f32 %v12483_v32, %v9179_v25  ;;  %v9347_v13 = vmul.f32 %v9335_v9, %v2548_v50  ;;  %v9353_v62 = vmul.f32 %v9350_v38, %v2540_v26  ;;  %v2556_v56 = vstv %s9236_s8  ;;  %v9360_v5 = vpop.permute.xlu0 %3647  ;;  %v12487_v25 = vld [vmem:[#allocation190_spill] sm:$0xff]  ;;  %s9635_s8 = sld [smem:[#allocation2 + $0x81]] }
 0x40a   : > { %v9358_v17 = vpop.permute.xlu1 %3649  ;;  %12485 = vst [vmem:[#allocation99_spill] sm:$0xff] %v9360_v5  ;;  %v9363_v36 = vadd.f32 %v12486_v3, %v1802_v58  ;;  %v9366_v32 = vadd.f32 %v12487_v25, %v1801_v18  ;;  %v9369_v6 = vmul.f32 %v9350_v38, %v2548_v50  ;;  %v2564_v48 = vstv %s9254_s10  ;;  %v12489_v18 = vld [vmem:[#allocation191_spill] sm:$0xff]  ;;  %v12490_v5 = vld [vmem:[#allocation192_spill] sm:$0xff]  ;;  %s9685_s10 = sld [smem:[#allocation2 + $0xa5]] }
 0x40b   : > { %12484 = vst [vmem:[#allocation98_spill] sm:$0xff] %v9358_v17  ;;  %v9375_v26 = vmul.f32 %v9329_v29, %v2548_v50  ;;  %4180 = vrot.lane.b32.xlu1 %v4174_v61, %s5818_s27  ;;  %v4176_v58 = vmul.f32 %v9276_v12, %v4173_v37  ;;  %v4175_v3 = vmul.f32 %v9218_v2, %v4173_v37  ;;  %v12492_v61 = vld [vmem:[#allocation193_spill] sm:$0xff] }
 0x40c   : > { %4164 = vrot.lane.b32.xlu0 %v4156_v46, %s5818_s27  ;;  %v9383_v25 = vadd.f32 %v12489_v18, %v9225_v0  ;;  %v9387_v17 = vadd.f32 %v12490_v5, %v9228_v20  ;;  %v9390_v50 = vmul.f32 %v9329_v29, %v2556_v56  ;;  %v9395_v46 = vadd.f32 %v12492_v61, %v9231_v40  ;;  %v12498_v18 = vld [vmem:[#allocation195_spill] sm:$0xff]  ;;  %v12499_v40 = vld [vmem:[#allocation196_spill] sm:$0xff] }
 0x40d   : > { %12488 = vst [vmem:[#allocation100_spill] sm:$0xff] %v9375_v26  ;;  %v9399_v45 = vadd.f32 %v12493_v35, %v9234_v60  ;;  %v9402_v37 = vmul.f32 %v9335_v9, %v2556_v56  ;;  %v9405_v0 = vmul.f32 %v9335_v9, %v2564_v48  ;;  %v9409_v5 = vpop.permute.xlu0 %3665  ;;  %v9413_v28 = vadd.f32 %v12498_v18, %v9243_v54  ;;  %v12502_v18 = vld [vmem:[#allocation197_spill] sm:$0xff] }
 0x40e   : > { %12491 = vst [vmem:[#allocation101_spill] sm:$0xff] %v9390_v50  ;;  %v9407_v20 = vpop.permute.xlu1 %3667  ;;  %12497 = vst [vmem:[#allocation103_spill] sm:$0xff] %v9409_v5  ;;  %v9417_v61 = vadd.f32 %v12499_v40, %v9246_v30  ;;  %v9420_v35 = vmul.f32 %v9350_v38, %v2556_v56  ;;  %v2572_v60 = vstv %s9310_s17  ;;  %v4195_v54 = vmul.f32 %v9218_v2, %v4193_v59  ;;  %v12503_v40 = vld [vmem:[#allocation198_spill] sm:$0xff]  ;;  %s9721_s17 = sld [smem:[#allocation2 + $0xc9]] }
 0x40f   : > { %12494 = vst [vmem:[#allocation102_spill] sm:$0xff] %v9402_v37  ;;  %12495 = vst [vmem:[#allocation105_spill] sm:$0xff] %v9405_v0  ;;  %v9426_v0 = vmul.f32 %v9350_v38, %v2564_v48  ;;  %4184 = vrot.lane.b32.xlu1 %v4176_v58, %s5818_s27  ;;  %v4194_v30 = vmul.f32 %v9222_v23, %v4193_v59  ;;  %v9434_v56 = vadd.f32 %v12502_v18, %v9249_v16  ;;  %v12505_v58 = vld [vmem:[#allocation201_spill] sm:$0xff] }
 0x410   : > { %12496 = vst [vmem:[#allocation106_spill] sm:$0xff] %v9407_v20  ;;  %12500 = vst [vmem:[#allocation104_spill] sm:$0xff] %v9420_v35  ;;  %4182 = vrot.lane.b32.xlu0 %v4175_v3, %s5818_s27  ;;  %v9438_v5 = vadd.f32 %v12503_v40, %v9252_v10  ;;  %v9441_v20 = vmul.f32 %v9329_v29, %v2564_v48  ;;  %v2006_v3 = vadd.f32 %v12505_v58, %v9265_v21  ;;  %v12506_v35 = vld [vmem:[#allocation202_spill] sm:$0xff]  ;;  %v12509_v48 = vld [vmem:[#allocation199_spill] sm:$0xff] }
 0x411   : > { %12501 = vst [vmem:[#allocation107_spill] sm:$0xff] %v9426_v0  ;;  %v4213_v0 = vstv %s9340_s19  ;;  %v2005_v37 = vadd.f32 %v12506_v35, %v9269_v31  ;;  %v9451_v50 = vmul.f32 %v9329_v29, %v2572_v60  ;;  %v2580_v16 = vstv %s9356_s20  ;;  %v9456_v10 = vpop.permute.xlu0 %3669  ;;  %v12511_v35 = vld [vmem:[#allocation203_spill] sm:$0xff]  ;;  %s9764_s19 = sld [smem:[#allocation2 + $0x44]]  ;;  %s9778_s20 = sld [smem:[#allocation2 + $0xed]] }
 0x412   : > { %12504 = vst [vmem:[#allocation108_spill] sm:$0xff] %v9441_v20  ;;  %v9454_v18 = vpop.permute.xlu1 %3685  ;;  %12508 = vst [vmem:[#allocation110_spill] sm:$0xff] %v9456_v10  ;;  %v9460_v40 = vadd.f32 %v12509_v48, %v9257_v49  ;;  %v12510_v20 = vld [vmem:[#allocation200_spill] sm:$0xff]  ;;  %v9467_v21 = vmul.f32 %v9335_v9, %v2572_v60  ;;  %v2588_v31 = vstv %s9372_s24  ;;  %v2025_v58 = vadd.f32 %v12511_v35, %v9282_v44  ;;  %s9802_s24 = sld [smem:[#allocation2 + $0x111]] }
 0x413   : > { %12507 = vst [vmem:[#allocation109_spill] sm:$0xff] %v9454_v18  ;;  %v9464_v26 = vadd.f32 %v12510_v20, %v9272_v55  ;;  %4202 = vrot.lane.b32.xlu1 %v4195_v54, %s5818_s27  ;;  %v4214_v10 = vmul.f32 %v9222_v23, %v4213_v0  ;;  %v4196_v49 = vmul.f32 %v9276_v12, %v4193_v59  ;;  %v12512_v48 = vld [vmem:[#allocation204_spill] sm:$0xff] }
 0x414   : > { %4200 = vrot.lane.b32.xlu0 %v4194_v30, %s5818_s27  ;;  %v2007_v55 = vadd.f32 %v12512_v48, %v9286_v53  ;;  %v9479_v20 = vmul.f32 %v9335_v9, %v2580_v16  ;;  %v9482_v18 = vmul.f32 %v9350_v38, %v2572_v60  ;;  %v9485_v44 = vmul.f32 %v9350_v38, %v2580_v16  ;;  %v12519_v48 = vld [vmem:[#allocation205_spill] sm:$0xff] }
 0x415   : > { %v9490_v54 = vadd.f32 %v8927_v24, %v2006_v3  ;;  %v9493_v30 = vadd.f32 %v8933_v51, %v2005_v37  ;;  %v9496_v59 = vmul.f32 %v9329_v29, %v2580_v16  ;;  %v9499_v53 = vmul.f32 %v9329_v29, %v2588_v31  ;;  %v9503_v35 = vpop.permute.xlu0 %3687  ;;  %v12520_v24 = vld [vmem:[#allocation206_spill] sm:$0xff] }
 0x416   : > { %12513 = vst [vmem:[#allocation111_spill] sm:$0xff] %v9482_v18  ;;  %12514 = vst [vmem:[#allocation112_spill] sm:$0xff] %v9485_v44  ;;  %v9501_v60 = vpop.permute.xlu1 %3689  ;;  %v2027_v44 = vadd.f32 %v12519_v48, %v9290_v11  ;;  %v2026_v3 = vadd.f32 %v12520_v24, %v9299_v63  ;;  %v9510_v51 = vmul.f32 %v9335_v9, %v2588_v31  ;;  %v2596_v37 = vstv %s9423_s26  ;;  %v12522_v11 = vld [vmem:[#allocation207_spill] sm:$0xff]  ;;  %v12523_v63 = vld [vmem:[#allocation208_spill] sm:$0xff]  ;;  %s9864_s26 = sld [smem:[#allocation2 + $0x68]] }
 0x417   : > { %12515 = vst [vmem:[#allocation113_spill] sm:$0xff] %v9496_v59  ;;  %12516 = vst [vmem:[#allocation26_spill] sm:$0xff] %v9499_v53  ;;  %v9514_v16 = vadd.f32 %v8950_v33, %v2025_v58  ;;  %4220 = vrot.lane.b32.xlu1 %v4214_v10, %s5818_s27  ;;  %v2046_v48 = vadd.f32 %v12522_v11, %v9303_v34  ;;  %v2045_v24 = vadd.f32 %v12523_v63, %v9307_v4  ;;  %v12524_v33 = vld [vmem:[#allocation209_spill] sm:$0xff]  ;;  %v12525_v10 = vld [vmem:[#allocation210_spill] sm:$0xff] }
 0x418   : > { %12517 = vst [vmem:[#allocation114_spill] sm:$0xff] %v9501_v60  ;;  %12518 = vst [vmem:[#allocation115_spill] sm:$0xff] %v9503_v35  ;;  %4204 = vrot.lane.b32.xlu0 %v4196_v49, %s5818_s27  ;;  %v4216_v60 = vmul.f32 %v9276_v12, %v4213_v0  ;;  %v4215_v35 = vmul.f32 %v9218_v2, %v4213_v0  ;;  %v4233_v53 = vstv %s9444_s28  ;;  %v12526_v59 = vld [vmem:[#allocation211_spill] sm:$0xff]  ;;  %v4253_v11 = vstv %s9487_s29  ;;  %v12534_v63 = vld [vmem:[#allocation353_spill] sm:$0xff]  ;;  %s9908_s28 = sld [smem:[#allocation2 + $0x8c]]  ;;  %s9977_s29 = sld [smem:[#allocation2 + $0x18]] }
 0x419   : > { %12521 = vst [vmem:[#allocation116_spill] sm:$0xff] %v9510_v51  ;;  %v9525_v51 = vadd.f32 %v8956_v43, %v2007_v55  ;;  %v2065_v58 = vadd.f32 %v12524_v33, %v9314_v42  ;;  %v2047_v49 = vadd.f32 %v12525_v10, %v9322_v41  ;;  %v2067_v18 = vadd.f32 %v12526_v59, %v9326_v57  ;;  %v9539_v4 = vpop.permute.xlu0 %3773  ;;  %v12530_v59 = vld [vmem:[#allocation78_spill] sm:$0xff]  ;;  %v12535_v10 = vld [vmem:[#allocation356_spill] sm:$0xff] }
 0x41a   : > { %v9535_v0 = vmul.f32 %v9335_v9, %v2596_v37  ;;  %v9537_v34 = vpop.permute.xlu1 %3775  ;;  %12528 = vst [vmem:[#allocation29_spill] sm:$0xff] %v9539_v4  ;;  %v9542_v43 = vadd.f32 %v8963_v1, %v2027_v44  ;;  %v9545_v55 = vadd.f32 %v8966_v27, %v2026_v3  ;;  %v9548_v42 = vmul.f32 %v9350_v38, %v2588_v31  ;;  %v12529_v27 = vld [vmem:[#allocation212_spill] sm:$0xff]  ;;  %v12531_v3 = vld [vmem:[#allocation79_spill] sm:$0xff] }
 0x41b   : > { %12527 = vst [vmem:[#allocation27_spill] sm:$0xff] %v9537_v34  ;;  %v9551_v41 = vmul.f32 %v9350_v38, %v2596_v37  ;;  %v9554_v57 = vmul.f32 %v9329_v29, %v2596_v37  ;;  %4224 = vrot.lane.b32.xlu1 %v4216_v60, %s5818_s27  ;;  %v4235_v9 = vmul.f32 %v9218_v2, %v4233_v53  ;;  %v12532_v29 = vld [vmem:[#allocation213_spill] sm:$0xff] }
 0x41c   : > { %4222 = vrot.lane.b32.xlu0 %v4215_v35, %s5818_s27  ;;  %v4234_v1 = vmul.f32 %v9222_v23, %v4233_v53  ;;  %v2066_v44 = vadd.f32 %v12529_v27, %v9344_v22  ;;  %v9563_v31 = vadd.f32 %v12530_v59, %v2046_v48  ;;  %v9566_v38 = vadd.f32 %v12531_v3, %v2045_v24  ;;  %v12533_v35 = vld [vmem:[#allocation80_spill] sm:$0xff]  ;;  %v12538_v24 = vld [vmem:[#allocation214_spill] sm:$0xff]  ;;  %v12539_v3 = vld [vmem:[#allocation215_spill] sm:$0xff] }
 0x41d   : > { %v2086_v60 = vadd.f32 %v12532_v29, %v9363_v36  ;;  %v9574_v37 = vadd.f32 %v12533_v35, %v2065_v58  ;;  %v9577_v33 = vadd.f32 %v12534_v63, %v2047_v49  ;;  %v9580_v22 = vadd.f32 %v12535_v10, %v2067_v18  ;;  %v9584_v27 = vpop.permute.xlu0 %3777  ;;  %v12540_v36 = vld [vmem:[#allocation216_spill] sm:$0xff]  ;;  %v12541_v29 = vld [vmem:[#allocation217_spill] sm:$0xff]  ;;  %v12542_v18 = vld [vmem:[#allocation218_spill] sm:$0xff] }
 0x41e   : > { %v9582_v48 = vpop.permute.xlu1 %3793  ;;  %12537 = vst [vmem:[#allocation32_spill] sm:$0xff] %v9584_v27  ;;  %v2085_v59 = vadd.f32 %v12538_v24, %v9366_v32  ;;  %v2105_v4 = vadd.f32 %v12539_v3, %v9383_v25  ;;  %v2087_v58 = vadd.f32 %v12540_v36, %v9387_v17  ;;  %v2107_v49 = vadd.f32 %v12541_v29, %v9395_v46  ;;  %v12543_v25 = vld [vmem:[#allocation219_spill] sm:$0xff]  ;;  %v12544_v17 = vld [vmem:[#allocation220_spill] sm:$0xff]  ;;  %v12545_v46 = vld [vmem:[#allocation221_spill] sm:$0xff] }
 0x41f   : > { %12536 = vst [vmem:[#allocation31_spill] sm:$0xff] %v9582_v48  ;;  %v2106_v35 = vadd.f32 %v12542_v18, %v9399_v45  ;;  %4242 = vrot.lane.b32.xlu1 %v4235_v9, %s5818_s27  ;;  %v4254_v32 = vmul.f32 %v9222_v23, %v4253_v11  ;;  %v4236_v63 = vmul.f32 %v9276_v12, %v4233_v53  ;;  %v12546_v36 = vld [vmem:[#allocation360_spill] sm:$0xff]  ;;  %v12547_v45 = vld [vmem:[#allocation222_spill] sm:$0xff]  ;;  %v12548_v53 = vld [vmem:[#allocation223_spill] sm:$0xff]  ;;  %v2959_v48 = vstv %s9685_s10  ;;  %s10096_s10 = sld [smem:[#allocation2 + $0xcc]] }
 0x420   : > { %4240 = vrot.lane.b32.xlu0 %v4234_v1, %s5818_s27  ;;  %v2126_v10 = vadd.f32 %v12543_v25, %v9413_v28  ;;  %v2125_v24 = vadd.f32 %v12544_v17, %v9417_v61  ;;  %v2145_v3 = vadd.f32 %v12545_v46, %v9434_v56  ;;  %v2181_v29 = vadd.f32 %v12546_v36, %v2066_v44  ;;  %v12549_v28 = vld [vmem:[#allocation224_spill] sm:$0xff]  ;;  %v12550_v25 = vld [vmem:[#allocation361_spill] sm:$0xff] }
 0x421   : > { %v2127_v9 = vadd.f32 %v12547_v45, %v9438_v5  ;;  %v2147_v1 = vadd.f32 %v12548_v53, %v9460_v40  ;;  %v2146_v18 = vadd.f32 %v12549_v28, %v9464_v26  ;;  %v2189_v61 = vadd.f32 %v12550_v25, %v2086_v60  ;;  %v9622_v56 = vpop.permute.xlu0 %3795  ;;  %v12553_v44 = vld [vmem:[#allocation81_spill] sm:$0xff]  ;;  %v12554_v5 = vld [vmem:[#allocation84_spill] sm:$0xff]  ;;  %v12565_v25 = vld [vmem:[#allocation230_spill] sm:$0xff] }
 0x422   : > { %v9620_v17 = vpop.permute.xlu1 %3797  ;;  %12552 = vst [vmem:[#allocation34_spill] sm:$0xff] %v9622_v56  ;;  %v2188_v46 = vadd.f32 %v12553_v44, %v2085_v59  ;;  %v2196_v36 = vadd.f32 %v9064_v8, %v2105_v4  ;;  %v2190_v27 = vadd.f32 %v9074_v47, %v2087_v58  ;;  %v9628_v45 = vadd.f32 %v12554_v5, %v2107_v49  ;;  %v12555_v40 = vld [vmem:[#allocation85_spill] sm:$0xff]  ;;  %v12556_v47 = vld [vmem:[#allocation86_spill] sm:$0xff]  ;;  %v12557_v59 = vld [vmem:[#allocation87_spill] sm:$0xff] }
 0x423   : > { %12551 = vst [vmem:[#allocation12_spill] sm:$0xff] %v9620_v17  ;;  %v9633_v26 = vadd.f32 %v12555_v40, %v2106_v35  ;;  %4260 = vrot.lane.b32.xlu1 %v4254_v32, %s5818_s27  ;;  %v4256_v60 = vmul.f32 %v9276_v12, %v4253_v11  ;;  %v4255_v8 = vmul.f32 %v9218_v2, %v4253_v11  ;;  %v4273_v35 = vstv %s9569_s30  ;;  %v12558_v53 = vld [vmem:[#allocation225_spill] sm:$0xff]  ;;  %v12566_v44 = vld [vmem:[#allocation231_spill] sm:$0xff]  ;;  %s9989_s30 = sld [smem:[#allocation2 + $0x3c]] }
 0x424   : > { %4244 = vrot.lane.b32.xlu0 %v4236_v63, %s5818_s27  ;;  %v9642_v4 = vadd.f32 %v12556_v47, %v2126_v10  ;;  %v9645_v58 = vadd.f32 %v12557_v59, %v2125_v24  ;;  %v9648_v49 = vadd.f32 %v9131_v52, %v2145_v3  ;;  %v9653_v32 = vadd.f32 %v12558_v53, %v9490_v54  ;;  %v12561_v24 = vld [vmem:[#allocation226_spill] sm:$0xff]  ;;  %v12562_v54 = vld [vmem:[#allocation227_spill] sm:$0xff]  ;;  %v12568_v47 = vld [vmem:[#allocation233_spill] sm:$0xff] }
 0x425   : > { %v9656_v63 = vadd.f32 %v9143_v15, %v2127_v9  ;;  %v9659_v28 = vadd.f32 %v9146_v19, %v2147_v1  ;;  %v9662_v11 = vadd.f32 %v9162_v39, %v2146_v18  ;;  %v9666_v52 = vpop.permute.xlu0 %3813  ;;  %v9670_v3 = vadd.f32 %v12561_v24, %v9493_v30  ;;  %v12563_v19 = vld [vmem:[#allocation228_spill] sm:$0xff]  ;;  %v12564_v1 = vld [vmem:[#allocation229_spill] sm:$0xff] }
 0x426   : > { %v9664_v10 = vpop.permute.xlu1 %3815  ;;  %12560 = vst [vmem:[#allocation13_spill] sm:$0xff] %v9666_v52  ;;  %v9674_v15 = vadd.f32 %v12562_v54, %v9514_v16  ;;  %v9678_v9 = vadd.f32 %v12563_v19, %v9525_v51  ;;  %v2927_v39 = vstv %s9594_s4  ;;  %v9683_v18 = vadd.f32 %v12564_v1, %v9542_v43  ;;  %v12572_v19 = vld [vmem:[#allocation235_spill] sm:$0xff]  ;;  %v12573_v1 = vld [vmem:[#allocation236_spill] sm:$0xff]  ;;  %v12582_v17 = vld [vmem:[#allocation241_spill] sm:$0xff]  ;;  %s9992_s4 = sld [smem:[#allocation2 + $0xb0]] }
 0x427   : > { %12559 = vst [vmem:[#allocation117_spill] sm:$0xff] %v9664_v10  ;;  %4264 = vrot.lane.b32.xlu1 %v4256_v60, %s5818_s27  ;;  %v4275_v30 = vmul.f32 %v9218_v2, %v4273_v35  ;;  %v4274_v16 = vmul.f32 %v9222_v23, %v4273_v35  ;;  %v9693_v51 = vadd.f32 %v12565_v25, %v9545_v55  ;;  %v2935_v43 = vstv %s9609_s5  ;;  %v12567_v60 = vld [vmem:[#allocation232_spill] sm:$0xff]  ;;  %v12569_v55 = vld [vmem:[#allocation234_spill] sm:$0xff]  ;;  %v9756_v52 = vld [vmem:[%s5938_s25 + $0x41] sm:$0x3]  ;;  %s10012_s5 = sld [smem:[#allocation2 + $0x60]] }
 0x428   : > { %4262 = vrot.lane.b32.xlu0 %v4255_v8, %s5818_s27  ;;  %v9697_v5 = vadd.f32 %v12566_v44, %v9563_v31  ;;  %v4293_v40 = vstv %s9611_s6  ;;  %v9705_v8 = vadd.f32 %v12567_v60, %v9566_v38  ;;  %v9709_v59 = vadd.f32 %v12568_v47, %v9574_v37  ;;  %v9716_v31 = vld [vmem:[%s5938_s25 + $0x39] sm:$0xff]  ;;  %s10024_s6 = sld [smem:[#allocation2 + $0xd4]] }
 0x429   : > { %v9713_v53 = vadd.f32 %v12569_v55, %v9577_v33  ;;  %v9719_v24 = vmul.f32 %v9716_v31, %v2927_v39  ;;  %v9725_v38 = vpop.permute.xlu0 %3817  ;;  %v9729_v37 = vadd.f32 %v12572_v19, %v9580_v22  ;;  %v9732_v25 = vadd.f32 %v12573_v1, %v2181_v29  ;;  %v9735_v33 = vld [vmem:[%s5938_s25 + $0x31] sm:$0xff] }
 0x42a   : > { %v9723_v54 = vpop.permute.xlu1 %3833  ;;  %12571 = vst [vmem:[#allocation36_spill] sm:$0xff] %v9725_v38  ;;  %v9738_v44 = vmul.f32 %v9735_v33, %v2927_v39  ;;  %v2943_v60 = vstv %s9630_s7  ;;  %v9742_v47 = vmul.f32 %v9735_v33, %v2935_v43  ;;  %v2951_v55 = vstv %s9635_s8  ;;  %v12574_v29 = vld [vmem:[#allocation237_spill] sm:$0xff]  ;;  %v12575_v38 = vld [vmem:[#allocation238_spill] sm:$0xff]  ;;  %s10038_s7 = sld [smem:[#allocation2 + $0x84]]  ;;  %s10064_s8 = sld [smem:[#allocation2 + $0xa8]] }
 0x42b   : > { %12570 = vst [vmem:[#allocation35_spill] sm:$0xff] %v9723_v54  ;;  %4282 = vrot.lane.b32.xlu1 %v4275_v30, %s5818_s27  ;;  %v4294_v22 = vmul.f32 %v9222_v23, %v4293_v40  ;;  %v4276_v19 = vmul.f32 %v9276_v12, %v4273_v35  ;;  %v9750_v1 = vadd.f32 %v12574_v29, %v2189_v61  ;;  %v12577_v35 = vld [vmem:[#allocation240_spill] sm:$0xff] }
 0x42c   : > { %4280 = vrot.lane.b32.xlu0 %v4274_v16, %s5818_s27  ;;  %v9753_v54 = vadd.f32 %v12575_v38, %v2188_v46  ;;  %v9759_v10 = vmul.f32 %v9756_v52, %v2927_v39  ;;  %v9762_v30 = vmul.f32 %v9756_v52, %v2935_v43  ;;  %v12576_v16 = vld [vmem:[#allocation239_spill] sm:$0xff]  ;;  %v9770_v61 = vadd.f32 %v12577_v35, %v2190_v27  ;;  %v12583_v27 = vld [vmem:[#allocation242_spill] sm:$0xff] }
 0x42d   : > { %v9767_v56 = vadd.f32 %v12576_v16, %v2196_v36  ;;  %v9773_v46 = vmul.f32 %v9716_v31, %v2935_v43  ;;  %v9776_v38 = vmul.f32 %v9716_v31, %v2943_v60  ;;  %v9782_v29 = vpop.permute.xlu0 %3835  ;;  %v9786_v36 = vadd.f32 %v12582_v17, %v9628_v45 }
 0x42e   : > { %v9780_v39 = vpop.permute.xlu1 %3837  ;;  %12581 = vst [vmem:[#allocation121_spill] sm:$0xff] %v9782_v29  ;;  %v9790_v16 = vadd.f32 %v12583_v27, %v9633_v26  ;;  %v9793_v43 = vmul.f32 %v9735_v33, %v2943_v60  ;;  %v9796_v35 = vmul.f32 %v9735_v33, %v2951_v55  ;;  %v4296_v17 = vmul.f32 %v9276_v12, %v4293_v40  ;;  %v12587_v26 = vld [vmem:[#allocation243_spill] sm:$0xff]  ;;  %v12588_v29 = vld [vmem:[#allocation244_spill] sm:$0xff] }
 0x42f   : > { %12578 = vst [vmem:[#allocation118_spill] sm:$0xff] %v9773_v46  ;;  %12579 = vst [vmem:[#allocation119_spill] sm:$0xff] %v9776_v38  ;;  %4300 = vrot.lane.b32.xlu1 %v4294_v22, %s5818_s27  ;;  %v4295_v45 = vmul.f32 %v9218_v2, %v4293_v40  ;;  %v9810_v27 = vadd.f32 %v12587_v26, %v9642_v4  ;;  %v9814_v34 = vadd.f32 %v12588_v29, %v9645_v58  ;;  %v12590_v22 = vld [vmem:[#allocation245_spill] sm:$0xff]  ;;  %v12596_v38 = vld [vmem:[#allocation250_spill] sm:$0xff] }
 0x430   : > { %12580 = vst [vmem:[#allocation120_spill] sm:$0xff] %v9780_v39  ;;  %12584 = vst [vmem:[#allocation122_spill] sm:$0xff] %v9793_v43  ;;  %v9799_v39 = vmul.f32 %v9756_v52, %v2943_v60  ;;  %4284 = vrot.lane.b32.xlu0 %v4276_v19, %s5818_s27  ;;  %v9817_v60 = vmul.f32 %v9756_v52, %v2951_v55  ;;  %v12591_v19 = vld [vmem:[#allocation246_spill] sm:$0xff]  ;;  %v9829_v40 = vmul.f32 %v9716_v31, %v2951_v55  ;;  %v12595_v29 = vld [vmem:[#allocation249_spill] sm:$0xff] }
 0x431   : > { %12585 = vst [vmem:[#allocation123_spill] sm:$0xff] %v9796_v35  ;;  %v9822_v35 = vadd.f32 %v12590_v22, %v9648_v49  ;;  %v9826_v43 = vadd.f32 %v12591_v19, %v9656_v63  ;;  %v2967_v4 = vstv %s9721_s17  ;;  %v9834_v58 = vpop.permute.xlu0 %3853  ;;  %v2392_v49 = vadd.f32 %v12596_v38, %v9670_v3  ;;  %v12599_v55 = vld [vmem:[#allocation247_spill] sm:$0xff]  ;;  %v12600_v3 = vld [vmem:[#allocation248_spill] sm:$0xff]  ;;  %s10144_s17 = sld [smem:[#allocation2 + $0xf8]] }
 0x432   : > { %12586 = vst [vmem:[#allocation124_spill] sm:$0xff] %v9799_v39  ;;  %12589 = vst [vmem:[#allocation125_spill] sm:$0xff] %v9817_v60  ;;  %v4313_v39 = vstv %s9701_s11  ;;  %v9832_v26 = vpop.permute.xlu1 %3855  ;;  %v2393_v60 = vadd.f32 %v12595_v29, %v9653_v32  ;;  %v9841_v22 = vmul.f32 %v9716_v31, %v2959_v48  ;;  %v9844_v63 = vmul.f32 %v9735_v33, %v2959_v48  ;;  %s10125_s11 = sld [smem:[#allocation2 + $0xf0]] }
 0x433   : > { %12592 = vst [vmem:[#allocation126_spill] sm:$0xff] %v9829_v40  ;;  %12593 = vst [vmem:[#allocation127_spill] sm:$0xff] %v9832_v26  ;;  %v9848_v19 = vadd.f32 %v12599_v55, %v9659_v28  ;;  %4304 = vrot.lane.b32.xlu1 %v4296_v17, %s5818_s27  ;;  %v4315_v32 = vmul.f32 %v9218_v2, %v4313_v39  ;;  %v4314_v29 = vmul.f32 %v9222_v23, %v4313_v39  ;;  %v12603_v17 = vld [vmem:[#allocation252_spill] sm:$0xff] }
 0x434   : > { %12594 = vst [vmem:[#allocation128_spill] sm:$0xff] %v9834_v58  ;;  %12597 = vst [vmem:[#allocation39_spill] sm:$0xff] %v9841_v22  ;;  %4302 = vrot.lane.b32.xlu0 %v4295_v45, %s5818_s27  ;;  %v9856_v38 = vadd.f32 %v12600_v3, %v9662_v11  ;;  %v12601_v58 = vld [vmem:[#allocation251_spill] sm:$0xff]  ;;  %v4333_v28 = vstv %s9764_s19  ;;  %v2394_v45 = vadd.f32 %v12603_v17, %v9678_v9  ;;  %v2975_v11 = vstv %s9778_s20  ;;  %v12608_v9 = vld [vmem:[#allocation254_spill] sm:$0xff]  ;;  %s10194_s19 = sld [smem:[#allocation2 + $0x114]] }
 0x435   : > { %12598 = vst [vmem:[#allocation16_spill] sm:$0xff] %v9844_v63  ;;  %v2412_v26 = vadd.f32 %v12601_v58, %v9674_v15  ;;  %v9861_v63 = vmul.f32 %v9735_v33, %v2967_v4  ;;  %v9869_v55 = vmul.f32 %v9756_v52, %v2959_v48  ;;  %v9872_v22 = vmul.f32 %v9756_v52, %v2967_v4  ;;  %v9877_v40 = vpop.permute.xlu0 %3857  ;;  %v12607_v15 = vld [vmem:[#allocation253_spill] sm:$0xff]  ;;  %s10196_s20 = sld [smem:[#allocation2 + $0x11c]] }
 0x436   : > { %v9875_v3 = vpop.permute.xlu1 %3873  ;;  %12606 = vst [vmem:[#allocation44_spill] sm:$0xff] %v9877_v40  ;;  %v2414_v58 = vadd.f32 %v12607_v15, %v9683_v18  ;;  %v9885_v46 = vadd.f32 %v9338_v14, %v2392_v49  ;;  %v9888_v48 = vmul.f32 %v9716_v31, %v2967_v4  ;;  %v2413_v17 = vadd.f32 %v12608_v9, %v9693_v51  ;;  %v12611_v49 = vld [vmem:[#allocation256_spill] sm:$0xff]  ;;  %v12613_v15 = vld [vmem:[#allocation258_spill] sm:$0xff] }
 0x437   : > { %12602 = vst [vmem:[#allocation40_spill] sm:$0xff] %v9861_v63  ;;  %12604 = vst [vmem:[#allocation18_spill] sm:$0xff] %v9872_v22  ;;  %v9882_v63 = vadd.f32 %v9332_v7, %v2393_v60  ;;  %v2983_v22 = vstv %s9802_s24  ;;  %4322 = vrot.lane.b32.xlu1 %v4315_v32, %s5819_s9  ;;  %v4334_v40 = vmul.f32 %v9222_v23, %v4333_v28  ;;  %v12609_v7 = vld [vmem:[#allocation255_spill] sm:$0xff]  ;;  %s10283_s24 = sld [smem:[#allocation2 + $0x22]] }
 0x438   : > { %12605 = vst [vmem:[#allocation43_spill] sm:$0xff] %v9875_v3  ;;  %4320 = vrot.lane.b32.xlu0 %v4314_v29, %s5819_s9  ;;  %v4316_v18 = vmul.f32 %v9276_v12, %v4313_v39  ;;  %v2433_v60 = vadd.f32 %v12609_v7, %v9697_v5  ;;  %v9900_v14 = vadd.f32 %v9347_v13, %v2412_v26  ;;  %v12612_v29 = vld [vmem:[#allocation257_spill] sm:$0xff]  ;;  %v12616_v7 = vld [vmem:[#allocation259_spill] sm:$0xff] }
 0x439   : > { %v9903_v4 = vmul.f32 %v9716_v31, %v2975_v11  ;;  %v9906_v51 = vmul.f32 %v9735_v33, %v2975_v11  ;;  %v2432_v32 = vadd.f32 %v12611_v49, %v9705_v8  ;;  %v2452_v39 = vadd.f32 %v12612_v29, %v9709_v59  ;;  %v9921_v9 = vpop.permute.xlu0 %3875 }
 0x43a   : > { %v2434_v5 = vadd.f32 %v12613_v15, %v9713_v53  ;;  %v9917_v13 = vadd.f32 %v9353_v62, %v2394_v45  ;;  %v9919_v26 = vpop.permute.xlu1 %3877  ;;  %12615 = vst [vmem:[#allocation131_spill] sm:$0xff] %v9921_v9  ;;  %v2454_v3 = vadd.f32 %v12616_v7, %v9729_v37  ;;  %v9929_v8 = vmul.f32 %v9735_v33, %v2983_v22  ;;  %v12617_v53 = vld [vmem:[#allocation100_spill] sm:$0xff]  ;;  %v12618_v45 = vld [vmem:[#allocation101_spill] sm:$0xff] }
 0x43b   : > { %12610 = vst [vmem:[#allocation129_spill] sm:$0xff] %v9906_v51  ;;  %12614 = vst [vmem:[#allocation130_spill] sm:$0xff] %v9919_v26  ;;  %v9926_v51 = vadd.f32 %v9369_v6, %v2414_v58  ;;  %v9932_v59 = vmul.f32 %v9756_v52, %v2975_v11  ;;  %v9935_v49 = vadd.f32 %v12617_v53, %v2413_v17  ;;  %4340 = vrot.lane.b32.xlu1 %v4334_v40, %s5819_s9  ;;  %v12619_v17 = vld [vmem:[#allocation260_spill] sm:$0xff]  ;;  %v12620_v40 = vld [vmem:[#allocation102_spill] sm:$0xff] }
 0x43c   : > { %4324 = vrot.lane.b32.xlu0 %v4316_v18, %s5819_s9  ;;  %v4336_v62 = vmul.f32 %v9276_v12, %v4333_v28  ;;  %v4335_v37 = vmul.f32 %v9218_v2, %v4333_v28  ;;  %v9942_v6 = vadd.f32 %v12618_v45, %v2433_v60  ;;  %v9945_v33 = vmul.f32 %v9756_v52, %v2983_v22  ;;  %v12621_v18 = vld [vmem:[#allocation105_spill] sm:$0xff]  ;;  %v12622_v28 = vld [vmem:[#allocation104_spill] sm:$0xff]  ;;  %v12626_v45 = vld [vmem:[#allocation262_spill] sm:$0xff] }
 0x43d   : > { %v9948_v11 = vmul.f32 %v9716_v31, %v2983_v22  ;;  %v4353_v58 = vstv %s9864_s26  ;;  %v2453_v29 = vadd.f32 %v12619_v17, %v9732_v25  ;;  %v9954_v15 = vadd.f32 %v12620_v40, %v2432_v32  ;;  %v9964_v52 = vpop.permute.xlu0 %3893  ;;  %v12625_v31 = vld [vmem:[#allocation261_spill] sm:$0xff]  ;;  %v12627_v32 = vld [vmem:[#allocation263_spill] sm:$0xff]  ;;  %v12640_v9 = vld [vmem:[#allocation108_spill] sm:$0xff]  ;;  %s10326_s26 = sld [smem:[#allocation2 + $0x46]] }
 0x43e   : > { %v9957_v7 = vadd.f32 %v12621_v18, %v2452_v39  ;;  %v9960_v53 = vadd.f32 %v12622_v28, %v2434_v5  ;;  %v9962_v60 = vpop.permute.xlu1 %3895  ;;  %12624 = vst [vmem:[#allocation133_spill] sm:$0xff] %v9964_v52  ;;  %v2473_v22 = vadd.f32 %v12625_v31, %v9750_v1  ;;  %v2472_v25 = vadd.f32 %v12626_v45, %v9753_v54  ;;  %v12628_v40 = vld [vmem:[#allocation107_spill] sm:$0xff]  ;;  %v12629_v5 = vld [vmem:[#allocation264_spill] sm:$0xff]  ;;  %v12630_v54 = vld [vmem:[#allocation265_spill] sm:$0xff] }
 0x43f   : > { %12623 = vst [vmem:[#allocation132_spill] sm:$0xff] %v9962_v60  ;;  %v2492_v17 = vadd.f32 %v12627_v32, %v9767_v56  ;;  %v9973_v39 = vadd.f32 %v12628_v40, %v2454_v3  ;;  %v2474_v18 = vadd.f32 %v12629_v5, %v9770_v61  ;;  %4344 = vrot.lane.b32.xlu1 %v4336_v62, %s5819_s9  ;;  %v12631_v56 = vld [vmem:[#allocation266_spill] sm:$0xff]  ;;  %v12632_v45 = vld [vmem:[#allocation267_spill] sm:$0xff]  ;;  %v4373_v61 = vstv %s9908_s28  ;;  %v12633_v62 = vld [vmem:[#allocation268_spill] sm:$0xff]  ;;  %s10357_s28 = sld [smem:[#allocation2 + $0x1b]] }
 0x440   : > { %4342 = vrot.lane.b32.xlu0 %v4335_v37, %s5819_s9  ;;  %v4355_v1 = vmul.f32 %v9218_v2, %v4353_v58  ;;  %v4354_v28 = vmul.f32 %v9222_v23, %v4353_v58  ;;  %v2494_v31 = vadd.f32 %v12630_v54, %v9786_v36  ;;  %v2493_v3 = vadd.f32 %v12631_v56, %v9790_v16  ;;  %v12634_v40 = vld [vmem:[#allocation269_spill] sm:$0xff]  ;;  %v12635_v52 = vld [vmem:[#allocation270_spill] sm:$0xff]  ;;  %v12636_v54 = vld [vmem:[#allocation271_spill] sm:$0xff] }
 0x441   : > { %v2513_v32 = vadd.f32 %v12632_v45, %v9810_v27  ;;  %v2512_v37 = vadd.f32 %v12633_v62, %v9814_v34  ;;  %v2532_v5 = vadd.f32 %v12634_v40, %v9822_v35  ;;  %v2514_v36 = vadd.f32 %v12635_v52, %v9826_v43  ;;  %v10004_v27 = vpop.permute.xlu0 %3897  ;;  %v12639_v45 = vld [vmem:[#allocation272_spill] sm:$0xff]  ;;  %v12641_v52 = vld [vmem:[#allocation111_spill] sm:$0xff] }
 0x442   : > { %v2534_v16 = vadd.f32 %v12636_v54, %v9848_v19  ;;  %v10002_v56 = vpop.permute.xlu1 %3913  ;;  %12638 = vst [vmem:[#allocation135_spill] sm:$0xff] %v10004_v27  ;;  %v2533_v60 = vadd.f32 %v12639_v45, %v9856_v38  ;;  %v2569_v26 = vadd.f32 %v12640_v9, %v2453_v29  ;;  %v2577_v34 = vadd.f32 %v9451_v50, %v2473_v22  ;;  %v12642_v40 = vld [vmem:[#allocation112_spill] sm:$0xff]  ;;  %v12643_v29 = vld [vmem:[#allocation113_spill] sm:$0xff] }
 0x443   : > { %12637 = vst [vmem:[#allocation134_spill] sm:$0xff] %v10002_v56  ;;  %v2576_v62 = vadd.f32 %v9467_v21, %v2472_v25  ;;  %v2584_v35 = vadd.f32 %v9479_v20, %v2492_v17  ;;  %4362 = vrot.lane.b32.xlu1 %v4355_v1, %s5819_s9  ;;  %v4374_v43 = vmul.f32 %v9222_v23, %v4373_v61  ;;  %v12644_v21 = vld [vmem:[#allocation26_spill] sm:$0xff]  ;;  %v12645_v20 = vld [vmem:[#allocation116_spill] sm:$0xff]  ;;  %v3314_v54 = vstv %s9977_s29  ;;  %s10384_s29 = sld [smem:[#allocation2 + $0x3f]] }
 0x444   : > { %4360 = vrot.lane.b32.xlu0 %v4354_v28, %s5819_s9  ;;  %v4356_v19 = vmul.f32 %v9276_v12, %v4353_v58  ;;  %v2578_v38 = vadd.f32 %v12641_v52, %v2474_v18  ;;  %v2586_v9 = vadd.f32 %v12642_v40, %v2494_v31  ;;  %v2585_v50 = vadd.f32 %v12643_v29, %v2493_v3  ;;  %v12648_v31 = vld [vmem:[#allocation273_spill] sm:$0xff]  ;;  %v12655_v52 = vld [vmem:[#allocation280_spill] sm:$0xff] }
 0x445   : > { %v10022_v22 = vadd.f32 %v12644_v21, %v2513_v32  ;;  %v10027_v25 = vadd.f32 %v12645_v20, %v2512_v37  ;;  %v10030_v17 = vadd.f32 %v9535_v0, %v2532_v5  ;;  %v10033_v58 = vadd.f32 %v9548_v42, %v2514_v36  ;;  %v10042_v28 = vpop.permute.xlu0 %3915  ;;  %v12649_v0 = vld [vmem:[#allocation274_spill] sm:$0xff]  ;;  %v12650_v42 = vld [vmem:[#allocation275_spill] sm:$0xff]  ;;  %v12651_v5 = vld [vmem:[#allocation276_spill] sm:$0xff] }
 0x446   : > { %v10036_v18 = vadd.f32 %v9551_v41, %v2534_v16  ;;  %v10040_v1 = vpop.permute.xlu1 %3917  ;;  %12647 = vst [vmem:[#allocation137_spill] sm:$0xff] %v10042_v28  ;;  %v10046_v3 = vadd.f32 %v12648_v31, %v9882_v63  ;;  %v10050_v32 = vadd.f32 %v12649_v0, %v9885_v46  ;;  %v10054_v41 = vadd.f32 %v12650_v42, %v9900_v14  ;;  %v12652_v14 = vld [vmem:[#allocation277_spill] sm:$0xff] }
 0x447   : > { %12646 = vst [vmem:[#allocation136_spill] sm:$0xff] %v10040_v1  ;;  %v10057_v37 = vadd.f32 %v9554_v57, %v2533_v60  ;;  %v10061_v36 = vadd.f32 %v12651_v5, %v9917_v13  ;;  %4380 = vrot.lane.b32.xlu1 %v4374_v43, %s5819_s9  ;;  %v4376_v46 = vmul.f32 %v9276_v12, %v4373_v61  ;;  %v12653_v13 = vld [vmem:[#allocation278_spill] sm:$0xff]  ;;  %v3322_v16 = vstv %s9989_s30  ;;  %v12654_v43 = vld [vmem:[#allocation279_spill] sm:$0xff]  ;;  %s10398_s30 = sld [smem:[#allocation2 + $0x63]] }
 0x448   : > { %4364 = vrot.lane.b32.xlu0 %v4356_v19, %s5819_s9  ;;  %v4375_v63 = vmul.f32 %v9218_v2, %v4373_v61  ;;  %v10072_v57 = vadd.f32 %v12652_v14, %v9926_v51  ;;  %v10076_v60 = vadd.f32 %v12653_v13, %v9935_v49  ;;  %v4393_v45 = vstv %s9992_s4  ;;  %v12656_v61 = vld [vmem:[#allocation281_spill] sm:$0xff]  ;;  %v12657_v51 = vld [vmem:[#allocation282_spill] sm:$0xff]  ;;  %s10411_s4 = sld [smem:[#allocation2 + $0x6a]] }
 0x449   : > { %v10082_v19 = vadd.f32 %v12654_v43, %v9942_v6  ;;  %v10086_v40 = vadd.f32 %v12655_v52, %v9954_v15  ;;  %v10090_v29 = vadd.f32 %v12656_v61, %v9957_v7  ;;  %v10094_v21 = vadd.f32 %v12657_v51, %v9960_v53  ;;  %v10100_v20 = vpop.permute.xlu0 %3933  ;;  %v12660_v6 = vld [vmem:[#allocation283_spill] sm:$0xff]  ;;  %v12661_v15 = vld [vmem:[#allocation284_spill] sm:$0xff]  ;;  %v10116_v42 = vld [vmem:[%s5938_s25 + $0x32] sm:$0xff] }
 0x44a   : > { %v10098_v49 = vpop.permute.xlu1 %3935  ;;  %12659 = vst [vmem:[#allocation139_spill] sm:$0xff] %v10100_v20  ;;  %v10104_v31 = vadd.f32 %v12660_v6, %v9973_v39  ;;  %v10107_v0 = vadd.f32 %v12661_v15, %v2569_v26  ;;  %v10110_v7 = vld [vmem:[%s5938_s25 + $0x3a] sm:$0xff]  ;;  %v10119_v5 = vmul.f32 %v10116_v42, %v3314_v54  ;;  %v10122_v14 = vmul.f32 %v10116_v42, %v3322_v16  ;;  %v12662_v43 = vld [vmem:[#allocation285_spill] sm:$0xff]  ;;  %v10138_v6 = vld [vmem:[%s5938_s25 + $0x42] sm:$0x3] }
 0x44b   : > { %12658 = vst [vmem:[#allocation138_spill] sm:$0xff] %v10098_v49  ;;  %v10113_v53 = vmul.f32 %v10110_v7, %v3314_v54  ;;  %v3330_v39 = vstv %s10012_s5  ;;  %4384 = vrot.lane.b32.xlu1 %v4376_v46, %s5819_s9  ;;  %v4395_v26 = vmul.f32 %v9218_v2, %v4393_v45  ;;  %v4394_v13 = vmul.f32 %v9222_v23, %v4393_v45  ;;  %v12663_v61 = vld [vmem:[#allocation286_spill] sm:$0xff]  ;;  %v12664_v46 = vld [vmem:[#allocation287_spill] sm:$0xff]  ;;  %v12668_v20 = vld [vmem:[#allocation288_spill] sm:$0xff]  ;;  %s10425_s5 = sld [smem:[#allocation2 + $0x87]] }
 0x44c   : > { %4382 = vrot.lane.b32.xlu0 %v4375_v63, %s5819_s9  ;;  %v10132_v52 = vadd.f32 %v12662_v43, %v2577_v34  ;;  %v10135_v51 = vadd.f32 %v12663_v61, %v2576_v62  ;;  %v10141_v15 = vmul.f32 %v10138_v6, %v3314_v54  ;;  %v4413_v27 = vstv %s10024_s6  ;;  %v12669_v49 = vld [vmem:[#allocation289_spill] sm:$0xff]  ;;  %v12672_v1 = vld [vmem:[#allocation290_spill] sm:$0xff]  ;;  %s10469_s6 = sld [smem:[#allocation2 + $0x8e]] }
 0x44d   : > { %v10147_v63 = vadd.f32 %v12664_v46, %v2584_v35  ;;  %v10150_v56 = vmul.f32 %v10138_v6, %v3322_v16  ;;  %v10153_v34 = vmul.f32 %v10110_v7, %v3322_v16  ;;  %v3338_v62 = vstv %s10038_s7  ;;  %v10158_v61 = vpop.permute.xlu0 %3937  ;;  %s10484_s7 = sld [smem:[#allocation2 + $0xab]] }
 0x44e   : > { %v10156_v43 = vpop.permute.xlu1 %3953  ;;  %12667 = vst [vmem:[#allocation142_spill] sm:$0xff] %v10158_v61  ;;  %v10161_v54 = vadd.f32 %v12668_v20, %v2578_v38  ;;  %v10164_v28 = vadd.f32 %v12669_v49, %v2586_v9  ;;  %v10167_v35 = vmul.f32 %v10110_v7, %v3330_v39  ;;  %v10170_v46 = vmul.f32 %v10116_v42, %v3330_v39  ;;  %v12673_v49 = vld [vmem:[#allocation291_spill] sm:$0xff]  ;;  %v12674_v61 = vld [vmem:[#allocation292_spill] sm:$0xff] }
 0x44f   : > { %12665 = vst [vmem:[#allocation140_spill] sm:$0xff] %v10153_v34  ;;  %12666 = vst [vmem:[#allocation141_spill] sm:$0xff] %v10156_v43  ;;  %v10173_v16 = vadd.f32 %v12672_v1, %v2585_v50  ;;  %v3346_v34 = vstv %s10064_s8  ;;  %4402 = vrot.lane.b32.xlu1 %v4395_v26, %s5819_s9  ;;  %v4414_v38 = vmul.f32 %v9222_v23, %v4413_v27  ;;  %s10510_s8 = sld [smem:[#allocation2 + $0xcf]] }
 0x450   : > { %12670 = vst [vmem:[#allocation143_spill] sm:$0xff] %v10167_v35  ;;  %12671 = vst [vmem:[#allocation144_spill] sm:$0xff] %v10170_v46  ;;  %4400 = vrot.lane.b32.xlu0 %v4394_v13, %s5819_s9  ;;  %v4396_v9 = vmul.f32 %v9276_v12, %v4393_v45  ;;  %v10182_v20 = vadd.f32 %v12673_v49, %v10022_v22  ;;  %v10186_v43 = vadd.f32 %v12674_v61, %v10027_v25  ;;  %v12677_v45 = vld [vmem:[#allocation293_spill] sm:$0xff]  ;;  %v12682_v49 = vld [vmem:[#allocation294_spill] sm:$0xff] }
 0x451   : > { %v10189_v50 = vmul.f32 %v10116_v42, %v3338_v62  ;;  %v10192_v1 = vmul.f32 %v10138_v6, %v3330_v39  ;;  %v10200_v26 = vadd.f32 %v12677_v45, %v10030_v17  ;;  %v10203_v22 = vmul.f32 %v10138_v6, %v3338_v62  ;;  %v10211_v39 = vpop.permute.xlu0 %3955  ;;  %v12684_v45 = vld [vmem:[#allocation298_spill] sm:$0xff] }
 0x452   : > { %v10206_v25 = vmul.f32 %v10110_v7, %v3338_v62  ;;  %v3354_v13 = vstv %s10096_s10  ;;  %v10209_v61 = vpop.permute.xlu1 %3957  ;;  %12681 = vst [vmem:[#allocation150_spill] sm:$0xff] %v10211_v39  ;;  %v2780_v46 = vadd.f32 %v12684_v45, %v10050_v32  ;;  %v10225_v62 = vmul.f32 %v10116_v42, %v3346_v34  ;;  %v12688_v32 = vld [vmem:[#allocation296_spill] sm:$0xff]  ;;  %s10544_s10 = sld [smem:[#allocation2 + $0xf3]] }
 0x453   : > { %12675 = vst [vmem:[#allocation145_spill] sm:$0xff] %v10189_v50  ;;  %12676 = vst [vmem:[#allocation146_spill] sm:$0xff] %v10192_v1  ;;  %v10215_v1 = vadd.f32 %v12682_v49, %v10033_v58  ;;  %v12683_v50 = vld [vmem:[#allocation297_spill] sm:$0xff]  ;;  %4420 = vrot.lane.b32.xlu1 %v4414_v38, %s5819_s9  ;;  %v4416_v58 = vmul.f32 %v9276_v12, %v4413_v27  ;;  %v4415_v49 = vmul.f32 %v9218_v2, %v4413_v27  ;;  %v12690_v38 = vld [vmem:[#allocation299_spill] sm:$0xff] }
 0x454   : > { %12678 = vst [vmem:[#allocation147_spill] sm:$0xff] %v10203_v22  ;;  %12679 = vst [vmem:[#allocation148_spill] sm:$0xff] %v10206_v25  ;;  %v2781_v17 = vadd.f32 %v12683_v50, %v10046_v3  ;;  %v10222_v22 = vmul.f32 %v10110_v7, %v3346_v34  ;;  %v3362_v25 = vstv %s10125_s11  ;;  %4404 = vrot.lane.b32.xlu0 %v4396_v9, %s5819_s9  ;;  %v12687_v3 = vld [vmem:[#allocation295_spill] sm:$0xff]  ;;  %s10580_s11 = sld [smem:[#allocation2 + $0xb2]] }
 0x455   : > { %12680 = vst [vmem:[#allocation149_spill] sm:$0xff] %v10209_v61  ;;  %12686 = vst [vmem:[#allocation151_spill] sm:$0xff] %v10225_v62  ;;  %v10234_v50 = vadd.f32 %v12687_v3, %v10036_v18  ;;  %v10238_v45 = vadd.f32 %v12688_v32, %v10057_v37  ;;  %v10241_v39 = vmul.f32 %v10116_v42, %v3354_v13  ;;  %v4433_v61 = vstv %s10144_s17  ;;  %v10257_v3 = vpop.permute.xlu0 %3973  ;;  %v12696_v32 = vld [vmem:[#allocation300_spill] sm:$0xff]  ;;  %s10594_s17 = sld [smem:[#allocation2 + $0x117]] }
 0x456   : > { %12685 = vst [vmem:[#allocation153_spill] sm:$0xff] %v10222_v22  ;;  %v2800_v62 = vadd.f32 %v12690_v38, %v10054_v41  ;;  %v10247_v9 = vmul.f32 %v10138_v6, %v3346_v34  ;;  %v10250_v27 = vmul.f32 %v10138_v6, %v3354_v13  ;;  %v10253_v18 = vmul.f32 %v10110_v7, %v3354_v13  ;;  %v10255_v37 = vpop.permute.xlu1 %3975  ;;  %v12707_v22 = vld [vmem:[#allocation307_spill] sm:$0xff] }
 0x457   : > { %12689 = vst [vmem:[#allocation154_spill] sm:$0xff] %v10241_v39  ;;  %12694 = vst [vmem:[#allocation157_spill] sm:$0xff] %v10255_v37  ;;  %v2782_v39 = vadd.f32 %v12696_v32, %v10061_v36  ;;  %v10262_v41 = vadd.f32 %v9719_v24, %v2781_v17  ;;  %v10265_v34 = vadd.f32 %v9738_v44, %v2780_v46  ;;  %4424 = vrot.lane.b32.xlu1 %v4416_v58, %s5819_s9  ;;  %v12699_v24 = vld [vmem:[#allocation301_spill] sm:$0xff]  ;;  %v12700_v44 = vld [vmem:[#allocation302_spill] sm:$0xff] }
 0x458   : > { %12691 = vst [vmem:[#allocation152_spill] sm:$0xff] %v10247_v9  ;;  %12692 = vst [vmem:[#allocation155_spill] sm:$0xff] %v10250_v27  ;;  %v10268_v38 = vmul.f32 %v10110_v7, %v3362_v25  ;;  %v10271_v27 = vmul.f32 %v10116_v42, %v3362_v25  ;;  %4422 = vrot.lane.b32.xlu0 %v4415_v49, %s5819_s9  ;;  %v4435_v13 = vmul.f32 %v9218_v2, %v4433_v61  ;;  %v12701_v37 = vld [vmem:[#allocation303_spill] sm:$0xff]  ;;  %v12702_v58 = vld [vmem:[#allocation304_spill] sm:$0xff] }
 0x459   : > { %12693 = vst [vmem:[#allocation156_spill] sm:$0xff] %v10253_v18  ;;  %12695 = vst [vmem:[#allocation158_spill] sm:$0xff] %v10257_v3  ;;  %v4434_v36 = vmul.f32 %v9222_v23, %v4433_v61  ;;  %v2802_v17 = vadd.f32 %v12699_v24, %v10072_v57  ;;  %v2801_v46 = vadd.f32 %v12700_v44, %v10076_v60  ;;  %v3370_v32 = vstv %s10194_s19  ;;  %v10296_v24 = vpop.permute.xlu0 %3977  ;;  %v12706_v60 = vld [vmem:[#allocation306_spill] sm:$0xff]  ;;  %s10630_s19 = sld [smem:[#allocation2 + $0xd6]] }
 0x45a   : > { %12697 = vst [vmem:[#allocation159_spill] sm:$0xff] %v10268_v38  ;;  %12698 = vst [vmem:[#allocation160_spill] sm:$0xff] %v10271_v27  ;;  %v4453_v3 = vstv %s10196_s20  ;;  %v2821_v27 = vadd.f32 %v12701_v37, %v10082_v19  ;;  %v2820_v49 = vadd.f32 %v12702_v58, %v10086_v40  ;;  %v12703_v38 = vld [vmem:[#allocation305_spill] sm:$0xff]  ;;  %v10292_v9 = vadd.f32 %v9742_v47, %v2800_v62  ;;  %v10294_v57 = vpop.permute.xlu1 %3993  ;;  %v12708_v19 = vld [vmem:[#allocation308_spill] sm:$0xff]  ;;  %s10709_s20 = sld [smem:[#allocation2 + $0xfa]] }
 0x45b   : > { %v2840_v18 = vadd.f32 %v12703_v38, %v10090_v29  ;;  %12704 = vst [vmem:[#allocation161_spill] sm:$0xff] %v10294_v57  ;;  %12705 = vst [vmem:[#allocation162_spill] sm:$0xff] %v10296_v24  ;;  %v2822_v44 = vadd.f32 %v12706_v60, %v10094_v21  ;;  %v2842_v35 = vadd.f32 %v12707_v22, %v10104_v31  ;;  %4442 = vrot.lane.b32.xlu1 %v4435_v13, %s5819_s9  ;;  %v12709_v31 = vld [vmem:[#allocation118_spill] sm:$0xff]  ;;  %v12717_v58 = vld [vmem:[#allocation125_spill] sm:$0xff] }
 0x45c   : > { %v2841_v37 = vadd.f32 %v12708_v19, %v10107_v0  ;;  %v10305_v40 = vadd.f32 %v9759_v10, %v2782_v39  ;;  %v10308_v29 = vmul.f32 %v10116_v42, %v3370_v32  ;;  %4440 = vrot.lane.b32.xlu0 %v4434_v36, %s5819_s9  ;;  %v4454_v47 = vmul.f32 %v9222_v23, %v4453_v3  ;;  %v12710_v42 = vld [vmem:[#allocation119_spill] sm:$0xff]  ;;  %v12711_v23 = vld [vmem:[#allocation122_spill] sm:$0xff]  ;;  %v12715_v36 = vld [vmem:[#allocation309_spill] sm:$0xff] }
 0x45d   : > { %v4436_v21 = vmul.f32 %v9276_v12, %v4433_v61  ;;  %v10315_v62 = vadd.f32 %v9762_v30, %v2802_v17  ;;  %v10318_v22 = vadd.f32 %v12709_v31, %v2801_v46  ;;  %v10321_v10 = vmul.f32 %v10138_v6, %v3362_v25  ;;  %v12712_v61 = vld [vmem:[#allocation123_spill] sm:$0xff]  ;;  %v12716_v17 = vld [vmem:[#allocation124_spill] sm:$0xff]  ;;  %v12767_v24 = vld [vmem:[#allocation341_spill] sm:$0xff] }
 0x45e   : > { %v10324_v0 = vmul.f32 %v10138_v6, %v3370_v32  ;;  %v10329_v39 = vadd.f32 %v12710_v42, %v2821_v27  ;;  %v10332_v38 = vadd.f32 %v12711_v23, %v2820_v49  ;;  %v10335_v30 = vadd.f32 %v12712_v61, %v2840_v18  ;;  %v10340_v25 = vpop.permute.xlu1 %3997  ;;  %v10342_v6 = vpop.permute.xlu0 %3995  ;;  %v12718_v18 = vld [vmem:[#allocation126_spill] sm:$0xff]  ;;  %v12720_v19 = vld [vmem:[#allocation311_spill] sm:$0xff]  ;;  %v12721_v31 = vld [vmem:[#allocation312_spill] sm:$0xff] }
 0x45f   : > { %v10338_v13 = vmul.f32 %v10110_v7, %v3370_v32  ;;  %12713 = vst [vmem:[#allocation163_spill] sm:$0xff] %v10340_v25  ;;  %12714 = vst [vmem:[#allocation164_spill] sm:$0xff] %v10342_v6  ;;  %v2861_v27 = vadd.f32 %v12715_v36, %v10132_v52  ;;  %v10347_v46 = vadd.f32 %v12716_v17, %v2822_v44  ;;  %v12719_v7 = vld [vmem:[#allocation310_spill] sm:$0xff]  ;;  %4460 = vrot.lane.b32.xlu1 %v4454_v47, %s5819_s9  ;;  %v12722_v42 = vld [vmem:[#allocation313_spill] sm:$0xff] }
 0x460   : > { %v10350_v49 = vadd.f32 %v12717_v58, %v2842_v35  ;;  %v10353_v60 = vadd.f32 %v12718_v18, %v2841_v37  ;;  %v2860_v32 = vadd.f32 %v12719_v7, %v10135_v51  ;;  %4444 = vrot.lane.b32.xlu0 %v4436_v21, %s5819_s9  ;;  %v4456_v52 = vmul.f32 %v9276_v12, %v4453_v3  ;;  %v10370_v51 = vld [vmem:[%s5938_s25 + $0x52] sm:$0xff]  ;;  %v10374_v36 = vld [vmem:[%s5938_s25 + $0x4a] sm:$0xff]  ;;  %v12724_v12 = vld [vmem:[#allocation315_spill] sm:$0xff] }
 0x461   : > { %v4455_v44 = vmul.f32 %v9218_v2, %v4453_v3  ;;  %v2880_v35 = vadd.f32 %v12720_v19, %v10147_v63  ;;  %v2862_v37 = vadd.f32 %v12721_v31, %v10161_v54  ;;  %v2882_v23 = vadd.f32 %v12722_v42, %v10164_v28  ;;  %v12723_v47 = vld [vmem:[#allocation314_spill] sm:$0xff]  ;;  %v12725_v3 = vld [vmem:[#allocation316_spill] sm:$0xff]  ;;  %v12726_v17 = vld [vmem:[#allocation317_spill] sm:$0xff] }
 0x462   : > { %v4540_v61 = vstv %s10283_s24  ;;  %v2881_v21 = vadd.f32 %v12723_v47, %v10173_v16  ;;  %v2901_v2 = vadd.f32 %v12724_v12, %v10182_v20  ;;  %v2900_v63 = vadd.f32 %v12725_v3, %v10186_v43  ;;  %v10386_v28 = vpop.permute.xlu1 %4015  ;;  %v10388_v58 = vpop.permute.xlu0 %4013  ;;  %v12729_v18 = vld [vmem:[#allocation318_spill] sm:$0xff]  ;;  %v12730_v7 = vld [vmem:[#allocation319_spill] sm:$0xff]  ;;  %v12731_v19 = vld [vmem:[#allocation320_spill] sm:$0xff]  ;;  %s10754_s24 = sld [smem:[#allocation2 + $0x11e]] }
 0x463   : > { %v2920_v54 = vadd.f32 %v12726_v17, %v10200_v26  ;;  %12727 = vst [vmem:[#allocation53_spill] sm:$0xff] %v10386_v28  ;;  %12728 = vst [vmem:[#allocation54_spill] sm:$0xff] %v10388_v58  ;;  %v2902_v16 = vadd.f32 %v12729_v18, %v10215_v1  ;;  %v2922_v20 = vadd.f32 %v12730_v7, %v10234_v50  ;;  %v12732_v31 = vld [vmem:[#allocation39_spill] sm:$0xff]  ;;  %v12733_v26 = vld [vmem:[#allocation16_spill] sm:$0xff]  ;;  %4464 = vrot.lane.b32.xlu1 %v4456_v52, %s5819_s9 }
 0x464   : > { %v2921_v43 = vadd.f32 %v12731_v19, %v10238_v45  ;;  %v2964_v42 = vadd.f32 %v12732_v31, %v2861_v27  ;;  %v2963_v47 = vadd.f32 %v12733_v26, %v2860_v32  ;;  %4462 = vrot.lane.b32.xlu0 %v4455_v44, %s5819_s9  ;;  %v4542_v12 = vmul.f32 %v10370_v51, %v4540_v61  ;;  %v12734_v3 = vld [vmem:[#allocation40_spill] sm:$0xff]  ;;  %v12735_v18 = vld [vmem:[#allocation18_spill] sm:$0xff]  ;;  %v12736_v44 = vld [vmem:[#allocation129_spill] sm:$0xff] }
 0x465   : > { %v4541_v1 = vmul.f32 %v10374_v36, %v4540_v61  ;;  %v2971_v17 = vadd.f32 %v12734_v3, %v2880_v35  ;;  %v2965_v50 = vadd.f32 %v9869_v55, %v2862_v37  ;;  %v2973_v45 = vadd.f32 %v12735_v18, %v2882_v23  ;;  %v10409_v7 = vld [vmem:[%s5938_s25 + $0x5a] sm:$0x3]  ;;  %v12739_v23 = vld [vmem:[#allocation321_spill] sm:$0xff] }
 0x466   : > { %v4560_v27 = vstv %s10326_s26  ;;  %v10414_v32 = vadd.f32 %v9888_v48, %v2881_v21  ;;  %v10417_v52 = vadd.f32 %v9903_v4, %v2901_v2  ;;  %v10420_v19 = vadd.f32 %v12736_v44, %v2900_v63  ;;  %v10427_v55 = vpop.permute.xlu1 %4033  ;;  %v10429_v37 = vpop.permute.xlu0 %4017  ;;  %v12740_v21 = vld [vmem:[#allocation322_spill] sm:$0xff]  ;;  %v12759_v58 = vld [vmem:[#allocation337_spill] sm:$0xff]  ;;  %s10764_s26 = sld [smem:[#allocation2 + $0x1e]] }
 0x467   : > { %v10423_v35 = vadd.f32 %v9929_v8, %v2920_v54  ;;  %12737 = vst [vmem:[#allocation165_spill] sm:$0xff] %v10427_v55  ;;  %12738 = vst [vmem:[#allocation166_spill] sm:$0xff] %v10429_v37  ;;  %v10433_v31 = vadd.f32 %v12739_v23, %v10262_v41  ;;  %v10436_v48 = vadd.f32 %v9932_v59, %v2902_v16  ;;  %v3702_v63 = vstv %s10357_s28  ;;  %v12750_v44 = vld [vmem:[#allocation330_spill] sm:$0xff]  ;;  %v12751_v23 = vld [vmem:[#allocation331_spill] sm:$0xff]  ;;  %s10778_s28 = sld [smem:[#allocation2 + $0x42]] }
 0x468   : > { %v10439_v4 = vadd.f32 %v9945_v33, %v2922_v20  ;;  %v10442_v8 = vadd.f32 %v9948_v11, %v2921_v43  ;;  %v10446_v2 = vadd.f32 %v12740_v21, %v10265_v34  ;;  %4549 = vrot.lane.b32.xlu1 %v4542_v12, %s5818_s27  ;;  %4547 = vrot.lane.b32.xlu0 %v4541_v1, %s5818_s27  ;;  %v12741_v33 = vld [vmem:[#allocation323_spill] sm:$0xff]  ;;  %v12742_v11 = vld [vmem:[#allocation324_spill] sm:$0xff]  ;;  %v12743_v34 = vld [vmem:[#allocation325_spill] sm:$0xff] }
 0x469   : > { %v4561_v41 = vmul.f32 %v10374_v36, %v4560_v27  ;;  %v4543_v59 = vmul.f32 %v10409_v7, %v4540_v61  ;;  %v10455_v54 = vadd.f32 %v12741_v33, %v10292_v9  ;;  %v10459_v16 = vadd.f32 %v12742_v11, %v10305_v40  ;;  %v12744_v43 = vld [vmem:[#allocation326_spill] sm:$0xff]  ;;  %v12745_v61 = vld [vmem:[#allocation327_spill] sm:$0xff]  ;;  %v12746_v12 = vld [vmem:[#allocation328_spill] sm:$0xff] }
 0x46a   : > { %v10463_v20 = vadd.f32 %v12743_v34, %v10315_v62  ;;  %v10467_v26 = vadd.f32 %v12744_v43, %v10318_v22  ;;  %v10473_v9 = vadd.f32 %v12745_v61, %v10329_v39  ;;  %v10477_v1 = vadd.f32 %v12746_v12, %v10332_v38  ;;  %v12747_v40 = vld [vmem:[#allocation329_spill] sm:$0xff]  ;;  %v10486_v22 = vpop.permute.xlu1 %4037  ;;  %v10488_v18 = vpop.permute.xlu0 %4035  ;;  %v10505_v33 = vld [vmem:[%s5938_s25 + $0x48] sm:$0xff] }
 0x46b   : > { %v10481_v3 = vadd.f32 %v12747_v40, %v10335_v30  ;;  %v3710_v62 = vstv %s10384_s29  ;;  %12748 = vst [vmem:[#allocation57_spill] sm:$0xff] %v10486_v22  ;;  %12749 = vst [vmem:[#allocation58_spill] sm:$0xff] %v10488_v18  ;;  %v10492_v39 = vadd.f32 %v12750_v44, %v10347_v46  ;;  %v10496_v38 = vadd.f32 %v12751_v23, %v10350_v49  ;;  %v10499_v21 = vld [vmem:[%s5938_s25 + $0x50] sm:$0xff]  ;;  %v12752_v46 = vld [vmem:[#allocation332_spill] sm:$0xff]  ;;  %s10799_s29 = sld [smem:[#allocation2 + $0x66]] }
 0x46c   : > { %v10502_v30 = vmul.f32 %v10499_v21, %v3702_v63  ;;  %v10508_v11 = vmul.f32 %v10505_v33, %v3702_v63  ;;  %v10514_v34 = vadd.f32 %v12752_v46, %v10353_v60  ;;  %v3718_v49 = vstv %s10398_s30  ;;  %4567 = vrot.lane.b32.xlu1 %v4561_v41, %s5818_s27  ;;  %4551 = vrot.lane.b32.xlu0 %v4543_v59, %s5818_s27  ;;  %v12753_v12 = vld [vmem:[#allocation333_spill] sm:$0xff]  ;;  %v10528_v23 = vld [vmem:[%s5938_s25 + $0x58] sm:$0x3]  ;;  %v12758_v55 = vld [vmem:[#allocation336_spill] sm:$0xff]  ;;  %s10817_s30 = sld [smem:[#allocation2 + $0x8a]] }
 0x46d   : > { %v4563_v43 = vmul.f32 %v10409_v7, %v4560_v27  ;;  %v4562_v61 = vmul.f32 %v10370_v51, %v4560_v27  ;;  %v10522_v40 = vadd.f32 %v12753_v12, %v2964_v42  ;;  %v10525_v44 = vmul.f32 %v10505_v33, %v3710_v62  ;;  %v12754_v18 = vld [vmem:[#allocation334_spill] sm:$0xff] }
 0x46e   : > { %v10531_v60 = vmul.f32 %v10528_v23, %v3702_v63  ;;  %v4580_v46 = vstv %s10411_s4  ;;  %v10535_v41 = vadd.f32 %v12754_v18, %v2963_v47  ;;  %v10538_v59 = vmul.f32 %v10528_v23, %v3710_v62  ;;  %v10546_v12 = vpop.permute.xlu1 %4055  ;;  %v10548_v22 = vpop.permute.xlu0 %4053  ;;  %v12757_v63 = vld [vmem:[#allocation335_spill] sm:$0xff]  ;;  %s10838_s4 = sld [smem:[#allocation2 + $0x23]] }
 0x46f   : > { %v10541_v27 = vmul.f32 %v10499_v21, %v3710_v62  ;;  %v3726_v42 = vstv %s10425_s5  ;;  %12755 = vst [vmem:[#allocation167_spill] sm:$0xff] %v10546_v12  ;;  %12756 = vst [vmem:[#allocation168_spill] sm:$0xff] %v10548_v22  ;;  %v10551_v37 = vadd.f32 %v12757_v63, %v2971_v17  ;;  %v10554_v47 = vadd.f32 %v12758_v55, %v2965_v50  ;;  %v12760_v50 = vld [vmem:[#allocation338_spill] sm:$0xff]  ;;  %s10897_s5 = sld [smem:[#allocation2 + $0xae]] }
 0x470   : > { %v10557_v18 = vmul.f32 %v10499_v21, %v3718_v49  ;;  %v10560_v62 = vmul.f32 %v10505_v33, %v3718_v49  ;;  %v10563_v28 = vadd.f32 %v12759_v58, %v2973_v45  ;;  %4571 = vrot.lane.b32.xlu1 %v4563_v43, %s5818_s27  ;;  %4569 = vrot.lane.b32.xlu0 %v4562_v61, %s5818_s27  ;;  %v4600_v58 = vstv %s10469_s6  ;;  %v12762_v45 = vld [vmem:[#allocation339_spill] sm:$0xff]  ;;  %v12763_v61 = vld [vmem:[#allocation340_spill] sm:$0xff]  ;;  %s10899_s6 = sld [smem:[#allocation2 + $0x47]] }
 0x471   : > { %v4582_v17 = vmul.f32 %v10370_v51, %v4580_v46  ;;  %v4581_v63 = vmul.f32 %v10374_v36, %v4580_v46  ;;  %v10571_v55 = vadd.f32 %v12760_v50, %v10414_v32  ;;  %v10574_v22 = vmul.f32 %v10505_v33, %v3726_v42 }
 0x472   : > { %v10577_v12 = vmul.f32 %v10528_v23, %v3718_v49  ;;  %v10584_v43 = vadd.f32 %v12762_v45, %v10417_v52  ;;  %v10588_v6 = vadd.f32 %v12763_v61, %v10420_v19  ;;  %v10591_v32 = vmul.f32 %v10528_v23, %v3726_v42  ;;  %v10596_v25 = vpop.permute.xlu1 %4073  ;;  %v10598_v49 = vpop.permute.xlu0 %4057  ;;  %v12768_v52 = vld [vmem:[#allocation342_spill] sm:$0xff] }
 0x473   : > { %v3734_v50 = vstv %s10484_s7  ;;  %12765 = vst [vmem:[#allocation171_spill] sm:$0xff] %v10596_v25  ;;  %12766 = vst [vmem:[#allocation172_spill] sm:$0xff] %v10598_v49  ;;  %v10602_v57 = vadd.f32 %v12767_v24, %v10423_v35  ;;  %v10606_v45 = vadd.f32 %v12768_v52, %v10436_v48  ;;  %v10609_v19 = vmul.f32 %v10499_v21, %v3726_v42  ;;  %v12771_v35 = vld [vmem:[#allocation343_spill] sm:$0xff]  ;;  %s10919_s7 = sld [smem:[#allocation2 + $0xd2]] }
 0x474   : > { %12761 = vst [vmem:[#allocation169_spill] sm:$0xff] %v10577_v12  ;;  %12764 = vst [vmem:[#allocation170_spill] sm:$0xff] %v10591_v32  ;;  %v3742_v61 = vstv %s10510_s8  ;;  %v12770_v32 = vld [vmem:[#allocation346_spill] sm:$0xff]  ;;  %4589 = vrot.lane.b32.xlu1 %v4582_v17, %s5818_s27  ;;  %4587 = vrot.lane.b32.xlu0 %v4581_v63, %s5818_s27  ;;  %v4601_v49 = vmul.f32 %v10374_v36, %v4600_v58  ;;  %v4583_v24 = vmul.f32 %v10409_v7, %v4580_v46  ;;  %v12772_v52 = vld [vmem:[#allocation347_spill] sm:$0xff]  ;;  %s10987_s8 = sld [smem:[#allocation2 + $0x11a]] }
 0x475   : > { %12769 = vst [vmem:[#allocation173_spill] sm:$0xff] %v10609_v19  ;;  %v3168_v12 = vadd.f32 %v12770_v32, %v10433_v31  ;;  %v10620_v48 = vadd.f32 %v12771_v35, %v10439_v4  ;;  %v3167_v42 = vadd.f32 %v12772_v52, %v10446_v2  ;;  %v10625_v25 = vmul.f32 %v10499_v21, %v3734_v50  ;;  %v12775_v17 = vld [vmem:[#allocation344_spill] sm:$0xff]  ;;  %v12776_v46 = vld [vmem:[#allocation349_spill] sm:$0xff] }
 0x476   : > { %v10628_v31 = vmul.f32 %v10505_v33, %v3734_v50  ;;  %v10634_v63 = vadd.f32 %v12775_v17, %v10442_v8  ;;  %v3187_v32 = vadd.f32 %v12776_v46, %v10455_v54  ;;  %v10639_v4 = vmul.f32 %v10505_v33, %v3742_v61  ;;  %v10642_v35 = vpop.permute.xlu1 %4077  ;;  %v10644_v52 = vpop.permute.xlu0 %4075 }
 0x477   : > { %12773 = vst [vmem:[#allocation174_spill] sm:$0xff] %v10625_v25  ;;  %v3750_v2 = vstv %s10544_s10  ;;  %v10649_v19 = vmul.f32 %v10528_v23, %v3734_v50  ;;  %v10652_v8 = vmul.f32 %v10528_v23, %v3742_v61  ;;  %v10655_v54 = vmul.f32 %v10499_v21, %v3742_v61  ;;  %s10999_s10 = sld [smem:[#allocation2 + $0x6b]] }
 0x478   : > { %12774 = vst [vmem:[#allocation175_spill] sm:$0xff] %v10628_v31  ;;  %12777 = vst [vmem:[#allocation176_spill] sm:$0xff] %v10639_v4  ;;  %v12778_v31 = vld [vmem:[#allocation350_spill] sm:$0xff]  ;;  %v10658_v17 = vadd.f32 %v10113_v53, %v3168_v12  ;;  %4607 = vrot.lane.b32.xlu1 %v4601_v49, %s5818_s27  ;;  %4591 = vrot.lane.b32.xlu0 %v4583_v24, %s5818_s27  ;;  %v4603_v46 = vmul.f32 %v10409_v7, %v4600_v58  ;;  %v12785_v49 = vld [vmem:[#allocation355_spill] sm:$0xff] }
 0x479   : > { %v3169_v25 = vadd.f32 %v12778_v31, %v10459_v16  ;;  %12779 = vst [vmem:[#allocation59_spill] sm:$0xff] %v10649_v19  ;;  %12780 = vst [vmem:[#allocation60_spill] sm:$0xff] %v10652_v8  ;;  %v4602_v16 = vmul.f32 %v10370_v51, %v4600_v58  ;;  %v10665_v50 = vadd.f32 %v10119_v5, %v3167_v42  ;;  %v12784_v53 = vld [vmem:[#allocation354_spill] sm:$0xff]  ;;  %v3758_v58 = vstv %s10594_s17  ;;  %s11128_s17 = sld [smem:[#allocation2 + $0xd7]] }
 0x47a   : > { %12781 = vst [vmem:[#allocation61_spill] sm:$0xff] %v10655_v54  ;;  %v10668_v31 = vmul.f32 %v10499_v21, %v3750_v2  ;;  %v10671_v61 = vmul.f32 %v10505_v33, %v3750_v2  ;;  %v4620_v54 = vstv %s10580_s11  ;;  %v3189_v12 = vadd.f32 %v12784_v53, %v10463_v20  ;;  %v10682_v5 = vpop.permute.xlu1 %4162  ;;  %v10684_v42 = vpop.permute.xlu0 %4160  ;;  %v12788_v20 = vld [vmem:[#allocation15_spill] sm:$0xff]  ;;  %s11099_s11 = sld [smem:[#allocation2 + $0xb3]] }
 0x47b   : > { %v3188_v24 = vadd.f32 %v12785_v49, %v10467_v26  ;;  %v10679_v8 = vadd.f32 %v10122_v14, %v3187_v32  ;;  %v3227_v53 = vadd.f32 %v12788_v20, %v10481_v3  ;;  %v10693_v26 = vadd.f32 %v10141_v15, %v3169_v25  ;;  %v12789_v14 = vld [vmem:[#allocation362_spill] sm:$0xff] }
 0x47c   : > { %12782 = vst [vmem:[#allocation62_spill] sm:$0xff] %v10668_v31  ;;  %12783 = vst [vmem:[#allocation63_spill] sm:$0xff] %v10671_v61  ;;  %v12786_v31 = vld [vmem:[#allocation14_spill] sm:$0xff]  ;;  %v12787_v61 = vld [vmem:[#allocation357_spill] sm:$0xff]  ;;  %v3209_v32 = vadd.f32 %v12789_v14, %v10492_v39  ;;  %4611 = vrot.lane.b32.xlu1 %v4603_v46, %s5818_s27  ;;  %4609 = vrot.lane.b32.xlu0 %v4602_v16, %s5818_s27  ;;  %v4622_v49 = vmul.f32 %v10370_v51, %v4620_v54  ;;  %v4640_v25 = vstv %s10630_s19  ;;  %s11171_s19 = sld [smem:[#allocation2 + $0xfb]] }
 0x47d   : > { %v3208_v19 = vadd.f32 %v12786_v31, %v10473_v9  ;;  %v3207_v4 = vadd.f32 %v12787_v61, %v10477_v1  ;;  %v4621_v9 = vmul.f32 %v10374_v36, %v4620_v54  ;;  %v12790_v31 = vld [vmem:[#allocation17_spill] sm:$0xff]  ;;  %v12791_v61 = vld [vmem:[#allocation19_spill] sm:$0xff]  ;;  %v10706_v15 = vmul.f32 %v10505_v33, %v3758_v58  ;;  %v12793_v46 = vld [vmem:[#allocation140_spill] sm:$0xff] }
 0x47e   : > { %v3229_v1 = vadd.f32 %v12790_v31, %v10496_v38  ;;  %v3228_v3 = vadd.f32 %v12791_v61, %v10514_v34  ;;  %v10712_v39 = vadd.f32 %v10150_v56, %v3189_v12  ;;  %v10715_v16 = vadd.f32 %v12793_v46, %v3188_v24  ;;  %v10723_v14 = vpop.permute.xlu1 %4180  ;;  %v10725_v34 = vpop.permute.xlu0 %4164  ;;  %v12797_v33 = vld [vmem:[#allocation143_spill] sm:$0xff]  ;;  %v12798_v61 = vld [vmem:[#allocation144_spill] sm:$0xff]  ;;  %v12799_v56 = vld [vmem:[#allocation145_spill] sm:$0xff] }
 0x47f   : > { %12792 = vst [vmem:[#allocation64_spill] sm:$0xff] %v10706_v15  ;;  %v10718_v20 = vmul.f32 %v10528_v23, %v3750_v2  ;;  %v10721_v38 = vmul.f32 %v10528_v23, %v3758_v58  ;;  %12795 = vst [vmem:[#allocation67_spill] sm:$0xff] %v10723_v14  ;;  %v10728_v31 = vadd.f32 %v12797_v33, %v3208_v19  ;;  %v12800_v2 = vld [vmem:[#allocation146_spill] sm:$0xff] }
 0x480   : > { %12796 = vst [vmem:[#allocation177_spill] sm:$0xff] %v10725_v34  ;;  %v10731_v15 = vadd.f32 %v12798_v61, %v3207_v4  ;;  %v10734_v12 = vadd.f32 %v12799_v56, %v3227_v53  ;;  %v10737_v24 = vmul.f32 %v10499_v21, %v3758_v58  ;;  %v10740_v46 = vadd.f32 %v12800_v2, %v3209_v32  ;;  %v12801_v4 = vld [vmem:[#allocation20_spill] sm:$0xff]  ;;  %v12802_v53 = vld [vmem:[#allocation21_spill] sm:$0xff]  ;;  %v12803_v56 = vld [vmem:[#allocation147_spill] sm:$0xff] }
 0x481   : > { %12794 = vst [vmem:[#allocation348_spill] sm:$0xff] %v10718_v20  ;;  %4629 = vrot.lane.b32.xlu1 %v4622_v49, %s5818_s27  ;;  %4627 = vrot.lane.b32.xlu0 %v4621_v9, %s5818_s27  ;;  %v4641_v23 = vmul.f32 %v10374_v36, %v4640_v25  ;;  %v4623_v19 = vmul.f32 %v10409_v7, %v4620_v54  ;;  %v12804_v58 = vld [vmem:[#allocation148_spill] sm:$0xff]  ;;  %v12805_v32 = vld [vmem:[#allocation23_spill] sm:$0xff]  ;;  %v12806_v9 = vld [vmem:[#allocation25_spill] sm:$0xff] }
 0x482   : > { %v3248_v33 = vadd.f32 %v12801_v4, %v10522_v40  ;;  %v3247_v61 = vadd.f32 %v12802_v53, %v10535_v41  ;;  %v3344_v21 = vadd.f32 %v12803_v56, %v3229_v1  ;;  %v10752_v20 = vadd.f32 %v12804_v58, %v3228_v3  ;;  %v12807_v54 = vld [vmem:[#allocation33_spill] sm:$0xff]  ;;  %v10766_v41 = vpop.permute.xlu1 %4184  ;;  %v10768_v1 = vpop.permute.xlu0 %4182 }
 0x483   : > { %v3267_v49 = vadd.f32 %v12805_v32, %v10551_v37  ;;  %v3249_v2 = vadd.f32 %v12806_v9, %v10554_v47  ;;  %v3269_v34 = vadd.f32 %v12807_v54, %v10563_v28  ;;  %v12808_v40 = vld [vmem:[#allocation345_spill] sm:$0xff]  ;;  %12809 = vst [vmem:[#allocation178_spill] sm:$0xff] %v10766_v41  ;;  %12810 = vst [vmem:[#allocation179_spill] sm:$0xff] %v10768_v1  ;;  %v12812_v37 = vld [vmem:[#allocation38_spill] sm:$0xff] }
 0x484   : > { %v3268_v4 = vadd.f32 %v12808_v40, %v10571_v55  ;;  %v12811_v3 = vld [vmem:[#allocation37_spill] sm:$0xff]  ;;  %v3287_v56 = vadd.f32 %v12812_v37, %v10588_v6  ;;  %v12814_v28 = vld [vmem:[#allocation42_spill] sm:$0xff]  ;;  %v4642_v54 = vmul.f32 %v10370_v51, %v4640_v25  ;;  %v12818_v37 = vld [vmem:[#allocation151_spill] sm:$0xff] }
 0x485   : > { %v3288_v53 = vadd.f32 %v12811_v3, %v10584_v43  ;;  %v12813_v47 = vld [vmem:[#allocation41_spill] sm:$0xff]  ;;  %v3289_v32 = vadd.f32 %v12814_v28, %v10606_v45  ;;  %4647 = vrot.lane.b32.xlu1 %v4641_v23, %s5818_s27  ;;  %4631 = vrot.lane.b32.xlu0 %v4623_v19, %s5818_s27  ;;  %v4643_v43 = vmul.f32 %v10409_v7, %v4640_v25  ;;  %v12816_v6 = vld [vmem:[#allocation22_spill] sm:$0xff]  ;;  %v12820_v41 = vld [vmem:[#allocation152_spill] sm:$0xff] }
 0x486   : > { %v3307_v58 = vadd.f32 %v12813_v47, %v10602_v57  ;;  %v12815_v55 = vld [vmem:[#allocation45_spill] sm:$0xff]  ;;  %v3308_v40 = vadd.f32 %v12816_v6, %v10634_v63  ;;  %v3350_v45 = vadd.f32 %v12818_v37, %v3247_v61  ;;  %v4660_v47 = vstv %s10709_s20  ;;  %v12819_v28 = vld [vmem:[#allocation154_spill] sm:$0xff]  ;;  %v12822_v19 = vld [vmem:[#allocation156_spill] sm:$0xff]  ;;  %v10801_v25 = vpop.permute.xlu1 %4202  ;;  %v10803_v63 = vpop.permute.xlu0 %4200  ;;  %s11195_s20 = sld [smem:[#allocation2 + $0x11f]] }
 0x487   : > { %v3309_v9 = vadd.f32 %v12815_v55, %v10620_v48  ;;  %v12817_v57 = vld [vmem:[#allocation153_spill] sm:$0xff]  ;;  %v3358_v1 = vadd.f32 %v12819_v28, %v3267_v49  ;;  %v3352_v48 = vadd.f32 %v12820_v41, %v3249_v2  ;;  %v12821_v55 = vld [vmem:[#allocation155_spill] sm:$0xff]  ;;  %v10797_v14 = vadd.f32 %v12822_v19, %v3268_v4  ;;  %12823 = vst [vmem:[#allocation180_spill] sm:$0xff] %v10801_v25  ;;  %v12826_v6 = vld [vmem:[#allocation160_spill] sm:$0xff] }
 0x488   : > { %v3351_v3 = vadd.f32 %v12817_v57, %v3248_v33  ;;  %v10794_v23 = vadd.f32 %v12821_v55, %v3269_v34  ;;  %12824 = vst [vmem:[#allocation181_spill] sm:$0xff] %v10803_v63  ;;  %v12825_v33 = vld [vmem:[#allocation159_spill] sm:$0xff]  ;;  %v10809_v49 = vadd.f32 %v12826_v6, %v3287_v56  ;;  %v10812_v2 = vadd.f32 %v10308_v29, %v3307_v58  ;;  %v12827_v29 = vld [vmem:[#allocation46_spill] sm:$0xff]  ;;  %v12837_v6 = vld [vmem:[#allocation52_spill] sm:$0xff] }
 0x489   : > { %v10806_v61 = vadd.f32 %v12825_v33, %v3288_v53  ;;  %v10815_v34 = vadd.f32 %v10321_v10, %v3289_v32  ;;  %v10820_v4 = vadd.f32 %v10324_v0, %v3309_v9  ;;  %4651 = vrot.lane.b32.xlu1 %v4643_v43, %s5818_s27  ;;  %4649 = vrot.lane.b32.xlu0 %v4642_v54, %s5818_s27  ;;  %v12828_v10 = vld [vmem:[#allocation24_spill] sm:$0xff]  ;;  %v4680_v32 = vstv %s10754_s24  ;;  %v12829_v9 = vld [vmem:[#allocation47_spill] sm:$0xff]  ;;  %v12834_v28 = vld [vmem:[#allocation50_spill] sm:$0xff]  ;;  %s11232_s24 = sld [smem:[#allocation2 + $0xf6]] }
 0x48a   : > { %v4662_v41 = vmul.f32 %v10370_v51, %v4660_v47  ;;  %v4661_v53 = vmul.f32 %v10374_v36, %v4660_v47  ;;  %v10828_v56 = vadd.f32 %v12827_v29, %v10658_v17  ;;  %v10832_v58 = vadd.f32 %v12828_v10, %v10665_v50  ;;  %v12830_v54 = vld [vmem:[#allocation48_spill] sm:$0xff]  ;;  %v12831_v17 = vld [vmem:[#allocation49_spill] sm:$0xff]  ;;  %v12838_v10 = vld [vmem:[#allocation30_spill] sm:$0xff] }
 0x48b   : > { %v10835_v0 = vadd.f32 %v10338_v13, %v3308_v40  ;;  %v10842_v43 = vadd.f32 %v12829_v9, %v10679_v8  ;;  %v10846_v57 = vadd.f32 %v12830_v54, %v10693_v26  ;;  %v10850_v37 = vadd.f32 %v12831_v17, %v10712_v39  ;;  %v10853_v13 = vpop.permute.xlu1 %4220  ;;  %v10855_v40 = vpop.permute.xlu0 %4204  ;;  %v12835_v8 = vld [vmem:[#allocation51_spill] sm:$0xff]  ;;  %v12836_v26 = vld [vmem:[#allocation28_spill] sm:$0xff]  ;;  %v10886_v17 = vld [vmem:[%s5938_s25 + $0x51] sm:$0xff] }
 0x48c   : > { %v4089_v50 = vstv %s10764_s26  ;;  %12832 = vst [vmem:[#allocation182_spill] sm:$0xff] %v10853_v13  ;;  %12833 = vst [vmem:[#allocation183_spill] sm:$0xff] %v10855_v40  ;;  %v10859_v55 = vadd.f32 %v12834_v28, %v10715_v16  ;;  %v10863_v19 = vadd.f32 %v12835_v8, %v10728_v31  ;;  %v10867_v33 = vadd.f32 %v12836_v26, %v10731_v15  ;;  %v12839_v15 = vld [vmem:[#allocation55_spill] sm:$0xff]  ;;  %v10909_v28 = vld [vmem:[%s5938_s25 + $0x59] sm:$0x3]  ;;  %s11379_s26 = sld [smem:[#allocation2 + $0x45]] }
 0x48d   : > { %v4097_v39 = vstv %s10778_s28  ;;  %v10872_v29 = vadd.f32 %v12837_v6, %v10734_v12  ;;  %4669 = vrot.lane.b32.xlu1 %v4662_v41, %s5818_s27  ;;  %4667 = vrot.lane.b32.xlu0 %v4661_v53, %s5818_s27  ;;  %v4681_v16 = vmul.f32 %v10374_v36, %v4680_v32  ;;  %v4663_v31 = vmul.f32 %v10409_v7, %v4660_v47  ;;  %v10892_v41 = vld [vmem:[%s5938_s25 + $0x49] sm:$0xff]  ;;  %s188_s28 = sand.u32 1, %s5806_s13  }
 0x48e   : > { %v10880_v9 = vadd.f32 %v12838_v10, %v10740_v46  ;;  %v10883_v54 = vadd.f32 %v12839_v15, %v3344_v21  ;;  %v10889_v12 = vmul.f32 %v10886_v17, %v4089_v50  ;;  %v10895_v53 = vmul.f32 %v10892_v41, %v4089_v50  ;;  %v12840_v46 = vld [vmem:[#allocation56_spill] sm:$0xff]  ;;  %12841 = vst [vmem:[#allocation184_spill] sm:$0xff] %v10909_v28  ;;  %v12844_v15 = vld [vmem:[#allocation65_spill] sm:$0xff] }
 0x48f   : > { %v10903_v47 = vadd.f32 %v12840_v46, %v10752_v20  ;;  %v10906_v21 = vmul.f32 %v10892_v41, %v4097_v39  ;;  %v10912_v8 = vmul.f32 %v10909_v28, %v4089_v50  ;;  %v4105_v26 = vstv %s10799_s29  ;;  %v10915_v6 = vpop.permute.xlu1 %4224  ;;  %v10917_v10 = vpop.permute.xlu0 %4222  ;;  %v12845_v20 = vld [vmem:[#allocation66_spill] sm:$0xff]  ;;  %s5612_s29 = smul.u32 640, %s188_s28 }
 0x490   : > { %12842 = vst [vmem:[#allocation185_spill] sm:$0xff] %v10915_v6  ;;  %12843 = vst [vmem:[#allocation186_spill] sm:$0xff] %v10917_v10  ;;  %v10922_v40 = vadd.f32 %v12844_v15, %v3351_v3  ;;  %v10925_v46 = vadd.f32 %v12845_v20, %v3350_v45  ;;  %v10928_v13 = vmul.f32 %v10909_v28, %v4097_v39  ;;  %v4113_v63 = vstv %s10817_s30  ;;  %v12848_v3 = vld [vmem:[#allocation351_spill] sm:$0xff]  ;;  %v12849_v45 = vld [vmem:[#allocation68_spill] sm:$0xff]  ;;  %s5511_s30 = sld [smem:[#allocation5 + $0x1]] }
 0x491   : > { %v10932_v50 = vmul.f32 %v10886_v17, %v4097_v39  ;;  %4687 = vrot.lane.b32.xlu1 %v4681_v16, %s5818_s27  ;;  %4671 = vrot.lane.b32.xlu0 %v4663_v31, %s5818_s27  ;;  %v4683_v10 = vmul.f32 %v10409_v7, %v4680_v32  ;;  %v4682_v6 = vmul.f32 %v10370_v51, %v4680_v32  ;;  %v12850_v39 = vld [vmem:[#allocation352_spill] sm:$0xff]  ;;  %v12851_v16 = vld [vmem:[#allocation69_spill] sm:$0xff] }
 0x492   : > { %12846 = vst [vmem:[#allocation187_spill] sm:$0xff] %v10928_v13  ;;  %v10939_v15 = vadd.f32 %v12848_v3, %v3358_v1  ;;  %v10942_v20 = vadd.f32 %v12849_v45, %v3352_v48  ;;  %v10945_v25 = vmul.f32 %v10886_v17, %v4105_v26  ;;  %v4700_v13 = vstv %s10838_s4  ;;  %v12856_v45 = vld [vmem:[#allocation70_spill] sm:$0xff]  ;;  %s11388_s4 = scalar_lea.vmem [#allocation7], %s5612_s29 }
 0x493   : > { %12847 = vst [vmem:[#allocation188_spill] sm:$0xff] %v10932_v50  ;;  %v10950_v50 = vadd.f32 %v12850_v39, %v10794_v23  ;;  %v10954_v31 = vadd.f32 %v12851_v16, %v10797_v14  ;;  %v10957_v32 = vmul.f32 %v10892_v41, %v4105_v26  ;;  %v10960_v1 = vmul.f32 %v10892_v41, %v4113_v63  ;;  %v10962_v48 = vpop.permute.xlu1 %4242  ;;  %v10964_v3 = vpop.permute.xlu0 %4240  ;;  %v12858_v39 = vld [vmem:[#allocation71_spill] sm:$0xff]  ;;  %s5097_s29 = sshll.u32 %s11388_s4, 4  ;;  %s11752_s29 = int_to_ptr.vmem [resolvable:$true] %s5097_s29 }
 0x494   : > { %12854 = vst [vmem:[#allocation191_spill] sm:$0xff] %v10962_v48  ;;  %12855 = vst [vmem:[#allocation192_spill] sm:$0xff] %v10964_v3  ;;  %v10968_v23 = vadd.f32 %v12856_v45, %v10806_v61  ;;  %v10972_v14 = vadd.f32 %v12858_v39, %v10809_v49  ;;  %v10975_v16 = vmul.f32 %v10909_v28, %v4105_v26  ;;  %v12863_v49 = vld [vmem:[#allocation72_spill] sm:$0xff]  ;;  %v12865_v39 = vld [vmem:[#allocation73_spill] sm:$0xff]  ;;  %v4720_v48 = vstv %s10899_s6  ;;  %s5525_s6 = sld [smem:[#allocation5 + $0x2]] }
 0x495   : > { %12852 = vst [vmem:[#allocation189_spill] sm:$0xff] %v10954_v31  ;;  %12853 = vst [vmem:[#allocation190_spill] sm:$0xff] %v10960_v1  ;;  %v10978_v31 = vmul.f32 %v10909_v28, %v4113_v63  ;;  %v10981_v1 = vmul.f32 %v10886_v17, %v4113_v63  ;;  %4691 = vrot.lane.b32.xlu1 %v4683_v10, %s5818_s27  ;;  %4689 = vrot.lane.b32.xlu0 %v4682_v6, %s5818_s27  ;;  %v4121_v63 = vstv %s10897_s5  ;;  %v12867_v6 = vld [vmem:[#allocation74_spill] sm:$0xff]  ;;  %s11038_s27 = sld [smem:[#allocation2 + $0x8f]]  ;;  %s11420_s5 = sld [smem:[#allocation2 + $0x69]] }
 0x496   : > { %12857 = vst [vmem:[#allocation193_spill] sm:$0xff] %v10968_v23  ;;  %12859 = vst [vmem:[#allocation194_spill] sm:$0xff] %v10972_v14  ;;  %v4702_v61 = vmul.f32 %v10370_v51, %v4700_v13  ;;  %v4701_v45 = vmul.f32 %v10374_v36, %v4700_v13  ;;  %v10991_v26 = vadd.f32 %v12863_v49, %v10812_v2  ;;  %v12869_v14 = vld [vmem:[#allocation77_spill] sm:$0xff]  ;;  %v11008_v23 = vstv %s10919_s7  ;;  %s11455_s7 = sld [smem:[#allocation2 + $0x8d]] }
 0x497   : > { %12860 = vst [vmem:[#allocation195_spill] sm:$0xff] %v10975_v16  ;;  %12861 = vst [vmem:[#allocation196_spill] sm:$0xff] %v10978_v31  ;;  %v10995_v3 = vadd.f32 %v12865_v39, %v10815_v34  ;;  %v3536_v10 = vadd.f32 %v12867_v6, %v10820_v4  ;;  %v3554_v16 = vadd.f32 %v12869_v14, %v10832_v58  ;;  %v11010_v2 = vpop.permute.xlu1 %4260  ;;  %v11012_v49 = vpop.permute.xlu0 %4244  ;;  %v12871_v34 = vld [vmem:[#allocation75_spill] sm:$0xff] }
 0x498   : > { %12862 = vst [vmem:[#allocation197_spill] sm:$0xff] %v10981_v1  ;;  %12864 = vst [vmem:[#allocation198_spill] sm:$0xff] %v10991_v26  ;;  %v12868_v1 = vld [vmem:[#allocation76_spill] sm:$0xff]  ;;  %v3535_v39 = vadd.f32 %v12871_v34, %v10835_v0  ;;  %v12873_v4 = vld [vmem:[#allocation359_spill] sm:$0xff]  ;;  %v11023_v58 = vmul.f32 %v10886_v17, %v4121_v63  ;;  %v4721_v14 = vmul.f32 %v10374_v36, %v4720_v48 }
 0x499   : > { %12866 = vst [vmem:[#allocation201_spill] sm:$0xff] %v10995_v3  ;;  %v3555_v31 = vadd.f32 %v12868_v1, %v10828_v56  ;;  %12870 = vst [vmem:[#allocation202_spill] sm:$0xff] %v11012_v49  ;;  %v12872_v3 = vld [vmem:[#allocation358_spill] sm:$0xff]  ;;  %v3556_v6 = vadd.f32 %v12873_v4, %v10846_v57  ;;  %4709 = vrot.lane.b32.xlu1 %v4702_v61, %s5819_s9  ;;  %4707 = vrot.lane.b32.xlu0 %v4701_v45, %s5819_s9 }
 0x49a   : > { %v3574_v26 = vadd.f32 %v12872_v3, %v10842_v43  ;;  %v12874_v56 = vld [vmem:[#allocation82_spill] sm:$0xff]  ;;  %v4703_v0 = vmul.f32 %v10409_v7, %v4700_v13  ;;  %v12876_v43 = vld [vmem:[#allocation115_spill] sm:$0xff]  ;;  %v11032_v57 = vmul.f32 %v10892_v41, %v4121_v63  ;;  %v3706_v45 = vadd.f32 %v10508_v11, %v3554_v16 }
 0x49b   : > { %v3576_v1 = vadd.f32 %v12874_v56, %v10850_v37  ;;  %v12875_v34 = vld [vmem:[#allocation114_spill] sm:$0xff]  ;;  %v3695_v3 = vadd.f32 %v12876_v43, %v3535_v39  ;;  %v11036_v37 = vmul.f32 %v10892_v41, %v11008_v23  ;;  %v3707_v61 = vadd.f32 %v10502_v30, %v3555_v31  ;;  %v11049_v39 = vpop.permute.xlu1 %4264  ;;  %v11051_v4 = vpop.permute.xlu0 %4262  ;;  %v12879_v56 = vld [vmem:[#allocation83_spill] sm:$0xff]  ;;  %v12880_v31 = vld [vmem:[#allocation88_spill] sm:$0xff] }
 0x49c   : > { %v3696_v49 = vadd.f32 %v12875_v34, %v3536_v10  ;;  %v11043_v13 = vmul.f32 %v10909_v28, %v4121_v63  ;;  %v11047_v10 = vmul.f32 %v10909_v28, %v11008_v23  ;;  %12877 = vst [vmem:[#allocation199_spill] sm:$0xff] %v11049_v39  ;;  %12878 = vst [vmem:[#allocation200_spill] sm:$0xff] %v11051_v4  ;;  %v11065_v39 = vstv %s10987_s8  ;;  %s11468_s8 = sld [smem:[#allocation5 + $0x3]] }
 0x49d   : > { %v3575_v34 = vadd.f32 %v12879_v56, %v10859_v55  ;;  %v3714_v43 = vadd.f32 %v10525_v44, %v3574_v26  ;;  %v3708_v30 = vadd.f32 %v10531_v60, %v3556_v6  ;;  %v3716_v11 = vadd.f32 %v10538_v59, %v3576_v1  ;;  %4727 = vrot.lane.b32.xlu1 %v4721_v14, %s5819_s9  ;;  %v12882_v55 = vld [vmem:[#allocation89_spill] sm:$0xff]  ;;  %v12884_v1 = vld [vmem:[#allocation91_spill] sm:$0xff] }
 0x49e   : > { %v3595_v16 = vadd.f32 %v12880_v31, %v10863_v19  ;;  %4711 = vrot.lane.b32.xlu0 %v4703_v0, %s5819_s9  ;;  %v4723_v63 = vmul.f32 %v10409_v7, %v4720_v48  ;;  %v4722_v4 = vmul.f32 %v10370_v51, %v4720_v48  ;;  %12881 = vst [vmem:[#allocation203_spill] sm:$0xff] %v11065_v39  ;;  %v4740_v26 = vstv %s10999_s10  ;;  %v12883_v19 = vld [vmem:[#allocation90_spill] sm:$0xff]  ;;  %s11504_s10 = sld [smem:[#allocation2 + $0xb1]] }
 0x49f   : > { %v3594_v44 = vadd.f32 %v12882_v55, %v10867_v33  ;;  %v3764_v60 = vadd.f32 %v10721_v38, %v3696_v49  ;;  %v3763_v59 = vadd.f32 %v10737_v24, %v3695_v3  ;;  %v3614_v6 = vadd.f32 %v12883_v19, %v10872_v29  ;;  %v11076_v0 = vpop.permute.xlu1 %4282  ;;  %v11078_v48 = vpop.permute.xlu0 %4280  ;;  %v12887_v24 = vld [vmem:[#allocation92_spill] sm:$0xff]  ;;  %v12888_v49 = vld [vmem:[#allocation93_spill] sm:$0xff]  ;;  %v12891_v19 = vld [vmem:[#allocation27_spill] sm:$0xff] }
 0x4a0   : > { %v3596_v14 = vadd.f32 %v12884_v1, %v10880_v9  ;;  %12885 = vst [vmem:[#allocation204_spill] sm:$0xff] %v11076_v0  ;;  %12886 = vst [vmem:[#allocation205_spill] sm:$0xff] %v11078_v48  ;;  %v4148_v56 = vmul.f32 %v10909_v28, %v11065_v39  ;;  %v4147_v38 = vmul.f32 %v10886_v17, %v11065_v39  ;;  %v12889_v3 = vld [vmem:[#allocation136_spill] sm:$0xff]  ;;  %v12890_v9 = vld [vmem:[#allocation137_spill] sm:$0xff] }
 0x4a1   : > { %v3616_v33 = vadd.f32 %v12887_v24, %v10883_v54  ;;  %v3615_v29 = vadd.f32 %v12888_v49, %v10903_v47  ;;  %v3924_v31 = vadd.f32 %v12889_v3, %v3764_v60  ;;  %v3923_v55 = vadd.f32 %v12890_v9, %v3763_v59  ;;  %4731 = vrot.lane.b32.xlu1 %v4723_v63, %s5819_s9  ;;  %v12892_v28 = vld [vmem:[#allocation29_spill] sm:$0xff]  ;;  %v12895_v3 = vld [vmem:[#allocation138_spill] sm:$0xff]  ;;  %v12896_v9 = vld [vmem:[#allocation139_spill] sm:$0xff] }
 0x4a2   : > { %v3783_v1 = vadd.f32 %v12891_v19, %v3707_v61  ;;  %4729 = vrot.lane.b32.xlu0 %v4722_v4, %s5819_s9  ;;  %v4742_v48 = vmul.f32 %v10370_v51, %v4740_v26  ;;  %v4741_v0 = vmul.f32 %v10374_v36, %v4740_v26  ;;  %v3782_v39 = vadd.f32 %v12892_v28, %v3706_v45  ;;  %v12893_v28 = vld [vmem:[#allocation31_spill] sm:$0xff]  ;;  %v12894_v45 = vld [vmem:[#allocation169_spill] sm:$0xff] }
 0x4a3   : > { %v4084_v54 = vadd.f32 %v10642_v35, %v3924_v31  ;;  %v4083_v47 = vadd.f32 %v10644_v52, %v3923_v55  ;;  %v4760_v24 = vstv %s11038_s27  ;;  %v3715_v60 = vadd.f32 %v10541_v27, %v3575_v34  ;;  %v11107_v59 = vpop.permute.xlu1 %4300  ;;  %v11109_v49 = vpop.permute.xlu0 %4284  ;;  %v12897_v34 = vld [vmem:[#allocation32_spill] sm:$0xff]  ;;  %v12902_v19 = vld [vmem:[#allocation141_spill] sm:$0xff]  ;;  %s5553_s27 = sld [smem:[#allocation5 + $0x4]] }
 0x4a4   : > { %v3723_v61 = vadd.f32 %v10557_v18, %v3595_v16  ;;  %v3722_v63 = vadd.f32 %v10560_v62, %v3594_v44  ;;  %v11105_v4 = vadd.f32 %v10574_v22, %v3614_v6  ;;  %v3802_v35 = vadd.f32 %v12893_v28, %v3714_v43  ;;  %v12898_v16 = vld [vmem:[#allocation170_spill] sm:$0xff]  ;;  %v12899_v43 = vld [vmem:[#allocation173_spill] sm:$0xff] }
 0x4a5   : > { %v11113_v52 = vadd.f32 %v12894_v45, %v3596_v14  ;;  %v3943_v31 = vadd.f32 %v12895_v3, %v3783_v1  ;;  %v3942_v27 = vadd.f32 %v12896_v9, %v3782_v39  ;;  %v3784_v18 = vadd.f32 %v12897_v34, %v3708_v30  ;;  %4749 = vrot.lane.b32.xlu1 %v4742_v48, %s5819_s9  ;;  %v12900_v39 = vld [vmem:[#allocation94_spill] sm:$0xff]  ;;  %v12901_v48 = vld [vmem:[#allocation95_spill] sm:$0xff] }
 0x4a6   : > { %4747 = vrot.lane.b32.xlu0 %v4741_v0, %s5819_s9  ;;  %v4761_v22 = vmul.f32 %v10374_v36, %v4760_v24  ;;  %v4743_v62 = vmul.f32 %v10409_v7, %v4740_v26  ;;  %v11123_v44 = vadd.f32 %v12898_v16, %v3616_v33  ;;  %v11126_v6 = vadd.f32 %v12899_v43, %v3615_v29  ;;  %v12903_v28 = vld [vmem:[#allocation142_spill] sm:$0xff] }
 0x4a7   : > { %v4151_v14 = vadd.f32 %v4148_v56, %v4084_v54  ;;  %v4150_v55 = vadd.f32 %v4147_v38, %v4083_v47  ;;  %v3635_v30 = vadd.f32 %v12900_v39, %v10922_v40  ;;  %v3634_v0 = vadd.f32 %v12901_v48, %v10925_v46  ;;  %v4305_v33 = vpop.permute.xlu1 %4304  ;;  %v4303_v45 = vpop.permute.xlu0 %4302  ;;  %v12904_v47 = vld [vmem:[#allocation12_spill] sm:$0xff]  ;;  %v12905_v3 = vld [vmem:[#allocation34_spill] sm:$0xff]  ;;  %v12910_v39 = vld [vmem:[#allocation13_spill] sm:$0xff] }
 0x4a8   : > { %v3962_v1 = vadd.f32 %v12902_v19, %v3802_v35  ;;  %v3944_v26 = vadd.f32 %v12903_v28, %v3784_v18  ;;  %v4094_v29 = vadd.f32 %v10889_v12, %v3943_v31  ;;  %v4093_v56 = vadd.f32 %v10895_v53, %v3942_v27  ;;  %v12906_v27 = vld [vmem:[#allocation96_spill] sm:$0xff]  ;;  %v12907_v18 = vld [vmem:[#allocation117_spill] sm:$0xff]  ;;  %v12912_v19 = vld [vmem:[#allocation67_spill] sm:$0xff] }
 0x4a9   : > { %v11138_v38 = vadd.f32 %v4305_v33, %v4151_v14  ;;  %v11140_v54 = vadd.f32 %v4303_v45, %v4150_v55  ;;  %v3804_v40 = vadd.f32 %v12904_v47, %v3716_v11  ;;  %4767 = vrot.lane.b32.xlu1 %v4761_v22, %s5819_s9  ;;  %v4763_v46 = vmul.f32 %v10409_v7, %v4760_v24  ;;  %v12913_v28 = vld [vmem:[#allocation177_spill] sm:$0xff] }
 0x4aa   : > { %4751 = vrot.lane.b32.xlu0 %v4743_v62, %s5819_s9  ;;  %v4762_v35 = vmul.f32 %v10370_v51, %v4760_v24  ;;  %v3803_v9 = vadd.f32 %v12905_v3, %v3715_v60  ;;  %v4170_v12 = vadd.f32 %v10682_v5, %v4094_v29  ;;  %v4169_v53 = vadd.f32 %v10684_v42, %v4093_v56  ;;  %v12908_v24 = vld [vmem:[#allocation149_spill] sm:$0xff]  ;;  %v12909_v60 = vld [vmem:[#allocation150_spill] sm:$0xff]  ;;  %v12915_v29 = vld [vmem:[#allocation175_spill] sm:$0xff] }
 0x4ab   : > { %v4780_v31 = vstv %s11099_s11  ;;  %v3654_v34 = vadd.f32 %v12906_v27, %v10939_v15  ;;  %v3823_v11 = vadd.f32 %v12907_v18, %v3723_v61  ;;  %v4101_v22 = vadd.f32 %v10906_v21, %v3962_v1  ;;  %v4323_v16 = vpop.permute.xlu1 %4322  ;;  %v4321_v43 = vpop.permute.xlu0 %4320  ;;  %v12911_v15 = vld [vmem:[#allocation174_spill] sm:$0xff]  ;;  %v12914_v45 = vld [vmem:[#allocation97_spill] sm:$0xff]  ;;  %s11535_s11 = sld [smem:[#allocation2 + $0xd5]] }
 0x4ac   : > { %v4095_v62 = vadd.f32 %v10912_v8, %v3944_v26  ;;  %v3964_v14 = vadd.f32 %v12908_v24, %v3804_v40  ;;  %v3963_v55 = vadd.f32 %v12909_v60, %v3803_v9  ;;  %v11158_v5 = vadd.f32 %v4323_v16, %v4170_v12  ;;  %v12916_v47 = vld [vmem:[#allocation157_spill] sm:$0xff]  ;;  %v12918_v12 = vld [vmem:[#allocation187_spill] sm:$0xff]  ;;  %v12922_v24 = vld [vmem:[#allocation36_spill] sm:$0xff] }
 0x4ad   : > { %v11160_v42 = vadd.f32 %v4321_v43, %v4169_v53  ;;  %v3822_v48 = vadd.f32 %v12910_v39, %v3722_v63  ;;  %4771 = vrot.lane.b32.xlu1 %v4763_v46, %s5819_s9  ;;  %v4782_v21 = vmul.f32 %v10370_v51, %v4780_v31  ;;  %v4781_v8 = vmul.f32 %v10374_v36, %v4780_v31  ;;  %v12917_v46 = vld [vmem:[#allocation158_spill] sm:$0xff]  ;;  %v12919_v53 = vld [vmem:[#allocation188_spill] sm:$0xff]  ;;  %v12924_v39 = vld [vmem:[#allocation179_spill] sm:$0xff] }
 0x4ae   : > { %4769 = vrot.lane.b32.xlu0 %v4762_v35, %s5819_s9  ;;  %v3739_v61 = vadd.f32 %v12911_v15, %v3635_v30  ;;  %v4189_v1 = vadd.f32 %v12912_v19, %v4101_v22  ;;  %v4171_v26 = vadd.f32 %v12913_v28, %v4095_v62  ;;  %v4800_v33 = vstv %s11128_s17  ;;  %v12920_v62 = vld [vmem:[#allocation176_spill] sm:$0xff]  ;;  %v12923_v60 = vld [vmem:[#allocation178_spill] sm:$0xff]  ;;  %v12927_v28 = vld [vmem:[#allocation161_spill] sm:$0xff]  ;;  %s11539_s17 = sld [smem:[#allocation5 + $0x5]] }
 0x4af   : > { %v3636_v63 = vadd.f32 %v12914_v45, %v10942_v20  ;;  %v3738_v56 = vadd.f32 %v12915_v29, %v3634_v0  ;;  %v3983_v40 = vadd.f32 %v12916_v47, %v3823_v11  ;;  %v3982_v35 = vadd.f32 %v12917_v46, %v3822_v48  ;;  %v4341_v3 = vpop.permute.xlu1 %4340  ;;  %v4325_v9 = vpop.permute.xlu0 %4324  ;;  %v12921_v11 = vld [vmem:[#allocation35_spill] sm:$0xff]  ;;  %v12929_v46 = vld [vmem:[#allocation121_spill] sm:$0xff] }
 0x4b0   : > { %v4103_v30 = vadd.f32 %v12918_v12, %v3964_v14  ;;  %v4102_v27 = vadd.f32 %v12919_v53, %v3963_v55  ;;  %v11180_v18 = vadd.f32 %v4341_v3, %v4189_v1  ;;  %v11182_v22 = vadd.f32 %v4325_v9, %v4171_v26  ;;  %v12928_v26 = vld [vmem:[#allocation162_spill] sm:$0xff]  ;;  %v12932_v9 = vld [vmem:[#allocation181_spill] sm:$0xff] }
 0x4b1   : > { %v3746_v16 = vadd.f32 %v12920_v62, %v3654_v34  ;;  %4789 = vrot.lane.b32.xlu1 %v4782_v21, %s5819_s9  ;;  %v4801_v20 = vmul.f32 %v10374_v36, %v4800_v33  ;;  %v4783_v0 = vmul.f32 %v10409_v7, %v4780_v31  ;;  %v3842_v43 = vadd.f32 %v12921_v11, %v11105_v4  ;;  %v12925_v34 = vld [vmem:[#allocation120_spill] sm:$0xff]  ;;  %v12933_v53 = vld [vmem:[#allocation189_spill] sm:$0xff]  ;;  %v12936_v11 = vld [vmem:[#allocation106_spill] sm:$0xff] }
 0x4b2   : > { %4787 = vrot.lane.b32.xlu0 %v4781_v8, %s5819_s9  ;;  %v3824_v14 = vadd.f32 %v12922_v24, %v11113_v52  ;;  %v4191_v55 = vadd.f32 %v12923_v60, %v4103_v30  ;;  %v4190_v48 = vadd.f32 %v12924_v39, %v4102_v27  ;;  %v3844_v21 = vadd.f32 %v12925_v34, %v11123_v44  ;;  %v12926_v8 = vld [vmem:[#allocation59_spill] sm:$0xff]  ;;  %v12938_v24 = vld [vmem:[#allocation164_spill] sm:$0xff] }
 0x4b3   : > { %v3740_v15 = vadd.f32 %v12926_v8, %v3636_v63  ;;  %v4110_v19 = vadd.f32 %v10945_v25, %v3983_v40  ;;  %v4109_v31 = vadd.f32 %v10957_v32, %v3982_v35  ;;  %v4345_v4 = vpop.permute.xlu1 %4344  ;;  %v4343_v1 = vpop.permute.xlu0 %4342  ;;  %v4002_v52 = vadd.f32 %v12927_v28, %v3842_v43  ;;  %v12930_v63 = vld [vmem:[#allocation98_spill] sm:$0xff]  ;;  %v12931_v35 = vld [vmem:[#allocation180_spill] sm:$0xff]  ;;  %v12934_v27 = vld [vmem:[#allocation99_spill] sm:$0xff] }
 0x4b4   : > { %v3984_v45 = vadd.f32 %v12928_v26, %v3824_v14  ;;  %v11204_v29 = vadd.f32 %v4345_v4, %v4191_v55  ;;  %v11206_v47 = vadd.f32 %v4343_v1, %v4190_v48  ;;  %v3843_v44 = vadd.f32 %v12929_v46, %v11126_v6  ;;  %v12935_v6 = vld [vmem:[#allocation193_spill] sm:$0xff]  ;;  %v12937_v43 = vld [vmem:[#allocation163_spill] sm:$0xff]  ;;  %v12939_v55 = vld [vmem:[#allocation190_spill] sm:$0xff] }
 0x4b5   : > { %4807 = vrot.lane.b32.xlu1 %v4801_v20, %s5819_s9  ;;  %v4803_v25 = vmul.f32 %v10409_v7, %v4800_v33  ;;  %v4802_v32 = vmul.f32 %v10370_v51, %v4800_v33  ;;  %v3656_v40 = vadd.f32 %v12930_v63, %v10950_v50  ;;  %v4210_v3 = vadd.f32 %v12931_v35, %v4110_v19  ;;  %v12940_v39 = vld [vmem:[#allocation195_spill] sm:$0xff]  ;;  %v12942_v1 = vld [vmem:[#allocation128_spill] sm:$0xff]  ;;  %v12945_v63 = vld [vmem:[#allocation194_spill] sm:$0xff] }
 0x4b6   : > { %4791 = vrot.lane.b32.xlu0 %v4783_v0, %s5819_s9  ;;  %v4209_v12 = vadd.f32 %v12932_v9, %v4109_v31  ;;  %v4820_v30 = vstv %s11171_s19  ;;  %v3655_v62 = vadd.f32 %v12934_v27, %v12933_v53  ;;  %v3675_v20 = vadd.f32 %v12936_v11, %v12935_v6  ;;  %v12941_v19 = vld [vmem:[#allocation127_spill] sm:$0xff]  ;;  %v12949_v53 = vld [vmem:[#allocation197_spill] sm:$0xff]  ;;  %s11577_s19 = sld [smem:[#allocation2 + $0xf9]] }
 0x4b7   : > { %v4004_v0 = vadd.f32 %v12937_v43, %v3844_v21  ;;  %v4003_v14 = vadd.f32 %v12938_v24, %v3843_v44  ;;  %v4363_v33 = vpop.permute.xlu1 %4362  ;;  %v4361_v60 = vpop.permute.xlu0 %4360  ;;  %v4117_v50 = vadd.f32 %v12939_v55, %v4002_v52  ;;  %v4111_v48 = vadd.f32 %v12940_v39, %v3984_v45  ;;  %v12943_v52 = vld [vmem:[#allocation182_spill] sm:$0xff]  ;;  %v12944_v45 = vld [vmem:[#allocation183_spill] sm:$0xff]  ;;  %v12950_v11 = vld [vmem:[#allocation53_spill] sm:$0xff] }
 0x4b8   : > { %v11227_v34 = vadd.f32 %v4363_v33, %v4210_v3  ;;  %v11229_v8 = vadd.f32 %v4361_v60, %v4209_v12  ;;  %v3863_v31 = vadd.f32 %v12941_v19, %v3739_v61  ;;  %v4822_v21 = vmul.f32 %v10370_v51, %v4820_v30  ;;  %v12946_v35 = vld [vmem:[#allocation103_spill] sm:$0xff]  ;;  %v12948_v12 = vld [vmem:[#allocation196_spill] sm:$0xff]  ;;  %v12951_v24 = vld [vmem:[#allocation54_spill] sm:$0xff] }
 0x4b9   : > { %4811 = vrot.lane.b32.xlu1 %v4803_v25, %s5819_s9  ;;  %v4821_v4 = vmul.f32 %v10374_v36, %v4820_v30  ;;  %v3862_v28 = vadd.f32 %v12942_v1, %v3738_v56  ;;  %v4229_v26 = vadd.f32 %v12943_v52, %v4117_v50  ;;  %v4211_v46 = vadd.f32 %v12944_v45, %v4111_v48  ;;  %v12947_v3 = vld [vmem:[#allocation43_spill] sm:$0xff]  ;;  %v12952_v55 = vld [vmem:[#allocation44_spill] sm:$0xff]  ;;  %v12954_v48 = vld [vmem:[#allocation185_spill] sm:$0xff] }
 0x4ba   : > { %4809 = vrot.lane.b32.xlu0 %v4802_v32, %s5819_s9  ;;  %v4840_v44 = vstv %s11195_s20  ;;  %v3674_v61 = vadd.f32 %v12946_v35, %v12945_v63  ;;  %v3882_v9 = vadd.f32 %v12947_v3, %v3746_v16  ;;  %v4119_v25 = vadd.f32 %v12948_v12, %v4004_v0  ;;  %v12956_v52 = vld [vmem:[#allocation61_spill] sm:$0xff]  ;;  %s5581_s20 = sld [smem:[#allocation5 + $0x6]] }
 0x4bb   : > { %v4118_v32 = vadd.f32 %v12949_v53, %v4003_v14  ;;  %v4381_v27 = vpop.permute.xlu1 %4380  ;;  %v4365_v6 = vpop.permute.xlu0 %4364  ;;  %v4023_v43 = vadd.f32 %v12950_v11, %v3863_v31  ;;  %v4022_v56 = vadd.f32 %v12951_v24, %v3862_v28  ;;  %v3864_v50 = vadd.f32 %v12952_v55, %v3740_v15  ;;  %v12953_v14 = vld [vmem:[#allocation60_spill] sm:$0xff]  ;;  %v12955_v31 = vld [vmem:[#allocation186_spill] sm:$0xff]  ;;  %v12958_v45 = vld [vmem:[#allocation165_spill] sm:$0xff] }
 0x4bc   : > { %v11249_v33 = vadd.f32 %v4381_v27, %v4229_v26  ;;  %v11251_v60 = vadd.f32 %v4365_v6, %v4211_v46  ;;  %v4841_v16 = vmul.f32 %v10374_v36, %v4840_v44  ;;  %v4823_v0 = vmul.f32 %v10409_v7, %v4820_v30  ;;  %v12957_v26 = vld [vmem:[#allocation62_spill] sm:$0xff]  ;;  %v12964_v11 = vld [vmem:[#allocation192_spill] sm:$0xff]  ;;  %v12967_v55 = vld [vmem:[#allocation201_spill] sm:$0xff] }
 0x4bd   : > { %4829 = vrot.lane.b32.xlu1 %v4822_v21, %s5819_s9  ;;  %v3748_v39 = vadd.f32 %v12953_v14, %v3656_v40  ;;  %v4231_v19 = vadd.f32 %v12954_v48, %v4119_v25  ;;  %v4230_v1 = vadd.f32 %v12955_v31, %v4118_v32  ;;  %v4131_v28 = vmul.f32 %v10886_v17, %v11008_v23  ;;  %v12959_v46 = vld [vmem:[#allocation166_spill] sm:$0xff]  ;;  %v12960_v25 = vld [vmem:[#allocation63_spill] sm:$0xff] }
 0x4be   : > { %4827 = vrot.lane.b32.xlu0 %v4821_v4, %s5819_s9  ;;  %v3747_v15 = vadd.f32 %v12956_v52, %v3655_v62  ;;  %v3755_v21 = vadd.f32 %v12957_v26, %v3675_v20  ;;  %v4042_v4 = vadd.f32 %v12958_v45, %v3882_v9  ;;  %v4024_v36 = vadd.f32 %v12959_v46, %v3864_v50  ;;  %v12961_v9 = vld [vmem:[#allocation130_spill] sm:$0xff]  ;;  %v12971_v52 = vld [vmem:[#allocation132_spill] sm:$0xff]  ;;  %v12972_v26 = vld [vmem:[#allocation133_spill] sm:$0xff] }
 0x4bf   : > { %v4385_v63 = vpop.permute.xlu1 %4384  ;;  %v4383_v30 = vpop.permute.xlu0 %4382  ;;  %v4126_v35 = vadd.f32 %v11023_v58, %v4023_v43  ;;  %v4125_v40 = vadd.f32 %v11032_v57, %v4022_v56  ;;  %v3754_v23 = vadd.f32 %v12960_v25, %v3674_v61  ;;  %v4137_v53 = vstv %s11232_s24  ;;  %v12962_v58 = vld [vmem:[#allocation131_spill] sm:$0xff]  ;;  %v12965_v24 = vld [vmem:[#allocation198_spill] sm:$0xff]  ;;  %v12966_v56 = vld [vmem:[#allocation109_spill] sm:$0xff]  ;;  %s11608_s24 = sld [smem:[#allocation2 + $0x11d]] }
 0x4c0   : > { %v11269_v3 = vadd.f32 %v4385_v63, %v4231_v19  ;;  %v11271_v12 = vadd.f32 %v4383_v30, %v4230_v1  ;;  %v4843_v62 = vmul.f32 %v10409_v7, %v4840_v44  ;;  %v4842_v20 = vmul.f32 %v10370_v51, %v4840_v44  ;;  %v12963_v57 = vld [vmem:[#allocation191_spill] sm:$0xff]  ;;  %v12968_v50 = vld [vmem:[#allocation110_spill] sm:$0xff]  ;;  %v12969_v44 = vld [vmem:[#allocation57_spill] sm:$0xff] }
 0x4c1   : > { %4847 = vrot.lane.b32.xlu1 %v4841_v16, %s5819_s9  ;;  %v3884_v32 = vadd.f32 %v12961_v9, %v3748_v39  ;;  %v3883_v27 = vadd.f32 %v12962_v58, %v3747_v15  ;;  %v4250_v6 = vadd.f32 %v12963_v57, %v4126_v35  ;;  %v4249_v43 = vadd.f32 %v12964_v11, %v4125_v40  ;;  %v12970_v48 = vld [vmem:[#allocation58_spill] sm:$0xff]  ;;  %v12974_v63 = vld [vmem:[#allocation64_spill] sm:$0xff]  ;;  %v12976_v25 = vld [vmem:[#allocation167_spill] sm:$0xff] }
 0x4c2   : > { %4831 = vrot.lane.b32.xlu0 %v4823_v0, %s5819_s9  ;;  %v3694_v61 = vadd.f32 %v12966_v56, %v12965_v24  ;;  %v3676_v16 = vadd.f32 %v12968_v50, %v12967_v55  ;;  %v4133_v0 = vadd.f32 %v11036_v37, %v4042_v4  ;;  %v4127_v7 = vadd.f32 %v11043_v13, %v4024_v36  ;;  %v12973_v13 = vld [vmem:[#allocation202_spill] sm:$0xff]  ;;  %v12975_v35 = vld [vmem:[#allocation348_spill] sm:$0xff] }
 0x4c3   : > { %v4403_v14 = vpop.permute.xlu1 %4402  ;;  %v4401_v51 = vpop.permute.xlu0 %4400  ;;  %v4044_v39 = vadd.f32 %v12969_v44, %v3884_v32  ;;  %v4043_v19 = vadd.f32 %v12970_v48, %v3883_v27  ;;  %v3903_v15 = vadd.f32 %v12971_v52, %v3755_v21  ;;  %v3902_v45 = vadd.f32 %v12972_v26, %v3754_v23  ;;  %v12977_v9 = vld [vmem:[#allocation168_spill] sm:$0xff] }
 0x4c4   : > { %v11291_v31 = vadd.f32 %v4403_v14, %v4250_v6  ;;  %v11293_v1 = vadd.f32 %v4401_v51, %v4249_v43  ;;  %v4269_v37 = vadd.f32 %v11010_v2, %v4133_v0  ;;  %v4251_v4 = vadd.f32 %v12973_v13, %v4127_v7  ;;  %v12979_v6 = vld [vmem:[#allocation135_spill] sm:$0xff]  ;;  %v12981_v56 = vld [vmem:[#allocation200_spill] sm:$0xff] }
 0x4c5   : > { %4851 = vrot.lane.b32.xlu1 %v4843_v62, %s5819_s9  ;;  %v4139_v46 = vmul.f32 %v10886_v17, %v4137_v53  ;;  %v4138_v36 = vmul.f32 %v10892_v41, %v4137_v53  ;;  %v3762_v30 = vadd.f32 %v12974_v63, %v3694_v61  ;;  %v3756_v40 = vadd.f32 %v12975_v35, %v3676_v16  ;;  %v12978_v17 = vld [vmem:[#allocation134_spill] sm:$0xff]  ;;  %v12980_v43 = vld [vmem:[#allocation199_spill] sm:$0xff]  ;;  %v12983_v7 = vld [vmem:[#allocation184_spill] sm:$0xff] }
 0x4c6   : > { %4849 = vrot.lane.b32.xlu0 %v4842_v20, %s5819_s9  ;;  %v4063_v21 = vadd.f32 %v12976_v25, %v3903_v15  ;;  %v4062_v23 = vadd.f32 %v12977_v9, %v3902_v45  ;;  %v4135_v20 = vadd.f32 %v11047_v10, %v4044_v39  ;;  %v4134_v58 = vadd.f32 %v4131_v28, %v4043_v19  ;;  %v12982_v16 = vld [vmem:[#allocation203_spill] sm:$0xff]  ;;  %v12985_v39 = vld [vmem:[#allocation172_spill] sm:$0xff]  ;;  %v12987_v45 = vld [vmem:[#allocation205_spill] sm:$0xff]  ;;  %s5487_s9 = sld [smem:[#allocation2 + $0x21]] }
 0x4c7   : > { %v4421_v32 = vpop.permute.xlu1 %4420  ;;  %v4405_v62 = vpop.permute.xlu0 %4404  ;;  %v3922_v57 = vadd.f32 %v12978_v17, %v3762_v30  ;;  %v3904_v11 = vadd.f32 %v12979_v6, %v3756_v40  ;;  %v4146_v0 = vmul.f32 %v10892_v41, %v12982_v16  ;;  %v4140_v10 = vmul.f32 %v12983_v7, %v4137_v53  ;;  %v12984_v51 = vld [vmem:[#allocation171_spill] sm:$0xff]  ;;  %v12986_v15 = vld [vmem:[#allocation204_spill] sm:$0xff] }
 0x4c8   : > { %v11308_v2 = vadd.f32 %v4421_v32, %v4269_v37  ;;  %v11310_v27 = vadd.f32 %v4405_v62, %v4251_v4  ;;  %v4271_v24 = vadd.f32 %v12980_v43, %v4135_v20  ;;  %v4270_v61 = vadd.f32 %v12981_v56, %v4134_v58 }
 0x4c9   : > { %v4142_v55 = vadd.f32 %v4139_v46, %v4063_v21  ;;  %v4141_v50 = vadd.f32 %v4138_v36, %v4062_v23  ;;  %v4082_v44 = vadd.f32 %v12984_v51, %v3922_v57  ;;  %v4064_v48 = vadd.f32 %v12985_v39, %v3904_v11 }
 0x4ca   : > { %v4888_v39 = vstv %s5511_s30 }
 0x4cb   : > { %v4425_v28 = vpop.permute.xlu1 %4424  ;;  %v4423_v14 = vpop.permute.xlu0 %4422  ;;  %v4290_v26 = vadd.f32 %v12986_v15, %v4142_v55  ;;  %v4289_v37 = vadd.f32 %v12987_v45, %v4141_v50  ;;  %v4149_v46 = vadd.f32 %v4146_v0, %v4082_v44  ;;  %v4143_v41 = vadd.f32 %v4140_v10, %v4064_v48  ;;  %v11427_v48 = vld [vmem:[%s5938_s25 + $0x52] sm:$0xff]  ;;  %5512 = vst.msk [vmem:[%s11388_s4 + $0x50] sm:$0xff] %vm4859_vm0, %v4888_v39 }
 0x4cc   : > { %v11321_v19 = vadd.f32 %v4425_v28, %v4271_v24  ;;  %v11323_v52 = vadd.f32 %v4423_v14, %v4270_v61  ;;  %v12988_v28 = vld [vmem:[#allocation11_spill] sm:$0xff]  ;;  %v4476_v14 = vstv %s5487_s9  ;;  %5513 = vst.msk [vmem:[%s11388_s4 + $0x58] sm:$0xff] %vm4859_vm0, %v4888_v39  ;;  %5514 = vst.msk [vmem:[%s11388_s4 + $0x60] sm:$0xff] %vm4859_vm0, %v4888_v39  ;;  %s11612_s9 = sld [smem:[#allocation5 + $0x7]] }
 0x4cd   : > { %v4309_v63 = vadd.f32 %v11107_v59, %v4149_v46  ;;  %v4291_v30 = vadd.f32 %v11109_v49, %v4143_v41  ;;  %4864 = vst.msk [vmem:[%s11388_s4 + $0x20] sm:$0xff] %vm4859_vm0, %v12988_v28  ;;  %4865 = vst.msk [vmem:[%s11388_s4 + $0x28] sm:$0xff] %vm4859_vm0, %v12988_v28  ;;  %v4478_v15 = vmul.f32 %v11427_v48, %v4476_v14 }
 0x4ce   : > { %4860 = vst.msk [vmem:[%s11388_s4] sm:$0xff] %vm4859_vm0, %v12988_v28  ;;  %4861 = vst.msk [vmem:[%s11388_s4 + $0x8] sm:$0xff] %vm4859_vm0, %v12988_v28 }
 0x4cf   : > { %v4443_v13 = vpop.permute.xlu1 %4442  ;;  %v4441_v4 = vpop.permute.xlu0 %4440  ;;  %4862 = vst.msk [vmem:[%s11388_s4 + $0x10] sm:$0xff] %vm4859_vm0, %v12988_v28  ;;  %4863 = vst.msk [vmem:[%s11388_s4 + $0x18] sm:$0xff] %vm4859_vm0, %v12988_v28  ;;  %v4481_v46 = vadd.f32 %v4478_v15, %v11158_v5 }
 0x4d0   : > { %v11327_v36 = vadd.f32 %v4443_v13, %v4290_v26  ;;  %v11329_v53 = vadd.f32 %v4441_v4, %v4289_v37  ;;  %4866 = vst.msk [vmem:[%s11388_s4 + $0x30] sm:$0xff] %vm4859_vm0, %v12988_v28  ;;  %4867 = vst.msk [vmem:[%s11388_s4 + $0x38] sm:$0xff] %vm4859_vm0, %v12988_v28  ;;  %v11431_v26 = vld [vmem:[%s5938_s25 + $0x4a] sm:$0xff]  ;;  %v4484_v37 = vstv %s11379_s26  ;;  %s5614_s26 = smul.u32 10240, %s5865_s16  ;;  %s11760_s16 = scalar_lea.sflag [#allocation3], %s188_s28 }
 0x4d1   : > { %4868 = vst.msk [vmem:[%s11388_s4 + $0x40] sm:$0xff] %vm4859_vm0, %v12988_v28  ;;  %4869 = vst.msk [vmem:[%s11388_s4 + $0x48] sm:$0xff] %vm4859_vm0, %v12988_v28  ;;  %v4477_v45 = vmul.f32 %v11431_v26, %v4476_v14 }
 0x4d2   : > { %5515 = vst.msk [vmem:[%s11388_s4 + $0x68] sm:$0xff] %vm4859_vm0, %v4888_v39  ;;  %5516 = vst.msk [vmem:[%s11388_s4 + $0x70] sm:$0xff] %vm4859_vm0, %v4888_v39 }
 0x4d3   : > { %v4461_v35 = vpop.permute.xlu1 %4460  ;;  %v4445_v40 = vpop.permute.xlu0 %4444  ;;  %5519 = vst.msk [vmem:[%s11388_s4 + $0x88] sm:$0xff] %vm4859_vm0, %v4888_v39  ;;  %5520 = vst.msk [vmem:[%s11388_s4 + $0x90] sm:$0xff] %vm4859_vm0, %v4888_v39  ;;  %v4480_v41 = vadd.f32 %v4477_v45, %v11160_v42  ;;  %v4486_v42 = vmul.f32 %v11427_v48, %v4484_v37 }
 0x4d4   : > { %v11333_v25 = vadd.f32 %v4461_v35, %v4309_v63  ;;  %v11335_v21 = vadd.f32 %v4445_v40, %v4291_v30  ;;  %5521 = vst.msk [vmem:[%s11388_s4 + $0x98] sm:$0xff] %vm4859_vm0, %v4888_v39  ;;  %5517 = vst.msk [vmem:[%s11388_s4 + $0x78] sm:$0xff] %vm4859_vm0, %v4888_v39  ;;  %v4485_v63 = vmul.f32 %v11431_v26, %v4484_v37  ;;  %v11465_v30 = vld [vmem:[%s5938_s25 + $0x5a] sm:$0x3]  ;;  %s5820_s25 = smov 31  }
 0x4d5   : > { %5518 = vst.msk [vmem:[%s11388_s4 + $0x80] sm:$0xff] %vm4859_vm0, %v4888_v39  ;;  %v4479_v35 = vmul.f32 %v11465_v30, %v4476_v14  ;;  %v4487_v5 = vmul.f32 %v11465_v30, %v4484_v37  ;;  %v4916_v39 = vstv %s5525_s6  ;;  %s11750_s6 = scalar_lea.hbm %s11804_s3, %s5614_s26 }
 0x4d6   : > { %v4488_v15 = vadd.f32 %v4485_v63, %v11180_v18  ;;  %5526 = vst.msk [vmem:[%s11388_s4 + $0xa0] sm:$0xff] %vm4859_vm0, %v4916_v39  ;;  %5527 = vst.msk [vmem:[%s11388_s4 + $0xa8] sm:$0xff] %vm4859_vm0, %v4916_v39  ;;  %v4944_v63 = vstv %s11468_s8  ;;  %s5821_s8 = smov [#allocation7]  }
 0x4d7   : > { %v4465_v9 = vpop.permute.xlu1 %4464  ;;  %v4463_v23 = vpop.permute.xlu0 %4462  ;;  %5528 = vst.msk [vmem:[%s11388_s4 + $0xb0] sm:$0xff] %vm4859_vm0, %v4916_v39  ;;  %5530 = vst.msk [vmem:[%s11388_s4 + $0xc0] sm:$0xff] %vm4859_vm0, %v4916_v39 }
 0x4d8   : > { %v11338_v32 = vadd.f32 %v4465_v9, %v11138_v38  ;;  %v11341_v62 = vadd.f32 %v4463_v23, %v11140_v54  ;;  %v4492_v23 = vstv %s11420_s5  ;;  %5531 = vst.msk [vmem:[%s11388_s4 + $0xc8] sm:$0xff] %vm4859_vm0, %v4916_v39  ;;  %5533 = vst.msk [vmem:[%s11388_s4 + $0xd8] sm:$0xff] %vm4859_vm0, %v4916_v39 }
 0x4d9   : > { %5534 = vst.msk [vmem:[%s11388_s4 + $0xe0] sm:$0xff] %vm4859_vm0, %v4916_v39  ;;  %5535 = vst.msk [vmem:[%s11388_s4 + $0xe8] sm:$0xff] %vm4859_vm0, %v4916_v39  ;;  %v4493_v37 = vmul.f32 %v11431_v26, %v4492_v23 }
 0x4da   : > { %5529 = vst.msk [vmem:[%s11388_s4 + $0xb8] sm:$0xff] %vm4859_vm0, %v4916_v39  ;;  %5532 = vst.msk [vmem:[%s11388_s4 + $0xd0] sm:$0xff] %vm4859_vm0, %v4916_v39 }
 0x4db   : > { %v11343_v20 = vpop.permute.xlu1 %4549  ;;  %v11345_v58 = vpop.permute.xlu0 %4547  ;;  %5540 = vst.msk [vmem:[%s11388_s4 + $0xf0] sm:$0xff] %vm4859_vm0, %v4944_v63  ;;  %5541 = vst.msk [vmem:[%s11388_s4 + $0xf8] sm:$0xff] %vm4859_vm0, %v4944_v63 }
 0x4dc   : > { %v4557_v40 = vadd.f32 %v11343_v20, %v4481_v46  ;;  %v4556_v9 = vadd.f32 %v11345_v58, %v4480_v41  ;;  %v4482_v20 = vadd.f32 %v4479_v35, %v11182_v22  ;;  %v4494_v58 = vmul.f32 %v11427_v48, %v4492_v23  ;;  %5542 = vst.msk [vmem:[%s11388_s4 + $0x100] sm:$0xff] %vm4859_vm0, %v4944_v63 }
 0x4dd   : > { %v4500_v41 = vstv %s11455_s7  ;;  %v4490_v35 = vadd.f32 %v4487_v5, %v11204_v29  ;;  %5543 = vst.msk [vmem:[%s11388_s4 + $0x108] sm:$0xff] %vm4859_vm0, %v4944_v63  ;;  %5544 = vst.msk [vmem:[%s11388_s4 + $0x110] sm:$0xff] %vm4859_vm0, %v4944_v63  ;;  %s5744_s7 = scalar_lea.vmem %s11752_s29, 10240 }
 0x4de   : > { %5547 = vst.msk [vmem:[%s11388_s4 + $0x128] sm:$0xff] %vm4859_vm0, %v4944_v63  ;;  %5548 = vst.msk [vmem:[%s11388_s4 + $0x130] sm:$0xff] %vm4859_vm0, %v4944_v63  ;;  %v4501_v5 = vmul.f32 %v11431_v26, %v4500_v41  ;;  %p5745_p10 = scmp.ne.s32.totalorder %s11752_s29, %s5744_s7 }
 0x4df   : > { %v11347_v59 = vpop.permute.xlu1 %4567  ;;  %v11349_v49 = vpop.permute.xlu0 %4551  ;;  %5549 = vst.msk [vmem:[%s11388_s4 + $0x138] sm:$0xff] %vm4859_vm0, %v4944_v63  ;;  %5545 = vst.msk [vmem:[%s11388_s4 + $0x118] sm:$0xff] %vm4859_vm0, %v4944_v63 }
 0x4e0   : > { %v4576_v18 = vadd.f32 %v11347_v59, %v4488_v15  ;;  %v4558_v22 = vadd.f32 %v11349_v49, %v4482_v20  ;;  %5546 = vst.msk [vmem:[%s11388_s4 + $0x120] sm:$0xff] %vm4859_vm0, %v4944_v63  ;;  %v4497_v15 = vadd.f32 %v4494_v58, %v11227_v34  ;;  %v4496_v20 = vadd.f32 %v4493_v37, %v11229_v8  ;;  %p5746_p0 = pnand %p5745_p10, %p12989_p12 }
 0x4e1   : > { %v4503_v34 = vmul.f32 %v11465_v30, %v4500_v41  ;;  %v4502_v8 = vmul.f32 %v11427_v48, %v4500_v41  ;;  %v4516_v63 = vstv %s11535_s11 }
 0x4e2   : > { %p5747_p7 = pneg %p5746_p0 }
 0x4e3   : > { %v11351_v17 = vpop.permute.xlu1 %4571  ;;  %v11353_v57 = vpop.permute.xlu0 %4569 }
 0x4e4   : > { %v4578_v29 = vadd.f32 %v11351_v17, %v4490_v35  ;;  %v5000_v35 = vstv %s11539_s17 }
 0x4e5   : > { %5568 = vst.msk [vmem:[%s11388_s4 + $0x190] sm:$0xff] %vm4859_vm0, %v5000_v35  ;;  %5569 = vst.msk [vmem:[%s11388_s4 + $0x198] sm:$0xff] %vm4859_vm0, %v5000_v35 }
 0x4e6   : > { %5570 = vst.msk [vmem:[%s11388_s4 + $0x1a0] sm:$0xff] %vm4859_vm0, %v5000_v35  ;;  %5571 = vst.msk [vmem:[%s11388_s4 + $0x1a8] sm:$0xff] %vm4859_vm0, %v5000_v35 }
 0x4e7   : > { %v11355_v6 = vpop.permute.xlu1 %4589  ;;  %v11357_v38 = vpop.permute.xlu0 %4587  ;;  %5572 = vst.msk [vmem:[%s11388_s4 + $0x1b0] sm:$0xff] %vm4859_vm0, %v5000_v35  ;;  %5575 = vst.msk [vmem:[%s11388_s4 + $0x1c8] sm:$0xff] %vm4859_vm0, %v5000_v35 }
 0x4e8   : > { %5576 = vst.msk [vmem:[%s11388_s4 + $0x1d0] sm:$0xff] %vm4859_vm0, %v5000_v35  ;;  %5577 = vst.msk [vmem:[%s11388_s4 + $0x1d8] sm:$0xff] %vm4859_vm0, %v5000_v35 }
 0x4e9   : > { %5573 = vst.msk [vmem:[%s11388_s4 + $0x1b8] sm:$0xff] %vm4859_vm0, %v5000_v35  ;;  %5574 = vst.msk [vmem:[%s11388_s4 + $0x1c0] sm:$0xff] %vm4859_vm0, %v5000_v35 }
 0x4eb   : > { %v11359_v54 = vpop.permute.xlu1 %4607  ;;  %v11361_v11 = vpop.permute.xlu0 %4591 }
 0x4ef   : > { %v11363_v43 = vpop.permute.xlu1 %4611  ;;  %v11365_v24 = vpop.permute.xlu0 %4609 }
 0x4f3   : > { %v11367_v56 = vpop.permute.xlu1 %4629  ;;  %v11369_v61 = vpop.permute.xlu0 %4627 }
 0x4f7   : > { %v11371_v55 = vpop.permute.xlu1 %4647  ;;  %v11373_v50 = vpop.permute.xlu0 %4631 }
 0x4fb   : > { %v11375_v16 = vpop.permute.xlu1 %4651  ;;  %v11377_v0 = vpop.permute.xlu0 %4649 }
 0x4ff   : > { %v11384_v7 = vpop.permute.xlu1 %4669  ;;  %v11386_v10 = vpop.permute.xlu0 %4667 }
 0x503   : > { %v11422_v51 = vpop.permute.xlu1 %4687  ;;  %v11424_v44 = vpop.permute.xlu0 %4671 }
 0x507   : > { %v11457_v13 = vpop.permute.xlu1 %4691  ;;  %v11459_v4 = vpop.permute.xlu0 %4689 }
 0x50b   : > { %v4710_v28 = vpop.permute.xlu1 %4709  ;;  %v4708_v14 = vpop.permute.xlu0 %4707 }
 0x50c   : > { %v4717_v45 = vadd.f32 %v4710_v28, %v4557_v40  ;;  %v4716_v46 = vadd.f32 %v4708_v14, %v4556_v9  ;;  %v4489_v40 = vadd.f32 %v4486_v42, %v11206_v47  ;;  %v4495_v42 = vmul.f32 %v11465_v30, %v4492_v23 }
 0x50d   : > { %v4508_v23 = vstv %s11504_s10 }
 0x50e   : > { %4875 = vrot.lane.b32.xlu1 %v4717_v45, %s5820_s25  ;;  %4873 = vrot.lane.b32.xlu0 %v4716_v46, %s5820_s25  ;;  %v4577_v47 = vadd.f32 %v11353_v57, %v4489_v40  ;;  %v4597_v57 = vadd.f32 %v11355_v6, %v4497_v15  ;;  %v4596_v46 = vadd.f32 %v11357_v38, %v4496_v20 }
 0x50f   : > { %v4728_v59 = vpop.permute.xlu1 %4727  ;;  %v4504_v38 = vadd.f32 %v4501_v5, %v11249_v33  ;;  %v4498_v58 = vadd.f32 %v4495_v42, %v11251_v60  ;;  %v4510_v41 = vmul.f32 %v11427_v48, %v4508_v23  ;;  %v4506_v40 = vadd.f32 %v4503_v34, %v11269_v3 }
 0x510   : > { %v4712_v49 = vpop.permute.xlu0 %4711  ;;  %v4736_v9 = vadd.f32 %v4728_v59, %v4576_v18  ;;  %v4511_v5 = vmul.f32 %v11465_v30, %v4508_v23 }
 0x511   : > { %v4718_v28 = vadd.f32 %v4712_v49, %v4558_v22  ;;  %v4972_v22 = vstv %s5553_s27  ;;  %v4616_v33 = vadd.f32 %v11359_v54, %v4504_v38  ;;  %v4598_v60 = vadd.f32 %v11361_v11, %v4498_v58 }
 0x512   : > { %4903 = vrot.lane.b32.xlu1 %v4736_v9, %s5820_s25  ;;  %5554 = vst.msk [vmem:[%s11388_s4 + $0x140] sm:$0xff] %vm4859_vm0, %v4972_v22  ;;  %5555 = vst.msk [vmem:[%s11388_s4 + $0x148] sm:$0xff] %vm4859_vm0, %v4972_v22  ;;  %v4509_v49 = vmul.f32 %v11431_v26, %v4508_v23  ;;  %v4505_v9 = vadd.f32 %v4502_v8, %v11271_v12  ;;  %v4618_v3 = vadd.f32 %v11363_v43, %v4506_v40 }
 0x513   : > { %4877 = vrot.lane.b32.xlu0 %v4718_v28, %s5820_s25  ;;  %v4732_v14 = vpop.permute.xlu1 %4731  ;;  %5556 = vst.msk [vmem:[%s11388_s4 + $0x150] sm:$0xff] %vm4859_vm0, %v4972_v22  ;;  %5558 = vst.msk [vmem:[%s11388_s4 + $0x160] sm:$0xff] %vm4859_vm0, %v4972_v22  ;;  %v4514_v34 = vadd.f32 %v4511_v5, %v11310_v27  ;;  %v5056_v58 = vstv %s11612_s9 }
 0x514   : > { %v4730_v39 = vpop.permute.xlu0 %4729  ;;  %v4738_v17 = vadd.f32 %v4732_v14, %v4578_v29  ;;  %5559 = vst.msk [vmem:[%s11388_s4 + $0x168] sm:$0xff] %vm4859_vm0, %v4972_v22  ;;  %5561 = vst.msk [vmem:[%s11388_s4 + $0x178] sm:$0xff] %vm4859_vm0, %v4972_v22  ;;  %v4617_v12 = vadd.f32 %v11365_v24, %v4505_v9  ;;  %v4512_v15 = vadd.f32 %v4509_v49, %v11293_v1 }
 0x515   : > { %v4737_v45 = vadd.f32 %v4730_v39, %v4577_v47  ;;  %5562 = vst.msk [vmem:[%s11388_s4 + $0x180] sm:$0xff] %vm4859_vm0, %v4972_v22  ;;  %5563 = vst.msk [vmem:[%s11388_s4 + $0x188] sm:$0xff] %vm4859_vm0, %v4972_v22  ;;  %v4517_v47 = vmul.f32 %v11431_v26, %v4516_v63  ;;  %v4513_v39 = vadd.f32 %v4510_v41, %v11291_v31 }
 0x516   : > { %4907 = vrot.lane.b32.xlu1 %v4738_v17, %s5820_s25  ;;  %5557 = vst.msk [vmem:[%s11388_s4 + $0x158] sm:$0xff] %vm4859_vm0, %v4972_v22  ;;  %5560 = vst.msk [vmem:[%s11388_s4 + $0x170] sm:$0xff] %vm4859_vm0, %v4972_v22  ;;  %v4636_v17 = vadd.f32 %v11369_v61, %v4512_v15  ;;  %v4519_v31 = vmul.f32 %v11465_v30, %v4516_v63  ;;  %v4518_v1 = vmul.f32 %v11427_v48, %v4516_v63 }
 0x517   : > { %4905 = vrot.lane.b32.xlu0 %v4737_v45, %s5820_s25  ;;  %v4750_v18 = vpop.permute.xlu1 %4749  ;;  %v4637_v24 = vadd.f32 %v11367_v56, %v4513_v39  ;;  %v4524_v45 = vstv %s11577_s19  ;;  %v4520_v61 = vadd.f32 %v4517_v47, %v11308_v2  ;;  %v4638_v27 = vadd.f32 %v11373_v50, %v4514_v34  ;;  %5596 = vst.msk [vmem:[%s11388_s4 + $0x230] sm:$0xff] %vm4859_vm0, %v5056_v58 }
 0x518   : > { %v4748_v6 = vpop.permute.xlu0 %4747  ;;  %v4757_v37 = vadd.f32 %v4750_v18, %v4597_v57  ;;  %v4526_v18 = vmul.f32 %v11427_v48, %v4524_v45  ;;  %v4532_v22 = vstv %s11608_s24  ;;  %v4522_v50 = vadd.f32 %v4519_v31, %v11321_v19  ;;  %5597 = vst.msk [vmem:[%s11388_s4 + $0x238] sm:$0xff] %vm4859_vm0, %v5056_v58  ;;  %5598 = vst.msk [vmem:[%s11388_s4 + $0x240] sm:$0xff] %vm4859_vm0, %v5056_v58 }
 0x519   : > { %v4756_v59 = vadd.f32 %v4748_v6, %v4596_v46  ;;  %v5028_v46 = vstv %s5581_s20  ;;  %v4656_v2 = vadd.f32 %v11371_v55, %v4520_v61  ;;  %v4525_v6 = vmul.f32 %v11431_v26, %v4524_v45  ;;  %5599 = vst.msk [vmem:[%s11388_s4 + $0x248] sm:$0xff] %vm4859_vm0, %v5056_v58  ;;  %5600 = vst.msk [vmem:[%s11388_s4 + $0x250] sm:$0xff] %vm4859_vm0, %v5056_v58 }
 0x51a   : > { %4933 = vrot.lane.b32.xlu1 %v4757_v37, %s5820_s25  ;;  %5582 = vst.msk [vmem:[%s11388_s4 + $0x1e0] sm:$0xff] %vm4859_vm0, %v5028_v46  ;;  %5583 = vst.msk [vmem:[%s11388_s4 + $0x1e8] sm:$0xff] %vm4859_vm0, %v5028_v46  ;;  %v4521_v37 = vadd.f32 %v4518_v1, %v11323_v52  ;;  %v4658_v19 = vadd.f32 %v11375_v16, %v4522_v50  ;;  %v4527_v41 = vmul.f32 %v11465_v30, %v4524_v45 }
 0x51b   : > { %4931 = vrot.lane.b32.xlu0 %v4756_v59, %s5820_s25  ;;  %v4768_v54 = vpop.permute.xlu1 %4767  ;;  %5584 = vst.msk [vmem:[%s11388_s4 + $0x1f0] sm:$0xff] %vm4859_vm0, %v5028_v46  ;;  %5586 = vst.msk [vmem:[%s11388_s4 + $0x200] sm:$0xff] %vm4859_vm0, %v5028_v46  ;;  %v4534_v9 = vmul.f32 %v11427_v48, %v4532_v22 }
 0x51c   : > { %v4752_v11 = vpop.permute.xlu0 %4751  ;;  %v4776_v28 = vadd.f32 %v4768_v54, %v4616_v33  ;;  %5587 = vst.msk [vmem:[%s11388_s4 + $0x208] sm:$0xff] %vm4859_vm0, %v5028_v46  ;;  %5589 = vst.msk [vmem:[%s11388_s4 + $0x218] sm:$0xff] %vm4859_vm0, %v5028_v46  ;;  %v4657_v52 = vadd.f32 %v11377_v0, %v4521_v37  ;;  %v4529_v54 = vadd.f32 %v4526_v18, %v11327_v36 }
 0x51d   : > { %v4758_v29 = vadd.f32 %v4752_v11, %v4598_v60  ;;  %5590 = vst.msk [vmem:[%s11388_s4 + $0x220] sm:$0xff] %vm4859_vm0, %v5028_v46  ;;  %5591 = vst.msk [vmem:[%s11388_s4 + $0x228] sm:$0xff] %vm4859_vm0, %v5028_v46  ;;  %v4533_v60 = vmul.f32 %v11431_v26, %v4532_v22  ;;  %v4528_v11 = vadd.f32 %v4525_v6, %v11329_v53 }
 0x51e   : > { %4959 = vrot.lane.b32.xlu1 %v4776_v28, %s5820_s25  ;;  %5585 = vst.msk [vmem:[%s11388_s4 + $0x1f8] sm:$0xff] %vm4859_vm0, %v5028_v46  ;;  %5588 = vst.msk [vmem:[%s11388_s4 + $0x210] sm:$0xff] %vm4859_vm0, %v5028_v46  ;;  %v4677_v16 = vadd.f32 %v11384_v7, %v4529_v54  ;;  %v4535_v26 = vmul.f32 %v11465_v30, %v4532_v22  ;;  %v4530_v53 = vadd.f32 %v4527_v41, %v11335_v21 }
 0x51f   : > { %4935 = vrot.lane.b32.xlu0 %v4758_v29, %s5820_s25  ;;  %v4772_v42 = vpop.permute.xlu1 %4771  ;;  %5603 = vst.msk [vmem:[%s11388_s4 + $0x268] sm:$0xff] %vm4859_vm0, %v5056_v58  ;;  %5604 = vst.msk [vmem:[%s11388_s4 + $0x270] sm:$0xff] %vm4859_vm0, %v5056_v58  ;;  %v4676_v0 = vadd.f32 %v11386_v10, %v4528_v11  ;;  %v4536_v36 = vadd.f32 %v4533_v60, %v11333_v25  ;;  %v4537_v5 = vadd.f32 %v4534_v9, %v11341_v62 }
 0x520   : > { %v4770_v14 = vpop.permute.xlu0 %4769  ;;  %v4778_v43 = vadd.f32 %v4772_v42, %v4618_v3  ;;  %5605 = vst.msk [vmem:[%s11388_s4 + $0x278] sm:$0xff] %vm4859_vm0, %v5056_v58  ;;  %5601 = vst.msk [vmem:[%s11388_s4 + $0x258] sm:$0xff] %vm4859_vm0, %v5056_v58  ;;  %v4678_v10 = vadd.f32 %v11424_v44, %v4530_v53  ;;  %v4538_v48 = vadd.f32 %v4535_v26, %v11338_v32 }
 0x521   : > { %v4777_v20 = vadd.f32 %v4770_v14, %v4617_v12  ;;  %5602 = vst.msk [vmem:[%s11388_s4 + $0x260] sm:$0xff] %vm4859_vm0, %v5056_v58  ;;  %v4696_v7 = vadd.f32 %v11422_v51, %v4536_v36  ;;  %v4697_v51 = vadd.f32 %v11459_v4, %v4537_v5 }
 0x522   : > { %4963 = vrot.lane.b32.xlu1 %v4778_v43, %s5820_s25  ;;  %v4698_v42 = vadd.f32 %v11457_v13, %v4538_v48 }
 0x523   : > { %4961 = vrot.lane.b32.xlu0 %v4777_v20, %s5820_s25  ;;  %v4790_v57 = vpop.permute.xlu1 %4789 }
 0x524   : > { %v4788_v56 = vpop.permute.xlu0 %4787  ;;  %v4797_v8 = vadd.f32 %v4790_v57, %v4637_v24 }
 0x525   : > { %v4796_v23 = vadd.f32 %v4788_v56, %v4636_v17 }
 0x526   : > { %4989 = vrot.lane.b32.xlu1 %v4797_v8, %s5820_s25 }
 0x527   : > { %4987 = vrot.lane.b32.xlu0 %v4796_v23, %s5820_s25  ;;  %v4808_v38 = vpop.permute.xlu1 %4807 }
 0x528   : > { %v4792_v55 = vpop.permute.xlu0 %4791  ;;  %v4816_v59 = vadd.f32 %v4808_v38, %v4656_v2 }
 0x529   : > { %v4798_v33 = vadd.f32 %v4792_v55, %v4638_v27 }
 0x52a   : > { %5015 = vrot.lane.b32.xlu1 %v4816_v59, %s5820_s25 }
 0x52b   : > { %4991 = vrot.lane.b32.xlu0 %v4798_v33, %s5820_s25  ;;  %v4812_v49 = vpop.permute.xlu1 %4811 }
 0x52c   : > { %v4810_v63 = vpop.permute.xlu0 %4809  ;;  %v4818_v35 = vadd.f32 %v4812_v49, %v4658_v19 }
 0x52d   : > { %v4817_v40 = vadd.f32 %v4810_v63, %v4657_v52 }
 0x52e   : > { %5019 = vrot.lane.b32.xlu1 %v4818_v35, %s5820_s25 }
 0x52f   : > { %5017 = vrot.lane.b32.xlu0 %v4817_v40, %s5820_s25  ;;  %v4830_v28 = vpop.permute.xlu1 %4829 }
 0x530   : > { %v4828_v29 = vpop.permute.xlu0 %4827  ;;  %v4837_v3 = vadd.f32 %v4830_v28, %v4677_v16 }
 0x531   : > { %v4836_v12 = vadd.f32 %v4828_v29, %v4676_v0 }
 0x532   : > { %5045 = vrot.lane.b32.xlu1 %v4837_v3, %s5820_s25 }
 0x533   : > { %5043 = vrot.lane.b32.xlu0 %v4836_v12, %s5820_s25  ;;  %v4848_v47 = vpop.permute.xlu1 %4847 }
 0x534   : > { %v4832_v30 = vpop.permute.xlu0 %4831  ;;  %v4856_v25 = vadd.f32 %v4848_v47, %v4696_v7 }
 0x535   : > { %v4838_v21 = vadd.f32 %v4832_v30, %v4678_v10 }
 0x536   : > { %5071 = vrot.lane.b32.xlu1 %v4856_v25, %s5820_s25 }
 0x537   : > { %5047 = vrot.lane.b32.xlu0 %v4838_v21, %s5820_s25  ;;  %v4852_v44 = vpop.permute.xlu1 %4851 }
 0x538   : > { %v4850_v14 = vpop.permute.xlu0 %4849  ;;  %v4858_v39 = vadd.f32 %v4852_v44, %v4698_v42 }
 0x539   : > { %v4857_v32 = vadd.f32 %v4850_v14, %v4697_v51 }
 0x53a   : > { %5075 = vrot.lane.b32.xlu1 %v4858_v39, %s5820_s25 }
 0x53b   : > { %5073 = vrot.lane.b32.xlu0 %v4857_v32, %s5820_s25  ;;  %s5748_s25 = sshll.u32 %s5821_s8, 4  ;;  %s5749_s25 = int_to_ptr.vmem [resolvable:$false] %s5748_s25 }
 0x53c   : > { %s5750_s10 = scalar_lea.vmem %s5749_s25, 20480  ;;  %p5751_p8 = scmp.lt.s32.totalorder %s11752_s29, %s5749_s25 }
 0x53d   : > { %p5752_p11 = scmp.lt.s32.totalorder %s5750_s10, %s5744_s7 }
 0x53f   : > { %p5753_p13 = por %p5752_p11, %p5751_p8 }
 0x541   : > { %p5754_p1 = pnand %p5753_p13, %p5747_p7 }
 0x580   : > { %v4876_v62 = vpop.permute.xlu1 %4875  ;;  %v4874_v13 = vpop.permute.xlu0 %4873 }
 0x581   : > { %4884 = vst.msk [vmem:[%s11388_s4 + $0x27] sm:$0xff] %vm4882_vm1, %v4876_v62  ;;  %4883 = vst.msk [vmem:[%s11388_s4 + $0x1f] sm:$0xff] %vm4882_vm1, %v4874_v13 }
 0x584   : > { %v4904_v4 = vpop.permute.xlu1 %4903 }
 0x585   : > { %v4878_v15 = vpop.permute.xlu0 %4877  ;;  %5522 = vst.msk [vmem:[%s11388_s4 + $0x6f] sm:$0xff] %vm4882_vm1, %v4904_v4 }
 0x586   : > { %4886 = vst.msk [vmem:[%s11388_s4 + $0x2f] sm:$0x3] %vm4885_vm2, %v4878_v15 }
 0x588   : > { %v4908_v43 = vpop.permute.xlu1 %4907 }
 0x589   : > { %v4906_v20 = vpop.permute.xlu0 %4905  ;;  %5524 = vst.msk [vmem:[%s11388_s4 + $0x7f] sm:$0x3] %vm4885_vm2, %v4908_v43 }
 0x58a   : > { %5523 = vst.msk [vmem:[%s11388_s4 + $0x77] sm:$0xff] %vm4882_vm1, %v4906_v20 }
 0x58c   : > { %v4934_v24 = vpop.permute.xlu1 %4933 }
 0x58d   : > { %v4932_v17 = vpop.permute.xlu0 %4931  ;;  %5537 = vst.msk [vmem:[%s11388_s4 + $0xc7] sm:$0xff] %vm4882_vm1, %v4934_v24 }
 0x58e   : > { %5536 = vst.msk [vmem:[%s11388_s4 + $0xbf] sm:$0xff] %vm4882_vm1, %v4932_v17 }
 0x590   : > { %v4960_v31 = vpop.permute.xlu1 %4959 }
 0x591   : > { %v4936_v1 = vpop.permute.xlu0 %4935  ;;  %5550 = vst.msk [vmem:[%s11388_s4 + $0x10f] sm:$0xff] %vm4882_vm1, %v4960_v31 }
 0x592   : > { %5538 = vst.msk [vmem:[%s11388_s4 + $0xcf] sm:$0x3] %vm4885_vm2, %v4936_v1 }
 0x594   : > { %v4964_v45 = vpop.permute.xlu1 %4963 }
 0x595   : > { %v4962_v57 = vpop.permute.xlu0 %4961  ;;  %5552 = vst.msk [vmem:[%s11388_s4 + $0x11f] sm:$0x3] %vm4885_vm2, %v4964_v45 }
 0x596   : > { %5551 = vst.msk [vmem:[%s11388_s4 + $0x117] sm:$0xff] %vm4882_vm1, %v4962_v57 }
 0x598   : > { %v4990_v56 = vpop.permute.xlu1 %4989 }
 0x599   : > { %v4988_v46 = vpop.permute.xlu0 %4987  ;;  %5565 = vst.msk [vmem:[%s11388_s4 + $0x167] sm:$0xff] %vm4882_vm1, %v4990_v56 }
 0x59a   : > { %5564 = vst.msk [vmem:[%s11388_s4 + $0x15f] sm:$0xff] %vm4882_vm1, %v4988_v46 }
 0x59c   : > { %v5016_v61 = vpop.permute.xlu1 %5015 }
 0x59d   : > { %v4992_v34 = vpop.permute.xlu0 %4991  ;;  %5578 = vst.msk [vmem:[%s11388_s4 + $0x1af] sm:$0xff] %vm4882_vm1, %v5016_v61 }
 0x59e   : > { %5566 = vst.msk [vmem:[%s11388_s4 + $0x16f] sm:$0x3] %vm4885_vm2, %v4992_v34 }
 0x5a0   : > { %v5020_v8 = vpop.permute.xlu1 %5019 }
 0x5a1   : > { %v5018_v23 = vpop.permute.xlu0 %5017  ;;  %5580 = vst.msk [vmem:[%s11388_s4 + $0x1bf] sm:$0x3] %vm4885_vm2, %v5020_v8 }
 0x5a2   : > { %5579 = vst.msk [vmem:[%s11388_s4 + $0x1b7] sm:$0xff] %vm4882_vm1, %v5018_v23 }
 0x5a4   : > { %v5046_v2 = vpop.permute.xlu1 %5045 }
 0x5a5   : > { %v5044_v27 = vpop.permute.xlu0 %5043  ;;  %5593 = vst.msk [vmem:[%s11388_s4 + $0x207] sm:$0xff] %vm4882_vm1, %v5046_v2 }
 0x5a6   : > { %5592 = vst.msk [vmem:[%s11388_s4 + $0x1ff] sm:$0xff] %vm4882_vm1, %v5044_v27 }
 0x5a8   : > { %v5072_v18 = vpop.permute.xlu1 %5071 }
 0x5a9   : > { %v5048_v6 = vpop.permute.xlu0 %5047  ;;  %5606 = vst.msk [vmem:[%s11388_s4 + $0x24f] sm:$0xff] %vm4882_vm1, %v5072_v18 }
 0x5aa   : > { %5594 = vst.msk [vmem:[%s11388_s4 + $0x20f] sm:$0x3] %vm4885_vm2, %v5048_v6 }
 0x5ac   : > { %v5076_v22 = vpop.permute.xlu1 %5075 }
 0x5ad   : > { %v5074_v38 = vpop.permute.xlu0 %5073  ;;  %5608 = vst.msk [vmem:[%s11388_s4 + $0x25f] sm:$0x3] %vm4885_vm2, %v5076_v22 }
 0x5ae   : > { %5607 = vst.msk [vmem:[%s11388_s4 + $0x257] sm:$0xff] %vm4882_vm1, %v5074_v38 }
 0x5af   : > { %5757 = shalt.err (!%p5754_p1)
}
 0x5b0   : > { %s5758_s28 = scalar_lea.hbm %s11750_s6, 10240  ;;  %s5762_s11 = scalar_lea.hbm %s11804_s3, 20480 }
 0x5b1   : > { %p5759_p2 = scmp.ne.s32.totalorder %s11750_s6, %s5758_s28  ;;  %p5763_p9 = scmp.lt.u32.totalorder %s11750_s6, %s11804_s3 }
 0x5b2   : > { %p5764_p5 = scmp.lt.u32.totalorder %s5762_s11, %s5758_s28  ;;  %p5766_p10 = scmp.lt.u32.totalorder %s5758_s28, %s11750_s6 }
 0x5b3   : > { %p5760_p3 = pnand %p5759_p2, %p12989_p12 }
 0x5b4   : > { %p5765_p6 = por %p5764_p5, %p5763_p9 }
 0x5b5   : > { %p5761_p4 = pneg %p5760_p3 }
 0x5b6   : > { %p5767_p0 = por %p5766_p10, %p5765_p6 }
 0x5b8   : > { %p5768_p7 = pnand %p5767_p0, %p5761_p4 }
 0x5ba   : > { %5771 = shalt.err (!%p5768_p7)
}
 0x5bb   : > { %s5822_s20 = smov 128   ;;  %s5823_s24 = smov 8  }
 0x5bc   : > { %5623 = dma.vmem_to_hbm [thread:$0]  (%p12989_p12), %s11752_s29, 10240, %s11750_s6, %s11760_s16, %s5822_s20, %s5822_s20, %s5823_s24  }
 0x5bd PF: > { %p5640_p8 = scmp.ge.s32.totalorder %s5814_s15, 2  ;;  %s5112_s9 = sand.u32 1, %s5802_s12  }
 0x5be   : > { %p12990_p11 = scmp.ne.s32.totalorder %s11813_s23, 0  ;;  %s5113_s26 = scalar_lea.sflag [#allocation3], %s5112_s9 }
 0x5c0   : > { %p5633_p13 = pnand %p5640_p8, %p12990_p11 }
 0x5c2   : > { %5797 = dma.done.wait (!%p5633_p13), %s5113_s26, 10240  }
 0x5c3   : > { %5799 = vsyncadd (!%p5633_p13), %s5113_s26, 4294957056  ;;  %p15_p1 = scmp.ge.s32.totalorder %s5869_s18, 4   ;;  %s12991_s12 = smov %s5806_s13 }
 0x5c4   : > { %s12992_s13 = smov %s5810_s14  ;;  %s12993_s14 = smov %s5880_s21 }
 0x5c5   : > { %s12994_s15 = smov %s5869_s18  ;;  %17 = sbr.rel (!%p15_p1) target bundleno = 5 (0x5), region = 86 }
 0x5cc   :  { %5118 = vsyncpa [#allocation3], 1 }
 0x5cd   :  { %5120 = vsyncpa [#allocation3 + $0x1], 1 }
 0x5ce   :  { %5121 = vsyncpa [#allocation4], 1 }
 0x5cf   :  { %5123 = vsyncpa [#allocation4 + $0x1], 1 }
 0x5d0   :  { %5124 = vsyncpa [#allocation6], 1 }

</bundles_post_ra>
